<compile_context>
chip_gen: v6e
topology: v6e:2x2x1
jax: 0.10.0
libtpu: 0.0.40
codegen_flags: <defaults>
</compile_context>

<pallas_src>
import functools

import jax
import jax.numpy as jnp
from jax import lax
from jax.experimental import pallas as pl
from jax.experimental.pallas import tpu as pltpu

# ---------------- configuration (small, consistent with the module) -----------------
N_NODES = 128
IN_CHANNELS = 32
HIDDEN_CHANNELS = 32
OUT_CHANNELS = 16          # convs[-1] params exist per __init__ but are unused (see note)
NUM_LAYERS = 3             # fused kernel below is specialized for 3 layers
BATCH = 2                  # number of graphs processed per call (parallel grid axis)
THRESHOLD = 0.1
COS_EPS = 1e-8
LN_EPS = 1e-5


# ------------------------------- fused Pallas kernel --------------------------------
def _egcnguard_fused_kernel(x_ref, mask_ref, w0_ref, w1_ref, vec_ref, out_ref, *, threshold):
    """Whole EGCNGuard forward for one graph (one grid step).

    x_ref   : (N, IN)      node features
    mask_ref: (N, N)       0/1 structure of the input adjacency (bfloat16, empty diagonal)
    w0_ref  : (IN, HID)    convs[0] weight
    w1_ref  : (HID, HID)   convs[1] weight (also reused for the final conv per the quirk)
    vec_ref : (8, HID)     rows = [b0, ln1_g, ln1_b, b1, ln2_g, ln2_b, 0, 0]
    out_ref : (N, HID)     log_softmax output
    """
    n = x_ref.shape[0]
    x0 = x_ref[...].astype(jnp.float32)
    struct = mask_ref[...] != 0                   # (N, N) bool structure of current adjacency

    vecs = vec_ref[...]                           # (8, HID)
    b0, g1, beta1 = vecs[0:1, :], vecs[1:2, :], vecs[2:3, :]
    b1, g2, beta2 = vecs[3:4, :], vecs[4:5, :], vecs[5:6, :]

    # Single lane-layout ones vector (1 vreg), reused by all three att calls for the
    # MXU-based degree relayout.
    ones_row = jnp.ones((1, n), jnp.float32)

    def att(h, struct):
        """Dense att_coef: cosine pruning + D^-1/2 S D^-1/2 + self-loops + exp."""
        # eye from (N,1)/(1,N) iotas -> only the bool mask is full-size.
        eye = (lax.broadcasted_iota(jnp.int32, (n, 1), 0)
               == lax.broadcasted_iota(jnp.int32, (1, n), 1))

        # Cosine normalization via rsqrt + multiply; clamp == 1/max(sqrt(sumsq), eps).
        sumsq = jnp.sum(h * h, axis=-1, keepdims=True)
        inv_norm = jnp.minimum(lax.rsqrt(sumsq), 1.0 / COS_EPS)
        hn = h * inv_norm
        # Cosine sims kept in f32 on the MXU for exact pruning-mask parity.
        s = lax.dot_general(hn, hn, (((1,), (1,)), ((), ())),
                            preferred_element_type=jnp.float32)      # (N, N)

        keep = struct & ((s >= threshold) | eye)                     # kept edges (+ self-loops)
        sims = jnp.where(keep & jnp.logical_not(eye), s, 0.0)        # self-loop sims zeroed

        # deg = scatter_add(sims, row) -> row sums; deg^-0.5 with inf -> 0
        deg = jnp.sum(sims, axis=1, keepdims=True)                   # (N, 1)
        dis_row = jnp.where(deg > 0.0, lax.rsqrt(deg), 0.0)          # dis[row]
        # Same row-degree vector laid out along lanes (dis[col]) via one small MXU matmul
        # (contract sims' last axis with ones) -- no (N,N) transpose, no symmetry assumption.
        deg_col = lax.dot_general(ones_row, sims, (((1,), (1,)), ((), ())),
                                  preferred_element_type=jnp.float32)   # (1, N)
        dis_col = jnp.where(deg_col > 0.0, lax.rsqrt(deg_col), 0.0)  # dis[col]

        w = dis_row * sims * dis_col                                 # D^-1/2 S D^-1/2 on edges

        # deg_new = scatter_add(1, col) + 1 ; new self-loop value = 1/deg_new
        deg_new = jnp.sum(keep.astype(jnp.float32), axis=0, keepdims=True) + 1.0   # (1, N)
        dinv_new = pl.reciprocal(deg_new, approx=True)               # EUP, off VPU path
        exp_diag = jnp.exp(dinv_new)                                 # (1, N)

        # Folded select chain: exp(w) computed unconditionally (EUP has slack), masked-out
        # entries discarded identically, diagonal overridden with exp(1/deg_new).
        a = jnp.where(eye, jnp.broadcast_to(exp_diag, (n, n)),
                      jnp.where(keep, jnp.exp(w), 0.0))
        return a, keep | eye                                         # mask = next layer struct

    def gcn(a, h, w, b):
        # bf16 operands (f32 accumulate) to avoid f32 MXU emulation passes.
        hw = jnp.dot(h.astype(jnp.bfloat16), w.astype(jnp.bfloat16),
                     preferred_element_type=jnp.float32)
        return jnp.dot(a.astype(jnp.bfloat16), hw.astype(jnp.bfloat16),
                       preferred_element_type=jnp.float32) + b

    def ln_relu(h, g, beta):
        mu = jnp.mean(h, axis=-1, keepdims=True)
        var = jnp.mean((h - mu) * (h - mu), axis=-1, keepdims=True)
        hn_ = (h - mu) * lax.rsqrt(var + LN_EPS)
        return jnp.maximum(hn_ * g + beta, 0.0)

    # ---- loop layer 0: att + conv0 + ln1 + relu (dropout = identity in eval mode) ----
    a, struct = att(x0, struct)
    h = ln_relu(gcn(a, x0, w0_ref[...], b0), g1, beta1)
    # ---- loop layer 1: att + conv1 + ln2 + relu ----
    a, struct = att(h, struct)
    h = ln_relu(gcn(a, h, w1_ref[...], b1), g2, beta2)
    # ---- final: reference reuses convs[-2] (loop-variable quirk) + log_softmax ----
    a, _ = att(h, struct)
    z = gcn(a, h, w1_ref[...], b1)
    zc = z - jnp.max(z, axis=-1, keepdims=True)
    out_ref[...] = zc - jnp.log(jnp.sum(jnp.exp(zc), axis=-1, keepdims=True))


# ------------------------------- wrapper --------------------------------------------
def egcnguard_forward(x, adj_mask, params):
    """Batched EGCNGuard forward.  x: (B,N,F) f32, adj_mask: (B,N,N) bf16 0/1 structure."""
    assert NUM_LAYERS == 3, "fused kernel is specialized for num_layers == 3"
    b, n, f_in = x.shape
    conv_w, conv_b = params["conv_w"], params["conv_b"]
    ln_g, ln_b = params["ln_g"], params["ln_b"]
    hid = conv_w[0].shape[1]

    # Stack all per-layer (1, hid) vectors into one small input (fewer DMA descriptors).
    vecs = jnp.concatenate(
        [conv_b[0], ln_g[1], ln_b[1], conv_b[1], ln_g[2], ln_b[2]], axis=0)   # (6, hid)
    vecs = jnp.pad(vecs, ((0, 8 - vecs.shape[0]), (0, 0)))                    # (8, hid)

    flops_per_graph = (2 * n * n * f_in + 2 * (2 * n * n * hid)    # 3 cosine-sim matmuls
                       + 3 * 2 * n * n                             # 3 degree-relayout matmuls
                       + 2 * n * f_in * hid + 2 * (2 * n * hid * hid)   # X @ W
                       + 3 * 2 * n * n * hid)                      # A @ (X W)
    transcendentals = b * (3 * (n * n + 3 * n) + n * hid + n)
    bytes_accessed = (b * (4 * x[0].size + 2 * adj_mask[0].size + 4 * n * hid)
                      + 4 * (conv_w[0].size + conv_w[1].size + vecs.size))

    return pl.pallas_call(
        functools.partial(_egcnguard_fused_kernel, threshold=THRESHOLD),
        out_shape=jax.ShapeDtypeStruct((b, n, hid), jnp.float32),
        grid=(b,),
        in_specs=[
            pl.BlockSpec((None, n, f_in), lambda i: (i, 0, 0)),
            pl.BlockSpec((None, n, n), lambda i: (i, 0, 0)),
            pl.BlockSpec((f_in, hid), lambda i: (0, 0)),
            pl.BlockSpec((hid, hid), lambda i: (0, 0)),
            pl.BlockSpec((8, hid), lambda i: (0, 0)),
        ],
        out_specs=pl.BlockSpec((None, n, hid), lambda i: (i, 0, 0)),
        compiler_params=pltpu.CompilerParams(dimension_semantics=("parallel",)),
        cost_estimate=pl.CostEstimate(flops=b * flops_per_graph,
                                      transcendentals=transcendentals,
                                      bytes_accessed=bytes_accessed),
    )(x, adj_mask, conv_w[0], conv_w[1], vecs)


def init_params(key):
    """Deterministic parameter init mirroring EGCNGuard.__init__ shapes."""
    dims = [IN_CHANNELS] + [HIDDEN_CHANNELS] * (NUM_LAYERS - 1) + [OUT_CHANNELS]
    conv_w, conv_b = [], []
    for li in range(NUM_LAYERS):
        key, kw, kb = jax.random.split(key, 3)
        fin, fout = dims[li], dims[li + 1]
        stdv = 1.0 / jnp.sqrt(jnp.float32(fout))
        conv_w.append(jax.random.uniform(kw, (fin, fout), jnp.float32, -stdv, stdv))
        conv_b.append(jax.random.uniform(kb, (1, fout), jnp.float32, -stdv, stdv))
    # lns: [LN(in)] + [LN(hidden)] * (num_layers - 1)
    ln_dims = [IN_CHANNELS] + [HIDDEN_CHANNELS] * (NUM_LAYERS - 1)
    ln_g = [jnp.ones((1, d), jnp.float32) for d in ln_dims]
    ln_b = [jnp.zeros((1, d), jnp.float32) for d in ln_dims]
    return {"conv_w": conv_w, "conv_b": conv_b, "ln_g": ln_g, "ln_b": ln_b}


# ------------------------------- main -------------------------------------------------
if __name__ == "__main__":
    key = jax.random.PRNGKey(0)
    k_x, k_a, k_p = jax.random.split(key, 3)

    x = jax.random.normal(k_x, (BATCH, N_NODES, IN_CHANNELS), jnp.float32)

    # random symmetric adjacency structures, empty diagonal, packed as bf16 0/1
    a = jax.random.bernoulli(k_a, 0.05, (BATCH, N_NODES, N_NODES))
    a = jnp.logical_or(a, jnp.swapaxes(a, -1, -2))
    a = jnp.logical_and(a, jnp.logical_not(jnp.eye(N_NODES, dtype=bool)[None]))
    adj_mask = a.astype(jnp.bfloat16)

    params = init_params(k_p)

    out = egcnguard_forward(x, adj_mask, params)
    out = jax.block_until_ready(out)
    assert out.shape == (BATCH, N_NODES, HIDDEN_CHANNELS)
    assert bool(jnp.all(jnp.isfinite(out)))
    print("KERNEL_OK")
</pallas_src>

<mosaic_0001>
module attributes {stable_mosaic.version = 11 : i64} {
  func.func @_egcnguard_fused_kernel(%arg0: i32, %arg1: memref<1x128x32xf32, #tpu.memory_space<vmem>>, %arg2: memref<1x128x128xbf16, #tpu.memory_space<vmem>>, %arg3: memref<32x32xf32, #tpu.memory_space<vmem>>, %arg4: memref<32x32xf32, #tpu.memory_space<vmem>>, %arg5: memref<8x32xf32, #tpu.memory_space<vmem>>, %arg6: memref<1x128x32xf32, #tpu.memory_space<vmem>>) attributes {dimension_semantics = [#tpu.dimension_semantics<parallel>], iteration_bounds = array<i64: 2>, scalar_prefetch = 0 : i64, scratch_operands = 0 : i64, tpu.core_type = #tpu.core_type<tc>, window_params = [{transform_indices = @transform_0, window_bounds = array<i64: 1, 128, 32>}, {transform_indices = @transform_1, window_bounds = array<i64: 1, 128, 128>}, {pipeline_mode = #tpu.pipeline_mode<synchronous>, transform_indices = @transform_2, window_bounds = array<i64: 32, 32>}, {pipeline_mode = #tpu.pipeline_mode<synchronous>, transform_indices = @transform_3, window_bounds = array<i64: 32, 32>}, {pipeline_mode = #tpu.pipeline_mode<synchronous>, transform_indices = @transform_4, window_bounds = array<i64: 8, 32>}, {transform_indices = @transform_5, window_bounds = array<i64: 1, 128, 32>}]} {
    %c0 = arith.constant 0 : index
    %c0_0 = arith.constant 0 : index
    %c0_1 = arith.constant 0 : index
    %0 = vector.load %arg1[%c0, %c0_0, %c0_1] : memref<1x128x32xf32, #tpu.memory_space<vmem>>, vector<1x128x32xf32>
    %1 = vector.shape_cast %0 : vector<1x128x32xf32> to vector<128x32xf32>
    %c0_2 = arith.constant 0 : index
    %c0_3 = arith.constant 0 : index
    %c0_4 = arith.constant 0 : index
    %2 = vector.load %arg2[%c0_2, %c0_3, %c0_4] : memref<1x128x128xbf16, #tpu.memory_space<vmem>>, vector<1x128x128xbf16>
    %3 = vector.shape_cast %2 : vector<1x128x128xbf16> to vector<128x128xbf16>
    %cst = arith.constant 0.000000e+00 : bf16
    %4 = vector.broadcast %cst : bf16 to vector<128x128xbf16>
    %5 = arith.cmpf one, %3, %4 : vector<128x128xbf16>
    %c0_5 = arith.constant 0 : index
    %c0_6 = arith.constant 0 : index
    %6 = vector.load %arg5[%c0_5, %c0_6] : memref<8x32xf32, #tpu.memory_space<vmem>>, vector<8x32xf32>
    %7 = vector.extract_strided_slice %6 {offsets = [0, 0], sizes = [1, 32], strides = [1, 1]} : vector<8x32xf32> to vector<1x32xf32>
    %8 = vector.extract_strided_slice %6 {offsets = [1, 0], sizes = [1, 32], strides = [1, 1]} : vector<8x32xf32> to vector<1x32xf32>
    %9 = vector.extract_strided_slice %6 {offsets = [2, 0], sizes = [1, 32], strides = [1, 1]} : vector<8x32xf32> to vector<1x32xf32>
    %10 = vector.extract_strided_slice %6 {offsets = [3, 0], sizes = [1, 32], strides = [1, 1]} : vector<8x32xf32> to vector<1x32xf32>
    %11 = vector.extract_strided_slice %6 {offsets = [4, 0], sizes = [1, 32], strides = [1, 1]} : vector<8x32xf32> to vector<1x32xf32>
    %12 = vector.extract_strided_slice %6 {offsets = [5, 0], sizes = [1, 32], strides = [1, 1]} : vector<8x32xf32> to vector<1x32xf32>
    %cst_7 = arith.constant 1.000000e+00 : f32
    %13 = vector.broadcast %cst_7 : f32 to vector<1x128xf32>
    %14 = tpu.iota {dimensions = array<i32: 0>} : vector<128x1xi32>
    %15 = tpu.iota {dimensions = array<i32: 1>} : vector<1x128xi32>
    %16 = vector.broadcast %14 : vector<128x1xi32> to vector<128x128xi32>
    %17 = vector.broadcast %15 : vector<1x128xi32> to vector<128x128xi32>
    %18 = arith.cmpi eq, %16, %17 : vector<128x128xi32>
    %19 = arith.mulf %1, %1 : vector<128x32xf32>
    %cst_8 = arith.constant dense<0.000000e+00> : vector<128xf32>
    %20 = vector.multi_reduction <add>, %19, %cst_8 [1] : vector<128x32xf32> to vector<128xf32>
    %21 = vector.shape_cast %20 : vector<128xf32> to vector<128x1xf32>
    %22 = math.rsqrt %21 : vector<128x1xf32>
    %cst_9 = arith.constant 1.000000e+08 : f32
    %23 = vector.broadcast %cst_9 : f32 to vector<128x1xf32>
    %24 = arith.minimumf %22, %23 : vector<128x1xf32>
    %25 = vector.broadcast %24 : vector<128x1xf32> to vector<128x32xf32>
    %26 = arith.mulf %1, %25 : vector<128x32xf32>
    %cst_10 = arith.constant dense<0.000000e+00> : vector<128x128xf32>
    %27 = tpu.matmul %26, %26, %cst_10 {dimension_numbers = #tpu.dot_dimension_numbers<[1], [1], [0], [0], [0, 0, 1, 0], [], []>} : vector<128x32xf32>, vector<128x32xf32>, vector<128x128xf32> -> vector<128x128xf32>
    %cst_11 = arith.constant 1.000000e-01 : f32
    %28 = vector.broadcast %cst_11 : f32 to vector<128x128xf32>
    %29 = arith.cmpf oge, %27, %28 : vector<128x128xf32>
    %30 = arith.ori %29, %18 : vector<128x128xi1>
    %31 = arith.andi %5, %30 : vector<128x128xi1>
    %cst_12 = arith.constant dense<true> : vector<128x128xi1>
    %32 = arith.xori %18, %cst_12 : vector<128x128xi1>
    %33 = arith.andi %31, %32 : vector<128x128xi1>
    %cst_13 = arith.constant 0.000000e+00 : f32
    %34 = vector.broadcast %cst_13 : f32 to vector<128x128xf32>
    %35 = arith.select %33, %27, %34 : vector<128x128xi1>, vector<128x128xf32>
    %cst_14 = arith.constant dense<0.000000e+00> : vector<128xf32>
    %36 = vector.multi_reduction <add>, %35, %cst_14 [1] : vector<128x128xf32> to vector<128xf32>
    %37 = vector.shape_cast %36 : vector<128xf32> to vector<128x1xf32>
    %cst_15 = arith.constant 0.000000e+00 : f32
    %38 = vector.broadcast %cst_15 : f32 to vector<128x1xf32>
    %39 = arith.cmpf ogt, %37, %38 : vector<128x1xf32>
    %40 = math.rsqrt %37 : vector<128x1xf32>
    %cst_16 = arith.constant 0.000000e+00 : f32
    %41 = vector.broadcast %cst_16 : f32 to vector<128x1xf32>
    %42 = arith.select %39, %40, %41 : vector<128x1xi1>, vector<128x1xf32>
    %cst_17 = arith.constant dense<0.000000e+00> : vector<1x128xf32>
    %43 = tpu.matmul %13, %35, %cst_17 {dimension_numbers = #tpu.dot_dimension_numbers<[1], [1], [0], [0], [0, 0, 1, 0], [], []>} : vector<1x128xf32>, vector<128x128xf32>, vector<1x128xf32> -> vector<1x128xf32>
    %cst_18 = arith.constant 0.000000e+00 : f32
    %44 = vector.broadcast %cst_18 : f32 to vector<1x128xf32>
    %45 = arith.cmpf ogt, %43, %44 : vector<1x128xf32>
    %46 = math.rsqrt %43 : vector<1x128xf32>
    %cst_19 = arith.constant 0.000000e+00 : f32
    %47 = vector.broadcast %cst_19 : f32 to vector<1x128xf32>
    %48 = arith.select %45, %46, %47 : vector<1x128xi1>, vector<1x128xf32>
    %49 = vector.broadcast %42 : vector<128x1xf32> to vector<128x128xf32>
    %50 = arith.mulf %49, %35 : vector<128x128xf32>
    %51 = vector.broadcast %48 : vector<1x128xf32> to vector<128x128xf32>
    %52 = arith.mulf %50, %51 : vector<128x128xf32>
    %53 = arith.extui %31 : vector<128x128xi1> to vector<128x128xi32>
    %54 = arith.sitofp %53 : vector<128x128xi32> to vector<128x128xf32>
    %cst_20 = arith.constant dense<0.000000e+00> : vector<128xf32>
    %55 = vector.multi_reduction <add>, %54, %cst_20 [0] : vector<128x128xf32> to vector<128xf32>
    %56 = vector.shape_cast %55 : vector<128xf32> to vector<1x128xf32>
    %cst_21 = arith.constant 1.000000e+00 : f32
    %57 = vector.broadcast %cst_21 : f32 to vector<1x128xf32>
    %58 = arith.addf %56, %57 : vector<1x128xf32>
    %59 = tpu.reciprocal %58 {approx = true} : vector<1x128xf32> -> vector<1x128xf32>
    %60 = math.exp %59 : vector<1x128xf32>
    %61 = vector.shape_cast %60 : vector<1x128xf32> to vector<1x128xf32>
    %62 = vector.broadcast %61 : vector<1x128xf32> to vector<128x128xf32>
    %63 = math.exp %52 : vector<128x128xf32>
    %cst_22 = arith.constant 0.000000e+00 : f32
    %64 = vector.broadcast %cst_22 : f32 to vector<128x128xf32>
    %65 = arith.select %31, %63, %64 : vector<128x128xi1>, vector<128x128xf32>
    %66 = arith.select %18, %62, %65 : vector<128x128xi1>, vector<128x128xf32>
    %67 = arith.ori %31, %18 : vector<128x128xi1>
    %c0_23 = arith.constant 0 : index
    %c0_24 = arith.constant 0 : index
    %68 = vector.load %arg3[%c0_23, %c0_24] : memref<32x32xf32, #tpu.memory_space<vmem>>, vector<32x32xf32>
    %69 = arith.truncf %1 : vector<128x32xf32> to vector<128x32xbf16>
    %70 = arith.truncf %68 : vector<32x32xf32> to vector<32x32xbf16>
    %cst_25 = arith.constant dense<0.000000e+00> : vector<128x32xf32>
    %71 = tpu.matmul %69, %70, %cst_25 {dimension_numbers = #tpu.dot_dimension_numbers<[1], [0], [0], [1], [0, 0, 1, 1], [], []>} : vector<128x32xbf16>, vector<32x32xbf16>, vector<128x32xf32> -> vector<128x32xf32>
    %72 = arith.truncf %66 : vector<128x128xf32> to vector<128x128xbf16>
    %73 = arith.truncf %71 : vector<128x32xf32> to vector<128x32xbf16>
    %cst_26 = arith.constant dense<0.000000e+00> : vector<128x32xf32>
    %74 = tpu.matmul %72, %73, %cst_26 {dimension_numbers = #tpu.dot_dimension_numbers<[1], [0], [0], [1], [0, 0, 1, 1], [], []>} : vector<128x128xbf16>, vector<128x32xbf16>, vector<128x32xf32> -> vector<128x32xf32>
    %75 = vector.broadcast %7 : vector<1x32xf32> to vector<128x32xf32>
    %76 = arith.addf %74, %75 : vector<128x32xf32>
    %cst_27 = arith.constant dense<0.000000e+00> : vector<128xf32>
    %77 = vector.multi_reduction <add>, %76, %cst_27 [1] : vector<128x32xf32> to vector<128xf32>
    %78 = vector.shape_cast %77 : vector<128xf32> to vector<128x1xf32>
    %cst_28 = arith.constant 3.200000e+01 : f32
    %79 = vector.broadcast %cst_28 : f32 to vector<128x1xf32>
    %80 = arith.divf %78, %79 : vector<128x1xf32>
    %81 = vector.broadcast %80 : vector<128x1xf32> to vector<128x32xf32>
    %82 = arith.subf %76, %81 : vector<128x32xf32>
    %83 = vector.broadcast %80 : vector<128x1xf32> to vector<128x32xf32>
    %84 = arith.subf %76, %83 : vector<128x32xf32>
    %85 = arith.mulf %82, %84 : vector<128x32xf32>
    %cst_29 = arith.constant dense<0.000000e+00> : vector<128xf32>
    %86 = vector.multi_reduction <add>, %85, %cst_29 [1] : vector<128x32xf32> to vector<128xf32>
    %87 = vector.shape_cast %86 : vector<128xf32> to vector<128x1xf32>
    %cst_30 = arith.constant 3.200000e+01 : f32
    %88 = vector.broadcast %cst_30 : f32 to vector<128x1xf32>
    %89 = arith.divf %87, %88 : vector<128x1xf32>
    %90 = vector.broadcast %80 : vector<128x1xf32> to vector<128x32xf32>
    %91 = arith.subf %76, %90 : vector<128x32xf32>
    %cst_31 = arith.constant 9.99999974E-6 : f32
    %92 = vector.broadcast %cst_31 : f32 to vector<128x1xf32>
    %93 = arith.addf %89, %92 : vector<128x1xf32>
    %94 = math.rsqrt %93 : vector<128x1xf32>
    %95 = vector.broadcast %94 : vector<128x1xf32> to vector<128x32xf32>
    %96 = arith.mulf %91, %95 : vector<128x32xf32>
    %97 = vector.broadcast %8 : vector<1x32xf32> to vector<128x32xf32>
    %98 = arith.mulf %96, %97 : vector<128x32xf32>
    %99 = vector.broadcast %9 : vector<1x32xf32> to vector<128x32xf32>
    %100 = arith.addf %98, %99 : vector<128x32xf32>
    %cst_32 = arith.constant 0.000000e+00 : f32
    %101 = vector.broadcast %cst_32 : f32 to vector<128x32xf32>
    %102 = arith.maximumf %100, %101 : vector<128x32xf32>
    %103 = tpu.iota {dimensions = array<i32: 0>} : vector<128x1xi32>
    %104 = tpu.iota {dimensions = array<i32: 1>} : vector<1x128xi32>
    %105 = vector.broadcast %103 : vector<128x1xi32> to vector<128x128xi32>
    %106 = vector.broadcast %104 : vector<1x128xi32> to vector<128x128xi32>
    %107 = arith.cmpi eq, %105, %106 : vector<128x128xi32>
    %108 = arith.mulf %102, %102 : vector<128x32xf32>
    %cst_33 = arith.constant dense<0.000000e+00> : vector<128xf32>
    %109 = vector.multi_reduction <add>, %108, %cst_33 [1] : vector<128x32xf32> to vector<128xf32>
    %110 = vector.shape_cast %109 : vector<128xf32> to vector<128x1xf32>
    %111 = math.rsqrt %110 : vector<128x1xf32>
    %cst_34 = arith.constant 1.000000e+08 : f32
    %112 = vector.broadcast %cst_34 : f32 to vector<128x1xf32>
    %113 = arith.minimumf %111, %112 : vector<128x1xf32>
    %114 = vector.broadcast %113 : vector<128x1xf32> to vector<128x32xf32>
    %115 = arith.mulf %102, %114 : vector<128x32xf32>
    %cst_35 = arith.constant dense<0.000000e+00> : vector<128x128xf32>
    %116 = tpu.matmul %115, %115, %cst_35 {dimension_numbers = #tpu.dot_dimension_numbers<[1], [1], [0], [0], [0, 0, 1, 0], [], []>} : vector<128x32xf32>, vector<128x32xf32>, vector<128x128xf32> -> vector<128x128xf32>
    %cst_36 = arith.constant 1.000000e-01 : f32
    %117 = vector.broadcast %cst_36 : f32 to vector<128x128xf32>
    %118 = arith.cmpf oge, %116, %117 : vector<128x128xf32>
    %119 = arith.ori %118, %107 : vector<128x128xi1>
    %120 = arith.andi %67, %119 : vector<128x128xi1>
    %cst_37 = arith.constant dense<true> : vector<128x128xi1>
    %121 = arith.xori %107, %cst_37 : vector<128x128xi1>
    %122 = arith.andi %120, %121 : vector<128x128xi1>
    %cst_38 = arith.constant 0.000000e+00 : f32
    %123 = vector.broadcast %cst_38 : f32 to vector<128x128xf32>
    %124 = arith.select %122, %116, %123 : vector<128x128xi1>, vector<128x128xf32>
    %cst_39 = arith.constant dense<0.000000e+00> : vector<128xf32>
    %125 = vector.multi_reduction <add>, %124, %cst_39 [1] : vector<128x128xf32> to vector<128xf32>
    %126 = vector.shape_cast %125 : vector<128xf32> to vector<128x1xf32>
    %cst_40 = arith.constant 0.000000e+00 : f32
    %127 = vector.broadcast %cst_40 : f32 to vector<128x1xf32>
    %128 = arith.cmpf ogt, %126, %127 : vector<128x1xf32>
    %129 = math.rsqrt %126 : vector<128x1xf32>
    %cst_41 = arith.constant 0.000000e+00 : f32
    %130 = vector.broadcast %cst_41 : f32 to vector<128x1xf32>
    %131 = arith.select %128, %129, %130 : vector<128x1xi1>, vector<128x1xf32>
    %cst_42 = arith.constant dense<0.000000e+00> : vector<1x128xf32>
    %132 = tpu.matmul %13, %124, %cst_42 {dimension_numbers = #tpu.dot_dimension_numbers<[1], [1], [0], [0], [0, 0, 1, 0], [], []>} : vector<1x128xf32>, vector<128x128xf32>, vector<1x128xf32> -> vector<1x128xf32>
    %cst_43 = arith.constant 0.000000e+00 : f32
    %133 = vector.broadcast %cst_43 : f32 to vector<1x128xf32>
    %134 = arith.cmpf ogt, %132, %133 : vector<1x128xf32>
    %135 = math.rsqrt %132 : vector<1x128xf32>
    %cst_44 = arith.constant 0.000000e+00 : f32
    %136 = vector.broadcast %cst_44 : f32 to vector<1x128xf32>
    %137 = arith.select %134, %135, %136 : vector<1x128xi1>, vector<1x128xf32>
    %138 = vector.broadcast %131 : vector<128x1xf32> to vector<128x128xf32>
    %139 = arith.mulf %138, %124 : vector<128x128xf32>
    %140 = vector.broadcast %137 : vector<1x128xf32> to vector<128x128xf32>
    %141 = arith.mulf %139, %140 : vector<128x128xf32>
    %142 = arith.extui %120 : vector<128x128xi1> to vector<128x128xi32>
    %143 = arith.sitofp %142 : vector<128x128xi32> to vector<128x128xf32>
    %cst_45 = arith.constant dense<0.000000e+00> : vector<128xf32>
    %144 = vector.multi_reduction <add>, %143, %cst_45 [0] : vector<128x128xf32> to vector<128xf32>
    %145 = vector.shape_cast %144 : vector<128xf32> to vector<1x128xf32>
    %cst_46 = arith.constant 1.000000e+00 : f32
    %146 = vector.broadcast %cst_46 : f32 to vector<1x128xf32>
    %147 = arith.addf %145, %146 : vector<1x128xf32>
    %148 = tpu.reciprocal %147 {approx = true} : vector<1x128xf32> -> vector<1x128xf32>
    %149 = math.exp %148 : vector<1x128xf32>
    %150 = vector.shape_cast %149 : vector<1x128xf32> to vector<1x128xf32>
    %151 = vector.broadcast %150 : vector<1x128xf32> to vector<128x128xf32>
    %152 = math.exp %141 : vector<128x128xf32>
    %cst_47 = arith.constant 0.000000e+00 : f32
    %153 = vector.broadcast %cst_47 : f32 to vector<128x128xf32>
    %154 = arith.select %120, %152, %153 : vector<128x128xi1>, vector<128x128xf32>
    %155 = arith.select %107, %151, %154 : vector<128x128xi1>, vector<128x128xf32>
    %156 = arith.ori %120, %107 : vector<128x128xi1>
    %c0_48 = arith.constant 0 : index
    %c0_49 = arith.constant 0 : index
    %157 = vector.load %arg4[%c0_48, %c0_49] : memref<32x32xf32, #tpu.memory_space<vmem>>, vector<32x32xf32>
    %158 = arith.truncf %102 : vector<128x32xf32> to vector<128x32xbf16>
    %159 = arith.truncf %157 : vector<32x32xf32> to vector<32x32xbf16>
    %cst_50 = arith.constant dense<0.000000e+00> : vector<128x32xf32>
    %160 = tpu.matmul %158, %159, %cst_50 {dimension_numbers = #tpu.dot_dimension_numbers<[1], [0], [0], [1], [0, 0, 1, 1], [], []>} : vector<128x32xbf16>, vector<32x32xbf16>, vector<128x32xf32> -> vector<128x32xf32>
    %161 = arith.truncf %155 : vector<128x128xf32> to vector<128x128xbf16>
    %162 = arith.truncf %160 : vector<128x32xf32> to vector<128x32xbf16>
    %cst_51 = arith.constant dense<0.000000e+00> : vector<128x32xf32>
    %163 = tpu.matmul %161, %162, %cst_51 {dimension_numbers = #tpu.dot_dimension_numbers<[1], [0], [0], [1], [0, 0, 1, 1], [], []>} : vector<128x128xbf16>, vector<128x32xbf16>, vector<128x32xf32> -> vector<128x32xf32>
    %164 = vector.broadcast %10 : vector<1x32xf32> to vector<128x32xf32>
    %165 = arith.addf %163, %164 : vector<128x32xf32>
    %cst_52 = arith.constant dense<0.000000e+00> : vector<128xf32>
    %166 = vector.multi_reduction <add>, %165, %cst_52 [1] : vector<128x32xf32> to vector<128xf32>
    %167 = vector.shape_cast %166 : vector<128xf32> to vector<128x1xf32>
    %cst_53 = arith.constant 3.200000e+01 : f32
    %168 = vector.broadcast %cst_53 : f32 to vector<128x1xf32>
    %169 = arith.divf %167, %168 : vector<128x1xf32>
    %170 = vector.broadcast %169 : vector<128x1xf32> to vector<128x32xf32>
    %171 = arith.subf %165, %170 : vector<128x32xf32>
    %172 = vector.broadcast %169 : vector<128x1xf32> to vector<128x32xf32>
    %173 = arith.subf %165, %172 : vector<128x32xf32>
    %174 = arith.mulf %171, %173 : vector<128x32xf32>
    %cst_54 = arith.constant dense<0.000000e+00> : vector<128xf32>
    %175 = vector.multi_reduction <add>, %174, %cst_54 [1] : vector<128x32xf32> to vector<128xf32>
    %176 = vector.shape_cast %175 : vector<128xf32> to vector<128x1xf32>
    %cst_55 = arith.constant 3.200000e+01 : f32
    %177 = vector.broadcast %cst_55 : f32 to vector<128x1xf32>
    %178 = arith.divf %176, %177 : vector<128x1xf32>
    %179 = vector.broadcast %169 : vector<128x1xf32> to vector<128x32xf32>
    %180 = arith.subf %165, %179 : vector<128x32xf32>
    %cst_56 = arith.constant 9.99999974E-6 : f32
    %181 = vector.broadcast %cst_56 : f32 to vector<128x1xf32>
    %182 = arith.addf %178, %181 : vector<128x1xf32>
    %183 = math.rsqrt %182 : vector<128x1xf32>
    %184 = vector.broadcast %183 : vector<128x1xf32> to vector<128x32xf32>
    %185 = arith.mulf %180, %184 : vector<128x32xf32>
    %186 = vector.broadcast %11 : vector<1x32xf32> to vector<128x32xf32>
    %187 = arith.mulf %185, %186 : vector<128x32xf32>
    %188 = vector.broadcast %12 : vector<1x32xf32> to vector<128x32xf32>
    %189 = arith.addf %187, %188 : vector<128x32xf32>
    %cst_57 = arith.constant 0.000000e+00 : f32
    %190 = vector.broadcast %cst_57 : f32 to vector<128x32xf32>
    %191 = arith.maximumf %189, %190 : vector<128x32xf32>
    %192 = tpu.iota {dimensions = array<i32: 0>} : vector<128x1xi32>
    %193 = tpu.iota {dimensions = array<i32: 1>} : vector<1x128xi32>
    %194 = vector.broadcast %192 : vector<128x1xi32> to vector<128x128xi32>
    %195 = vector.broadcast %193 : vector<1x128xi32> to vector<128x128xi32>
    %196 = arith.cmpi eq, %194, %195 : vector<128x128xi32>
    %197 = arith.mulf %191, %191 : vector<128x32xf32>
    %cst_58 = arith.constant dense<0.000000e+00> : vector<128xf32>
    %198 = vector.multi_reduction <add>, %197, %cst_58 [1] : vector<128x32xf32> to vector<128xf32>
    %199 = vector.shape_cast %198 : vector<128xf32> to vector<128x1xf32>
    %200 = math.rsqrt %199 : vector<128x1xf32>
    %cst_59 = arith.constant 1.000000e+08 : f32
    %201 = vector.broadcast %cst_59 : f32 to vector<128x1xf32>
    %202 = arith.minimumf %200, %201 : vector<128x1xf32>
    %203 = vector.broadcast %202 : vector<128x1xf32> to vector<128x32xf32>
    %204 = arith.mulf %191, %203 : vector<128x32xf32>
    %cst_60 = arith.constant dense<0.000000e+00> : vector<128x128xf32>
    %205 = tpu.matmul %204, %204, %cst_60 {dimension_numbers = #tpu.dot_dimension_numbers<[1], [1], [0], [0], [0, 0, 1, 0], [], []>} : vector<128x32xf32>, vector<128x32xf32>, vector<128x128xf32> -> vector<128x128xf32>
    %cst_61 = arith.constant 1.000000e-01 : f32
    %206 = vector.broadcast %cst_61 : f32 to vector<128x128xf32>
    %207 = arith.cmpf oge, %205, %206 : vector<128x128xf32>
    %208 = arith.ori %207, %196 : vector<128x128xi1>
    %209 = arith.andi %156, %208 : vector<128x128xi1>
    %cst_62 = arith.constant dense<true> : vector<128x128xi1>
    %210 = arith.xori %196, %cst_62 : vector<128x128xi1>
    %211 = arith.andi %209, %210 : vector<128x128xi1>
    %cst_63 = arith.constant 0.000000e+00 : f32
    %212 = vector.broadcast %cst_63 : f32 to vector<128x128xf32>
    %213 = arith.select %211, %205, %212 : vector<128x128xi1>, vector<128x128xf32>
    %cst_64 = arith.constant dense<0.000000e+00> : vector<128xf32>
    %214 = vector.multi_reduction <add>, %213, %cst_64 [1] : vector<128x128xf32> to vector<128xf32>
    %215 = vector.shape_cast %214 : vector<128xf32> to vector<128x1xf32>
    %cst_65 = arith.constant 0.000000e+00 : f32
    %216 = vector.broadcast %cst_65 : f32 to vector<128x1xf32>
    %217 = arith.cmpf ogt, %215, %216 : vector<128x1xf32>
    %218 = math.rsqrt %215 : vector<128x1xf32>
    %cst_66 = arith.constant 0.000000e+00 : f32
    %219 = vector.broadcast %cst_66 : f32 to vector<128x1xf32>
    %220 = arith.select %217, %218, %219 : vector<128x1xi1>, vector<128x1xf32>
    %cst_67 = arith.constant dense<0.000000e+00> : vector<1x128xf32>
    %221 = tpu.matmul %13, %213, %cst_67 {dimension_numbers = #tpu.dot_dimension_numbers<[1], [1], [0], [0], [0, 0, 1, 0], [], []>} : vector<1x128xf32>, vector<128x128xf32>, vector<1x128xf32> -> vector<1x128xf32>
    %cst_68 = arith.constant 0.000000e+00 : f32
    %222 = vector.broadcast %cst_68 : f32 to vector<1x128xf32>
    %223 = arith.cmpf ogt, %221, %222 : vector<1x128xf32>
    %224 = math.rsqrt %221 : vector<1x128xf32>
    %cst_69 = arith.constant 0.000000e+00 : f32
    %225 = vector.broadcast %cst_69 : f32 to vector<1x128xf32>
    %226 = arith.select %223, %224, %225 : vector<1x128xi1>, vector<1x128xf32>
    %227 = vector.broadcast %220 : vector<128x1xf32> to vector<128x128xf32>
    %228 = arith.mulf %227, %213 : vector<128x128xf32>
    %229 = vector.broadcast %226 : vector<1x128xf32> to vector<128x128xf32>
    %230 = arith.mulf %228, %229 : vector<128x128xf32>
    %231 = arith.extui %209 : vector<128x128xi1> to vector<128x128xi32>
    %232 = arith.sitofp %231 : vector<128x128xi32> to vector<128x128xf32>
    %cst_70 = arith.constant dense<0.000000e+00> : vector<128xf32>
    %233 = vector.multi_reduction <add>, %232, %cst_70 [0] : vector<128x128xf32> to vector<128xf32>
    %234 = vector.shape_cast %233 : vector<128xf32> to vector<1x128xf32>
    %cst_71 = arith.constant 1.000000e+00 : f32
    %235 = vector.broadcast %cst_71 : f32 to vector<1x128xf32>
    %236 = arith.addf %234, %235 : vector<1x128xf32>
    %237 = tpu.reciprocal %236 {approx = true} : vector<1x128xf32> -> vector<1x128xf32>
    %238 = math.exp %237 : vector<1x128xf32>
    %239 = vector.shape_cast %238 : vector<1x128xf32> to vector<1x128xf32>
    %240 = vector.broadcast %239 : vector<1x128xf32> to vector<128x128xf32>
    %241 = math.exp %230 : vector<128x128xf32>
    %cst_72 = arith.constant 0.000000e+00 : f32
    %242 = vector.broadcast %cst_72 : f32 to vector<128x128xf32>
    %243 = arith.select %209, %241, %242 : vector<128x128xi1>, vector<128x128xf32>
    %244 = arith.select %196, %240, %243 : vector<128x128xi1>, vector<128x128xf32>
    %c0_73 = arith.constant 0 : index
    %c0_74 = arith.constant 0 : index
    %245 = vector.load %arg4[%c0_73, %c0_74] : memref<32x32xf32, #tpu.memory_space<vmem>>, vector<32x32xf32>
    %246 = arith.truncf %191 : vector<128x32xf32> to vector<128x32xbf16>
    %247 = arith.truncf %245 : vector<32x32xf32> to vector<32x32xbf16>
    %cst_75 = arith.constant dense<0.000000e+00> : vector<128x32xf32>
    %248 = tpu.matmul %246, %247, %cst_75 {dimension_numbers = #tpu.dot_dimension_numbers<[1], [0], [0], [1], [0, 0, 1, 1], [], []>} : vector<128x32xbf16>, vector<32x32xbf16>, vector<128x32xf32> -> vector<128x32xf32>
    %249 = arith.truncf %244 : vector<128x128xf32> to vector<128x128xbf16>
    %250 = arith.truncf %248 : vector<128x32xf32> to vector<128x32xbf16>
    %cst_76 = arith.constant dense<0.000000e+00> : vector<128x32xf32>
    %251 = tpu.matmul %249, %250, %cst_76 {dimension_numbers = #tpu.dot_dimension_numbers<[1], [0], [0], [1], [0, 0, 1, 1], [], []>} : vector<128x128xbf16>, vector<128x32xbf16>, vector<128x32xf32> -> vector<128x32xf32>
    %252 = vector.broadcast %10 : vector<1x32xf32> to vector<128x32xf32>
    %253 = arith.addf %251, %252 : vector<128x32xf32>
    %cst_77 = arith.constant dense<0xFF800000> : vector<128xf32>
    %254 = vector.multi_reduction <maximumf>, %253, %cst_77 [1] : vector<128x32xf32> to vector<128xf32>
    %255 = vector.shape_cast %254 : vector<128xf32> to vector<128x1xf32>
    %256 = vector.broadcast %255 : vector<128x1xf32> to vector<128x32xf32>
    %257 = arith.subf %253, %256 : vector<128x32xf32>
    %258 = math.exp %257 : vector<128x32xf32>
    %cst_78 = arith.constant dense<0.000000e+00> : vector<128xf32>
    %259 = vector.multi_reduction <add>, %258, %cst_78 [1] : vector<128x32xf32> to vector<128xf32>
    %260 = vector.shape_cast %259 : vector<128xf32> to vector<128x1xf32>
    %261 = math.log %260 : vector<128x1xf32>
    %262 = vector.broadcast %261 : vector<128x1xf32> to vector<128x32xf32>
    %263 = arith.subf %257, %262 : vector<128x32xf32>
    %c0_79 = arith.constant 0 : index
    %c0_80 = arith.constant 0 : index
    %c0_81 = arith.constant 0 : index
    %264 = vector.load %arg6[%c0_79, %c0_80, %c0_81] : memref<1x128x32xf32, #tpu.memory_space<vmem>>, vector<1x128x32xf32>
    %265 = vector.shape_cast %264 : vector<1x128x32xf32> to vector<128x32xf32>
    %266 = vector.shape_cast %263 : vector<128x32xf32> to vector<1x128x32xf32>
    tpu.vector_store %arg6[%c0_79, %c0_80, %c0_81], %266 {strides = array<i32>} : memref<1x128x32xf32, #tpu.memory_space<vmem>>, vector<1x128x32xf32>,
    return
  }
  func.func @transform_0(%arg0: i32) -> (i32, i32, i32) {
    %c0_i32 = arith.constant 0 : i32
    %c0_i32_0 = arith.constant 0 : i32
    %c0_i32_1 = arith.constant 0 : i32
    return %arg0, %c0_i32, %c0_i32_0 : i32, i32, i32
  }
  func.func @transform_1(%arg0: i32) -> (i32, i32, i32) {
    %c0_i32 = arith.constant 0 : i32
    %c0_i32_0 = arith.constant 0 : i32
    %c0_i32_1 = arith.constant 0 : i32
    return %arg0, %c0_i32, %c0_i32_0 : i32, i32, i32
  }
  func.func @transform_2(%arg0: i32) -> (i32, i32) {
    %c0_i32 = arith.constant 0 : i32
    %c0_i32_0 = arith.constant 0 : i32
    %c0_i32_1 = arith.constant 0 : i32
    return %c0_i32, %c0_i32_0 : i32, i32
  }
  func.func @transform_3(%arg0: i32) -> (i32, i32) {
    %c0_i32 = arith.constant 0 : i32
    %c0_i32_0 = arith.constant 0 : i32
    %c0_i32_1 = arith.constant 0 : i32
    return %c0_i32, %c0_i32_0 : i32, i32
  }
  func.func @transform_4(%arg0: i32) -> (i32, i32) {
    %c0_i32 = arith.constant 0 : i32
    %c0_i32_0 = arith.constant 0 : i32
    %c0_i32_1 = arith.constant 0 : i32
    return %c0_i32, %c0_i32_0 : i32, i32
  }
  func.func @transform_5(%arg0: i32) -> (i32, i32, i32) {
    %c0_i32 = arith.constant 0 : i32
    %c0_i32_0 = arith.constant 0 : i32
    %c0_i32_1 = arith.constant 0 : i32
    return %arg0, %c0_i32, %c0_i32_0 : i32, i32, i32
  }
}

</mosaic_0001>

<bundles_post_ra>
// kernel: tpu_custom_call.1
= control target key start
LH: loop header
LB: loop body
LE: loop exit
PB: predicated region body
PF: predicated region fallthrough
CT: control target
= control target key end

     0   :  { %s5783_s18 = smov 0   ;;  %s10753_s0 = inlined_call_operand.vmem [shape: f32[2,128,32], index: 0, kind: input, shape index: {}]   ;;  %s10754_s1 = inlined_call_operand.vmem [shape: bf16[2,128,128], index: 1, kind: input, shape index: {}]   ;;  %s10755_s2 = inlined_call_operand.vmem [shape: f32[32,32], index: 2, kind: input, shape index: {}]   ;;  %s10756_s3 = inlined_call_operand.vmem [shape: f32[32,32], index: 3, kind: input, shape index: {}]   ;;  %s10757_s4 = inlined_call_operand.vmem [shape: f32[8,32], index: 4, kind: input, shape index: {}]   ;;  %s10758_s5 = inlined_call_operand.vmem [shape: f32[2,128,32], index: 5, kind: output, shape index: {}]  }
   0x1 LB: > { %s4384_s19 = sadd.s32 4294967295, %s5746_s18   ;;  %p4388_p0 = scmp.ge.s32.totalorder %s5746_s18, 1  ;;  %s5746_s18 = sphi %s5783_s18, %s15_s18  }
   0x2   : > { %p197_p1 = scmp.lt.s32.totalorder %s5746_s18, 3 }
   0x4   : > { %p198_p2 = pnand %p4388_p0, %p197_p1 }
   0x6   : > { %201 = sbr.rel (%p198_p2) target bundleno = 4135 (0x1027), region = 40 }
   0xb   : > { %p230_p3 = scmp.lt.s32.totalorder %s4384_s19, 1  ;;  %vm10761_vm0 = vcmask 261120   ;;  %vm10766_vm3 = vmmov 1   ;;  %vm10759_vm5 = vmmov 0  }
   0xd   : > { %s12560_s19 = smov (!%p230_p3, %s4384_s19), 1 }
   0xe   : > { %s4613_s20 = sshll.u32 %s12560_s19, 7  ;;  %s4614_s24 = sshll.u32 %s12560_s19, 6 }
   0xf   : > { %s5799_s23 = scalar_lea.vmem %s10753_s0, %s4613_s20  ;;  %s6050_s27 = scalar_lea.vmem %s10754_s1, %s4614_s24 }
  0x10   : > { %v5802_v0 = vld [vmem:[%s5799_s23 + $0x78] sm:$0xff]  ;;  %v5805_v1 = vld [vmem:[%s5799_s23 + $0x70] sm:$0xff]  ;;  %v5808_v2 = vld [vmem:[%s5799_s23 + $0x68] sm:$0xff]  ;;  %s10700_s28 = scalar_lea.vmem %s10758_s5, %s4613_s20 }
  0x11   : > { %v347_v3 = vmul.f32 %v5802_v0, %v5802_v0  ;;  %v346_v4 = vmul.f32 %v5805_v1, %v5805_v1  ;;  %v345_v5 = vmul.f32 %v5808_v2, %v5808_v2  ;;  %v5817_v6 = vld [vmem:[%s5799_s23 + $0x60] sm:$0xff]  ;;  %v5822_v8 = vld [vmem:[%s5799_s23 + $0x58] sm:$0xff]  ;;  %v5825_v9 = vld [vmem:[%s5799_s23 + $0x50] sm:$0xff] }
  0x12   : > { %v344_v7 = vmul.f32 %v5817_v6, %v5817_v6  ;;  %v343_v14 = vmul.f32 %v5822_v8, %v5822_v8  ;;  %v342_v15 = vmul.f32 %v5825_v9, %v5825_v9  ;;  %v5836_v16 = vld [vmem:[%s5799_s23 + $0x48] sm:$0xff]  ;;  %v5839_v17 = vld [vmem:[%s5799_s23 + $0x40] sm:$0xff]  ;;  %v5848_v22 = vld [vmem:[%s5799_s23 + $0x38] sm:$0xff] }
  0x13   : > { %v394_v10 = vsel %vm10761_vm0, %v347_v3, 0.0  ;;  %v388_v11 = vsel %vm10761_vm0, %v345_v5, 0.0  ;;  %v391_v12 = vsel %vm10761_vm0, %v346_v4, 0.0  ;;  %v341_v20 = vmul.f32 %v5836_v16, %v5836_v16  ;;  %v5851_v23 = vld [vmem:[%s5799_s23 + $0x30] sm:$0xff]  ;;  %v5860_v28 = vld [vmem:[%s5799_s23 + $0x28] sm:$0xff]  ;;  %v5863_v29 = vld [vmem:[%s5799_s23 + $0x20] sm:$0xff] }
  0x14   : > { %395 = vadd.xlane.f32.xlu0 %v394_v10  ;;  %389 = vadd.xlane.f32.xlu1 %v388_v11  ;;  %v385_v13 = vsel %vm10761_vm0, %v344_v7, 0.0  ;;  %v382_v18 = vsel %vm10761_vm0, %v343_v14, 0.0  ;;  %v379_v19 = vsel %vm10761_vm0, %v342_v15, 0.0  ;;  %v340_v21 = vmul.f32 %v5839_v17, %v5839_v17  ;;  %v5872_v34 = vld [vmem:[%s5799_s23 + $0x18] sm:$0xff]  ;;  %v5875_v35 = vld [vmem:[%s5799_s23 + $0x10] sm:$0xff]  ;;  %v5884_v40 = vld [vmem:[%s5799_s23 + $0x8] sm:$0xff] }
  0x15   : > { %v376_v24 = vsel %vm10761_vm0, %v341_v20, 0.0  ;;  %v339_v26 = vmul.f32 %v5848_v22, %v5848_v22  ;;  %v338_v27 = vmul.f32 %v5851_v23, %v5851_v23  ;;  %v337_v32 = vmul.f32 %v5860_v28, %v5860_v28  ;;  %v5887_v41 = vld [vmem:[%s5799_s23] sm:$0xff] }
  0x16   : > { %v373_v25 = vsel %vm10761_vm0, %v340_v21, 0.0  ;;  %v336_v33 = vmul.f32 %v5863_v29, %v5863_v29  ;;  %v335_v38 = vmul.f32 %v5872_v34, %v5872_v34  ;;  %v334_v39 = vmul.f32 %v5875_v35, %v5875_v35 }
  0x17   : > { %v370_v30 = vsel %vm10761_vm0, %v339_v26, 0.0  ;;  %v367_v31 = vsel %vm10761_vm0, %v338_v27, 0.0  ;;  %v364_v36 = vsel %vm10761_vm0, %v337_v32, 0.0  ;;  %v333_v44 = vmul.f32 %v5884_v40, %v5884_v40 }
  0x18   : > { %392 = vadd.xlane.f32.xlu0 %v391_v12  ;;  %386 = vadd.xlane.f32.xlu1 %v385_v13  ;;  %v361_v37 = vsel %vm10761_vm0, %v336_v33, 0.0  ;;  %v358_v42 = vsel %vm10761_vm0, %v335_v38, 0.0  ;;  %v355_v43 = vsel %vm10761_vm0, %v334_v39, 0.0  ;;  %v332_v45 = vmul.f32 %v5887_v41, %v5887_v41 }
  0x19   : > { %v352_v46 = vsel %vm10761_vm0, %v333_v44, 0.0 }
  0x1a   : > { %v349_v47 = vsel %vm10761_vm0, %v332_v45, 0.0 }
  0x1c   : > { %383 = vadd.xlane.f32.xlu0 %v382_v18  ;;  %380 = vadd.xlane.f32.xlu1 %v379_v19 }
  0x20   : > { %377 = vadd.xlane.f32.xlu0 %v376_v24  ;;  %374 = vadd.xlane.f32.xlu1 %v373_v25 }
  0x24   : > { %371 = vadd.xlane.f32.xlu0 %v370_v30  ;;  %368 = vadd.xlane.f32.xlu1 %v367_v31 }
  0x28   : > { %365 = vadd.xlane.f32.xlu0 %v364_v36  ;;  %362 = vadd.xlane.f32.xlu1 %v361_v37 }
  0x2c   : > { %359 = vadd.xlane.f32.xlu0 %v358_v42  ;;  %356 = vadd.xlane.f32.xlu1 %v355_v43 }
  0x30   : > { %353 = vadd.xlane.f32.xlu0 %v352_v46  ;;  %350 = vadd.xlane.f32.xlu1 %v349_v47 }
  0x9d   : > { %v396_v48 = vpop.xlane.xlu0 %395  ;;  %v390_v49 = vpop.xlane.xlu1 %389 }
  0x9e   : > { %5299 = vrsqrt.f32 %v396_v48 }
  0x9f   : > { %5301 = vrsqrt.f32 %v390_v49 }
  0xa1   : > { %v393_v50 = vpop.xlane.xlu0 %392  ;;  %v387_v51 = vpop.xlane.xlu1 %386 }
  0xa2   : > { %5303 = vrsqrt.f32 %v393_v50 }
  0xa3   : > { %5305 = vrsqrt.f32 %v387_v51 }
  0xa5   : > { %v384_v52 = vpop.xlane.xlu0 %383  ;;  %v381_v53 = vpop.xlane.xlu1 %380 }
  0xa6   : > { %5307 = vrsqrt.f32 %v384_v52 }
  0xa7   : > { %5309 = vrsqrt.f32 %v381_v53 }
  0xa9   : > { %v375_v54 = vpop.xlane.xlu1 %374  ;;  %v378_v56 = vpop.xlane.xlu0 %377 }
  0xaa   : > { %5311 = vrsqrt.f32 %v378_v56 }
  0xab   : > { %v5300_v55 = vpop.eup %5299  ;;  %5313 = vrsqrt.f32 %v375_v54 }
  0xac   : > { %v5302_v57 = vpop.eup %5301  ;;  %v428_v58 = vmin.f32 %v5300_v55, 1e+08 }
  0xad   : > { %v369_v59 = vpop.xlane.xlu1 %368  ;;  %v426_v60 = vmin.f32 %v5302_v57, 1e+08  ;;  %v372_v11 = vpop.xlane.xlu0 %371 }
  0xae   : > { %v5898_v61 = vmul.f32 %v428_v58, %v5802_v0  ;;  %5315 = vrsqrt.f32 %v372_v11  ;;  %v10799_v58 = vmov 0.0  }
  0xaf   : > { %v5304_v62 = vpop.eup %5303  ;;  %v5908_v7 = vmul.f32 %v426_v60, %v5808_v2  ;;  %5317 = vrsqrt.f32 %v369_v59  ;;  %4897 = vmatprep.subr.mxu1 %v10799_v58  ;;  %v297_v59 = vlaneseq  ;;  %4929 = vmatprep.mubr.msk.f32.mxu1 %vm10759_vm5, %v10799_v58  ;;  %v11305_v58 = vmov 0 }
  0xb0   : > { %v5306_v63 = vpop.eup %5305  ;;  %v427_v3 = vmin.f32 %v5304_v62, 1e+08  ;;  %4841 = vmatprep.subr.msk.mxu0 %vm10761_vm0, %v5898_v61 }
  0xb1   : > { %4842 = vmatpush3.xpose.msk.msra.mxu0 %vm10761_vm0, %v5898_v61  ;;  %v363_v4 = vpop.xlane.xlu1 %362  ;;  %v425_v10 = vmin.f32 %v5306_v63, 1e+08  ;;  %v366_v19 = vpop.xlane.xlu0 %365  ;;  %v5997_v60 = vshrl.u32 %v297_v59, 7  ;;  %v6000_v63 = vand.u32 127, %v297_v59  ;;  %v266_v59 = vld [vmem:[%s6050_s27 + $0x8] sm:$0xf] }
  0xb2   : > { %v5905_v5 = vmul.f32 %v427_v3, %v5805_v1  ;;  %v11190_v3 = vmov 0 }
  0xb3   : > { %v5308_v0 = vpop.eup %5307  ;;  %v5915_v13 = vmul.f32 %v425_v10, %v5817_v6  ;;  %11189 = vst [vmem:[#allocation2_spill] sm:$0xff] %v5997_v60  ;;  %v299_v62 = vadd.s32 8, %v5997_v60  ;;  %vm6013_vm2 = vcmp.eq.s32.totalorder %v5997_v60, %v6000_v63  ;;  %v303_v11 = vadd.s32 40, %v5997_v60 }
  0xb4   : > { %4843 = vmatprep.subr.msk.mxu0 %vm10761_vm0, %v5905_v5  ;;  %v424_v14 = vmin.f32 %v5308_v0, 1e+08  ;;  %v5310_v1 = vpop.eup %5309  ;;  %v11196_v0 = vmov 0  ;;  %vm702_vm10 = vmxor %vm6013_vm2, %vm10766_vm3 }
  0xb5   : > { %4844 = vmatpush3.xpose.msk.msra.mxu0 %vm10761_vm0, %v5905_v5  ;;  %v357_v12 = vpop.xlane.xlu1 %356  ;;  %v423_v18 = vmin.f32 %v5310_v1, 1e+08  ;;  %vm6003_vm1 = vcmp.eq.s32.totalorder %v299_v62, %v6000_v63  ;;  %vm6063_vm14 = vcmp.eq.s32.totalorder %v303_v11, %v6000_v63  ;;  %v11259_v62 = vmov 0 }
  0xb6   : > { %4845 = vmatprep.subr.msk.mxu0 %vm10761_vm0, %v5908_v7  ;;  %v5922_v15 = vmul.f32 %v424_v14, %v5822_v8  ;;  %v11191_v3 = vsel %vm6003_vm1, 4294967295, %v11190_v3  ;;  %vm703_vm4 = vmxor %vm6003_vm1, %vm10766_vm3  ;;  %v11202_v14 = vmov 0  ;;  %v11264_v11 = vmov 0 }
  0xb7   : > { %v5312_v6 = vpop.eup %5311  ;;  %v5929_v20 = vmul.f32 %v423_v18, %v5825_v9  ;;  %v360_v9 = vpop.xlane.xlu0 %359  ;;  %11192 = vst [vmem:[#allocation3_spill] sm:$0xff] %v11191_v3  ;;  %vm6039_vm9 = vmpackc.low %vm703_vm4, %vm703_vm4  ;;  %v302_v18 = vadd.s32 32, %v5997_v60  ;;  %v11268_v1 = vmov 0  ;;  %v312_v3 = vadd.s32 112, %v5997_v60 }
  0xb8   : > { %v422_v21 = vmin.f32 %v5312_v6, 1e+08  ;;  %v5314_v8 = vpop.eup %5313  ;;  %v11203_v14 = vsel %vm6039_vm9, 4294967295, %v11202_v14  ;;  %v306_v6 = vadd.s32 64, %v5997_v60 }
  0xb9   : > { %4846 = vmatpush3.xpose.msk.msra.mxu0 %vm10761_vm0, %v5908_v7  ;;  %v351_v2 = vpop.xlane.xlu1 %350  ;;  %v421_v25 = vmin.f32 %v5314_v8, 1e+08  ;;  %11204 = vst [vmem:[#allocation7_spill] sm:$0xff] %v11203_v14  ;;  %v265_v8 = vld [vmem:[%s6050_s27 + $0x4] sm:$0xf]  ;;  %v310_v14 = vadd.s32 96, %v5997_v60 }
  0xba   : > { %4847 = vmatprep.subr.msk.mxu0 %vm10761_vm0, %v5915_v13  ;;  %5319 = vrsqrt.f32 %v351_v2  ;;  %v5936_v24 = vmul.f32 %v422_v21, %v5836_v16 }
  0xbb   : > { %5321 = vrsqrt.f32 %v366_v19  ;;  %v5316_v26 = vpop.eup %5315  ;;  %v437_v27 = vmul.f32 %v421_v25, %v5839_v17  ;;  %v354_v39 = vpop.xlane.xlu0 %353  ;;  %v11219_v25 = vmov 0 }
  0xbc   : > { %5323 = vrsqrt.f32 %v363_v4  ;;  %v420_v30 = vmin.f32 %v5316_v26, 1e+08  ;;  %v5318_v31 = vpop.eup %5317  ;;  %v301_v4 = vadd.s32 24, %v5997_v60  ;;  %v11221_v26 = vmov 0 }
  0xbd   : > { %4848 = vmatpush3.xpose.msk.msra.mxu0 %vm10761_vm0, %v5915_v13  ;;  %5325 = vrsqrt.f32 %v360_v9  ;;  %v419_v37 = vmin.f32 %v5318_v31, 1e+08  ;;  %v11223_v9 = vmov 0 }
  0xbe   : > { %4849 = vmatprep.subr.msk.mxu0 %vm10761_vm0, %v5922_v15  ;;  %v436_v36 = vmul.f32 %v420_v30, %v5848_v22  ;;  %5327 = vrsqrt.f32 %v357_v12  ;;  %vm6025_vm6 = vcmp.eq.s32.totalorder %v301_v4, %v6000_v63  ;;  %v11199_v12 = vmov 0 }
  0xbf   : > { %v435_v43 = vmul.f32 %v419_v37, %v5851_v23  ;;  %5329 = vrsqrt.f32 %v354_v39  ;;  %v11197_v0 = vsel %vm6025_vm6, 4294967295, %v11196_v0  ;;  %vm6055_vm12 = vmxor %vm6025_vm6, %vm10766_vm3  ;;  %v305_v30 = vadd.s32 56, %v5997_v60 }
  0xc0   : > { %11198 = vst [vmem:[#allocation5_spill] sm:$0xff] %v11197_v0  ;;  %v11237_v39 = vmov 0  ;;  %v11262_v4 = vmov 0  ;;  %v11282_v37 = vmov 0  ;;  %v270_v0 = vld [vmem:[%s6050_s27 + $0x18] sm:$0xf] }
  0xc1   : > { %4850 = vmatpush3.xpose.msk.msra.mxu0 %vm10761_vm0, %v5922_v15 }
  0xc2   : > { %4851 = vmatprep.subr.msk.mxu0 %vm10761_vm0, %v5929_v20 }
  0xc5   : > { %4852 = vmatpush3.xpose.msk.msra.mxu0 %vm10761_vm0, %v5929_v20 }
  0xc6   : > { %4853 = vmatprep.subr.msk.mxu0 %vm10761_vm0, %v5936_v24 }
  0xc7   : > { %v5320_v32 = vpop.eup %5319 }
  0xc8   : > { %v413_v33 = vmin.f32 %v5320_v32, 1e+08  ;;  %v5322_v38 = vpop.eup %5321  ;;  %v264_v32 = vld [vmem:[%s6050_s27] sm:$0xf] }
  0xc9   : > { %4854 = vmatpush3.xpose.msk.msra.mxu0 %vm10761_vm0, %v5936_v24  ;;  %v418_v44 = vmin.f32 %v5322_v38, 1e+08  ;;  %v5324_v45 = vpop.eup %5323  ;;  %v11234_v38 = vmov 0 }
  0xca   : > { %4855 = vmatprep.subr.msk.mxu0 %vm10761_vm0, %v437_v27  ;;  %v429_v42 = vmul.f32 %v413_v33, %v5887_v41  ;;  %v417_v47 = vmin.f32 %v5324_v45, 1e+08  ;;  %v5326_v48 = vpop.eup %5325  ;;  %v11226_v33 = vmov 0 }
  0xcb   : > { %v434_v46 = vmul.f32 %v418_v44, %v5860_v28  ;;  %v416_v50 = vmin.f32 %v5326_v48, 1e+08  ;;  %v5328_v51 = vpop.eup %5327  ;;  %v10803_v44 = vmov 0  }
  0xcc   : > { %4873 = vmatprep.mubr.msk.f32.mxu0 %vm10761_vm0, %v429_v42  ;;  %v433_v49 = vmul.f32 %v417_v47, %v5863_v29  ;;  %v415_v53 = vmin.f32 %v5328_v51, 1e+08  ;;  %v5330_v54 = vpop.eup %5329  ;;  %v11240_v47 = vmov 0  ;;  %v11248_v51 = vmov 0 }
  0xcd   : > { %4856 = vmatpush3.xpose.msk.msra.mxu0 %vm10761_vm0, %v437_v27  ;;  %v432_v52 = vmul.f32 %v416_v50, %v5872_v34  ;;  %v414_v56 = vmin.f32 %v5330_v54, 1e+08  ;;  %v11245_v50 = vmov 0 }
  0xce   : > { %4857 = vmatprep.subr.msk.mxu0 %vm10761_vm0, %v436_v36  ;;  %v431_v55 = vmul.f32 %v415_v53, %v5875_v35  ;;  %v307_v53 = vadd.s32 72, %v5997_v60 }
  0xcf   : > { %v430_v57 = vmul.f32 %v414_v56, %v5884_v40 }
  0xd1   : > { %4858 = vmatpush3.xpose.msk.msra.mxu0 %vm10761_vm0, %v436_v36 }
  0xd2   : > { %4859 = vmatprep.subr.msk.mxu0 %vm10761_vm0, %v435_v43 }
  0xd5   : > { %4860 = vmatpush3.xpose.msk.msra.mxu0 %vm10761_vm0, %v435_v43 }
  0xd6   : > { %4861 = vmatprep.subr.msk.mxu0 %vm10761_vm0, %v434_v46 }
  0xd9   : > { %4862 = vmatpush3.xpose.msk.msra.mxu0 %vm10761_vm0, %v434_v46 }
  0xda   : > { %4863 = vmatprep.subr.msk.mxu0 %vm10761_vm0, %v433_v49 }
  0xdd   : > { %4864 = vmatpush3.xpose.msk.msra.mxu0 %vm10761_vm0, %v433_v49 }
  0xde   : > { %4865 = vmatprep.subr.msk.mxu0 %vm10761_vm0, %v432_v52 }
  0xe1   : > { %4866 = vmatpush3.xpose.msk.msra.mxu0 %vm10761_vm0, %v432_v52 }
  0xe2   : > { %4867 = vmatprep.subr.msk.mxu0 %vm10761_vm0, %v431_v55 }
  0xe5   : > { %4868 = vmatpush3.xpose.msk.msra.mxu0 %vm10761_vm0, %v431_v55 }
  0xe6   : > { %4869 = vmatprep.subr.msk.mxu0 %vm10761_vm0, %v430_v57 }
  0xe9   : > { %4870 = vmatpush3.xpose.msk.msra.mxu0 %vm10761_vm0, %v430_v57 }
  0xea   : > { %4871 = vmatprep.subr.msk.mxu0 %vm10761_vm0, %v429_v42 }
  0xed   : > { %4872 = vmatpush3.xpose.msk.msra.mxu0 %vm10761_vm0, %v429_v42  ;;  %v304_v42 = vadd.s32 48, %v5997_v60 }
  0xf0   : > { %4874 = vmatmul.mubr.msk.f32.vlgmr.msra.gmra.mxu0 %vm10761_vm0, %v430_v57 }
  0xf1   : > { %4876 = vmatprep.mubr.msk.f32.mxu0 %vm10761_vm0, %v431_v55  ;;  %v11254_v55 = vmov 0 }
  0xf4   : > { %4877 = vmatmul.mubr.msk.f32.gmra.mxu0 %vm10761_vm0, %v432_v52  ;;  %v11251_v52 = vmov 0 }
  0xf5   : > { %4879 = vmatprep.mubr.msk.f32.mxu0 %vm10761_vm0, %v433_v49 }
  0xf8   : > { %4880 = vmatmul.mubr.msk.f32.gmra.mxu0 %vm10761_vm0, %v434_v46  ;;  %v267_v46 = vld [vmem:[%s6050_s27 + $0xc] sm:$0xf] }
  0xf9   : > { %4882 = vmatprep.mubr.msk.f32.mxu0 %vm10761_vm0, %v435_v43 }
  0xfc   : > { %4883 = vmatmul.mubr.msk.f32.gmra.mxu0 %vm10761_vm0, %v436_v36  ;;  %v11229_v36 = vmov 0 }
  0xfd   : > { %4885 = vmatprep.mubr.msk.f32.mxu0 %vm10761_vm0, %v437_v27 }
 0x100   : > { %4886 = vmatmul.mubr.msk.f32.gmra.mxu0 %vm10761_vm0, %v5936_v24  ;;  %v11216_v24 = vmov 0 }
 0x101   : > { %4888 = vmatprep.mubr.msk.f32.mxu0 %vm10761_vm0, %v5929_v20  ;;  %v11274_v20 = vmov 0 }
 0x104   : > { %4889 = vmatmul.mubr.msk.f32.gmra.mxu0 %vm10761_vm0, %v5922_v15  ;;  %v11207_v15 = vmov 0 }
 0x105   : > { %4891 = vmatprep.mubr.msk.f32.mxu0 %vm10761_vm0, %v5915_v13  ;;  %v11208_v15 = vsel %vm6063_vm14, 4294967295, %v11207_v15 }
 0x106   : > { %11209 = vst [vmem:[#allocation8_spill] sm:$0xff] %v11208_v15  ;;  %v313_v15 = vadd.s32 120, %v5997_v60 }
 0x108   : > { %4892 = vmatmul.mubr.msk.f32.gmra.mxu0 %vm10761_vm0, %v5908_v7  ;;  %v11193_v7 = vmov 0 }
 0x109   : > { %4894 = vmatprep.mubr.msk.f32.mxu0 %vm10761_vm0, %v5905_v5  ;;  %v11194_v7 = vsel %vm6013_vm2, 4294967295, %v11193_v7 }
 0x10a   : > { %11195 = vst [vmem:[#allocation4_spill] sm:$0xff] %v11194_v7  ;;  %v11357_v7 = vmov 0 }
 0x10c   : > { %4895 = vmatmul.mubr.msk.f32.gmra.mxu0 %vm10761_vm0, %v5898_v61  ;;  %v300_v61 = vadd.s32 16, %v5997_v60  ;;  %vm6090_vm0 = vmpackc.low %vm702_vm10, %vm702_vm10 }
 0x10d   : > { %v11217_v24 = vsel %vm6090_vm0, 4294967295, %v11216_v24 }
 0x10e   : > { %vm6032_vm7 = vcmp.eq.s32.totalorder %v300_v61, %v6000_v63  ;;  %11218 = vst [vmem:[#allocation9_spill] sm:$0xff] %v11217_v24 }
 0x10f   : > { %v11200_v12 = vsel %vm6032_vm7, 4294967295, %v11199_v12  ;;  %vm6071_vm15 = vmxor %vm6032_vm7, %vm10766_vm3 }
 0x110   : > { %11201 = vst [vmem:[#allocation6_spill] sm:$0xff] %v11200_v12  ;;  %v11343_v12 = vmov 0 }
 0x1b0   : > { %v6009_v5 = vpop.f32.mrf.mxu0 }
 0x1b1   : > { %vm639_vm8 = vcmp.ge.f32.partialorder %v6009_v5, 0.1 }
 0x1b2   : > { %v6022_v10 = vpop.f32.mrf.mxu0  ;;  %vm6077_vm4 = vmor %vm639_vm8, %vm6003_vm1 }
 0x1b3   : > { %vm638_vm11 = vcmp.ge.f32.partialorder %v6022_v10, 0.1  ;;  %vm671_vm10 = vmpackc.low %vm6077_vm4, %vm6077_vm4 }
 0x1b4   : > { %v6037_v13 = vpop.f32.mrf.mxu0  ;;  %vm6083_vm5 = vmor %vm638_vm11, %vm6013_vm2  ;;  %vm6112_vm2 = vcmp.eq.s32.totalorder %v302_v18, %v6000_v63  ;;  %v11271_v18 = vmov 0 }
 0x1b5   : > { %vm641_vm13 = vcmp.ge.f32.partialorder %v6037_v13, 0.1  ;;  %vm6103_vm11 = vmxor %vm6063_vm14, %vm10766_vm3  ;;  %v11224_v9 = vsel %vm6112_vm2, 4294967295, %v11223_v9  ;;  %vm281_vm3 = vcmp.ne.bf16.partialorder %v265_v8, 0 }
 0x1b6   : > { %v6060_v2 = vpop.f32.mrf.mxu0  ;;  %vm6096_vm8 = vmor %vm641_vm13, %vm6025_vm6  ;;  %v11222_v26 = vsel %vm6103_vm11, 4294967295, %v11221_v26  ;;  %11225 = vst [vmem:[#allocation10_spill] sm:$0xff] %v11224_v9  ;;  %vm11231_vm13 = vmmov 1   ;;  %v11335_v9 = vmov 0 }
 0x1b7   : > { %v11220_v25 = vsel %vm6096_vm8, 4294967295, %v11219_v25  ;;  %vm640_vm1 = vcmp.ge.f32.partialorder %v6060_v2, 0.1  ;;  %vm6131_vm6 = vmpackc.low %vm6055_vm12, %vm6055_vm12  ;;  %vm6154_vm12 = vcmp.eq.s32.totalorder %v305_v30, %v6000_v63  ;;  %v11277_v30 = vmov 0 }
 0x1b8   : > { %v6087_v21 = vpop.f32.mrf.mxu0  ;;  %v11227_v33 = vsel %vm6131_vm6, 4294967295, %v11226_v33  ;;  %vm6137_vm11 = vmor %vm640_vm1, %vm6032_vm7  ;;  %v11238_v39 = vsel %vm6154_vm12, 4294967295, %v11237_v39  ;;  %vm280_vm7 = vcmp.ne.bf16.partialorder %v264_v32, 0 }
 0x1b9   : > { %11228 = vst [vmem:[#allocation11_spill] sm:$0xff] %v11227_v33  ;;  %v11230_v36 = vsel %vm6137_vm11, 4294967295, %v11229_v36  ;;  %vm6144_vm4 = vmxor %vm6112_vm2, %vm11231_vm13  ;;  %vm643_vm8 = vcmp.ge.f32.partialorder %v6087_v21, 0.1  ;;  %v11311_v33 = vmov 0 }
 0x1ba   : > { %v6116_v27 = vpop.f32.mrf.mxu0  ;;  %vm6149_vm0 = vmand %vm281_vm3, %vm671_vm10  ;;  %11239 = vst [vmem:[#allocation13_spill] sm:$0xff] %v11238_v39  ;;  %v11407_v39 = vmov 0 }
 0x1bb   : > { %v11235_v38 = vsel %vm6149_vm0, 4294967295, %v11234_v38  ;;  %vm735_vm1 = vmand %vm6149_vm0, %vm6039_vm9  ;;  %vm642_vm3 = vcmp.ge.f32.partialorder %v6116_v27, 0.1 }
 0x1bc   : > { %v6125_v31 = vpop.f32.mrf.mxu0  ;;  %11236 = vst [vmem:[#allocation12_spill] sm:$0xff] %v11235_v38  ;;  %v751_v45 = vsel %vm735_vm1, 65537, %v10803_v44  ;;  %vm6173_vm10 = vmpackc.low %vm6071_vm15, %vm6071_vm15 }
 0x1bd   : > { %v11241_v47 = vsel %vm6173_vm10, 4294967295, %v11240_v47  ;;  %vm6179_vm9 = vmor %vm643_vm8, %vm6063_vm14  ;;  %v767_v49 = vunpack.c.l.b16 %v751_v45  ;;  %vm6201_vm8 = vcmp.eq.s32.totalorder %v304_v42, %v6000_v63  ;;  %vm11258_vm10 = vnez %v11222_v26  ;;  %v269_v26 = vld [vmem:[%s6050_s27 + $0x14] sm:$0xf] }
 0x1be   : > { %v6159_v43 = vpop.f32.mrf.mxu0  ;;  %11242 = vst [vmem:[#allocation14_spill] sm:$0xff] %v11241_v47  ;;  %vm6186_vm1 = vmxor %vm6154_vm12, %vm11231_vm13  ;;  %v11252_v52 = vsel %vm6201_vm8, 4294967295, %v11251_v52  ;;  %v11286_v45 = vmov 0 }
 0x1bf   : > { %v11246_v50 = vsel %vm6186_vm1, 4294967295, %v11245_v50  ;;  %vm11247_vm15 = vmpackc.low %vm6083_vm5, %vm6083_vm5  ;;  %11253 = vst [vmem:[#allocation16_spill] sm:$0xff] %v11252_v52  ;;  %vm6208_vm14 = vcmp.ne.s32.totalorder %v767_v49, 0  ;;  %vm11256_vm1 = vnez %v11217_v24  ;;  %v309_v49 = vadd.s32 88, %v5997_v60 }
 0x1c0   : > { %vm6196_vm0 = vmand %vm280_vm7, %vm11247_vm15  ;;  %v6206_v54 = vpop.f32.mrf.mxu0  ;;  %v11255_v55 = vsel %vm6208_vm14, 4294967295, %v11254_v55  ;;  %vm283_vm7 = vcmp.ne.bf16.partialorder %v267_v46, 0  ;;  %v6222_v56 = vsel %vm6208_vm14, %v6009_v5, 0.0  ;;  %vm11266_vm15 = vnez %v11220_v25 }
 0x1c1   : > { %v11249_v51 = vsel %vm6196_vm0, 4294967295, %v11248_v51  ;;  %vm734_vm5 = vmand %vm6196_vm0, %vm11256_vm1  ;;  %11257 = vst [vmem:[#allocation17_spill] sm:$0xff] %v6222_v56  ;;  %816 = vadd.xlane.f32.xlu1 %v6222_v56  ;;  %vm6258_vm0 = vcmp.eq.s32.totalorder %v307_v53, %v6000_v63  ;;  %v11289_v46 = vmov 0  ;;  %v11315_v24 = vmov 0 }
 0x1c2   : > { %11250 = vst [vmem:[#allocation15_spill] sm:$0xff] %v11249_v51  ;;  %v750_v57 = vsel %vm734_vm5, 65537, %v10803_v44  ;;  %vm6229_vm11 = vmpackc.low %vm11258_vm10, %vm11258_vm10  ;;  %vm645_vm10 = vcmp.ge.f32.partialorder %v6125_v31, 0.1  ;;  %v11272_v18 = vsel %vm6258_vm0, 4294967295, %v11271_v18  ;;  %v6263_v19 = vpop.f32.mrf.mxu0  ;;  %v11332_v52 = vmov 0 }
 0x1c3   : > { %v11260_v62 = vsel %vm6229_vm11, 4294967295, %v11259_v62  ;;  %vm6235_vm1 = vmor %vm642_vm3, %vm6112_vm2  ;;  %v766_v61 = vunpack.c.l.b16 %v750_v57  ;;  %11273 = vst [vmem:[#allocation20_spill] sm:$0xff] %v11272_v18  ;;  %v11292_v57 = vmov 0  ;;  %v11329_v18 = vmov 0 }
 0x1c4   : > { %11261 = vst [vmem:[#allocation18_spill] sm:$0xff] %v11260_v62  ;;  %v11263_v4 = vsel %vm6235_vm1, 4294967295, %v11262_v4  ;;  %vm6243_vm5 = vmxor %vm6201_vm8, %vm11231_vm13  ;;  %v6320_v53 = vpop.f32.mrf.mxu0  ;;  %v271_v62 = vld [vmem:[%s6050_s27 + $0x1c] sm:$0xf]  ;;  %v11397_v56 = vmov 0 }
 0x1c5   : > { %v11265_v11 = vsel %vm6243_vm5, 4294967295, %v11264_v11  ;;  %vm11267_vm3 = vmpackc.low %vm11266_vm15, %vm11266_vm15  ;;  %vm6265_vm14 = vcmp.ne.s32.totalorder %v766_v61, 0  ;;  %vm282_vm15 = vcmp.ne.bf16.partialorder %v266_v59, 0  ;;  %v268_v61 = vld [vmem:[%s6050_s27 + $0x10] sm:$0xf] }
 0x1c6   : > { %vm6253_vm2 = vmand %vm283_vm7, %vm11267_vm3  ;;  %v11275_v20 = vsel %vm6265_vm14, 4294967295, %v11274_v20  ;;  %v6279_v8 = vsel %vm6265_vm14, %v6022_v10, 0.0  ;;  %vm11284_vm3 = vnez %v11230_v36 }
 0x1c7   : > { %v11269_v1 = vsel %vm6253_vm2, 4294967295, %v11268_v1  ;;  %vm737_vm7 = vmand %vm6253_vm2, %vm6131_vm6  ;;  %11276 = vst [vmem:[#allocation21_spill] sm:$0xff] %v6279_v8  ;;  %814 = vadd.xlane.f32.xlu0 %v6279_v8  ;;  %vm6315_vm2 = vcmp.eq.s32.totalorder %v306_v6, %v6000_v63  ;;  %v308_v6 = vadd.s32 80, %v5997_v60  ;;  %v11393_v8 = vmov 0 }
 0x1c8   : > { %11270 = vst [vmem:[#allocation19_spill] sm:$0xff] %v11269_v1  ;;  %v753_v25 = vsel %vm737_vm7, 65537, %v10803_v44  ;;  %vm6286_vm5 = vmpackc.low %vm6144_vm4, %vm6144_vm4  ;;  %vm644_vm4 = vcmp.ge.f32.partialorder %v6159_v43, 0.1  ;;  %v11290_v46 = vsel %vm6315_vm2, 4294967295, %v11289_v46 }
 0x1c9   : > { %v11278_v30 = vsel %vm6286_vm5, 4294967295, %v11277_v30  ;;  %vm6292_vm6 = vmor %vm645_vm10, %vm6154_vm12  ;;  %v769_v42 = vunpack.c.l.b16 %v753_v25  ;;  %11291 = vst [vmem:[#allocation24_spill] sm:$0xff] %v11290_v46  ;;  %vm11296_vm5 = vnez %v11246_v50  ;;  %v11297_v25 = vmov 0 }
 0x1ca   : > { %11279 = vst [vmem:[#allocation22_spill] sm:$0xff] %v11278_v30  ;;  %vm6300_vm7 = vmxor %vm6258_vm0, %vm11231_vm13  ;;  %v11302_v50 = vmov 0  ;;  %v11347_v46 = vmov 0 }
 0x1cb   : > { %v11283_v37 = vsel %vm6300_vm7, 4294967295, %v11282_v37  ;;  %vm11285_vm10 = vmpackc.low %vm11284_vm3, %vm11284_vm3  ;;  %vm6322_vm14 = vcmp.ne.s32.totalorder %v769_v42, 0  ;;  %vm11294_vm7 = vnez %v11241_v47  ;;  %vm285_vm3 = vcmp.ne.bf16.partialorder %v269_v26, 0 }
 0x1cc   : > { %vm6310_vm12 = vmand %vm282_vm15, %vm11285_vm10  ;;  %v11293_v57 = vsel %vm6322_vm14, 4294967295, %v11292_v57  ;;  %v6336_v36 = vsel %vm6322_vm14, %v6037_v13, 0.0  ;;  %v11300_v26 = vmov 0  ;;  %v311_v47 = vadd.s32 104, %v5997_v60  ;;  %v275_v60 = vld [vmem:[%s6050_s27 + $0x2c] sm:$0xf] }
 0x1cd   : > { %v11287_v45 = vsel %vm6310_vm12, 4294967295, %v11286_v45  ;;  %vm736_vm15 = vmand %vm6310_vm12, %vm11294_vm7  ;;  %11295 = vst [vmem:[#allocation25_spill] sm:$0xff] %v6336_v36  ;;  %820 = vadd.xlane.f32.xlu1 %v6336_v36  ;;  %vm11327_vm14 = vnez %v11263_v4  ;;  %v11340_v4 = vmov 0  ;;  %v11360_v36 = vmov 0 }
 0x1ce   : > { %11288 = vst [vmem:[#allocation23_spill] sm:$0xff] %v11287_v45  ;;  %v752_v59 = vsel %vm736_vm15, 65537, %v10803_v44  ;;  %vm6344_vm1 = vmpackc.low %vm11296_vm5, %vm11296_vm5  ;;  %v6377_v44 = vpop.f32.mrf.mxu0  ;;  %vm6398_vm5 = vcmp.eq.s32.totalorder %v308_v6, %v6000_v63  ;;  %v11325_v6 = vmov 0 }
 0x1cf   : > { %v11298_v25 = vsel %vm6344_vm1, 4294967295, %v11297_v25  ;;  %vm6350_vm10 = vmor %vm644_vm4, %vm6201_vm8  ;;  %v768_v42 = vunpack.c.l.b16 %v752_v59  ;;  %vm6373_vm8 = vcmp.eq.s32.totalorder %v309_v49, %v6000_v63  ;;  %v11308_v59 = vmov 0 }
 0x1d0   : > { %11299 = vst [vmem:[#allocation26_spill] sm:$0xff] %v11298_v25  ;;  %v11301_v26 = vsel %vm6350_vm10, 4294967295, %v11300_v26  ;;  %vm6358_vm15 = vmxor %vm6315_vm2, %vm11231_vm13  ;;  %v11309_v59 = vsel %vm6373_vm8, 4294967295, %v11308_v59  ;;  %v11314_v49 = vmov 0   ;;  %v11316_v24 = vsel %vm6398_vm5, 4294967295, %v11315_v24 }
 0x1d1   : > { %v11303_v50 = vsel %vm6358_vm15, 4294967295, %v11302_v50  ;;  %vm11304_vm4 = vmpackc.low %vm6179_vm9, %vm6179_vm9  ;;  %11310 = vst [vmem:[#allocation28_spill] sm:$0xff] %v11309_v59  ;;  %vm6380_vm12 = vcmp.ne.s32.totalorder %v768_v42, 0  ;;  %v11368_v25 = vmov 0  ;;  %v11371_v59 = vmov 0 }
 0x1d2   : > { %vm6368_vm7 = vmand %vm285_vm3, %vm11304_vm4  ;;  %v11312_v33 = vsel %vm6380_vm12, 4294967295, %v11311_v33  ;;  %vm284_vm3 = vcmp.ne.bf16.partialorder %v268_v61, 0  ;;  %v6394_v48 = vsel %vm6380_vm12, %v6060_v2, 0.0  ;;  %11317 = vst [vmem:[#allocation30_spill] sm:$0xff] %v11316_v24  ;;  %v11319_v61 = vmov 0 }
 0x1d3   : > { %v11306_v58 = vsel %vm6368_vm7, 4294967295, %v11305_v58  ;;  %vm739_vm9 = vmand %vm6368_vm7, %vm6229_vm11  ;;  %11313 = vst [vmem:[#allocation29_spill] sm:$0xff] %v6394_v48  ;;  %vm11318_vm11 = vnez %v11265_v11  ;;  %vm11322_vm4 = vcmp.ge.f32.partialorder %v6206_v54, 0.1  ;;  %818 = vadd.xlane.f32.xlu0 %v6394_v48  ;;  %vm646_vm12 = vcmp.ge.f32.partialorder %v6263_v19, 0.1 }
 0x1d4   : > { %11307 = vst [vmem:[#allocation27_spill] sm:$0xff] %v11306_v58  ;;  %v755_v42 = vsel %vm739_vm9, 65537, %v11314_v49  ;;  %vm6406_vm7 = vmpackc.low %vm11318_vm11, %vm11318_vm11  ;;  %v11384_v24 = vmov 0  ;;  %v11452_v48 = vmov 0 }
 0x1d5   : > { %v11320_v61 = vsel %vm6406_vm7, 4294967295, %v11319_v61  ;;  %vm6415_vm9 = vmor %vm11322_vm4, %vm6258_vm0  ;;  %v771_v11 = vunpack.c.l.b16 %v755_v42  ;;  %vm6438_vm7 = vcmp.eq.s32.totalorder %v311_v47, %v6000_v63  ;;  %v6442_v42 = vpop.f32.mrf.mxu0  ;;  %v11338_v47 = vmov 0 }
 0x1d6   : > { %11321 = vst [vmem:[#allocation31_spill] sm:$0xff] %v11320_v61  ;;  %vm6424_vm11 = vmxor %vm6373_vm8, %vm11231_vm13  ;;  %v11333_v52 = vsel %vm6438_vm7, 4294967295, %v11332_v52 }
 0x1d7   : > { %v11326_v6 = vsel %vm6424_vm11, 4294967295, %v11325_v6  ;;  %vm11328_vm4 = vmpackc.low %vm11327_vm14, %vm11327_vm14  ;;  %11334 = vst [vmem:[#allocation33_spill] sm:$0xff] %v11333_v52  ;;  %vm6445_vm10 = vcmp.ne.s32.totalorder %v771_v11, 0  ;;  %vm11337_vm11 = vnez %v11278_v30 }
 0x1d8   : > { %vm6433_vm0 = vmand %vm284_vm3, %vm11328_vm4  ;;  %v11336_v9 = vsel %vm6445_vm10, 4294967295, %v11335_v9  ;;  %v6469_v11 = vsel %vm6445_vm10, %v6087_v21, 0.0  ;;  %vm6474_vm3 = vcmp.eq.s32.totalorder %v310_v14, %v6000_v63  ;;  %vm11353_vm10 = vcmp.ne.bf16.partialorder %v271_v62, 0 }
 0x1d9   : > { %v11330_v18 = vsel %vm6433_vm0, 4294967295, %v11329_v18  ;;  %vm738_vm14 = vmand %vm6433_vm0, %vm11337_vm11  ;;  %11342 = vst [vmem:[#allocation34_spill] sm:$0xff] %v6469_v11  ;;  %v11344_v12 = vsel %vm6474_vm3, 4294967295, %v11343_v12  ;;  %vm11346_vm11 = vnez %v11283_v37  ;;  %824 = vadd.xlane.f32.xlu1 %v6469_v11  ;;  %v11350_v37 = vmov 0 }
 0x1da   : > { %11331 = vst [vmem:[#allocation32_spill] sm:$0xff] %v11330_v18  ;;  %vm6456_vm4 = vmxor %vm6398_vm5, %vm11231_vm13  ;;  %v754_v30 = vsel %vm738_vm14, 65537, %v11314_v49  ;;  %vm649_vm14 = vcmp.ge.f32.partialorder %v6320_v53, 0.1  ;;  %v11354_v11 = vmov 0 }
 0x1db   : > { %v11339_v47 = vsel %vm6456_vm4, 4294967295, %v11338_v47  ;;  %vm6462_vm15 = vmor %vm646_vm12, %vm6315_vm2  ;;  %11345 = vst [vmem:[#allocation35_spill] sm:$0xff] %v11344_v12  ;;  %v770_v14 = vunpack.c.l.b16 %v754_v30  ;;  %v6509_v30 = vpop.f32.mrf.mxu0  ;;  %vm6512_vm4 = vcmp.eq.s32.totalorder %v313_v15, %v6000_v63  ;;  %v11362_v15 = vmov 0 }
 0x1dc   : > { %v11341_v4 = vsel %vm6462_vm15, 4294967295, %v11340_v4  ;;  %vm6481_vm12 = vmpackc.low %vm11346_vm11, %vm11346_vm11  ;;  %v11358_v7 = vsel %vm6512_vm4, 4294967295, %v11357_v7  ;;  %v11404_v12 = vmov 0 }
 0x1dd   : > { %v11348_v46 = vsel %vm6481_vm12, 4294967295, %v11347_v46  ;;  %vm6494_vm0 = vmxor %vm6438_vm7, %vm11231_vm13  ;;  %11359 = vst [vmem:[#allocation38_spill] sm:$0xff] %v11358_v7 }
 0x1de   : > { %11349 = vst [vmem:[#allocation36_spill] sm:$0xff] %v11348_v46  ;;  %v11351_v37 = vsel %vm6494_vm0, 4294967295, %v11350_v37  ;;  %vm11352_vm2 = vmpackc.low %vm6292_vm6, %vm6292_vm6  ;;  %vm6519_vm0 = vcmp.ne.s32.totalorder %v770_v14, 0  ;;  %vm286_vm6 = vcmp.ne.bf16.partialorder %v270_v0, 0  ;;  %v273_v14 = vld [vmem:[%s6050_s27 + $0x24] sm:$0xf] }
 0x1df   : > { %vm6505_vm12 = vmand %vm11353_vm10, %vm11352_vm2  ;;  %v11361_v36 = vsel %vm6519_vm0, 4294967295, %v11360_v36  ;;  %v6543_v32 = vsel %vm6519_vm0, %v6116_v27, 0.0 }
 0x1e0   : > { %v11355_v11 = vsel %vm6505_vm12, 4294967295, %v11354_v11  ;;  %vm741_vm2 = vmand %vm6505_vm12, %vm6344_vm1  ;;  %11366 = vst [vmem:[#allocation39_spill] sm:$0xff] %v6543_v32  ;;  %vm11367_vm1 = vnez %v11303_v50  ;;  %822 = vadd.xlane.f32.xlu0 %v6543_v32  ;;  %v272_v32 = vld [vmem:[%s6050_s27 + $0x20] sm:$0xf] }
 0x1e1   : > { %11356 = vst [vmem:[#allocation37_spill] sm:$0xff] %v11355_v11  ;;  %vm6530_vm10 = vmxor %vm6474_vm3, %vm11231_vm13  ;;  %v757_v0 = vsel %vm741_vm2, 65537, %v11314_v49 }
 0x1e2   : > { %v11363_v15 = vsel %vm6530_vm10, 4294967295, %v11362_v15  ;;  %vm6536_vm11 = vmor %vm649_vm14, %vm6373_vm8  ;;  %vm6555_vm14 = vcmp.eq.s32.totalorder %v312_v3, %v6000_v63  ;;  %vm11374_vm8 = vcmp.ge.f32.partialorder %v6377_v44, 0.1  ;;  %v773_v50 = vunpack.c.l.b16 %v757_v0  ;;  %v6586_v0 = vpop.f32.mrf.mxu0 }
 0x1e3   : > { %vm6550_vm12 = vmpackc.low %vm11367_vm1, %vm11367_vm1  ;;  %v11372_v59 = vsel %vm6555_vm14, 4294967295, %v11371_v59  ;;  %vm651_vm1 = vcmp.ge.f32.partialorder %v6442_v42, 0.1  ;;  %v11377_v63 = vmov 0  ;;  %v11381_v3 = vmov 0 }
 0x1e4   : > { %v11369_v25 = vsel %vm6550_vm12, 4294967295, %v11368_v25  ;;  %11373 = vst [vmem:[#allocation41_spill] sm:$0xff] %v11372_v59  ;;  %vm6564_vm2 = vmor %vm11374_vm8, %vm6398_vm5  ;;  %vm11379_vm12 = vnez %v11301_v26  ;;  %vm11392_vm8 = vnez %v11326_v6  ;;  %v11400_v6 = vmov 0  ;;  %v276_v59 = vld [vmem:[%s6050_s27 + $0x30] sm:$0xf] }
 0x1e5   : > { %11370 = vst [vmem:[#allocation40_spill] sm:$0xff] %v11369_v25  ;;  %vm6572_vm0 = vmxor %vm6512_vm4, %vm11231_vm13  ;;  %vm6591_vm4 = vcmp.ne.s32.totalorder %v773_v50, 0 }
 0x1e6   : > { %v11378_v63 = vsel %vm6572_vm0, 4294967295, %v11377_v63  ;;  %vm11380_vm10 = vmpackc.low %vm11379_vm12, %vm11379_vm12  ;;  %v11385_v24 = vsel %vm6591_vm4, 4294967295, %v11384_v24  ;;  %vm11386_vm0 = vnez %v11320_v61  ;;  %v6609_v50 = vsel %vm6591_vm4, %v6125_v31, 0.0 }
 0x1e7   : > { %vm6581_vm15 = vmand %vm286_vm6, %vm11380_vm10  ;;  %vm289_vm6 = vcmp.ne.bf16.partialorder %v273_v14, 0  ;;  %11389 = vst [vmem:[#allocation43_spill] sm:$0xff] %v6609_v50  ;;  %v11390_v61 = vmov 0  ;;  %828 = vadd.xlane.f32.xlu1 %v6609_v50 }
 0x1e8   : > { %v11382_v3 = vsel %vm6581_vm15, 4294967295, %v11381_v3  ;;  %vm740_vm12 = vmand %vm6581_vm15, %vm11386_vm0  ;;  %vm11403_vm0 = vnez %v11339_v47 }
 0x1e9   : > { %11383 = vst [vmem:[#allocation42_spill] sm:$0xff] %v11382_v3  ;;  %vm6602_vm10 = vmxor %vm6555_vm14, %vm11231_vm13  ;;  %v756_v14 = vsel %vm740_vm12, 65537, %v11314_v49 }
 0x1ea   : > { %vm6613_vm5 = vmor %vm651_vm1, %vm6438_vm7  ;;  %v772_v52 = vunpack.c.l.b16 %v756_v14  ;;  %vm11396_vm1 = vcmp.ge.f32.partialorder %v6509_v30, 0.1  ;;  %v6648_v14 = vpop.f32.mrf.mxu0 }
 0x1eb   : > { %v11391_v61 = vsel %vm6613_vm5, 4294967295, %v11390_v61  ;;  %vm6622_vm13 = vmpackc.low %vm11392_vm8, %vm11392_vm8  ;;  %vm653_vm8 = vcmp.ge.f32.partialorder %v6586_v0, 0.1  ;;  %vm11414_vm5 = vnez %v11351_v37  ;;  %v11420_v37 = vmov 0 }
 0x1ec   : > { %v11394_v8 = vsel %vm6622_vm13, 4294967295, %v11393_v8  ;;  %vm6634_vm12 = vmor %vm11396_vm1, %vm6474_vm3  ;;  %vm6660_vm4 = vcmp.ne.s32.totalorder %v772_v52, 0 }
 0x1ed   : > { %11395 = vst [vmem:[#allocation44_spill] sm:$0xff] %v11394_v8  ;;  %v11398_v56 = vsel %vm6634_vm12, 4294967295, %v11397_v56  ;;  %vm11399_vm7 = vmpackc.low %vm6415_vm9, %vm6415_vm9  ;;  %v11408_v39 = vsel %vm6660_vm4, 4294967295, %v11407_v39  ;;  %v6671_v47 = vsel %vm6660_vm4, %v6159_v43, 0.0  ;;  %vm291_vm12 = vcmp.ne.bf16.partialorder %v275_v60, 0 }
 0x1ee   : > { %vm6644_vm15 = vmand %vm289_vm6, %vm11399_vm7  ;;  %vm11409_vm7 = vnez %v11348_v46  ;;  %vm288_vm6 = vcmp.ne.bf16.partialorder %v272_v32, 0  ;;  %11410 = vst [vmem:[#allocation47_spill] sm:$0xff] %v6671_v47  ;;  %v11415_v32 = vmov 0  ;;  %826 = vadd.xlane.f32.xlu0 %v6671_v47  ;;  %v11424_v47 = vmov 0  ;;  %v279_v8 = vld [vmem:[%s6050_s27 + $0x3c] sm:$0xf] }
 0x1ef   : > { %v11401_v6 = vsel %vm6644_vm15, 4294967295, %v11400_v6  ;;  %vm6653_vm1 = vmpackc.low %vm11403_vm0, %vm11403_vm0  ;;  %vm11411_vm0 = vnez %v11358_v7  ;;  %v274_v7 = vld [vmem:[%s6050_s27 + $0x28] sm:$0xf]  ;;  %v11434_v60 = vmov 0 }
 0x1f0   : > { %11402 = vst [vmem:[#allocation45_spill] sm:$0xff] %v11401_v6  ;;  %v11405_v12 = vsel %vm6653_vm1, 4294967295, %v11404_v12  ;;  %vm743_vm9 = vmand %vm6644_vm15, %vm11409_vm7  ;;  %v277_v6 = vld [vmem:[%s6050_s27 + $0x34] sm:$0xf] }
 0x1f1   : > { %11406 = vst [vmem:[#allocation46_spill] sm:$0xff] %v11405_v12  ;;  %v759_v50 = vsel %vm743_vm9, 65537, %v11314_v49  ;;  %vm6676_vm3 = vmor %vm653_vm8, %vm11411_vm0  ;;  %vm652_vm8 = vcmp.ge.f32.partialorder %v6648_v14, 0.1  ;;  %vm11418_vm0 = vnez %v11341_v4 }
 0x1f2   : > { %vm6684_vm7 = vmpackc.low %vm11414_vm5, %vm11414_vm5  ;;  %v775_v46 = vunpack.c.l.b16 %v759_v50  ;;  %vm11423_vm5 = vnez %v11363_v15 }
 0x1f3   : > { %v11416_v32 = vsel %vm6684_vm7, 4294967295, %v11415_v32  ;;  %vm11419_vm15 = vmpackc.low %vm11418_vm0, %vm11418_vm0 }
 0x1f4   : > { %11417 = vst [vmem:[#allocation48_spill] sm:$0xff] %v11416_v32  ;;  %vm6698_vm4 = vmand %vm288_vm6, %vm11419_vm15  ;;  %vm6710_vm9 = vcmp.ne.s32.totalorder %v775_v46, 0  ;;  %vm11429_vm6 = vnez %v11369_v25  ;;  %vm11433_vm15 = vnez %v11378_v63  ;;  %v11438_v63 = vmov 0 }
 0x1f5   : > { %v11421_v37 = vsel %vm6698_vm4, 4294967295, %v11420_v37  ;;  %vm6706_vm7 = vmpackc.low %vm11423_vm5, %vm11423_vm5  ;;  %v6724_v4 = vsel %vm6710_vm9, %v6206_v54, 0.0 }
 0x1f6   : > { %11422 = vst [vmem:[#allocation49_spill] sm:$0xff] %v11421_v37  ;;  %v11425_v47 = vsel %vm6706_vm7, 4294967295, %v11424_v47  ;;  %vm742_vm0 = vmand %vm6698_vm4, %vm11429_vm6  ;;  %832 = vadd.xlane.f32.xlu1 %v6724_v4 }
 0x1f7   : > { %11426 = vst [vmem:[#allocation50_spill] sm:$0xff] %v11425_v47  ;;  %11430 = vst [vmem:[#allocation51_spill] sm:$0xff] %v6724_v4  ;;  %v758_v46 = vsel %vm742_vm0, 65537, %v11314_v49 }
 0x1f8   : > { %vm6729_vm5 = vmor %vm652_vm8, %vm6555_vm14  ;;  %v774_v25 = vunpack.c.l.b16 %v758_v46  ;;  %vm290_vm8 = vcmp.ne.bf16.partialorder %v274_v7, 0  ;;  %v11441_v46 = vmov 0 }
 0x1f9   : > { %vm6737_vm6 = vmpackc.low %vm11433_vm15, %vm11433_vm15 }
 0x1fa   : > { %v11435_v60 = vsel %vm6737_vm6, 4294967295, %v11434_v60  ;;  %vm11437_vm14 = vmpackc.low %vm6536_vm11, %vm6536_vm11  ;;  %vm6762_vm0 = vcmp.ne.s32.totalorder %v774_v25, 0  ;;  %v11447_v25 = vmov 0 }
 0x1fb   : > { %11436 = vst [vmem:[#allocation52_spill] sm:$0xff] %v11435_v60  ;;  %vm6750_vm4 = vmand %vm291_vm12, %vm11437_vm14  ;;  %vm293_vm14 = vcmp.ne.bf16.partialorder %v277_v6, 0  ;;  %v6773_v62 = vsel %vm6762_vm0, %v6263_v19, 0.0 }
 0x1fc   : > { %v11439_v63 = vsel %vm6750_vm4, 4294967295, %v11438_v63  ;;  %vm6758_vm15 = vmpackc.low %vm6602_vm10, %vm6602_vm10  ;;  %830 = vadd.xlane.f32.xlu0 %v6773_v62 }
 0x1fd   : > { %11440 = vst [vmem:[#allocation53_spill] sm:$0xff] %v11439_v63  ;;  %v11442_v46 = vsel %vm6758_vm15, 4294967295, %v11441_v46  ;;  %vm745_vm11 = vmand %vm6750_vm4, %vm6622_vm13  ;;  %vm292_vm4 = vcmp.ne.bf16.partialorder %v276_v59, 0  ;;  %v278_v63 = vld [vmem:[%s6050_s27 + $0x38] sm:$0xf] }
 0x1fe   : > { %11443 = vst [vmem:[#allocation54_spill] sm:$0xff] %v11442_v46  ;;  %v761_v26 = vsel %vm745_vm11, 65537, %v11314_v49  ;;  %vm11446_vm10 = vmpackc.low %vm6564_vm2, %vm6564_vm2  ;;  %vm11450_vm11 = vnez %v11391_v61  ;;  %v11479_v46 = vmov 0.0  }
 0x1ff   : > { %vm6781_vm12 = vmand %vm290_vm8, %vm11446_vm10  ;;  %v777_v6 = vunpack.c.l.b16 %v761_v26 }
 0x200   : > { %v11448_v25 = vsel %vm6781_vm12, 4294967295, %v11447_v25  ;;  %vm744_vm13 = vmand %vm6781_vm12, %vm6653_vm1  ;;  %vm11457_vm1 = vnez %v11416_v32  ;;  %vm295_vm12 = vcmp.ne.bf16.partialorder %v279_v8, 0 }
 0x201   : > { %11449 = vst [vmem:[#allocation55_spill] sm:$0xff] %v11448_v25  ;;  %v760_v4 = vsel %vm744_vm13, 65537, %v11314_v49  ;;  %vm11451_vm2 = vmpackc.low %vm11450_vm11, %vm11450_vm11  ;;  %vm6802_vm10 = vcmp.ne.s32.totalorder %v777_v6, 0 }
 0x202   : > { %vm6797_vm8 = vmand %vm293_vm14, %vm11451_vm2  ;;  %v776_v12 = vunpack.c.l.b16 %v760_v4  ;;  %v6813_v59 = vsel %vm6802_vm10, %v6320_v53, 0.0  ;;  %vm11459_vm14 = vnez %v11398_v56  ;;  %v11461_v4 = vmov 0 }
 0x203   : > { %v11453_v48 = vsel %vm6797_vm8, 4294967295, %v11452_v48  ;;  %vm747_vm13 = vmand %vm6797_vm8, %vm11457_vm1  ;;  %11458 = vst [vmem:[#allocation57_spill] sm:$0xff] %v6813_v59  ;;  %836 = vadd.xlane.f32.xlu1 %v6813_v59  ;;  %vm294_vm8 = vcmp.ne.bf16.partialorder %v278_v63, 0 }
 0x204   : > { %11454 = vst [vmem:[#allocation56_spill] sm:$0xff] %v11453_v48  ;;  %v763_v61 = vsel %vm747_vm13, 65537, %v11314_v49  ;;  %vm11460_vm11 = vmpackc.low %vm11459_vm14, %vm11459_vm14  ;;  %vm6826_vm1 = vcmp.ne.s32.totalorder %v776_v12, 0  ;;  %v11467_v12 = vmov 0 }
 0x205   : > { %vm6821_vm2 = vmand %vm292_vm4, %vm11460_vm11  ;;  %v779_v6 = vunpack.c.l.b16 %v763_v61  ;;  %v6837_v56 = vsel %vm6826_vm1, %v6377_v44, 0.0 }
 0x206   : > { %v11462_v4 = vsel %vm6821_vm2, 4294967295, %v11461_v4  ;;  %vm746_vm13 = vmand %vm6821_vm2, %vm6706_vm7  ;;  %834 = vadd.xlane.f32.xlu0 %v6837_v56 }
 0x207   : > { %11463 = vst [vmem:[#allocation58_spill] sm:$0xff] %v11462_v4  ;;  %v762_v32 = vsel %vm746_vm13, 65537, %v11314_v49  ;;  %vm11466_vm4 = vmpackc.low %vm6676_vm3, %vm6676_vm3  ;;  %vm6850_vm11 = vcmp.ne.s32.totalorder %v779_v6, 0  ;;  %v11474_v6 = vmov 0 }
 0x208   : > { %vm6845_vm14 = vmand %vm295_vm12, %vm11466_vm4  ;;  %v778_v61 = vunpack.c.l.b16 %v762_v32  ;;  %v6861_v52 = vsel %vm6850_vm11, %v6442_v42, 0.0 }
 0x209   : > { %v11468_v12 = vsel %vm6845_vm14, 4294967295, %v11467_v12  ;;  %vm749_vm13 = vmand %vm6845_vm14, %vm6737_vm6  ;;  %11472 = vst [vmem:[#allocation60_spill] sm:$0xff] %v6861_v52  ;;  %840 = vadd.xlane.f32.xlu1 %v6861_v52  ;;  %vm11512_vm6 = vnez %v11382_v3 }
 0x20a   : > { %11469 = vst [vmem:[#allocation59_spill] sm:$0xff] %v11468_v12  ;;  %v765_v47 = vsel %vm749_vm13, 65537, %v11314_v49  ;;  %vm11473_vm3 = vmpackc.low %vm6729_vm5, %vm6729_vm5  ;;  %vm6874_vm4 = vcmp.ne.s32.totalorder %v778_v61, 0 }
 0x20b   : > { %vm6869_vm12 = vmand %vm294_vm8, %vm11473_vm3  ;;  %v781_v60 = vunpack.c.l.b16 %v765_v47  ;;  %v6885_v15 = vsel %vm6874_vm4, %v6509_v30, 0.0  ;;  %vm11485_vm3 = vnez %v11312_v33  ;;  %v1212_v33 = vpack.c.bf16 %v5836_v16, %v5839_v17 }
 0x20c   : > { %v11475_v6 = vsel %vm6869_vm12, 4294967295, %v11474_v6  ;;  %vm748_vm13 = vmand %vm6869_vm12, %vm6758_vm15  ;;  %838 = vadd.xlane.f32.xlu0 %v6885_v15 }
 0x20d   : > { %11476 = vst [vmem:[#allocation61_spill] sm:$0xff] %v11475_v6  ;;  %v764_v59 = vsel %vm748_vm13, 65537, %v11314_v49  ;;  %vm797_vm5 = vcmp.ne.s32.totalorder %v781_v60, 0  ;;  %vm11487_vm13 = vnez %v11275_v20 }
 0x20e   : > { %v780_v61 = vunpack.c.l.b16 %v764_v59  ;;  %4898 = vmatpush3.xpose.msk.msra.mxu1 %vm797_vm5, %v6586_v0  ;;  %v6891_v47 = vsel %vm797_vm5, %v6586_v0, 0.0  ;;  %vm11488_vm5 = vcmask 261120   ;;  %v11564_v59 = vld [vmem:[#allocation5_spill] sm:$0xff] }
 0x20f   : > { %844 = vadd.xlane.f32.xlu1 %v6891_v47  ;;  %4899 = vmatprep.subr.mxu1 %v11479_v46 }
 0x210   : > { %vm796_vm8 = vcmp.ne.s32.totalorder %v780_v61, 0 }
 0x211   : > { %v6896_v52 = vsel %vm796_vm8, %v6648_v14, 0.0 }
 0x212   : > { %842 = vadd.xlane.f32.xlu0 %v6896_v52  ;;  %4900 = vmatpush3.xpose.msk.msra.mxu1 %vm796_vm8, %v6648_v14  ;;  %vm11489_vm8 = vmmov %vm11488_vm5 }
 0x213   : > { %4901 = vmatprep.subr.mxu1 %v11479_v46 }
 0x216   : > { %4902 = vmatpush3.xpose.msk.msra.mxu1 %vm6850_vm11, %v6442_v42  ;;  %vm11484_vm11 = vnez %v11293_v57  ;;  %v11555_v57 = vld [vmem:[#allocation3_spill] sm:$0xff] }
 0x217   : > { %4903 = vmatprep.subr.mxu1 %v11479_v46 }
 0x21a   : > { %4904 = vmatpush3.xpose.msk.msra.mxu1 %vm6874_vm4, %v6509_v30  ;;  %vm11486_vm4 = vnez %v11255_v55  ;;  %v5738_v55 = vld [vmem:[%s5799_s23 + $0x70] sm:$0xff] }
 0x21b   : > { %4905 = vmatprep.subr.mxu1 %v11479_v46 }
 0x21e   : > { %4906 = vmatpush3.xpose.msk.msra.mxu1 %vm6802_vm10, %v6320_v53  ;;  %vm11480_vm10 = vnez %v11385_v24  ;;  %v1207_v24 = vld [vmem:[%s10755_s2 + $0x18] sm:$0xff] }
 0x21f   : > { %4907 = vmatprep.subr.mxu1 %v11479_v46 }
 0x222   : > { %4908 = vmatpush3.xpose.msk.msra.mxu1 %vm6826_vm1, %v6377_v44  ;;  %vm11481_vm1 = vnez %v11408_v39 }
 0x223   : > { %4909 = vmatprep.subr.mxu1 %v11479_v46 }
 0x226   : > { %4910 = vmatpush3.xpose.msk.msra.mxu1 %vm6710_vm9, %v6206_v54  ;;  %vm11482_vm9 = vnez %v11336_v9  ;;  %v1205_v9 = vld [vmem:[%s10755_s2 + $0x8] sm:$0xff]  ;;  %v5737_v54 = vld [vmem:[%s5799_s23 + $0x78] sm:$0xff] }
 0x227   : > { %4911 = vmatprep.subr.mxu1 %v11479_v46 }
 0x22a   : > { %4912 = vmatpush3.xpose.msk.msra.mxu1 %vm6762_vm0, %v6263_v19  ;;  %vm11483_vm0 = vnez %v11361_v36 }
 0x22b   : > { %4913 = vmatprep.subr.mxu1 %v11479_v46 }
 0x22e   : > { %4914 = vmatpush3.xpose.msk.msra.mxu1 %vm11480_vm10, %v6125_v31  ;;  %v10960_v31 = vmov 1.0   ;;  %vm11490_vm10 = vmmov %vm11488_vm5 }
 0x22f   : > { %4915 = vmatprep.subr.mxu1 %v11479_v46 }
 0x232   : > { %4916 = vmatpush3.xpose.msk.msra.mxu1 %vm11481_vm1, %v6159_v43  ;;  %vm11491_vm1 = vmmov %vm11488_vm5  ;;  %v5736_v43 = vld [vmem:[%s5799_s23 + $0x60] sm:$0xff] }
 0x233   : > { %4917 = vmatprep.subr.mxu1 %v11479_v46 }
 0x236   : > { %4918 = vmatpush3.xpose.msk.msra.mxu1 %vm11482_vm9, %v6087_v21  ;;  %v1206_v21 = vld [vmem:[%s10755_s2 + $0x10] sm:$0xff]  ;;  %vm11492_vm9 = vmmov %vm11491_vm1 }
 0x237   : > { %4919 = vmatprep.subr.mxu1 %v11479_v46 }
 0x23a   : > { %4920 = vmatpush3.xpose.msk.msra.mxu1 %vm11483_vm0, %v6116_v27  ;;  %v1208_v27 = vpack.c.bf16 %v5884_v40, %v5887_v41  ;;  %v1209_v40 = vpack.c.bf16 %v5872_v34, %v5875_v35  ;;  %v1210_v41 = vpack.c.bf16 %v5860_v28, %v5863_v29  ;;  %v5733_v34 = vld [vmem:[%s5799_s23 + $0x58] sm:$0xff]  ;;  %v5734_v35 = vld [vmem:[%s5799_s23 + $0x50] sm:$0xff]  ;;  %v5735_v29 = vld [vmem:[%s5799_s23 + $0x68] sm:$0xff] }
 0x23b   : > { %4921 = vmatprep.subr.mxu1 %v11479_v46  ;;  %v1213_v28 = vpack.c.bf16 %v5733_v34, %v5734_v35  ;;  %v1214_v44 = vpack.c.bf16 %v5735_v29, %v5736_v43  ;;  %vm11493_vm0 = vmmov %vm11491_vm1  ;;  %v11575_v43 = vld [vmem:[#allocation24_spill] sm:$0xff] }
 0x23e   : > { %4922 = vmatpush3.xpose.msk.msra.mxu1 %vm11484_vm11, %v6037_v13  ;;  %v1217_v13 = vpack.c.bf16 %v1207_v24, %v1206_v21  ;;  %vm11494_vm11 = vmmov %vm11493_vm0  ;;  %v1009_v21 = vsel %vm11512_vm6, 65537, %v11314_v49  ;;  %vm11518_vm6 = vnez %v11421_v37 }
 0x23f   : > { %4923 = vmatprep.subr.mxu1 %v11479_v46 }
 0x242   : > { %4924 = vmatpush3.xpose.msk.msra.mxu1 %vm11485_vm3, %v6060_v2  ;;  %v1204_v2 = vld [vmem:[%s10755_s2] sm:$0xff]  ;;  %vm11495_vm3 = vmmov %vm11493_vm0 }
 0x243   : > { %4925 = vmatprep.subr.mxu1 %v11479_v46 }
 0x246   : > { %4926 = vmatpush3.xpose.msk.msra.mxu1 %vm11486_vm4, %v6009_v5  ;;  %v1216_v5 = vpack.c.bf16 %v1205_v9, %v1204_v2  ;;  %vm11496_vm4 = vnez %v11249_v51  ;;  %v1025_v9 = vunpack.c.l.b16 %v1009_v21 }
 0x247   : > { %4927 = vmatprep.subr.mxu1 %v11479_v46  ;;  %v1003_v16 = vsel %vm11496_vm4, 65537, %v11314_v49 }
 0x248   : > { %v1019_v19 = vunpack.c.l.b16 %v1003_v16 }
 0x24a   : > { %4928 = vmatpush3.xpose.msk.msra.mxu1 %vm11487_vm13, %v6022_v10  ;;  %v1211_v10 = vpack.c.bf16 %v5848_v22, %v5851_v23  ;;  %v1215_v22 = vpack.c.bf16 %v5737_v54, %v5738_v55  ;;  %vm11497_vm13 = vnez %v11235_v38  ;;  %v11521_v54 = vld [vmem:[#allocation45_spill] sm:$0xff] }
 0x24b   : > { %4932 = vmatprep.subr.bf16.mxu1 %v1217_v13  ;;  %v1004_v17 = vsel %vm11497_vm13, 65537, %v11314_v49 }
 0x24c   : > { %v1020_v20 = vunpack.c.l.b16 %v1004_v17 }
 0x24d   : > { %4930 = vmatmul.mubr.f32.vlgmr.msra.gmra.mxu1 %v10960_v31 }
 0x24e   : > { %4933 = vmatpush3.bf16.msra.mxu1 %v1217_v13  ;;  %4936 = vmatprep.mubr.msk.bf16.mxu1 %vm11488_vm5, %v1208_v27  ;;  %vm11498_vm5 = vnez %v11287_v45  ;;  %v11568_v27 = vld [vmem:[#allocation8_spill] sm:$0xff] }
 0x24f   : > { %4934 = vmatprep.subr.bf16.mxu1 %v1216_v5  ;;  %v1005_v23 = vsel %vm11498_vm5, 65537, %v11314_v49  ;;  %vm11522_vm5 = vnez %v11521_v54 }
 0x250   : > { %v1021_v53 = vunpack.c.l.b16 %v1005_v23  ;;  %v1012_v55 = vsel %vm11522_vm5, 65537, %v11314_v49 }
 0x251   : > { %v1028_v23 = vunpack.c.l.b16 %v1012_v55 }
 0x252   : > { %4935 = vmatpush3.bf16.msra.mxu1 %v1216_v5 }
 0x253   : > { %vm7089_vm5 = vcmp.ne.s32.totalorder %v1028_v23, 0 }
 0x255   : > { %4937 = vmatmul.mubr.msk.bf16.vlgmr.msra.gmra.mxu1 %vm11489_vm8, %v1209_v40  ;;  %vm7002_vm8 = vcmp.ne.s32.totalorder %v1019_v19, 0 }
 0x256   : > { %4940 = vmatprep.mubr.msk.bf16.mxu1 %vm11490_vm10, %v1210_v41  ;;  %vm11501_vm10 = vnez %v11269_v1  ;;  %v4443_v14 = vsel %vm7002_vm8, 1.0, %v11479_v46 }
 0x257   : > { %v1006_v36 = vsel %vm11501_vm10, 65537, %v11314_v49 }
 0x258   : > { %v1022_v39 = vunpack.c.l.b16 %v1006_v36  ;;  %v11526_v36 = vmov 0 }
 0x259   : > { %v11527_v36 = vsel %vm7089_vm5, 4294967295, %v11526_v36 }
 0x25d   : > { %4941 = vmatmul.mubr.msk.bf16.gmra.mxu1 %vm11491_vm1, %v1211_v10  ;;  %vm7009_vm1 = vcmp.ne.s32.totalorder %v1021_v53, 0 }
 0x25e   : > { %4944 = vmatprep.mubr.msk.bf16.mxu1 %vm11492_vm9, %v1212_v33  ;;  %vm7013_vm9 = vcmp.ne.s32.totalorder %v1020_v20, 0  ;;  %v4445_v50 = vsel %vm7009_vm1, 1.0, %v11479_v46  ;;  %v1011_v33 = vsel %vm11518_vm6, 65537, %v11314_v49  ;;  %vm11525_vm6 = vnez %v11448_v25 }
 0x25f   : > { %v4444_v60 = vsel %vm7013_vm9, 1.0, %v11479_v46  ;;  %v1027_v29 = vunpack.c.l.b16 %v1011_v33  ;;  %v1013_v17 = vsel %vm11525_vm6, 65537, %v11314_v49 }
 0x260   : > { %v1083_v26 = vadd.f32 %v4444_v60, %v4443_v14  ;;  %v1029_v53 = vunpack.c.l.b16 %v1013_v17  ;;  %v11528_v14 = vld [vmem:[#allocation53_spill] sm:$0xff]  ;;  %v4452_v60 = vsel %vm7089_vm5, 1.0, %v11479_v46 }
 0x261   : > { %vm7076_vm10 = vcmp.ne.s32.totalorder %v1027_v29, 0  ;;  %vm11529_vm4 = vnez %v11528_v14  ;;  %v1018_v29 = vsel %vm6845_vm14, 65537, %v11314_v49 }
 0x262   : > { %v1084_v8 = vadd.f32 %v4445_v50, %v1083_v26  ;;  %v4451_v20 = vsel %vm7076_vm10, 1.0, %v11479_v46  ;;  %vm7096_vm13 = vcmp.ne.s32.totalorder %v1029_v53, 0 }
 0x265   : > { %4945 = vmatmul.mubr.msk.bf16.gmra.mxu1 %vm11493_vm0, %v1213_v28  ;;  %vm11506_vm0 = vnez %v11330_v18 }
 0x266   : > { %4948 = vmatprep.mubr.msk.bf16.mxu1 %vm11494_vm11, %v1214_v44  ;;  %v1007_v0 = vsel %vm11506_vm0, 65537, %v11314_v49  ;;  %vm7029_vm11 = vcmp.ne.s32.totalorder %v1022_v39, 0  ;;  %vm11515_vm0 = vnez %v11355_v11  ;;  %v1014_v39 = vsel %vm11529_vm4, 65537, %v11314_v49 }
 0x267   : > { %v1023_v7 = vunpack.c.l.b16 %v1007_v0  ;;  %v4446_v61 = vsel %vm7029_vm11, 1.0, %v11479_v46  ;;  %v1010_v40 = vsel %vm11515_vm0, 65537, %v11314_v49  ;;  %v1030_v26 = vunpack.c.l.b16 %v1014_v39 }
 0x268   : > { %v1085_v13 = vadd.f32 %v4446_v61, %v1084_v8  ;;  %v1026_v34 = vunpack.c.l.b16 %v1010_v40  ;;  %vm11534_vm4 = vnez %v11453_v48 }
 0x269   : > { %vm7036_vm15 = vcmp.ne.s32.totalorder %v1023_v7, 0  ;;  %v1015_v7 = vsel %vm6821_vm2, 65537, %v11314_v49  ;;  %vm7109_vm6 = vcmp.ne.s32.totalorder %v1030_v26, 0 }
 0x26a   : > { %v4447_v2 = vsel %vm7036_vm15, 1.0, %v11479_v46  ;;  %vm7069_vm0 = vcmp.ne.s32.totalorder %v1026_v34, 0  ;;  %v1031_v61 = vunpack.c.l.b16 %v1015_v7 }
 0x26b   : > { %v1086_v5 = vadd.f32 %v4447_v2, %v1085_v13  ;;  %v4450_v16 = vsel %vm7069_vm0, 1.0, %v11479_v46  ;;  %v1016_v13 = vsel %vm11534_vm4, 65537, %v11314_v49 }
 0x26c   : > { %vm7116_vm5 = vcmp.ne.s32.totalorder %v1031_v61, 0  ;;  %v1032_v40 = vunpack.c.l.b16 %v1016_v13  ;;  %v817_v61 = vpop.xlane.xlu1 %816 }
 0x26d   : > { %4949 = vmatmul.mubr.msk.bf16.gmra.mxu1 %vm11495_vm3, %v1215_v22  ;;  %vm11509_vm3 = vnez %v11306_v58  ;;  %v4455_v33 = vsel %vm7116_vm5, 1.0, %v11479_v46  ;;  %5331 = vrsqrt.f32 %v817_v61  ;;  %vm847_vm14 = vcmp.gt.f32.partialorder %v817_v61, 0.0  ;;  %v11547_v61 = vld [vmem:[#allocation17_spill] sm:$0xff]  ;;  %v11577_v22 = vld [vmem:[#allocation20_spill] sm:$0xff] }
 0x26e   : > { %v1008_v63 = vsel %vm11509_vm3, 65537, %v11314_v49  ;;  %vm7056_vm3 = vcmp.ne.s32.totalorder %v1025_v9, 0  ;;  %v4454_v9 = vsel %vm7109_vm6, 1.0, %v11479_v46  ;;  %vm7129_vm2 = vcmp.ne.s32.totalorder %v1032_v40, 0 }
 0x26f   : > { %v1024_v24 = vunpack.c.l.b16 %v1008_v63  ;;  %v4449_v28 = vsel %vm7056_vm3, 1.0, %v11479_v46  ;;  %v4453_v63 = vsel %vm7096_vm13, 1.0, %v11479_v46  ;;  %v4456_v55 = vsel %vm7129_vm2, 1.0, %v11479_v46 }
 0x270   : > { %v7153_v40 = vpop.xlane.xlu1 %820 }
 0x271   : > { %vm7049_vm7 = vcmp.ne.s32.totalorder %v1024_v24, 0 }
 0x272   : > { %v4448_v10 = vsel %vm7049_vm7, 1.0, %v11479_v46 }
 0x273   : > { %v1087_v35 = vadd.f32 %v4448_v10, %v1086_v5  ;;  %v1017_v5 = vsel %vm6869_vm12, 65537, %v11314_v49  ;;  %v11550_v49 = vld [vmem:[#allocation25_spill] sm:$0xff] }
 0x274   : > { %v1033_v34 = vunpack.c.l.b16 %v1017_v5 }
 0x275   : > { %v1088_v44 = vadd.f32 %v4449_v28, %v1087_v35  ;;  %v11537_v35 = vmov 0 }
 0x276   : > { %v11538_v35 = vsel %vm7129_vm2, 4294967295, %v11537_v35  ;;  %vm7136_vm4 = vcmp.ne.s32.totalorder %v1033_v34, 0  ;;  %v7157_v34 = vpop.xlane.xlu1 %824 }
 0x277   : > { %v1089_v19 = vadd.f32 %v4450_v16, %v1088_v44  ;;  %v11539_v44 = vmov 0  ;;  %v1034_v16 = vunpack.c.l.b16 %v1018_v29  ;;  %v4457_v23 = vsel %vm7136_vm4, 1.0, %v11479_v46 }
 0x278   : > { %v11540_v44 = vsel %vm7136_vm4, 4294967295, %v11539_v44  ;;  %vm851_vm2 = vcmp.gt.f32.partialorder %v7157_v34, 0.0 }
 0x279   : > { %v1090_v0 = vadd.f32 %v4451_v20, %v1089_v19  ;;  %11541 = vst [vmem:[#allocation62_spill] sm:$0xff] %v11540_v44  ;;  %vm7146_vm12 = vcmp.ne.s32.totalorder %v1034_v16, 0  ;;  %v11542_v19 = vmov 0  ;;  %v11554_v44 = vld [vmem:[#allocation34_spill] sm:$0xff] }
 0x27a   : > { %v11543_v19 = vsel %vm7146_vm12, 4294967295, %v11542_v19  ;;  %v4458_v53 = vsel %vm7146_vm12, 1.0, %v11479_v46  ;;  %v5332_v29 = vpop.eup %5331 }
 0x27b   : > { %v1091_v8 = vadd.f32 %v4452_v60, %v1090_v0  ;;  %11544 = vst [vmem:[#allocation63_spill] sm:$0xff] %v11543_v19  ;;  %v11552_v19 = vld [vmem:[#allocation4_spill] sm:$0xff] }
 0x27d   : > { %v1092_v24 = vadd.f32 %v4453_v63, %v1091_v8 }
 0x27f   : > { %v1093_v10 = vadd.f32 %v4454_v9, %v1092_v24  ;;  %v815_v24 = vpop.xlane.xlu0 %814 }
 0x280   : > { %5333 = vrsqrt.f32 %v815_v24  ;;  %vm846_vm12 = vcmp.gt.f32.partialorder %v815_v24, 0.0 }
 0x281   : > { %v1094_v28 = vadd.f32 %v4455_v33, %v1093_v10 }
 0x283   : > { %v1095_v17 = vadd.f32 %v4456_v55, %v1094_v28  ;;  %v819_v5 = vpop.xlane.xlu0 %818 }
 0x285   : > { %v1096_v20 = vadd.f32 %v4457_v23, %v1095_v17  ;;  %v11545_v17 = vld [vmem:[#allocation2_spill] sm:$0xff] }
 0x286   : > { %v7164_v23 = vsub.s32 0, %v11545_v17 }
 0x287   : > { %v1097_v0 = vadd.f32 %v4458_v53, %v1096_v20  ;;  %v7155_v33 = vpop.xlane.xlu0 %822 }
 0x288   : > { %11546 = vst [vmem:[#allocation64_spill] sm:$0xff] %v7164_v23 }
 0x289   : > { %v1098_v39 = vrot.slane %v1097_v0, 4 }
 0x28b   : > { %v1099_v60 = vadd.f32 %v1098_v39, %v1097_v0  ;;  %v879_v0 = vsel %vm847_vm14, %v5332_v29, 0.0  ;;  %vm848_vm14 = vcmp.gt.f32.partialorder %v819_v5, 0.0 }
 0x28c   : > { %v968_v24 = vmul.f32 %v879_v0, %v11547_v61 }
 0x28d   : > { %v1100_v7 = vrot.slane %v1099_v60, 2  ;;  %v5334_v55 = vpop.eup %5333 }
 0x28e   : > { %v878_v39 = vsel %vm846_vm12, %v5334_v55, 0.0  ;;  %vm849_vm12 = vcmp.gt.f32.partialorder %v7153_v40, 0.0 }
 0x28f   : > { %v1101_v26 = vadd.f32 %v1100_v7, %v1099_v60  ;;  %v7168_v60 = vpop.xlane.xlu0 %826 }
 0x291   : > { %v1102_v8 = vrot.slane %v1101_v26, 1 }
 0x293   : > { %v1103_v63 = vadd.f32 %v1102_v8, %v1101_v26  ;;  %v7170_v26 = vpop.xlane.xlu1 %828  ;;  %v7188_v0 = vpop.xlane.xlu0 %830 }
 0x295   : > { %v1104_v13 = vadd.f32 1.0, %v1103_v63 }
 0x297   : > { %5335 = vrcp.f32 %v1104_v13  ;;  %v11548_v13 = vld [vmem:[#allocation21_spill] sm:$0xff] }
 0x2a4   : > { %v5336_v53 = vpop.eup %5335 }
 0x2a5   : > { %v1106_v55 = vmul.f32 1.442695, %v5336_v53 }
 0x30d   : > { %v960_v9 = vpop.f32.mrf.mxu1 }
 0x30e   : > { %5337 = vrsqrt.f32 %v960_v9  ;;  %vm964_vm4 = vcmp.gt.f32.partialorder %v960_v9, 0.0 }
 0x30f   : > { %v4931_v10 = vpop.f32.mrf.mxu1  ;;  %5339 = vrsqrt.f32 %v7153_v40 }
 0x310   : > { %v967_v10 = vmul.f32 %v878_v39, %v11548_v13  ;;  %5341 = vrsqrt.f32 %v819_v5  ;;  %v7190_v39 = vpop.xlane.xlu1 %832 }
 0x311   : > { %5343 = vrsqrt.f32 %v7155_v33 }
 0x312   : > { %5345 = vrsqrt.f32 %v7157_v34 }
 0x313   : > { %5347 = vpow2.f32 %v1106_v55 }
 0x315   : > { %v7159_v28 = vpop.f32.mrf.mxu1 }
 0x317   : > { %v7161_v16 = vpop.f32.mrf.mxu1 }
 0x319   : > { %v7166_v20 = vpop.f32.mrf.mxu1 }
 0x31b   : > { %v5338_v7 = vpop.eup %5337  ;;  %v7172_v8 = vpop.f32.mrf.mxu1 }
 0x31c   : > { %v966_v63 = vsel %vm964_vm4, %v5338_v7, 0.0  ;;  %vm850_vm4 = vcmp.gt.f32.partialorder %v7155_v33, 0.0 }
 0x31d   : > { %v7178_v31 = vrot.slane %v966_v63, %v7164_v23  ;;  %v7180_v29 = vpop.f32.mrf.mxu1 }
 0x31f   : > { %v7183_v6 = vpop.f32.mrf.mxu1  ;;  %v987_v9 = vmul.f32 %v7178_v31, %v967_v10  ;;  %v988_v4 = vmul.f32 %v7178_v31, %v968_v24  ;;  %v7200_v24 = vpop.xlane.xlu0 %834 }
 0x320   : > { %v7203_v10 = vpop.xlane.xlu1 %836 }
 0x321   : > { %v7192_v7 = vpop.f32.mrf.mxu1  ;;  %v1108_v63 = vmul.f32 1.442695, %v987_v9  ;;  %v1110_v61 = vmul.f32 1.442695, %v988_v4  ;;  %v5340_v4 = vpop.eup %5339 }
 0x322   : > { %v5342_v9 = vpop.eup %5341  ;;  %v881_v3 = vsel %vm849_vm12, %v5340_v4, 0.0  ;;  %v11551_v4 = vld [vmem:[#allocation39_spill] sm:$0xff]  ;;  %vm854_vm12 = vcmp.gt.f32.partialorder %v7188_v0, 0.0 }
 0x323   : > { %v7194_v13 = vpop.f32.mrf.mxu1  ;;  %5349 = vpow2.f32 %v1108_v63  ;;  %v5344_v63 = vpop.eup %5343  ;;  %v880_v12 = vsel %vm848_vm14, %v5342_v9, 0.0  ;;  %v11549_v9 = vld [vmem:[#allocation29_spill] sm:$0xff]  ;;  %v970_v1 = vmul.f32 %v881_v3, %v11550_v49  ;;  %vm11553_vm14 = vnez %v11552_v19  ;;  %v11790_v19 = vld [vmem:[#allocation22_spill] sm:$0xff] }
 0x324   : > { %5351 = vpow2.f32 %v1110_v61  ;;  %v7212_v25 = vpop.xlane.xlu0 %838  ;;  %v5346_v14 = vpop.eup %5345  ;;  %v882_v11 = vsel %vm850_vm4, %v5344_v63, 0.0  ;;  %v969_v58 = vmul.f32 %v880_v12, %v11549_v9  ;;  %vm855_vm4 = vcmp.gt.f32.partialorder %v7190_v39, 0.0 }
 0x325   : > { %5353 = vrsqrt.f32 %v7168_v60  ;;  %v7197_v53 = vpop.f32.mrf.mxu1  ;;  %v7217_v37 = vpop.xlane.xlu1 %840  ;;  %v883_v33 = vsel %vm851_vm2, %v5346_v14, 0.0  ;;  %v971_v63 = vmul.f32 %v882_v11, %v11551_v4  ;;  %vm11556_vm2 = vnez %v11555_v57 }
 0x326   : > { %5355 = vrsqrt.f32 %v7170_v26  ;;  %v7220_v18 = vpop.eup %5347  ;;  %v989_v14 = vmul.f32 %v7178_v31, %v969_v58  ;;  %v972_v49 = vmul.f32 %v883_v33, %v11554_v44  ;;  %v11827_v57 = vmov 0 }
 0x327   : > { %5357 = vrsqrt.f32 %v7188_v0  ;;  %v7205_v48 = vpop.f32.mrf.mxu1 }
 0x328   : > { %5359 = vrsqrt.f32 %v7190_v39  ;;  %v7237_v3 = vpop.xlane.xlu0 %842  ;;  %v992_v4 = vmul.f32 %v7178_v31, %v972_v49 }
 0x329   : > { %v7208_v55 = vpop.f32.mrf.mxu1  ;;  %5361 = vrsqrt.f32 %v7200_v24 }
 0x32a   : > { %5363 = vrsqrt.f32 %v7203_v10  ;;  %v1118_v49 = vmul.f32 1.442695, %v992_v4 }
 0x32b   : > { %v7210_v61 = vpop.f32.mrf.mxu1  ;;  %5365 = vrsqrt.f32 %v7212_v25 }
 0x32c   : > { %5367 = vrsqrt.f32 %v7217_v37 }
 0x32d   : > { %v4950_v54 = vpop.f32.mrf.mxu1  ;;  %5369 = vrsqrt.f32 %v7237_v3 }
 0x32f   : > { %v1324_v5 = vpop.f32.mrf.mxu1 }
 0x330   : > { %v5350_v40 = vpop.eup %5349 }
 0x331   : > { %v5352_v45 = vpop.eup %5351  ;;  %v4951_v51 = vpop.f32.mrf.mxu1  ;;  %v1140_v38 = vsel %vm7002_vm8, %v5350_v40, 0.0  ;;  %vm852_vm8 = vcmp.gt.f32.partialorder %v7168_v60, 0.0 }
 0x332   : > { %v5354_v17 = vpop.eup %5353  ;;  %v1354_v34 = vpack.c.bf16 %v4951_v51, %v4950_v54  ;;  %v1141_v23 = vsel %vm7013_vm9, %v5352_v45, 0.0  ;;  %v1156_v12 = vsel %vm11553_vm14, %v7220_v18, %v1140_v38  ;;  %v990_v51 = vmul.f32 %v7178_v31, %v970_v1  ;;  %v7244_v45 = vpop.xlane.xlu1 %844 }
 0x333   : > { %v5356_v9 = vpop.eup %5355  ;;  %v1327_v11 = vpop.f32.mrf.mxu1  ;;  %v1157_v40 = vsel %vm11556_vm2, %v7220_v18, %v1141_v23  ;;  %v991_v54 = vmul.f32 %v7178_v31, %v971_v63  ;;  %vm853_vm9 = vcmp.gt.f32.partialorder %v7170_v26, 0.0  ;;  %v884_v33 = vsel %vm852_vm8, %v5354_v17, 0.0  ;;  %v11557_v63 = vld [vmem:[#allocation47_spill] sm:$0xff] }
 0x334   : > { %v5358_v30 = vpop.eup %5357  ;;  %v1353_v38 = vpack.c.bf16 %v1327_v11, %v1324_v5  ;;  %4952 = vmatprep.subr.bf16.mxu0 %v1354_v34  ;;  %v1339_v58 = vpack.c.bf16 %v1157_v40, %v1156_v12  ;;  %v885_v23 = vsel %vm853_vm9, %v5356_v9, 0.0  ;;  %v1112_v1 = vmul.f32 1.442695, %v989_v14  ;;  %v11558_v9 = vld [vmem:[#allocation43_spill] sm:$0xff] }
 0x335   : > { %v5360_v44 = vpop.eup %5359  ;;  %4953 = vmatpush3.bf16.msra.mxu0 %v1354_v34  ;;  %v886_v60 = vsel %vm854_vm12, %v5358_v30, 0.0  ;;  %5371 = vrsqrt.f32 %v7244_v45  ;;  %v1114_v5 = vmul.f32 1.442695, %v990_v51  ;;  %v973_v26 = vmul.f32 %v884_v33, %v11557_v63  ;;  %v11559_v51 = vld [vmem:[#allocation51_spill] sm:$0xff] }
 0x336   : > { %4968 = vmatprep.mubr.bf16.mxu0 %v1339_v58  ;;  %4954 = vmatprep.subr.bf16.mxu0 %v1353_v38  ;;  %v887_v17 = vsel %vm855_vm4, %v5360_v44, 0.0  ;;  %v1352_v34 = vpack.c.bf16 %v7208_v55, %v7197_v53  ;;  %v1116_v12 = vmul.f32 1.442695, %v991_v54  ;;  %v974_v0 = vmul.f32 %v885_v23, %v11558_v9  ;;  %v5362_v11 = vpop.eup %5361 }
 0x337   : > { %v975_v14 = vmul.f32 %v886_v60, %v6773_v62  ;;  %5373 = vpow2.f32 %v1112_v1  ;;  %v993_v39 = vmul.f32 %v7178_v31, %v973_v26  ;;  %v5364_v40 = vpop.eup %5363  ;;  %v976_v30 = vmul.f32 %v887_v17, %v11559_v51  ;;  %v11560_v60 = vld [vmem:[#allocation57_spill] sm:$0xff]  ;;  %v11561_v17 = vld [vmem:[#allocation60_spill] sm:$0xff] }
 0x338   : > { %5375 = vpow2.f32 %v1114_v5  ;;  %v994_v58 = vmul.f32 %v7178_v31, %v974_v0  ;;  %v5366_v44 = vpop.eup %5365  ;;  %vm856_vm8 = vcmp.gt.f32.partialorder %v7200_v24, 0.0  ;;  %v1351_v53 = vpack.c.bf16 %v7210_v61, %v7205_v48 }
 0x339   : > { %4955 = vmatpush3.bf16.msra.mxu0 %v1353_v38  ;;  %5377 = vpow2.f32 %v1116_v12  ;;  %v995_v55 = vmul.f32 %v7178_v31, %v975_v14  ;;  %v5368_v62 = vpop.eup %5367  ;;  %vm857_vm9 = vcmp.gt.f32.partialorder %v7203_v10, 0.0  ;;  %v888_v38 = vsel %vm856_vm8, %v5362_v11, 0.0 }
 0x33a   : > { %4956 = vmatprep.subr.bf16.mxu0 %v1352_v34  ;;  %5379 = vpow2.f32 %v1118_v49  ;;  %v996_v54 = vmul.f32 %v7178_v31, %v976_v30  ;;  %v889_v33 = vsel %vm857_vm9, %v5364_v40, 0.0  ;;  %vm858_vm12 = vcmp.gt.f32.partialorder %v7212_v25, 0.0 }
 0x33b   : > { %v1120_v4 = vmul.f32 1.442695, %v993_v39  ;;  %vm859_vm4 = vcmp.gt.f32.partialorder %v7217_v37, 0.0  ;;  %v890_v24 = vsel %vm858_vm12, %v5366_v44, 0.0  ;;  %v1122_v48 = vmul.f32 1.442695, %v994_v58  ;;  %v5370_v37 = vpop.eup %5369 }
 0x33c   : > { %v977_v61 = vmul.f32 %v888_v38, %v6837_v56  ;;  %v891_v23 = vsel %vm859_vm4, %v5368_v62, 0.0  ;;  %v1350_v10 = vpack.c.bf16 %v7192_v7, %v7180_v29  ;;  %v1124_v1 = vmul.f32 1.442695, %v995_v55  ;;  %v11566_v38 = vld [vmem:[#allocation10_spill] sm:$0xff] }
 0x33d   : > { %4957 = vmatpush3.bf16.msra.mxu0 %v1352_v34  ;;  %v978_v5 = vmul.f32 %v889_v33, %v11560_v60  ;;  %v1126_v63 = vmul.f32 1.442695, %v996_v54  ;;  %v979_v26 = vmul.f32 %v890_v24, %v6885_v15  ;;  %5381 = vpow2.f32 %v1120_v4 }
 0x33e   : > { %4958 = vmatprep.subr.bf16.mxu0 %v1351_v53  ;;  %v997_v25 = vmul.f32 %v7178_v31, %v977_v61  ;;  %v980_v34 = vmul.f32 %v891_v23, %v11561_v17  ;;  %5383 = vpow2.f32 %v1122_v48  ;;  %v1349_v29 = vpack.c.bf16 %v7194_v13, %v7183_v6 }
 0x33f   : > { %v998_v56 = vmul.f32 %v7178_v31, %v978_v5  ;;  %5385 = vpow2.f32 %v1124_v1  ;;  %v999_v7 = vmul.f32 %v7178_v31, %v979_v26  ;;  %vm860_vm8 = vcmp.gt.f32.partialorder %v7237_v3, 0.0 }
 0x340   : > { %5387 = vpow2.f32 %v1126_v63  ;;  %v1000_v15 = vmul.f32 %v7178_v31, %v980_v34  ;;  %vm861_vm9 = vcmp.gt.f32.partialorder %v7244_v45, 0.0  ;;  %v892_v9 = vsel %vm860_vm8, %v5370_v37, 0.0  ;;  %v11571_v63 = vld [vmem:[#allocation16_spill] sm:$0xff] }
 0x341   : > { %4959 = vmatpush3.bf16.msra.mxu0 %v1351_v53  ;;  %v1128_v0 = vmul.f32 1.442695, %v997_v25  ;;  %v1130_v14 = vmul.f32 1.442695, %v998_v56  ;;  %v1348_v6 = vpack.c.bf16 %v7166_v20, %v7159_v28  ;;  %v1132_v13 = vmul.f32 1.442695, %v999_v7 }
 0x342   : > { %4960 = vmatprep.subr.bf16.mxu0 %v1350_v10  ;;  %v5372_v12 = vpop.eup %5371  ;;  %v981_v3 = vmul.f32 %v892_v9, %v6896_v52  ;;  %v1134_v51 = vmul.f32 1.442695, %v1000_v15  ;;  %v1347_v45 = vpack.c.bf16 %v7172_v8, %v7161_v16  ;;  %v11562_v8 = vld [vmem:[#allocation6_spill] sm:$0xff]  ;;  %vm11572_vm4 = vnez %v11571_v63  ;;  %v11573_v25 = vld [vmem:[#allocation13_spill] sm:$0xff] }
 0x343   : > { %v893_v11 = vsel %vm861_vm9, %v5372_v12, 0.0  ;;  %5389 = vpow2.f32 %v1128_v0  ;;  %vm11563_vm12 = vnez %v11562_v8  ;;  %vm11574_vm8 = vnez %v11573_v25  ;;  %v11780_v8 = vld [vmem:[#allocation42_spill] sm:$0xff] }
 0x344   : > { %v5374_v49 = vpop.eup %5373  ;;  %v982_v58 = vmul.f32 %v893_v11, %v6891_v47  ;;  %5391 = vpow2.f32 %v1130_v14  ;;  %v1001_v44 = vmul.f32 %v7178_v31, %v981_v3  ;;  %v11582_v14 = vld [vmem:[#allocation28_spill] sm:$0xff] }
 0x345   : > { %4961 = vmatpush3.bf16.msra.mxu0 %v1350_v10  ;;  %v5376_v39 = vpop.eup %5375  ;;  %v1142_v28 = vsel %vm7009_vm1, %v5374_v49, 0.0  ;;  %5393 = vpow2.f32 %v1132_v13  ;;  %vm11565_vm1 = vnez %v11564_v59  ;;  %v11580_v49 = vld [vmem:[#allocation30_spill] sm:$0xff]  ;;  %v11586_v13 = vld [vmem:[#allocation33_spill] sm:$0xff] }
 0x346   : > { %4962 = vmatprep.subr.bf16.mxu0 %v1349_v29  ;;  %v5378_v40 = vpop.eup %5377  ;;  %v1143_v20 = vsel %vm7029_vm11, %v5376_v39, 0.0  ;;  %v1002_v52 = vmul.f32 %v7178_v31, %v982_v58  ;;  %5395 = vpow2.f32 %v1134_v51  ;;  %v1158_v42 = vsel %vm11563_vm12, %v7220_v18, %v1142_v28  ;;  %v11588_v51 = vld [vmem:[#allocation62_spill] sm:$0xff]  ;;  %v11590_v58 = vld [vmem:[#allocation63_spill] sm:$0xff] }
 0x347   : > { %v5380_v30 = vpop.eup %5379  ;;  %v1144_v47 = vsel %vm7036_vm15, %v5378_v40, 0.0  ;;  %v1159_v55 = vsel %vm11565_vm1, %v7220_v18, %v1143_v20  ;;  %v1136_v62 = vmul.f32 1.442695, %v1001_v44  ;;  %vm11567_vm11 = vnez %v11566_v38  ;;  %v11592_v44 = vld [vmem:[#allocation41_spill] sm:$0xff]  ;;  %v11594_v20 = vld [vmem:[#allocation38_spill] sm:$0xff] }
 0x348   : > { %v1145_v53 = vsel %vm7049_vm7, %v5380_v30, 0.0  ;;  %v1160_v32 = vsel %vm11567_vm11, %v7220_v18, %v1144_v47  ;;  %vm11569_vm7 = vnez %v11568_v27  ;;  %v1138_v33 = vmul.f32 1.442695, %v1002_v52  ;;  %v11762_v27 = vld [vmem:[#allocation37_spill] sm:$0xff]  ;;  %v11772_v59 = vld [vmem:[#allocation18_spill] sm:$0xff] }
 0x349   : > { %4963 = vmatpush3.bf16.msra.mxu0 %v1349_v29  ;;  %v1161_v54 = vsel %vm11569_vm7, %v7220_v18, %v1145_v53  ;;  %v1340_v48 = vpack.c.bf16 %v1159_v55, %v1158_v42  ;;  %5397 = vpow2.f32 %v1136_v62  ;;  %vm11570_vm15 = vnez %v11527_v36 }
 0x34a   : > { %4964 = vmatprep.subr.bf16.mxu0 %v1348_v6  ;;  %v5382_v16 = vpop.eup %5381  ;;  %v1341_v61 = vpack.c.bf16 %v1161_v54, %v1160_v32  ;;  %5399 = vpow2.f32 %v1138_v33  ;;  %vm11581_vm9 = vnez %v11580_v49 }
 0x34b   : > { %v5384_v31 = vpop.eup %5383  ;;  %v1146_v23 = vsel %vm7056_vm3, %v5382_v16, 0.0  ;;  %vm11579_vm3 = vnez %v11538_v35 }
 0x34c   : > { %v5386_v4 = vpop.eup %5385  ;;  %v1147_v10 = vsel %vm7069_vm0, %v5384_v31, 0.0  ;;  %v1162_v26 = vsel %vm11572_vm4, %v7220_v18, %v1146_v23  ;;  %vm11576_vm0 = vnez %v11575_v43 }
 0x34d   : > { %4965 = vmatpush3.bf16.msra.mxu0 %v1348_v6  ;;  %v5388_v24 = vpop.eup %5387  ;;  %v1148_v1 = vsel %vm7076_vm10, %v5386_v4, 0.0  ;;  %v1163_v41 = vsel %vm11574_vm8, %v7220_v18, %v1147_v10  ;;  %vm11578_vm10 = vnez %v11577_v22  ;;  %v11584_v6 = vld [vmem:[#allocation35_spill] sm:$0xff] }
 0x34e   : > { %4966 = vmatprep.subr.bf16.mxu0 %v1347_v45  ;;  %v1149_v60 = vsel %vm11570_vm15, %v5388_v24, 0.0  ;;  %v1164_v17 = vsel %vm11576_vm0, %v7220_v18, %v1148_v1  ;;  %v1342_v12 = vpack.c.bf16 %v1163_v41, %v1162_v26  ;;  %vm11583_vm15 = vnez %v11582_v14  ;;  %v7367_v24 = vld [vmem:[%s10757_s4] sm:$0xff] }
 0x34f   : > { %v1165_v34 = vsel %vm11578_vm10, %v7220_v18, %v1149_v60 }
 0x350   : > { %v5390_v5 = vpop.eup %5389  ;;  %v1343_v29 = vpack.c.bf16 %v1165_v34, %v1164_v17 }
 0x351   : > { %4967 = vmatpush3.bf16.msra.mxu0 %v1347_v45  ;;  %v5392_v37 = vpop.eup %5391  ;;  %v1150_v7 = vsel %vm7096_vm13, %v5390_v5, 0.0  ;;  %vm11585_vm13 = vnez %v11584_v6 }
 0x352   : > { %5040 = vmatprep.subr.mxu0 %v11479_v46  ;;  %v5394_v36 = vpop.eup %5393  ;;  %v1151_v15 = vsel %vm7109_vm6, %v5392_v37, 0.0  ;;  %v1166_v11 = vsel %vm11581_vm9, %v7220_v18, %v1150_v7  ;;  %vm11587_vm6 = vnez %v11586_v13  ;;  %vm11593_vm9 = vnez %v11592_v44 }
 0x353   : > { %v5396_v56 = vpop.eup %5395  ;;  %v1152_v9 = vsel %vm7116_vm5, %v5394_v36, 0.0  ;;  %v1167_v39 = vsel %vm11583_vm15, %v7220_v18, %v1151_v15  ;;  %vm11589_vm5 = vnez %v11588_v51 }
 0x354   : > { %4969 = vmatmul.mubr.bf16.vlgmr.msra.gmra.mxu0 %v1340_v48  ;;  %v1153_v0 = vsel %vm11579_vm3, %v5396_v56, 0.0  ;;  %v1168_v21 = vsel %vm11585_vm13, %v7220_v18, %v1152_v9  ;;  %v1344_v35 = vpack.c.bf16 %v1167_v39, %v1166_v11  ;;  %vm11591_vm3 = vnez %v11590_v58 }
 0x355   : > { %4972 = vmatprep.mubr.bf16.mxu0 %v1341_v61  ;;  %v1169_v2 = vsel %vm11587_vm6, %v7220_v18, %v1153_v0  ;;  %vm11595_vm13 = vnez %v11594_v20  ;;  %vm11596_vm6 = vmmov 0   ;;  %v11597_v61 = vld [vmem:[#allocation64_spill] sm:$0xff] }
 0x356   : > { %v5398_v50 = vpop.eup %5397  ;;  %v1345_v3 = vpack.c.bf16 %v1169_v2, %v1168_v21  ;;  %v1358_v23 = vrot.slane %v7367_v24, %v11597_v61 }
 0x357   : > { %v5400_v40 = vpop.eup %5399  ;;  %v1154_v30 = vsel %vm11589_vm5, %v5398_v50, 0.0  ;;  %vm11598_vm5 = vcmask 261120  }
 0x358   : > { %v1155_v45 = vsel %vm11591_vm3, %v5400_v40, 0.0  ;;  %v1170_v28 = vsel %vm11593_vm9, %v7220_v18, %v1154_v30  ;;  %vm11599_vm3 = vmmov %vm11598_vm5 }
 0x359   : > { %v1171_v52 = vsel %vm11595_vm13, %v7220_v18, %v1155_v45  ;;  %vm11601_vm9 = vmmov %vm11599_vm3 }
 0x35a   : > { %v1346_v47 = vpack.c.bf16 %v1171_v52, %v1170_v28  ;;  %vm11602_vm15 = vmmov %vm11599_vm3 }
 0x35b   : > { %vm11656_vm13 = vmmov %vm11599_vm3 }
 0x35c   : > { %4973 = vmatmul.mubr.bf16.gmra.mxu0 %v1342_v12  ;;  %vm11663_vm0 = vmmov %vm11599_vm3 }
 0x35d   : > { %4976 = vmatprep.mubr.bf16.mxu0 %v1343_v29  ;;  %vm11664_vm10 = vmmov %vm11663_vm0 }
 0x35e   : > { %vm11667_vm4 = vmmov %vm11663_vm0 }
 0x35f   : > { %vm11668_vm8 = vmmov %vm11663_vm0 }
 0x360   : > { %vm11671_vm11 = vmmov %vm11663_vm0 }
 0x364   : > { %4977 = vmatmul.mubr.bf16.gmra.mxu0 %v1344_v35 }
 0x365   : > { %4980 = vmatprep.mubr.bf16.mxu0 %v1345_v3 }
 0x36c   : > { %4981 = vmatmul.mubr.bf16.gmra.mxu0 %v1346_v47 }
 0x36d   : > { %5072 = vmatprep.mubr.msk.f32.mxu0 %vm11596_vm6, %v11479_v46  ;;  %vm11600_vm6 = vmmov %vm11599_vm3 }
 0x414   : > { %v4970_v53 = vpop.f32.mrf.mxu0 }
 0x415   : > { %v7396_v3 = vadd.f32 %v4970_v53, %v1358_v23 }
 0x416   : > { %v1393_v16 = vpop.f32.mrf.mxu0 }
 0x417   : > { %v7404_v45 = vadd.f32 %v1393_v16, %v1358_v23 }
 0x418   : > { %v4971_v42 = vpop.f32.mrf.mxu0 }
 0x419   : > { %v7406_v28 = vadd.f32 %v4971_v42, %v1358_v23 }
 0x41a   : > { %v1396_v55 = vpop.f32.mrf.mxu0 }
 0x41b   : > { %v7412_v53 = vadd.f32 %v1396_v55, %v1358_v23 }
 0x41c   : > { %v4974_v62 = vpop.f32.mrf.mxu0 }
 0x41d   : > { %v7380_v0 = vadd.f32 %v4974_v62, %v1358_v23 }
 0x41e   : > { %v1409_v31 = vpop.f32.mrf.mxu0 }
 0x41f   : > { %v7388_v21 = vadd.f32 %v1409_v31, %v1358_v23  ;;  %v1456_v31 = vsel %vm11599_vm3, %v7404_v45, 0.0 }
 0x420   : > { %v4975_v32 = vpop.f32.mrf.mxu0 }
 0x421   : > { %v7390_v2 = vadd.f32 %v4975_v32, %v1358_v23 }
 0x422   : > { %v1412_v54 = vpop.f32.mrf.mxu0 }
 0x423   : > { %v7398_v51 = vadd.f32 %v1412_v54, %v1358_v23  ;;  %v1477_v30 = vsel %vm11599_vm3, %v7390_v2, 0.0 }
 0x424   : > { %v4978_v33 = vpop.f32.mrf.mxu0 }
 0x425   : > { %v1434_v34 = vadd.f32 %v4978_v33, %v1358_v23 }
 0x426   : > { %v1425_v4 = vpop.f32.mrf.mxu0 }
 0x427   : > { %v7374_v29 = vadd.f32 %v1425_v4, %v1358_v23  ;;  %v1486_v9 = vsel %vm11602_vm15, %v1434_v34, 0.0  ;;  %vm11606_vm15 = vmmov %vm11599_vm3 }
 0x428   : > { %v4979_v18 = vpop.f32.mrf.mxu0  ;;  %v1474_v35 = vsel %vm11606_vm15, %v7380_v0, 0.0  ;;  %vm11610_vm15 = vmmov %vm11599_vm3 }
 0x429   : > { %v7376_v7 = vadd.f32 %v4979_v18, %v1358_v23  ;;  %v1465_v62 = vsel %vm11610_vm15, %v7406_v28, 0.0  ;;  %vm11614_vm15 = vmmov %vm11599_vm3 }
 0x42a   : > { %v1428_v48 = vpop.f32.mrf.mxu0 }
 0x42b   : > { %v7382_v11 = vadd.f32 %v1428_v48, %v1358_v23 }
 0x42c   : > { %v4982_v10 = vpop.f32.mrf.mxu0 }
 0x42d   : > { %v1450_v1 = vadd.f32 %v4982_v10, %v1358_v23 }
 0x42e   : > { %v1441_v60 = vpop.f32.mrf.mxu0 }
 0x42f   : > { %v1442_v5 = vadd.f32 %v1441_v60, %v1358_v23  ;;  %v1498_v26 = vsel %vm11598_vm5, %v1450_v1, 0.0  ;;  %vm11603_vm5 = vmmov %vm11599_vm3 }
 0x430   : > { %1499 = vadd.xlane.f32.xlu1 %v1498_v26  ;;  %v4983_v41 = vpop.f32.mrf.mxu0  ;;  %v1489_v39 = vsel %vm11603_vm5, %v7376_v7, 0.0  ;;  %vm11607_vm5 = vmmov %vm11599_vm3 }
 0x431   : > { %v1453_v37 = vadd.f32 %v4983_v41, %v1358_v23  ;;  %v1492_v12 = vsel %vm11600_vm6, %v1442_v5, 0.0  ;;  %vm11604_vm6 = vmmov %vm11599_vm3  ;;  %v1468_v58 = vsel %vm11607_vm5, %v7388_v21, 0.0 }
 0x432   : > { %v1444_v17 = vpop.f32.mrf.mxu0  ;;  %v1480_v50 = vsel %vm11604_vm6, %v7374_v29, 0.0  ;;  %vm11608_vm6 = vmmov %vm11599_vm3 }
 0x433   : > { %v1445_v36 = vadd.f32 %v1444_v17, %v1358_v23  ;;  %v1501_v56 = vsel %vm11599_vm3, %v1453_v37, 0.0  ;;  %v1471_v52 = vsel %vm11608_vm6, %v7398_v51, 0.0  ;;  %vm11611_vm5 = vmmov %vm11599_vm3 }
 0x434   : > { %1502 = vadd.xlane.f32.xlu0 %v1501_v56  ;;  %1493 = vadd.xlane.f32.xlu1 %v1492_v12  ;;  %v1459_v16 = vsel %vm11611_vm5, %v7412_v53, 0.0  ;;  %vm11612_vm6 = vmmov %vm11599_vm3 }
 0x435   : > { %v1495_v15 = vsel %vm11601_vm9, %v1445_v36, 0.0  ;;  %vm11605_vm9 = vmmov %vm11599_vm3 }
 0x436   : > { %v1483_v40 = vsel %vm11605_vm9, %v7382_v11, 0.0  ;;  %vm11609_vm9 = vmmov %vm11599_vm3 }
 0x437   : > { %v1462_v47 = vsel %vm11609_vm9, %v7396_v3, 0.0  ;;  %vm11613_vm9 = vmmov %vm11599_vm3 }
 0x438   : > { %1496 = vadd.xlane.f32.xlu0 %v1495_v15  ;;  %1487 = vadd.xlane.f32.xlu1 %v1486_v9  ;;  %vm11615_vm5 = vmmov %vm11599_vm3 }
 0x43c   : > { %1490 = vadd.xlane.f32.xlu0 %v1489_v39  ;;  %1481 = vadd.xlane.f32.xlu1 %v1480_v50 }
 0x440   : > { %1484 = vadd.xlane.f32.xlu0 %v1483_v40  ;;  %1475 = vadd.xlane.f32.xlu1 %v1474_v35 }
 0x444   : > { %1478 = vadd.xlane.f32.xlu0 %v1477_v30  ;;  %1469 = vadd.xlane.f32.xlu1 %v1468_v58 }
 0x448   : > { %1472 = vadd.xlane.f32.xlu0 %v1471_v52  ;;  %1463 = vadd.xlane.f32.xlu1 %v1462_v47 }
 0x44c   : > { %1466 = vadd.xlane.f32.xlu0 %v1465_v62  ;;  %1457 = vadd.xlane.f32.xlu1 %v1456_v31 }
 0x450   : > { %1460 = vadd.xlane.f32.xlu0 %v1459_v16 }
 0x4b9   : > { %v1500_v42 = vpop.xlane.xlu1 %1499 }
 0x4ba   : > { %v1519_v32 = vmul.f32 0.03125, %v1500_v42 }
 0x4bc   : > { %v7420_v54 = vsub.f32 %v1450_v1, %v1519_v32 }
 0x4bd   : > { %v1503_v33 = vpop.xlane.xlu0 %1502  ;;  %v1494_v4 = vpop.xlane.xlu1 %1493 }
 0x4be   : > { %v1520_v55 = vmul.f32 0.03125, %v1503_v33  ;;  %v1517_v18 = vmul.f32 0.03125, %v1494_v4  ;;  %v1551_v48 = vmul.f32 %v7420_v54, %v7420_v54 }
 0x4c0   : > { %v7424_v23 = vsub.f32 %v1453_v37, %v1520_v55  ;;  %v7426_v10 = vsub.f32 %v1442_v5, %v1517_v18  ;;  %v1595_v60 = vsel %vm11612_vm6, %v1551_v48, 0.0  ;;  %vm11616_vm6 = vmmov %vm11599_vm3 }
 0x4c1   : > { %v1497_v26 = vpop.xlane.xlu0 %1496  ;;  %1596 = vadd.xlane.f32.xlu1 %v1595_v60  ;;  %v1488_v41 = vpop.xlane.xlu1 %1487 }
 0x4c2   : > { %v1518_v17 = vmul.f32 0.03125, %v1497_v26  ;;  %v1515_v56 = vmul.f32 0.03125, %v1488_v41  ;;  %v1552_v1 = vmul.f32 %v7424_v23, %v7424_v23  ;;  %v1549_v12 = vmul.f32 %v7426_v10, %v7426_v10 }
 0x4c4   : > { %v7433_v15 = vsub.f32 %v1445_v36, %v1518_v17  ;;  %v7435_v9 = vsub.f32 %v1434_v34, %v1515_v56  ;;  %v1598_v5 = vsel %vm11613_vm9, %v1552_v1, 0.0  ;;  %v1589_v37 = vsel %vm11614_vm15, %v1549_v12, 0.0  ;;  %vm11617_vm9 = vmmov %vm11599_vm3 }
 0x4c5   : > { %1599 = vadd.xlane.f32.xlu0 %v1598_v5  ;;  %v1491_v39 = vpop.xlane.xlu0 %1490  ;;  %1590 = vadd.xlane.f32.xlu1 %v1589_v37  ;;  %v1482_v50 = vpop.xlane.xlu1 %1481  ;;  %vm11618_vm15 = vmmov %vm11599_vm3 }
 0x4c6   : > { %v1516_v40 = vmul.f32 0.03125, %v1491_v39  ;;  %v1513_v35 = vmul.f32 0.03125, %v1482_v50  ;;  %v1550_v30 = vmul.f32 %v7433_v15, %v7433_v15  ;;  %v1547_v58 = vmul.f32 %v7435_v9, %v7435_v9 }
 0x4c8   : > { %v7444_v36 = vsub.f32 %v7376_v7, %v1516_v40  ;;  %v7447_v34 = vsub.f32 %v7374_v29, %v1513_v35  ;;  %v1592_v52 = vsel %vm11599_vm3, %v1550_v30, 0.0  ;;  %v1583_v47 = vsel %vm11615_vm5, %v1547_v58, 0.0  ;;  %vm11619_vm5 = vmmov %vm11599_vm3 }
 0x4c9   : > { %1593 = vadd.xlane.f32.xlu0 %v1592_v52  ;;  %v1485_v62 = vpop.xlane.xlu0 %1484  ;;  %1584 = vadd.xlane.f32.xlu1 %v1583_v47  ;;  %v1476_v31 = vpop.xlane.xlu1 %1475 }
 0x4ca   : > { %v1514_v16 = vmul.f32 0.03125, %v1485_v62  ;;  %v1511_v42 = vmul.f32 0.03125, %v1476_v31  ;;  %v1548_v32 = vmul.f32 %v7444_v36, %v7444_v36  ;;  %v1545_v7 = vmul.f32 %v7447_v34, %v7447_v34 }
 0x4cc   : > { %v7456_v33 = vsub.f32 %v7382_v11, %v1514_v16  ;;  %v7459_v29 = vsub.f32 %v7380_v0, %v1511_v42  ;;  %v1586_v4 = vsel %vm11616_vm6, %v1548_v32, 0.0  ;;  %v1577_v55 = vsel %vm11617_vm9, %v1545_v7, 0.0  ;;  %vm11620_vm6 = vmmov %vm11599_vm3 }
 0x4cd   : > { %1587 = vadd.xlane.f32.xlu0 %v1586_v4  ;;  %v1479_v18 = vpop.xlane.xlu0 %1478  ;;  %1578 = vadd.xlane.f32.xlu1 %v1577_v55  ;;  %v1470_v48 = vpop.xlane.xlu1 %1469  ;;  %vm11621_vm9 = vmmov %vm11599_vm3 }
 0x4ce   : > { %v1512_v60 = vmul.f32 0.03125, %v1479_v18  ;;  %v1509_v26 = vmul.f32 0.03125, %v1470_v48  ;;  %v1546_v41 = vmul.f32 %v7456_v33, %v7456_v33  ;;  %v1543_v11 = vmul.f32 %v7459_v29, %v7459_v29 }
 0x4d0   : > { %v7468_v17 = vsub.f32 %v7390_v2, %v1512_v60  ;;  %v7471_v0 = vsub.f32 %v7388_v21, %v1509_v26  ;;  %v1580_v56 = vsel %vm11618_vm15, %v1546_v41, 0.0  ;;  %v1571_v1 = vsel %vm11599_vm3, %v1543_v11, 0.0  ;;  %vm11622_vm15 = vmmov %vm11599_vm3 }
 0x4d1   : > { %1581 = vadd.xlane.f32.xlu0 %v1580_v56  ;;  %v1473_v12 = vpop.xlane.xlu0 %1472  ;;  %1572 = vadd.xlane.f32.xlu1 %v1571_v1  ;;  %v1464_v5 = vpop.xlane.xlu1 %1463 }
 0x4d2   : > { %v1510_v37 = vmul.f32 0.03125, %v1473_v12  ;;  %v1507_v39 = vmul.f32 0.03125, %v1464_v5  ;;  %v1544_v50 = vmul.f32 %v7468_v17, %v7468_v17  ;;  %v1541_v2 = vmul.f32 %v7471_v0, %v7471_v0 }
 0x4d4   : > { %v7480_v40 = vsub.f32 %v7398_v51, %v1510_v37  ;;  %v7483_v21 = vsub.f32 %v7396_v3, %v1507_v39  ;;  %v1574_v35 = vsel %vm11619_vm5, %v1544_v50, 0.0  ;;  %v1565_v30 = vsel %vm11620_vm6, %v1541_v2, 0.0  ;;  %vm11623_vm5 = vmmov %vm11599_vm3 }
 0x4d5   : > { %1575 = vadd.xlane.f32.xlu0 %v1574_v35  ;;  %v1467_v58 = vpop.xlane.xlu0 %1466  ;;  %1566 = vadd.xlane.f32.xlu1 %v1565_v30  ;;  %v1458_v52 = vpop.xlane.xlu1 %1457  ;;  %vm11624_vm6 = vmmov %vm11599_vm3 }
 0x4d6   : > { %v1508_v47 = vmul.f32 0.03125, %v1467_v58  ;;  %v1505_v62 = vmul.f32 0.03125, %v1458_v52  ;;  %v1542_v31 = vmul.f32 %v7480_v40, %v7480_v40  ;;  %v1539_v51 = vmul.f32 %v7483_v21, %v7483_v21 }
 0x4d8   : > { %v7492_v16 = vsub.f32 %v7406_v28, %v1508_v47  ;;  %v7495_v3 = vsub.f32 %v7404_v45, %v1505_v62  ;;  %v1568_v42 = vsel %vm11621_vm9, %v1542_v31, 0.0  ;;  %v1559_v32 = vsel %vm11622_vm15, %v1539_v51, 0.0  ;;  %vm11626_vm9 = vmmov %vm11599_vm3 }
 0x4d9   : > { %1569 = vadd.xlane.f32.xlu0 %v1568_v42  ;;  %v1461_v7 = vpop.xlane.xlu0 %1460  ;;  %1560 = vadd.xlane.f32.xlu1 %v1559_v32  ;;  %v11625_v42 = vld [vmem:[#allocation2_spill] sm:$0xff]  ;;  %vm11627_vm15 = vmmov %vm11599_vm3 }
 0x4da   : > { %v1506_v4 = vmul.f32 0.03125, %v1461_v7  ;;  %v1540_v55 = vmul.f32 %v7492_v16, %v7492_v16  ;;  %v1537_v18 = vmul.f32 %v7495_v3, %v7495_v3  ;;  %v1667_v32 = vsub.s32 1, %v11625_v42 }
 0x4dc   : > { %v7504_v28 = vsub.f32 %v7412_v53, %v1506_v4  ;;  %v1562_v45 = vsel %vm11599_vm3, %v1540_v55, 0.0  ;;  %v1553_v48 = vsel %vm11623_vm5, %v1537_v18, 0.0  ;;  %v1687_v55 = vsub.s32 2, %v11625_v42  ;;  %vm11628_vm5 = vmmov %vm11599_vm3  ;;  %v11756_v42 = vld [vmem:[#allocation14_spill] sm:$0xff] }
 0x4dd   : > { %1563 = vadd.xlane.f32.xlu0 %v1562_v45  ;;  %1554 = vadd.xlane.f32.xlu1 %v1553_v48 }
 0x4de   : > { %v1538_v60 = vmul.f32 %v7504_v28, %v7504_v28 }
 0x4e0   : > { %v1556_v26 = vsel %vm11624_vm6, %v1538_v60, 0.0  ;;  %vm11629_vm6 = vmmov %vm11599_vm3 }
 0x4e1   : > { %1557 = vadd.xlane.f32.xlu0 %v1556_v26  ;;  %v7514_v26 = vrot.slane %v7367_v24, %v1667_v32 }
 0x54a   : > { %v1597_v41 = vpop.xlane.xlu1 %1596 }
 0x54b   : > { %v1615_v11 = vmul.f32 0.03125, %v1597_v41 }
 0x54d   : > { %v1631_v56 = vadd.f32 1e-05, %v1615_v11 }
 0x54e   : > { %v1600_v1 = vpop.xlane.xlu0 %1599  ;;  %v1591_v12 = vpop.xlane.xlu1 %1590 }
 0x54f   : > { %5401 = vrsqrt.f32 %v1631_v56  ;;  %v1616_v53 = vmul.f32 0.03125, %v1600_v1  ;;  %v1613_v5 = vmul.f32 0.03125, %v1591_v12  ;;  %v7518_v12 = vrot.slane %v7367_v24, %v1687_v55 }
 0x551   : > { %v1632_v37 = vadd.f32 1e-05, %v1616_v53  ;;  %v1629_v39 = vadd.f32 1e-05, %v1613_v5 }
 0x552   : > { %v1594_v50 = vpop.xlane.xlu0 %1593  ;;  %v1585_v2 = vpop.xlane.xlu1 %1584 }
 0x553   : > { %5403 = vrsqrt.f32 %v1632_v37  ;;  %v1614_v35 = vmul.f32 0.03125, %v1594_v50  ;;  %v1611_v30 = vmul.f32 0.03125, %v1585_v2 }
 0x554   : > { %5405 = vrsqrt.f32 %v1629_v39 }
 0x555   : > { %v1630_v58 = vadd.f32 1e-05, %v1614_v35  ;;  %v1627_v52 = vadd.f32 1e-05, %v1611_v30 }
 0x556   : > { %v1588_v47 = vpop.xlane.xlu0 %1587  ;;  %v1579_v62 = vpop.xlane.xlu1 %1578 }
 0x557   : > { %5407 = vrsqrt.f32 %v1630_v58  ;;  %v1612_v31 = vmul.f32 0.03125, %v1588_v47  ;;  %v1609_v51 = vmul.f32 0.03125, %v1579_v62 }
 0x558   : > { %5409 = vrsqrt.f32 %v1627_v52 }
 0x559   : > { %v1628_v7 = vadd.f32 1e-05, %v1612_v31  ;;  %v1625_v4 = vadd.f32 1e-05, %v1609_v51 }
 0x55a   : > { %v1582_v18 = vpop.xlane.xlu0 %1581  ;;  %v1573_v45 = vpop.xlane.xlu1 %1572 }
 0x55b   : > { %5411 = vrsqrt.f32 %v1628_v7  ;;  %v1610_v48 = vmul.f32 0.03125, %v1582_v18  ;;  %v1607_v60 = vmul.f32 0.03125, %v1573_v45 }
 0x55c   : > { %v5402_v41 = vpop.eup %5401  ;;  %5413 = vrsqrt.f32 %v1625_v4 }
 0x55d   : > { %v1626_v11 = vadd.f32 1e-05, %v1610_v48  ;;  %v1623_v56 = vadd.f32 1e-05, %v1607_v60  ;;  %v1663_v1 = vmul.f32 %v5402_v41, %v7420_v54 }
 0x55e   : > { %v1576_v53 = vpop.xlane.xlu0 %1575  ;;  %v1567_v5 = vpop.xlane.xlu1 %1566 }
 0x55f   : > { %5415 = vrsqrt.f32 %v1626_v11  ;;  %v1608_v37 = vmul.f32 0.03125, %v1576_v53  ;;  %v1605_v39 = vmul.f32 0.03125, %v1567_v5  ;;  %v1683_v50 = vmul.f32 %v7514_v26, %v1663_v1 }
 0x560   : > { %v5404_v2 = vpop.eup %5403  ;;  %5417 = vrsqrt.f32 %v1623_v56 }
 0x561   : > { %v5406_v35 = vpop.eup %5405  ;;  %v1624_v30 = vadd.f32 1e-05, %v1608_v37  ;;  %v1621_v58 = vadd.f32 1e-05, %v1605_v39  ;;  %v1703_v52 = vadd.f32 %v7518_v12, %v1683_v50  ;;  %v1664_v47 = vmul.f32 %v5404_v2, %v7424_v23 }
 0x562   : > { %v1570_v54 = vpop.xlane.xlu0 %1569  ;;  %v1561_v62 = vpop.xlane.xlu1 %1560  ;;  %v1661_v24 = vmul.f32 %v5406_v35, %v7426_v10 }
 0x563   : > { %5419 = vrsqrt.f32 %v1624_v30  ;;  %v1606_v31 = vmul.f32 0.03125, %v1570_v54  ;;  %v1603_v51 = vmul.f32 0.03125, %v1561_v62  ;;  %v7524_v32 = vmax.f32 %v1703_v52, 0.0 }
 0x564   : > { %v5408_v7 = vpop.eup %5407  ;;  %5421 = vrsqrt.f32 %v1621_v58  ;;  %v1684_v4 = vmul.f32 %v7514_v26, %v1664_v47  ;;  %v1681_v55 = vmul.f32 %v7514_v26, %v1661_v24 }
 0x565   : > { %v5410_v18 = vpop.eup %5409  ;;  %v1622_v45 = vadd.f32 1e-05, %v1606_v31  ;;  %v1619_v48 = vadd.f32 1e-05, %v1603_v51  ;;  %v1735_v23 = vmul.f32 %v7524_v32, %v7524_v32  ;;  %v1662_v60 = vmul.f32 %v5408_v7, %v7433_v15 }
 0x566   : > { %v1564_v10 = vpop.xlane.xlu0 %1563  ;;  %v1555_v41 = vpop.xlane.xlu1 %1554  ;;  %v1704_v11 = vadd.f32 %v7518_v12, %v1684_v4  ;;  %v1701_v56 = vadd.f32 %v7518_v12, %v1681_v55  ;;  %v1659_v1 = vmul.f32 %v5410_v18, %v7435_v9 }
 0x567   : > { %5423 = vrsqrt.f32 %v1622_v45  ;;  %v1604_v53 = vmul.f32 0.03125, %v1564_v10  ;;  %v1601_v5 = vmul.f32 0.03125, %v1555_v41  ;;  %v1779_v37 = vsel %vm11626_vm9, %v1735_v23, 0.0  ;;  %vm11630_vm9 = vmmov %vm11599_vm3 }
 0x568   : > { %v5412_v39 = vpop.eup %5411  ;;  %5425 = vrsqrt.f32 %v1619_v48  ;;  %1780 = vadd.xlane.f32.xlu1 %v1779_v37  ;;  %v7535_v50 = vmax.f32 %v1704_v11, 0.0  ;;  %v7537_v2 = vmax.f32 %v1701_v56, 0.0  ;;  %v1682_v15 = vmul.f32 %v7514_v26, %v1662_v60 }
 0x569   : > { %v5414_v35 = vpop.eup %5413  ;;  %v1620_v30 = vadd.f32 1e-05, %v1604_v53  ;;  %v1617_v58 = vadd.f32 1e-05, %v1601_v5  ;;  %v1679_v52 = vmul.f32 %v7514_v26, %v1659_v1  ;;  %v1660_v9 = vmul.f32 %v5412_v39, %v7444_v36 }
 0x56a   : > { %v1558_v47 = vpop.xlane.xlu0 %1557  ;;  %v1736_v54 = vmul.f32 %v7535_v50, %v7535_v50  ;;  %v1733_v62 = vmul.f32 %v7537_v2, %v7537_v2  ;;  %v1702_v24 = vadd.f32 %v7518_v12, %v1682_v15  ;;  %v1657_v31 = vmul.f32 %v5414_v35, %v7447_v34 }
 0x56b   : > { %5427 = vrsqrt.f32 %v1620_v30  ;;  %v1602_v51 = vmul.f32 0.03125, %v1558_v47  ;;  %v1699_v7 = vadd.f32 %v7518_v12, %v1679_v52  ;;  %v1680_v4 = vmul.f32 %v7514_v26, %v1660_v9 }
 0x56c   : > { %v5416_v55 = vpop.eup %5415  ;;  %5429 = vrsqrt.f32 %v1617_v58  ;;  %v1782_v36 = vsel %vm11627_vm15, %v1736_v54, 0.0  ;;  %v1773_v18 = vsel %vm11599_vm3, %v1733_v62, 0.0  ;;  %v7552_v45 = vmax.f32 %v1702_v24, 0.0  ;;  %vm11631_vm15 = vmmov %vm11599_vm3 }
 0x56d   : > { %v5418_v48 = vpop.eup %5417  ;;  %v1618_v23 = vadd.f32 1e-05, %v1602_v51  ;;  %1783 = vadd.xlane.f32.xlu0 %v1782_v36  ;;  %1774 = vadd.xlane.f32.xlu1 %v1773_v18  ;;  %v7554_v60 = vmax.f32 %v1699_v7, 0.0  ;;  %v1700_v34 = vadd.f32 %v7518_v12, %v1680_v4  ;;  %v1677_v10 = vmul.f32 %v7514_v26, %v1657_v31 }
 0x56e   : > { %v1734_v41 = vmul.f32 %v7552_v45, %v7552_v45  ;;  %v1658_v11 = vmul.f32 %v5416_v55, %v7456_v33  ;;  %v1655_v56 = vmul.f32 %v5418_v48, %v7459_v29 }
 0x56f   : > { %5431 = vrsqrt.f32 %v1618_v23  ;;  %v1731_v1 = vmul.f32 %v7554_v60, %v7554_v60  ;;  %v7564_v53 = vmax.f32 %v1700_v34, 0.0  ;;  %v1697_v5 = vadd.f32 %v7518_v12, %v1677_v10 }
 0x570   : > { %v5420_v37 = vpop.eup %5419  ;;  %v1776_v39 = vsel %vm11628_vm5, %v1734_v41, 0.0  ;;  %v1678_v15 = vmul.f32 %v7514_v26, %v1658_v11  ;;  %v1675_v35 = vmul.f32 %v7514_v26, %v1655_v56  ;;  %vm11632_vm5 = vmmov %vm11599_vm3 }
 0x571   : > { %v5422_v30 = vpop.eup %5421  ;;  %1777 = vadd.xlane.f32.xlu0 %v1776_v39  ;;  %v1767_v33 = vsel %vm11629_vm6, %v1731_v1, 0.0  ;;  %v1732_v29 = vmul.f32 %v7564_v53, %v7564_v53  ;;  %v7573_v58 = vmax.f32 %v1697_v5, 0.0  ;;  %v1656_v52 = vmul.f32 %v5420_v37, %v7468_v17  ;;  %vm11633_vm6 = vmmov %vm11599_vm3 }
 0x572   : > { %1768 = vadd.xlane.f32.xlu1 %v1767_v33  ;;  %v1698_v9 = vadd.f32 %v7518_v12, %v1678_v15  ;;  %v1695_v47 = vadd.f32 %v7518_v12, %v1675_v35  ;;  %v1653_v54 = vmul.f32 %v5422_v30, %v7471_v0 }
 0x573   : > { %v1770_v62 = vsel %vm11630_vm9, %v1732_v29, 0.0  ;;  %v1729_v24 = vmul.f32 %v7573_v58, %v7573_v58  ;;  %v1676_v31 = vmul.f32 %v7514_v26, %v1656_v52  ;;  %vm11634_vm9 = vmmov %vm11599_vm3 }
 0x574   : > { %v5424_v51 = vpop.eup %5423  ;;  %v7583_v7 = vmax.f32 %v1698_v9, 0.0  ;;  %v7585_v4 = vmax.f32 %v1695_v47, 0.0  ;;  %v1673_v17 = vmul.f32 %v7514_v26, %v1653_v54 }
 0x575   : > { %v5426_v55 = vpop.eup %5425  ;;  %1771 = vadd.xlane.f32.xlu0 %v1770_v62  ;;  %v1761_v36 = vsel %vm11631_vm15, %v1729_v24, 0.0  ;;  %v1696_v0 = vadd.f32 %v7518_v12, %v1676_v31  ;;  %v1654_v18 = vmul.f32 %v5424_v51, %v7480_v40  ;;  %vm11635_vm15 = vmmov %vm11599_vm3 }
 0x576   : > { %1762 = vadd.xlane.f32.xlu1 %v1761_v36  ;;  %v1730_v48 = vmul.f32 %v7583_v7, %v7583_v7  ;;  %v1727_v23 = vmul.f32 %v7585_v4, %v7585_v4  ;;  %v1693_v34 = vadd.f32 %v7518_v12, %v1673_v17  ;;  %v1651_v10 = vmul.f32 %v5426_v55, %v7483_v21 }
 0x577   : > { %v7597_v41 = vmax.f32 %v1696_v0, 0.0  ;;  %v1674_v11 = vmul.f32 %v7514_v26, %v1654_v18 }
 0x578   : > { %v5428_v56 = vpop.eup %5427  ;;  %v1764_v1 = vsel %vm11599_vm3, %v1730_v48, 0.0  ;;  %v1755_v40 = vsel %vm11632_vm5, %v1727_v23, 0.0  ;;  %v7602_v5 = vmax.f32 %v1693_v34, 0.0  ;;  %v1671_v37 = vmul.f32 %v7514_v26, %v1651_v10  ;;  %vm11636_vm5 = vmmov %vm11599_vm3 }
 0x579   : > { %v5430_v39 = vpop.eup %5429  ;;  %1765 = vadd.xlane.f32.xlu0 %v1764_v1  ;;  %v1728_v15 = vmul.f32 %v7597_v41, %v7597_v41  ;;  %v1694_v21 = vadd.f32 %v7518_v12, %v1674_v11  ;;  %v1652_v35 = vmul.f32 %v5428_v56, %v7492_v16 }
 0x57a   : > { %1756 = vadd.xlane.f32.xlu1 %v1755_v40  ;;  %v1725_v30 = vmul.f32 %v7602_v5, %v7602_v5  ;;  %v1691_v33 = vadd.f32 %v7518_v12, %v1671_v37  ;;  %v1649_v29 = vmul.f32 %v5430_v39, %v7495_v3 }
 0x57b   : > { %v1758_v52 = vsel %vm11633_vm6, %v1728_v15, 0.0  ;;  %v7614_v9 = vmax.f32 %v1694_v21, 0.0  ;;  %v1672_v47 = vmul.f32 %v7514_v26, %v1652_v35  ;;  %vm11637_vm6 = vmmov %vm11599_vm3 }
 0x57c   : > { %v5432_v54 = vpop.eup %5431  ;;  %v1749_v62 = vsel %vm11634_vm9, %v1725_v30, 0.0  ;;  %v7618_v24 = vmax.f32 %v1691_v33, 0.0  ;;  %v1669_v16 = vmul.f32 %v7514_v26, %v1649_v29  ;;  %vm11638_vm9 = vmmov %vm11599_vm3 }
 0x57d   : > { %1759 = vadd.xlane.f32.xlu0 %v1758_v52  ;;  %v1726_v31 = vmul.f32 %v7614_v9, %v7614_v9  ;;  %v1692_v51 = vadd.f32 %v7518_v12, %v1672_v47  ;;  %v1650_v3 = vmul.f32 %v5432_v54, %v7504_v28 }
 0x57e   : > { %1750 = vadd.xlane.f32.xlu1 %v1749_v62  ;;  %v1723_v17 = vmul.f32 %v7618_v24, %v7618_v24  ;;  %v1689_v55 = vadd.f32 %v7518_v12, %v1669_v16 }
 0x57f   : > { %v1752_v36 = vsel %vm11635_vm15, %v1726_v31, 0.0  ;;  %v7629_v0 = vmax.f32 %v1692_v51, 0.0  ;;  %v1670_v18 = vmul.f32 %v7514_v26, %v1650_v3  ;;  %vm11639_vm15 = vmmov %vm11599_vm3 }
 0x580   : > { %v1743_v48 = vsel %vm11599_vm3, %v1723_v17, 0.0  ;;  %v7633_v23 = vmax.f32 %v1689_v55, 0.0 }
 0x581   : > { %1753 = vadd.xlane.f32.xlu0 %v1752_v36  ;;  %v1724_v28 = vmul.f32 %v7629_v0, %v7629_v0  ;;  %v1690_v34 = vadd.f32 %v7518_v12, %v1670_v18 }
 0x582   : > { %1744 = vadd.xlane.f32.xlu1 %v1743_v48  ;;  %v1721_v10 = vmul.f32 %v7633_v23, %v7633_v23 }
 0x583   : > { %v1746_v11 = vsel %vm11636_vm5, %v1724_v28, 0.0  ;;  %v7641_v56 = vmax.f32 %v1690_v34, 0.0  ;;  %vm11640_vm5 = vmmov %vm11599_vm3 }
 0x584   : > { %v1737_v26 = vsel %vm11637_vm6, %v1721_v10, 0.0  ;;  %vm11641_vm6 = vmmov %vm11599_vm3 }
 0x585   : > { %1747 = vadd.xlane.f32.xlu0 %v1746_v11  ;;  %v1722_v1 = vmul.f32 %v7641_v56, %v7641_v56 }
 0x586   : > { %1738 = vadd.xlane.f32.xlu1 %v1737_v26 }
 0x587   : > { %v1740_v40 = vsel %vm11638_vm9, %v1722_v1, 0.0  ;;  %vm11642_vm9 = vmmov %vm11599_vm3 }
 0x589   : > { %1741 = vadd.xlane.f32.xlu0 %v1740_v40 }
 0x5f1   : > { %v1781_v37 = vpop.xlane.xlu1 %1780 }
 0x5f2   : > { %5433 = vrsqrt.f32 %v1781_v37 }
 0x5f6   : > { %v1784_v12 = vpop.xlane.xlu0 %1783  ;;  %v1775_v39 = vpop.xlane.xlu1 %1774 }
 0x5f7   : > { %5435 = vrsqrt.f32 %v1784_v12 }
 0x5fa   : > { %v1778_v15 = vpop.xlane.xlu0 %1777 }
 0x5fb   : > { %5437 = vrsqrt.f32 %v1778_v15  ;;  %v1769_v21 = vpop.xlane.xlu1 %1768 }
 0x5fc   : > { %5439 = vrsqrt.f32 %v1775_v39 }
 0x5fe   : > { %v1772_v35 = vpop.xlane.xlu0 %1771 }
 0x5ff   : > { %v1763_v30 = vpop.xlane.xlu1 %1762  ;;  %5441 = vrsqrt.f32 %v1772_v35  ;;  %v5434_v33 = vpop.eup %5433 }
 0x600   : > { %v1815_v47 = vmin.f32 %v5434_v33, 1e+08  ;;  %5443 = vrsqrt.f32 %v1769_v21 }
 0x602   : > { %v1766_v62 = vpop.xlane.xlu0 %1765  ;;  %v7651_v3 = vmul.f32 %v1815_v47, %v7524_v32 }
 0x603   : > { %v1757_v29 = vpop.xlane.xlu1 %1756  ;;  %5445 = vrsqrt.f32 %v1766_v62 }
 0x604   : > { %v5436_v52 = vpop.eup %5435  ;;  %5447 = vrsqrt.f32 %v1763_v30 }
 0x605   : > { %v1816_v54 = vmin.f32 %v5436_v52, 1e+08 }
 0x606   : > { %v1760_v34 = vpop.xlane.xlu0 %1759 }
 0x607   : > { %v7648_v16 = vmul.f32 %v1816_v54, %v7535_v50  ;;  %v1751_v31 = vpop.xlane.xlu1 %1750 }
 0x608   : > { %v5438_v51 = vpop.eup %5437 }
 0x609   : > { %v1814_v17 = vmin.f32 %v5438_v51, 1e+08  ;;  %4984 = vmatprep.subr.msk.mxu1 %vm11639_vm15, %v7648_v16  ;;  %v5440_v55 = vpop.eup %5439  ;;  %vm11643_vm15 = vmmov %vm11599_vm3 }
 0x60a   : > { %4985 = vmatpush3.xpose.msk.msra.mxu1 %vm11599_vm3, %v7648_v16  ;;  %v1813_v18 = vmin.f32 %v5440_v55, 1e+08  ;;  %v1754_v39 = vpop.xlane.xlu0 %1753 }
 0x60b   : > { %v1745_v36 = vpop.xlane.xlu1 %1744  ;;  %4986 = vmatprep.subr.msk.mxu1 %vm11640_vm5, %v7651_v3  ;;  %v7660_v48 = vmul.f32 %v1814_v17, %v7552_v45  ;;  %vm11644_vm5 = vmmov %vm11599_vm3 }
 0x60c   : > { %v5442_v28 = vpop.eup %5441  ;;  %v7667_v11 = vmul.f32 %v1813_v18, %v7537_v2 }
 0x60d   : > { %v1812_v26 = vmin.f32 %v5442_v28, 1e+08  ;;  %v5444_v1 = vpop.eup %5443 }
 0x60e   : > { %4987 = vmatpush3.xpose.msk.msra.mxu1 %vm11641_vm6, %v7651_v3  ;;  %v1811_v40 = vmin.f32 %v5444_v1, 1e+08  ;;  %vm11645_vm6 = vmmov %vm11599_vm3  ;;  %v1748_v47 = vpop.xlane.xlu0 %1747 }
 0x60f   : > { %v1739_v10 = vpop.xlane.xlu1 %1738  ;;  %4988 = vmatprep.subr.msk.mxu1 %vm11642_vm9, %v7660_v48  ;;  %v7674_v37 = vmul.f32 %v1812_v26, %v7564_v53  ;;  %vm11646_vm9 = vmmov %vm11599_vm3 }
 0x610   : > { %5449 = vrsqrt.f32 %v1739_v10  ;;  %v5446_v12 = vpop.eup %5445  ;;  %v7681_v15 = vmul.f32 %v1811_v40, %v7554_v60 }
 0x611   : > { %5451 = vrsqrt.f32 %v1760_v34  ;;  %v1810_v21 = vmin.f32 %v5446_v12, 1e+08  ;;  %v5448_v35 = vpop.eup %5447 }
 0x612   : > { %4989 = vmatpush3.xpose.msk.msra.mxu1 %vm11643_vm15, %v7660_v48  ;;  %5453 = vrsqrt.f32 %v1757_v29  ;;  %vm11647_vm15 = vmmov %vm11599_vm3  ;;  %v1809_v33 = vmin.f32 %v5448_v35, 1e+08  ;;  %v1742_v34 = vpop.xlane.xlu0 %1741 }
 0x613   : > { %4990 = vmatprep.subr.msk.mxu1 %vm11599_vm3, %v7667_v11  ;;  %5455 = vrsqrt.f32 %v1754_v39  ;;  %v1826_v29 = vmul.f32 %v1810_v21, %v7583_v7 }
 0x614   : > { %5457 = vrsqrt.f32 %v1751_v31  ;;  %v1825_v51 = vmul.f32 %v1809_v33, %v7573_v58 }
 0x615   : > { %5459 = vrsqrt.f32 %v1748_v47 }
 0x616   : > { %4991 = vmatpush3.xpose.msk.msra.mxu1 %vm11644_vm5, %v7667_v11  ;;  %vm11648_vm5 = vmmov %vm11599_vm3  ;;  %5461 = vrsqrt.f32 %v1745_v36 }
 0x617   : > { %4992 = vmatprep.subr.msk.mxu1 %vm11645_vm6, %v7674_v37  ;;  %vm11649_vm6 = vmmov %vm11599_vm3  ;;  %5463 = vrsqrt.f32 %v1742_v34 }
 0x61a   : > { %4993 = vmatpush3.xpose.msk.msra.mxu1 %vm11646_vm9, %v7674_v37  ;;  %vm11650_vm9 = vmmov %vm11599_vm3 }
 0x61b   : > { %4994 = vmatprep.subr.msk.mxu1 %vm11647_vm15, %v7681_v15  ;;  %vm11651_vm15 = vmmov %vm11599_vm3 }
 0x61d   : > { %v5450_v30 = vpop.eup %5449 }
 0x61e   : > { %v5452_v52 = vpop.eup %5451  ;;  %v1801_v54 = vmin.f32 %v5450_v30, 1e+08  ;;  %4995 = vmatpush3.xpose.msk.msra.mxu1 %vm11599_vm3, %v7681_v15 }
 0x61f   : > { %4996 = vmatprep.subr.msk.mxu1 %vm11648_vm5, %v1826_v29  ;;  %v1808_v17 = vmin.f32 %v5452_v52, 1e+08  ;;  %v5454_v55 = vpop.eup %5453  ;;  %vm11652_vm5 = vmmov %vm11599_vm3 }
 0x620   : > { %v1817_v62 = vmul.f32 %v1801_v54, %v7633_v23  ;;  %v1807_v31 = vmin.f32 %v5454_v55, 1e+08  ;;  %v5456_v28 = vpop.eup %5455 }
 0x621   : > { %v1824_v18 = vmul.f32 %v1808_v17, %v7597_v41  ;;  %v1806_v26 = vmin.f32 %v5456_v28, 1e+08  ;;  %v5458_v1 = vpop.eup %5457 }
 0x622   : > { %5016 = vmatprep.mubr.msk.f32.mxu1 %vm11649_vm6, %v1817_v62  ;;  %4997 = vmatpush3.xpose.msk.msra.mxu1 %vm11650_vm9, %v1826_v29  ;;  %v1823_v10 = vmul.f32 %v1807_v31, %v7585_v4  ;;  %vm11653_vm6 = vmmov %vm11599_vm3  ;;  %v1805_v40 = vmin.f32 %v5458_v1, 1e+08  ;;  %v5460_v39 = vpop.eup %5459  ;;  %v11690_v31 = vld [vmem:[#allocation15_spill] sm:$0xff] }
 0x623   : > { %4998 = vmatprep.subr.msk.mxu1 %vm11651_vm15, %v1825_v51  ;;  %vm11654_vm9 = vmmov %vm11599_vm3  ;;  %v1822_v12 = vmul.f32 %v1806_v26, %v7614_v9  ;;  %v1804_v21 = vmin.f32 %v5460_v39, 1e+08  ;;  %v5462_v35 = vpop.eup %5461  ;;  %v11697_v26 = vld [vmem:[#allocation19_spill] sm:$0xff] }
 0x624   : > { %vm11655_vm15 = vmmov %vm11599_vm3  ;;  %v1821_v36 = vmul.f32 %v1805_v40, %v7602_v5  ;;  %v1803_v30 = vmin.f32 %v5462_v35, 1e+08  ;;  %v5464_v52 = vpop.eup %5463  ;;  %v11701_v40 = vmov 0  ;;  %v11705_v39 = vld [vmem:[#allocation7_spill] sm:$0xff] }
 0x625   : > { %v1820_v33 = vmul.f32 %v1804_v21, %v7629_v0  ;;  %v1802_v54 = vmin.f32 %v5464_v52, 1e+08 }
 0x626   : > { %4999 = vmatpush3.xpose.msk.msra.mxu1 %vm11599_vm3, %v1825_v51  ;;  %v1819_v47 = vmul.f32 %v1803_v30, %v7618_v24 }
 0x627   : > { %5000 = vmatprep.subr.msk.mxu1 %vm11652_vm5, %v1824_v18  ;;  %vm11657_vm5 = vmmov %vm11599_vm3  ;;  %v1818_v17 = vmul.f32 %v1802_v54, %v7641_v56 }
 0x62a   : > { %5001 = vmatpush3.xpose.msk.msra.mxu1 %vm11653_vm6, %v1824_v18  ;;  %vm11658_vm6 = vmmov %vm11599_vm3 }
 0x62b   : > { %5002 = vmatprep.subr.msk.mxu1 %vm11654_vm9, %v1823_v10  ;;  %vm11659_vm9 = vmmov %vm11599_vm3 }
 0x62e   : > { %5003 = vmatpush3.xpose.msk.msra.mxu1 %vm11655_vm15, %v1823_v10  ;;  %vm11661_vm15 = vmmov %vm11599_vm3 }
 0x62f   : > { %5004 = vmatprep.subr.msk.mxu1 %vm11656_vm13, %v1822_v12  ;;  %vm11660_vm13 = vmmov %vm11599_vm3 }
 0x632   : > { %5005 = vmatpush3.xpose.msk.msra.mxu1 %vm11599_vm3, %v1822_v12 }
 0x633   : > { %5006 = vmatprep.subr.msk.mxu1 %vm11657_vm5, %v1821_v36  ;;  %vm11662_vm5 = vmmov %vm11599_vm3 }
 0x636   : > { %5007 = vmatpush3.xpose.msk.msra.mxu1 %vm11658_vm6, %v1821_v36  ;;  %vm11665_vm6 = vmmov %vm11663_vm0 }
 0x637   : > { %5008 = vmatprep.subr.msk.mxu1 %vm11659_vm9, %v1820_v33  ;;  %vm11666_vm9 = vmmov %vm11663_vm0 }
 0x63a   : > { %5009 = vmatpush3.xpose.msk.msra.mxu1 %vm11660_vm13, %v1820_v33  ;;  %vm11669_vm13 = vmmov %vm11663_vm0 }
 0x63b   : > { %5010 = vmatprep.subr.msk.mxu1 %vm11661_vm15, %v1819_v47  ;;  %vm11670_vm15 = vmmov %vm11663_vm0 }
 0x63e   : > { %5011 = vmatpush3.xpose.msk.msra.mxu1 %vm11599_vm3, %v1819_v47  ;;  %vm11672_vm3 = vmmov %vm11663_vm0 }
 0x63f   : > { %5012 = vmatprep.subr.msk.mxu1 %vm11662_vm5, %v1818_v17  ;;  %vm11673_vm5 = vmmov %vm11663_vm0 }
 0x642   : > { %5013 = vmatpush3.xpose.msk.msra.mxu1 %vm11663_vm0, %v1818_v17 }
 0x643   : > { %5014 = vmatprep.subr.msk.mxu1 %vm11664_vm10, %v1817_v62  ;;  %vm11674_vm10 = vmmov %vm11663_vm0 }
 0x646   : > { %5015 = vmatpush3.xpose.msk.msra.mxu1 %vm11665_vm6, %v1817_v62  ;;  %vm11675_vm6 = vmmov %vm11663_vm0 }
 0x649   : > { %5017 = vmatmul.mubr.msk.f32.vlgmr.msra.gmra.mxu1 %vm11666_vm9, %v1818_v17  ;;  %vm11679_vm9 = vmmov %vm11663_vm0  ;;  %v11720_v17 = vmov 0 }
 0x64a   : > { %5019 = vmatprep.mubr.msk.f32.mxu1 %vm11667_vm4, %v1819_v47  ;;  %vm11676_vm4 = vmmov %vm11663_vm0  ;;  %v11716_v47 = vmov 0 }
 0x64d   : > { %5020 = vmatmul.mubr.msk.f32.gmra.mxu1 %vm11668_vm8, %v1820_v33  ;;  %vm11677_vm8 = vmmov %vm11663_vm0  ;;  %v11711_v33 = vld [vmem:[#allocation23_spill] sm:$0xff] }
 0x64e   : > { %5022 = vmatprep.mubr.msk.f32.mxu1 %vm11669_vm13, %v1821_v36  ;;  %vm10982_vm13 = vmpackc.low %vm11556_vm2, %vm11556_vm2  ;;  %v11707_v36 = vmov 0  }
 0x651   : > { %5023 = vmatmul.mubr.msk.f32.gmra.mxu1 %vm11670_vm15, %v1822_v12 }
 0x652   : > { %5025 = vmatprep.mubr.msk.f32.mxu1 %vm11671_vm11, %v1823_v10  ;;  %vm11678_vm11 = vmmov %vm11663_vm0 }
 0x655   : > { %5026 = vmatmul.mubr.msk.f32.gmra.mxu1 %vm11672_vm3, %v1824_v18  ;;  %vm10983_vm3 = vmpackc.low %vm11553_vm14, %vm11553_vm14  ;;  %v11728_v18 = vld [vmem:[#allocation27_spill] sm:$0xff] }
 0x656   : > { %5028 = vmatprep.mubr.msk.f32.mxu1 %vm11673_vm5, %v1825_v51 }
 0x659   : > { %5029 = vmatmul.mubr.msk.f32.gmra.mxu1 %vm11663_vm0, %v1826_v29 }
 0x65a   : > { %5031 = vmatprep.mubr.msk.f32.mxu1 %vm11674_vm10, %v7681_v15  ;;  %v11794_v15 = vmov 0 }
 0x65d   : > { %5032 = vmatmul.mubr.msk.f32.gmra.mxu1 %vm11675_vm6, %v7674_v37 }
 0x65e   : > { %5034 = vmatprep.mubr.msk.f32.mxu1 %vm11676_vm4, %v7667_v11 }
 0x661   : > { %5035 = vmatmul.mubr.msk.f32.gmra.mxu1 %vm11677_vm8, %v7660_v48  ;;  %vm11698_vm8 = vnez %v11697_v26  ;;  %v11777_v26 = vmov 0 }
 0x662   : > { %5037 = vmatprep.mubr.msk.f32.mxu1 %vm11678_vm11, %v7651_v3  ;;  %v11680_v3 = vld [vmem:[#allocation12_spill] sm:$0xff] }
 0x663   : > { %vm11681_vm6 = vnez %v11680_v3  ;;  %v11722_v3 = vld [vmem:[#allocation9_spill] sm:$0xff] }
 0x664   : > { %vm7768_vm4 = vmor %vm11681_vm6, %vm10982_vm13 }
 0x665   : > { %5038 = vmatmul.mubr.msk.f32.gmra.mxu1 %vm11679_vm9, %v7648_v16 }
 0x709   : > { %v7741_v62 = vpop.f32.mrf.mxu1 }
 0x70a   : > { %vm2027_vm15 = vcmp.ge.f32.partialorder %v7741_v62, 0.1 }
 0x70b   : > { %v7743_v29 = vpop.f32.mrf.mxu1  ;;  %vm7777_vm11 = vmor %vm2027_vm15, %vm11556_vm2  ;;  %vm11691_vm15 = vnez %v11690_v31 }
 0x70c   : > { %vm2026_vm5 = vcmp.ge.f32.partialorder %v7743_v29, 0.1  ;;  %vm7802_vm13 = vmor %vm11691_vm15, %vm10983_vm3 }
 0x70d   : > { %v7749_v11 = vpop.f32.mrf.mxu1  ;;  %vm7783_vm9 = vmor %vm2026_vm5, %vm11553_vm14  ;;  %vm11706_vm14 = vnez %v11705_v39 }
 0x70e   : > { %vm2029_vm10 = vcmp.ge.f32.partialorder %v7749_v11, 0.1  ;;  %vm2059_vm5 = vmpackc.low %vm7777_vm11, %vm7777_vm11 }
 0x70f   : > { %v7759_v16 = vpop.f32.mrf.mxu1  ;;  %vm7791_vm6 = vmor %vm2029_vm10, %vm11565_vm1 }
 0x710   : > { %vm2028_vm10 = vcmp.ge.f32.partialorder %v7759_v16, 0.1  ;;  %vm11696_vm3 = vmpackc.low %vm11565_vm1, %vm11565_vm1  ;;  %vm11712_vm1 = vnez %v11711_v33  ;;  %v11737_v33 = vmov 0 }
 0x711   : > { %v7787_v51 = vpop.f32.mrf.mxu1  ;;  %vm7825_vm11 = vmor %vm2028_vm10, %vm11563_vm12  ;;  %vm11704_vm10 = vnez %v11566_v38  ;;  %v11764_v38 = vmov 0 }
 0x712   : > { %vm7836_vm0 = vmor %vm11698_vm8, %vm11696_vm3  ;;  %vm2031_vm15 = vcmp.ge.f32.partialorder %v7787_v51, 0.1 }
 0x713   : > { %v7810_v28 = vpop.f32.mrf.mxu1  ;;  %vm7843_vm2 = vmand %vm7768_vm4, %vm2059_vm5 }
 0x714   : > { %v11702_v40 = vsel %vm7843_vm2, 4294967295, %v11701_v40  ;;  %vm2091_vm3 = vmand %vm7843_vm2, %vm11706_vm14  ;;  %vm11723_vm2 = vnez %v11722_v3 }
 0x715   : > { %v7821_v34 = vpop.f32.mrf.mxu1  ;;  %11703 = vst [vmem:[#allocation17_spill] sm:$0xff] %v11702_v40  ;;  %v2107_v21 = vsel %vm2091_vm3, 65537, %v11707_v36  ;;  %vm7862_vm4 = vmor %vm2031_vm15, %vm11569_vm7  ;;  %vm2030_vm3 = vcmp.ge.f32.partialorder %v7810_v28, 0.1 }
 0x716   : > { %v2123_v30 = vunpack.c.l.b16 %v2107_v21  ;;  %vm11710_vm5 = vmpackc.low %vm11563_vm12, %vm11563_vm12  ;;  %v11733_v21 = vmov 0 }
 0x717   : > { %v7847_v12 = vpop.f32.mrf.mxu1  ;;  %vm7873_vm14 = vmor %vm11712_vm1, %vm11710_vm5  ;;  %vm11719_vm1 = vnez %v11573_v25  ;;  %vm11729_vm5 = vnez %v11728_v18 }
 0x718   : > { %vm11715_vm15 = vmpackc.low %vm7783_vm9, %vm7783_vm9  ;;  %vm7894_vm12 = vcmp.ne.s32.totalorder %v2123_v30, 0 }
 0x719   : > { %vm7885_vm8 = vmand %vm7802_vm13, %vm11715_vm15  ;;  %v7889_v54 = vpop.f32.mrf.mxu1  ;;  %v11721_v17 = vsel %vm7894_vm12, 4294967295, %v11720_v17  ;;  %v7908_v48 = vsel %vm7894_vm12, %v7741_v62, 0.0 }
 0x71a   : > { %v11717_v47 = vsel %vm7885_vm8, 4294967295, %v11716_v47  ;;  %vm2090_vm9 = vmand %vm7885_vm8, %vm11723_vm2  ;;  %11724 = vst [vmem:[#allocation29_spill] sm:$0xff] %v7908_v48  ;;  %2172 = vadd.xlane.f32.xlu1 %v7908_v48  ;;  %v11829_v48 = vld [vmem:[#allocation31_spill] sm:$0xff] }
 0x71b   : > { %11718 = vst [vmem:[#allocation21_spill] sm:$0xff] %v11717_v47  ;;  %v2106_v37 = vsel %vm2090_vm9, 65537, %v11707_v36  ;;  %vm7913_vm15 = vmor %vm2030_vm3, %vm11704_vm10  ;;  %vm2033_vm9 = vcmp.ge.f32.partialorder %v7821_v34, 0.1  ;;  %v7941_v30 = vpop.f32.mrf.mxu1 }
 0x71c   : > { %v2122_v31 = vunpack.c.l.b16 %v2106_v37  ;;  %vm11727_vm13 = vmpackc.low %vm11569_vm7, %vm11569_vm7  ;;  %v11739_v37 = vld [vmem:[#allocation11_spill] sm:$0xff] }
 0x71d   : > { %vm7925_vm2 = vmor %vm11729_vm5, %vm11727_vm13  ;;  %vm11736_vm5 = vnez %v11571_v63  ;;  %vm11740_vm12 = vnez %v11739_v37  ;;  %v11745_v37 = vld [vmem:[#allocation32_spill] sm:$0xff]  ;;  %v7993_v39 = vpop.f32.mrf.mxu1 }
 0x71e   : > { %vm11732_vm3 = vmpackc.low %vm7791_vm6, %vm7791_vm6  ;;  %vm7946_vm7 = vcmp.ne.s32.totalorder %v2122_v31, 0  ;;  %vm11746_vm13 = vnez %v11745_v37  ;;  %v11754_v37 = vmov 0 }
 0x71f   : > { %vm7937_vm8 = vmand %vm7836_vm0, %vm11732_vm3  ;;  %v11738_v33 = vsel %vm7946_vm7, 4294967295, %v11737_v33  ;;  %v7960_v55 = vsel %vm7946_vm7, %v7743_v29, 0.0  ;;  %vm11757_vm7 = vnez %v11756_v42  ;;  %v8045_v25 = vpop.f32.mrf.mxu1 }
 0x720   : > { %v11734_v21 = vsel %vm7937_vm8, 4294967295, %v11733_v21  ;;  %vm2093_vm6 = vmand %vm7937_vm8, %vm11740_vm12  ;;  %11741 = vst [vmem:[#allocation39_spill] sm:$0xff] %v7960_v55  ;;  %2170 = vadd.xlane.f32.xlu0 %v7960_v55  ;;  %v11823_v55 = vld [vmem:[#allocation49_spill] sm:$0xff] }
 0x721   : > { %11735 = vst [vmem:[#allocation25_spill] sm:$0xff] %v11734_v21  ;;  %v2109_v1 = vsel %vm2093_vm6, 65537, %v11707_v36  ;;  %vm7965_vm3 = vmor %vm2033_vm9, %vm11719_vm1  ;;  %vm2032_vm6 = vcmp.ge.f32.partialorder %v7847_v12, 0.1  ;;  %v8100_v63 = vpop.f32.mrf.mxu1 }
 0x722   : > { %v2125_v18 = vunpack.c.l.b16 %v2109_v1  ;;  %vm11744_vm0 = vmpackc.low %vm11704_vm10, %vm11704_vm10  ;;  %v11750_v1 = vmov 0 }
 0x723   : > { %vm7977_vm12 = vmor %vm11746_vm13, %vm11744_vm0  ;;  %vm11753_vm13 = vnez %v11577_v22  ;;  %vm11763_vm0 = vnez %v11762_v27  ;;  %v11770_v27 = vmov 0  ;;  %v11807_v22 = vmov 0 }
 0x724   : > { %vm11749_vm9 = vmpackc.low %vm7825_vm11, %vm7825_vm11  ;;  %vm7998_vm10 = vcmp.ne.s32.totalorder %v2125_v18, 0 }
 0x725   : > { %vm7989_vm8 = vmand %vm7873_vm14, %vm11749_vm9  ;;  %v11755_v37 = vsel %vm7998_vm10, 4294967295, %v11754_v37  ;;  %v8012_v10 = vsel %vm7998_vm10, %v7749_v11, 0.0  ;;  %vm11774_vm10 = vnez %v11575_v43  ;;  %v11833_v43 = vld [vmem:[#allocation59_spill] sm:$0xff] }
 0x726   : > { %v11751_v1 = vsel %vm7989_vm8, 4294967295, %v11750_v1  ;;  %vm2092_vm11 = vmand %vm7989_vm8, %vm11757_vm7  ;;  %11758 = vst [vmem:[#allocation47_spill] sm:$0xff] %v8012_v10  ;;  %2176 = vadd.xlane.f32.xlu1 %v8012_v10  ;;  %v11797_v10 = vld [vmem:[#allocation45_spill] sm:$0xff] }
 0x727   : > { %11752 = vst [vmem:[#allocation34_spill] sm:$0xff] %v11751_v1  ;;  %v2108_v52 = vsel %vm2092_vm11, 65537, %v11707_v36  ;;  %vm8017_vm9 = vmor %vm2032_vm6, %vm11736_vm5  ;;  %vm2035_vm11 = vcmp.ge.f32.partialorder %v7889_v54, 0.1 }
 0x728   : > { %v2124_v42 = vunpack.c.l.b16 %v2108_v52  ;;  %vm11761_vm14 = vmpackc.low %vm11719_vm1, %vm11719_vm1  ;;  %v11767_v52 = vmov 0 }
 0x729   : > { %vm8029_vm7 = vmor %vm11763_vm0, %vm11761_vm14  ;;  %vm11773_vm0 = vnez %v11772_v59 }
 0x72a   : > { %v11765_v38 = vsel %vm8029_vm7, 4294967295, %v11764_v38  ;;  %vm11766_vm6 = vmpackc.low %vm7862_vm4, %vm7862_vm4  ;;  %vm8047_vm1 = vcmp.ne.s32.totalorder %v2124_v42, 0  ;;  %vm2034_vm7 = vcmp.ge.f32.partialorder %v7941_v30, 0.1 }
 0x72b   : > { %vm8041_vm8 = vmand %vm7925_vm2, %vm11766_vm6  ;;  %v11771_v27 = vsel %vm8047_vm1, 4294967295, %v11770_v27  ;;  %v8064_v42 = vsel %vm8047_vm1, %v7759_v16, 0.0  ;;  %vm11792_vm1 = vnez %v11582_v14  ;;  %vm11803_vm6 = vnez %v11765_v38 }
 0x72c   : > { %v11768_v52 = vsel %vm8041_vm8, 4294967295, %v11767_v52  ;;  %vm2095_vm14 = vmand %vm8041_vm8, %vm11773_vm0  ;;  %11775 = vst [vmem:[#allocation51_spill] sm:$0xff] %v8064_v42  ;;  %2174 = vadd.xlane.f32.xlu0 %v8064_v42  ;;  %v11799_v42 = vmov 0 }
 0x72d   : > { %11769 = vst [vmem:[#allocation43_spill] sm:$0xff] %v11768_v52  ;;  %v2111_v35 = vsel %vm2095_vm14, 65537, %v11707_v36  ;;  %vm8072_vm0 = vmor %vm2035_vm11, %vm11753_vm13  ;;  %vm11781_vm14 = vnez %v11780_v8  ;;  %v11788_v8 = vmov 0  ;;  %v11906_v52 = vld [vmem:[#allocation44_spill] sm:$0xff] }
 0x72e   : > { %v11778_v26 = vsel %vm8072_vm0, 4294967295, %v11777_v26  ;;  %v2127_v59 = vunpack.c.l.b16 %v2111_v35  ;;  %vm11779_vm4 = vmpackc.low %vm11736_vm5, %vm11736_vm5  ;;  %v11785_v35 = vmov 0 }
 0x72f   : > { %vm8084_vm2 = vmor %vm11781_vm14, %vm11779_vm4  ;;  %vm11791_vm4 = vnez %v11790_v19 }
 0x730   : > { %vm11784_vm11 = vmpackc.low %vm7913_vm15, %vm7913_vm15  ;;  %vm8102_vm5 = vcmp.ne.s32.totalorder %v2127_v59, 0  ;;  %vm2037_vm15 = vcmp.ge.f32.partialorder %v7993_v39, 0.1 }
 0x731   : > { %vm8096_vm8 = vmand %vm7977_vm12, %vm11784_vm11  ;;  %v11789_v8 = vsel %vm8102_vm5, 4294967295, %v11788_v8  ;;  %v8119_v59 = vsel %vm8102_vm5, %v7787_v51, 0.0  ;;  %vm2036_vm5 = vcmp.ge.f32.partialorder %v8045_v25, 0.1 }
 0x732   : > { %v11786_v35 = vsel %vm8096_vm8, 4294967295, %v11785_v35  ;;  %vm2094_vm14 = vmand %vm8096_vm8, %vm11791_vm4  ;;  %11793 = vst [vmem:[#allocation60_spill] sm:$0xff] %v8119_v59  ;;  %2180 = vadd.xlane.f32.xlu1 %v8119_v59  ;;  %vm11798_vm4 = vnez %v11797_v10  ;;  %v8156_v10 = vpop.f32.mrf.mxu1  ;;  %v11809_v59 = vld [vmem:[#allocation26_spill] sm:$0xff] }
 0x733   : > { %11787 = vst [vmem:[#allocation57_spill] sm:$0xff] %v11786_v35  ;;  %v2110_v3 = vsel %vm2094_vm14, 65537, %v11707_v36  ;;  %vm8124_vm11 = vmor %vm2034_vm7, %vm11774_vm10  ;;  %vm11801_vm7 = vnez %v11580_v49 }
 0x734   : > { %v11795_v15 = vsel %vm8124_vm11, 4294967295, %v11794_v15  ;;  %v2126_v19 = vunpack.c.l.b16 %v2110_v3  ;;  %vm11796_vm12 = vmpackc.low %vm11753_vm13, %vm11753_vm13  ;;  %v11804_v3 = vmov 0 }
 0x735   : > { %vm8137_vm8 = vmor %vm11798_vm4, %vm11796_vm12  ;;  %vm11810_vm12 = vnez %v11809_v59 }
 0x736   : > { %v11800_v42 = vsel %vm8137_vm8, 4294967295, %v11799_v42  ;;  %vm11802_vm0 = vmpackc.low %vm7965_vm3, %vm7965_vm3  ;;  %vm8158_vm4 = vcmp.ne.s32.totalorder %v2126_v19, 0  ;;  %vm11811_vm8 = vnez %v11586_v13  ;;  %v11812_v19 = vmov 0 }
 0x737   : > { %vm8152_vm13 = vmand %vm11803_vm6, %vm11802_vm0  ;;  %v11808_v22 = vsel %vm8158_vm4, 4294967295, %v11807_v22  ;;  %v8181_v38 = vsel %vm8158_vm4, %v7810_v28, 0.0  ;;  %vm11817_vm0 = vnez %v11584_v6  ;;  %vm11824_vm4 = vnez %v11823_v55 }
 0x738   : > { %v11805_v3 = vsel %vm8152_vm13, 4294967295, %v11804_v3  ;;  %vm2097_vm14 = vmand %vm8152_vm13, %vm11810_vm12  ;;  %11814 = vst [vmem:[#allocation63_spill] sm:$0xff] %v8181_v38  ;;  %2178 = vadd.xlane.f32.xlu0 %v8181_v38  ;;  %v11819_v38 = vmov 0  ;;  %v11835_v55 = vmov 0  ;;  %v11875_v13 = vmov 0 }
 0x739   : > { %11806 = vst [vmem:[#allocation62_spill] sm:$0xff] %v11805_v3  ;;  %vm8174_vm6 = vmor %vm2037_vm15, %vm11792_vm1  ;;  %v2113_v31 = vsel %vm2097_vm14, 65537, %v11707_v36  ;;  %vm2039_vm15 = vcmp.ge.f32.partialorder %v8100_v63, 0.1  ;;  %vm11834_vm1 = vnez %v11833_v43 }
 0x73a   : > { %v11813_v19 = vsel %vm8174_vm6, 4294967295, %v11812_v19  ;;  %vm8187_vm3 = vmor %vm2036_vm5, %vm11801_vm7  ;;  %v2129_v61 = vunpack.c.l.b16 %v2113_v31  ;;  %vm2038_vm5 = vcmp.ge.f32.partialorder %v8156_v10, 0.1  ;;  %v8207_v31 = vpop.f32.mrf.mxu1  ;;  %vm11831_vm7 = vnez %v11594_v20 }
 0x73b   : > { %vm11818_vm14 = vmpackc.low %vm8017_vm9, %vm8017_vm9 }
 0x73c   : > { %vm8202_vm13 = vmand %vm8084_vm2, %vm11818_vm14  ;;  %vm8220_vm9 = vcmp.ne.s32.totalorder %v2129_v61, 0  ;;  %vm11830_vm2 = vnez %v11829_v48  ;;  %v8298_v35 = vpop.f32.mrf.mxu1 }
 0x73d   : > { %v11820_v38 = vsel %vm8202_vm13, 4294967295, %v11819_v38  ;;  %vm11822_vm12 = vmpackc.low %vm11774_vm10, %vm11774_vm10  ;;  %v11828_v57 = vsel %vm8220_vm9, 4294967295, %v11827_v57  ;;  %v8245_v61 = vsel %vm8220_vm9, %v7821_v34, 0.0  ;;  %vm11845_vm9 = vnez %v11800_v42  ;;  %v11857_v42 = vld [vmem:[#allocation36_spill] sm:$0xff] }
 0x73e   : > { %11821 = vst [vmem:[#allocation12_spill] sm:$0xff] %v11820_v38  ;;  %vm8216_vm11 = vmor %vm11824_vm4, %vm11822_vm12  ;;  %2184 = vadd.xlane.f32.xlu1 %v8245_v61  ;;  %v11841_v38 = vmov 0 }
 0x73f   : > { %vm2096_vm14 = vmand %vm8202_vm13, %vm11830_vm2  ;;  %11837 = vst [vmem:[#allocation15_spill] sm:$0xff] %v8245_v61  ;;  %v11851_v61 = vld [vmem:[#allocation53_spill] sm:$0xff] }
 0x740   : > { %vm11832_vm10 = vmpackc.low %vm11831_vm7, %vm11831_vm7  ;;  %v2112_v43 = vsel %vm2096_vm14, 65537, %v11707_v36  ;;  %vm11843_vm14 = vnez %v11778_v26  ;;  %v11855_v26 = vmov 0 }
 0x741   : > { %vm8235_vm4 = vmor %vm11834_vm1, %vm11832_vm10  ;;  %v2128_v3 = vunpack.c.l.b16 %v2112_v43  ;;  %v11846_v43 = vmov 0 }
 0x742   : > { %v11836_v55 = vsel %vm8235_vm4, 4294967295, %v11835_v55  ;;  %vm8249_vm2 = vmor %vm2039_vm15, %vm11811_vm8  ;;  %vm2041_vm15 = vcmp.ge.f32.partialorder %v8207_v31, 0.1 }
 0x743   : > { %vm8260_vm12 = vmor %vm2038_vm5, %vm11817_vm0  ;;  %vm11849_vm5 = vnez %v11582_v14  ;;  %vm11852_vm0 = vnez %v11851_v61  ;;  %vm8290_vm13 = vcmp.ne.s32.totalorder %v2128_v3, 0  ;;  %v11916_v14 = vmov 0 }
 0x744   : > { %v11842_v38 = vsel %vm8260_vm12, 4294967295, %v11841_v38  ;;  %vm11844_vm1 = vmpackc.low %vm11843_vm14, %vm11843_vm14  ;;  %v11856_v26 = vsel %vm8290_vm13, 4294967295, %v11855_v26  ;;  %v8306_v61 = vsel %vm8290_vm13, %v7847_v12, 0.0 }
 0x745   : > { %vm8275_vm6 = vmand %vm11845_vm9, %vm11844_vm1  ;;  %vm11858_vm9 = vnez %v11857_v42  ;;  %11859 = vst [vmem:[#allocation23_spill] sm:$0xff] %v8306_v61  ;;  %v11862_v42 = vld [vmem:[#allocation55_spill] sm:$0xff]  ;;  %2182 = vadd.xlane.f32.xlu0 %v8306_v61 }
 0x746   : > { %v11847_v43 = vsel %vm8275_vm6, 4294967295, %v11846_v43  ;;  %vm11850_vm10 = vmpackc.low %vm11849_vm5, %vm11849_vm5  ;;  %vm11863_vm5 = vnez %v11862_v42  ;;  %v11867_v42 = vld [vmem:[#allocation56_spill] sm:$0xff] }
 0x747   : > { %11848 = vst [vmem:[#allocation19_spill] sm:$0xff] %v11847_v43  ;;  %vm8286_vm4 = vmor %vm11852_vm0, %vm11850_vm10  ;;  %vm11860_vm10 = vnez %v11580_v49  ;;  %v11883_v49 = vld [vmem:[#allocation40_spill] sm:$0xff] }
 0x748   : > { %vm2099_vm1 = vmand %vm8275_vm6, %vm11858_vm9 }
 0x749   : > { %v2115_v3 = vsel %vm2099_vm1, 65537, %v11707_v36  ;;  %vm2057_vm0 = vmor %vm2041_vm15, %vm11831_vm7  ;;  %vm2040_vm15 = vcmp.ge.f32.partialorder %v8298_v35, 0.1 }
 0x74a   : > { %vm11861_vm9 = vmpackc.low %vm11860_vm10, %vm11860_vm10  ;;  %v2131_v43 = vunpack.c.l.b16 %v2115_v3  ;;  %v11871_v3 = vmov 0 }
 0x74b   : > { %vm8318_vm6 = vmor %vm11863_vm5, %vm11861_vm9  ;;  %vm11868_vm5 = vnez %v11867_v42 }
 0x74c   : > { %vm2073_vm14 = vmpackc.low %vm2057_vm0, %vm2057_vm0  ;;  %vm8338_vm10 = vcmp.ne.s32.totalorder %v2131_v43, 0  ;;  %vm11873_vm0 = vnez %v11795_v15  ;;  %v11880_v43 = vmov 0  ;;  %v11887_v15 = vld [vmem:[#allocation58_spill] sm:$0xff] }
 0x74d   : > { %vm11866_vm7 = vmpackc.low %vm11811_vm8, %vm11811_vm8  ;;  %v11872_v3 = vsel %vm8338_vm10, 4294967295, %v11871_v3  ;;  %v8356_v42 = vsel %vm8338_vm10, %v7889_v54, 0.0  ;;  %vm11884_vm8 = vnez %v11883_v49  ;;  %vm11888_vm12 = vnez %v11887_v15 }
 0x74e   : > { %vm8334_vm9 = vmor %vm11868_vm5, %vm11866_vm7  ;;  %11878 = vst [vmem:[#allocation32_spill] sm:$0xff] %v8356_v42  ;;  %vm11879_vm7 = vnez %v11836_v55  ;;  %2188 = vadd.xlane.f32.xlu1 %v8356_v42  ;;  %v11896_v15 = vmov 0  ;;  %v11913_v42 = vld [vmem:[#allocation46_spill] sm:$0xff] }
 0x74f   : > { %vm11874_vm1 = vmpackc.low %vm11873_vm0, %vm11873_vm0 }
 0x750   : > { %vm8349_vm13 = vmand %vm8216_vm11, %vm11874_vm1  ;;  %vm11885_vm11 = vnez %v11584_v6 }
 0x751   : > { %v11876_v13 = vsel %vm8349_vm13, 4294967295, %v11875_v13  ;;  %vm8360_vm5 = vmand %vm11879_vm7, %vm2073_vm14  ;;  %vm11891_vm14 = vnez %v11592_v44 }
 0x752   : > { %11877 = vst [vmem:[#allocation27_spill] sm:$0xff] %v11876_v13  ;;  %v11881_v43 = vsel %vm8360_vm5, 4294967295, %v11880_v43  ;;  %vm2098_vm0 = vmand %vm8349_vm13, %vm11884_vm8 }
 0x753   : > { %11882 = vst [vmem:[#allocation37_spill] sm:$0xff] %v11881_v43  ;;  %vm11886_vm1 = vmpackc.low %vm11885_vm11, %vm11885_vm11  ;;  %v2114_v55 = vsel %vm2098_vm0, 65537, %v11707_v36 }
 0x754   : > { %vm8375_vm10 = vmor %vm11888_vm12, %vm11886_vm1  ;;  %v2130_v61 = vunpack.c.l.b16 %v2114_v55  ;;  %vm11894_vm12 = vnez %v11813_v19  ;;  %v11900_v55 = vld [vmem:[#allocation61_spill] sm:$0xff] }
 0x755   : > { %vm8383_vm7 = vmor %vm2040_vm15, %vm11891_vm14  ;;  %vm11901_vm0 = vnez %v11900_v55 }
 0x756   : > { %vm11895_vm1 = vmpackc.low %vm11894_vm12, %vm11894_vm12  ;;  %vm8412_vm8 = vcmp.ne.s32.totalorder %v2130_v61, 0  ;;  %v11910_v61 = vmov 0 }
 0x757   : > { %vm8397_vm11 = vmand %vm8286_vm4, %vm11895_vm1  ;;  %vm11907_vm4 = vnez %v11906_v52  ;;  %v8423_v44 = vsel %vm8412_vm8, %v7941_v30, 0.0 }
 0x758   : > { %v11897_v15 = vsel %vm8397_vm11, 4294967295, %v11896_v15  ;;  %vm11899_vm15 = vmpackc.low %vm11891_vm14, %vm11891_vm14  ;;  %11908 = vst [vmem:[#allocation45_spill] sm:$0xff] %v8423_v44  ;;  %2186 = vadd.xlane.f32.xlu0 %v8423_v44  ;;  %v11931_v44 = vld [vmem:[#allocation50_spill] sm:$0xff] }
 0x759   : > { %11898 = vst [vmem:[#allocation42_spill] sm:$0xff] %v11897_v15  ;;  %vm8408_vm13 = vmor %vm11901_vm0, %vm11899_vm15  ;;  %vm11914_vm0 = vnez %v11913_v42  ;;  %v11921_v42 = vld [vmem:[#allocation48_spill] sm:$0xff] }
 0x75a   : > { %vm2101_vm12 = vmand %vm8397_vm11, %vm11907_vm4 }
 0x75b   : > { %v2117_v55 = vsel %vm2101_vm12, 65537, %v11707_v36  ;;  %vm11909_vm1 = vmpackc.low %vm8187_vm3, %vm8187_vm3 }
 0x75c   : > { %vm8433_vm15 = vmand %vm8318_vm6, %vm11909_vm1  ;;  %v2133_v52 = vunpack.c.l.b16 %v2117_v55  ;;  %vm11922_vm1 = vnez %v11921_v42 }
 0x75d   : > { %v11911_v61 = vsel %vm8433_vm15, 4294967295, %v11910_v61  ;;  %vm2100_vm4 = vmand %vm8433_vm15, %vm11914_vm0 }
 0x75e   : > { %11912 = vst [vmem:[#allocation49_spill] sm:$0xff] %v11911_v61  ;;  %v2116_v15 = vsel %vm2100_vm4, 65537, %v11707_v36  ;;  %vm11915_vm3 = vmpackc.low %vm8249_vm2, %vm8249_vm2  ;;  %vm8454_vm12 = vcmp.ne.s32.totalorder %v2133_v52, 0  ;;  %vm11924_vm2 = vnez %v11842_v38 }
 0x75f   : > { %vm8450_vm6 = vmand %vm8334_vm9, %vm11915_vm3  ;;  %v2132_v55 = vunpack.c.l.b16 %v2116_v15  ;;  %v8465_v48 = vsel %vm8454_vm12, %v7993_v39, 0.0  ;;  %v11926_v15 = vmov 0 }
 0x760   : > { %v11917_v14 = vsel %vm8450_vm6, 4294967295, %v11916_v14  ;;  %vm2103_vm4 = vmand %vm8450_vm6, %vm11922_vm1  ;;  %11923 = vst [vmem:[#allocation53_spill] sm:$0xff] %v8465_v48  ;;  %2192 = vadd.xlane.f32.xlu1 %v8465_v48 }
 0x761   : > { %11918 = vst [vmem:[#allocation59_spill] sm:$0xff] %v11917_v14  ;;  %v2119_v20 = vsel %vm2103_vm4, 65537, %v11707_v36  ;;  %vm11925_vm9 = vmpackc.low %vm11924_vm2, %vm11924_vm2  ;;  %vm8480_vm1 = vcmp.ne.s32.totalorder %v2132_v55, 0  ;;  %vm11932_vm4 = vnez %v11931_v44  ;;  %v11934_v14 = vld [vmem:[#allocation52_spill] sm:$0xff]  ;;  %v11986_v55 = vmov 0 }
 0x762   : > { %vm8475_vm3 = vmand %vm8375_vm10, %vm11925_vm9  ;;  %v2135_v42 = vunpack.c.l.b16 %v2119_v20  ;;  %v8491_v38 = vsel %vm8480_vm1, %v8045_v25, 0.0  ;;  %vm11935_vm10 = vnez %v11934_v14  ;;  %v11939_v14 = vmov 0 }
 0x763   : > { %v11927_v15 = vsel %vm8475_vm3, 4294967295, %v11926_v15  ;;  %vm2102_vm0 = vmand %vm8475_vm3, %vm11932_vm4  ;;  %11933 = vst [vmem:[#allocation56_spill] sm:$0xff] %v8491_v38  ;;  %2190 = vadd.xlane.f32.xlu0 %v8491_v38 }
 0x764   : > { %11928 = vst [vmem:[#allocation55_spill] sm:$0xff] %v11927_v15  ;;  %v2118_v18 = vsel %vm2102_vm0, 65537, %v11707_v36  ;;  %vm2105_vm2 = vmand %vm8360_vm5, %vm11935_vm10  ;;  %vm8499_vm9 = vcmp.ne.s32.totalorder %v2135_v42, 0 }
 0x765   : > { %v2134_v20 = vunpack.c.l.b16 %v2118_v18  ;;  %v2121_v44 = vsel %vm2105_vm2, 65537, %v11707_v36  ;;  %vm11938_vm4 = vmpackc.low %vm8383_vm7, %vm8383_vm7  ;;  %v8518_v42 = vsel %vm8499_vm9, %v8100_v63, 0.0  ;;  %v11942_v18 = vld [vmem:[#allocation54_spill] sm:$0xff] }
 0x766   : > { %vm8511_vm0 = vmand %vm8408_vm13, %vm11938_vm4  ;;  %v2137_v48 = vunpack.c.l.b16 %v2121_v44  ;;  %vm11943_vm10 = vnez %v11942_v18  ;;  %2196 = vadd.xlane.f32.xlu1 %v8518_v42 }
 0x767   : > { %v11940_v14 = vsel %vm8511_vm0, 4294967295, %v11939_v14  ;;  %vm2104_vm2 = vmand %vm8511_vm0, %vm11943_vm10  ;;  %vm8525_vm7 = vcmp.ne.s32.totalorder %v2134_v20, 0 }
 0x768   : > { %11941 = vst [vmem:[#allocation58_spill] sm:$0xff] %v11940_v14  ;;  %v2120_v6 = vsel %vm2104_vm2, 65537, %v11707_v36  ;;  %v8533_v38 = vsel %vm8525_vm7, %v8156_v10, 0.0  ;;  %vm2153_vm13 = vcmp.ne.s32.totalorder %v2137_v48, 0  ;;  %vm11949_vm2 = vnez %v11789_v8  ;;  %v11980_v8 = vld [vmem:[#allocation43_spill] sm:$0xff] }
 0x769   : > { %v2136_v44 = vunpack.c.l.b16 %v2120_v6  ;;  %2194 = vadd.xlane.f32.xlu0 %v8533_v38  ;;  %5041 = vmatpush3.xpose.msk.msra.mxu0 %vm2153_vm13, %v8207_v31  ;;  %v8538_v18 = vsel %vm2153_vm13, %v8207_v31, 0.0  ;;  %vm11952_vm13 = vnez %v11771_v27  ;;  %v11988_v6 = vld [vmem:[#allocation62_spill] sm:$0xff]  ;;  %v12036_v27 = vld [vmem:[#allocation5_spill] sm:$0xff] }
 0x76a   : > { %5042 = vmatprep.subr.mxu0 %v11479_v46  ;;  %2200 = vadd.xlane.f32.xlu1 %v8538_v18 }
 0x76b   : > { %vm2152_vm4 = vcmp.ne.s32.totalorder %v2136_v44, 0 }
 0x76c   : > { %v8543_v20 = vsel %vm2152_vm4, %v8298_v35, 0.0 }
 0x76d   : > { %2198 = vadd.xlane.f32.xlu0 %v8543_v20  ;;  %5043 = vmatpush3.xpose.msk.msra.mxu0 %vm2152_vm4, %v8298_v35  ;;  %vm11953_vm4 = vnez %v11721_v17 }
 0x76e   : > { %5044 = vmatprep.subr.mxu0 %v11479_v46 }
 0x771   : > { %5045 = vmatpush3.xpose.msk.msra.mxu0 %vm8499_vm9, %v8100_v63  ;;  %vm11946_vm9 = vnez %v11872_v3  ;;  %v2546_v63 = vld [vmem:[%s10756_s3 + $0x10] sm:$0xff] }
 0x772   : > { %5046 = vmatprep.subr.mxu0 %v11479_v46 }
 0x775   : > { %5047 = vmatpush3.xpose.msk.msra.mxu0 %vm8525_vm7, %v8156_v10  ;;  %vm11951_vm7 = vnez %v11755_v37 }
 0x776   : > { %5048 = vmatprep.subr.mxu0 %v11479_v46 }
 0x779   : > { %5049 = vmatpush3.xpose.msk.msra.mxu0 %vm8454_vm12, %v7993_v39  ;;  %vm11947_vm12 = vnez %v11828_v57 }
 0x77a   : > { %5050 = vmatprep.subr.mxu0 %v11479_v46 }
 0x77d   : > { %5051 = vmatpush3.xpose.msk.msra.mxu0 %vm8480_vm1, %v8045_v25  ;;  %vm11948_vm1 = vnez %v11856_v26  ;;  %v2547_v25 = vld [vmem:[%s10756_s3 + $0x18] sm:$0xff]  ;;  %v11984_v26 = vld [vmem:[#allocation12_spill] sm:$0xff] }
 0x77e   : > { %5052 = vmatprep.subr.mxu0 %v11479_v46 }
 0x781   : > { %5053 = vmatpush3.xpose.msk.msra.mxu0 %vm11946_vm9, %v7889_v54  ;;  %vm11955_vm9 = vnez %v11738_v33 }
 0x782   : > { %5054 = vmatprep.subr.mxu0 %v11479_v46 }
 0x785   : > { %5055 = vmatpush3.xpose.msk.msra.mxu0 %vm8412_vm8, %v7941_v30  ;;  %vm11950_vm8 = vnez %v11808_v22  ;;  %v8606_v22 = vpack.c.bf16 %v2547_v25, %v2546_v63 }
 0x786   : > { %5056 = vmatprep.subr.mxu0 %v11479_v46 }
 0x787   : > { %11954 = vst [vmem:[#allocation61_spill] sm:$0xff] %v8606_v22 }
 0x789   : > { %5057 = vmatpush3.xpose.msk.msra.mxu0 %vm11947_vm12, %v7821_v34  ;;  %vm11958_vm12 = vcmask 261120   ;;  %v2550_v34 = vpack.c.bf16 %v7614_v9, %v7602_v5  ;;  %v2554_v5 = vpack.c.bf16 %v7552_v45, %v7537_v2 }
 0x78a   : > { %5058 = vmatprep.subr.mxu0 %v11479_v46 }
 0x78d   : > { %5059 = vmatpush3.xpose.msk.msra.mxu0 %vm11948_vm1, %v7847_v12  ;;  %vm11959_vm1 = vmmov %vm11958_vm12 }
 0x78e   : > { %5060 = vmatprep.subr.mxu0 %v11479_v46 }
 0x791   : > { %5061 = vmatpush3.xpose.msk.msra.mxu0 %vm11949_vm2, %v7787_v51  ;;  %vm11960_vm2 = vmmov %vm11959_vm1 }
 0x792   : > { %5062 = vmatprep.subr.mxu0 %v11479_v46 }
 0x795   : > { %5063 = vmatpush3.xpose.msk.msra.mxu0 %vm11950_vm8, %v7810_v28  ;;  %v11957_v28 = vmov 1.0   ;;  %vm11961_vm8 = vmmov %vm11959_vm1 }
 0x796   : > { %5064 = vmatprep.subr.mxu0 %v11479_v46 }
 0x799   : > { %5065 = vmatpush3.xpose.msk.msra.mxu0 %vm11951_vm7, %v7749_v11  ;;  %v2544_v11 = vld [vmem:[%s10756_s3] sm:$0xff]  ;;  %vm11962_vm7 = vmmov %vm11959_vm1 }
 0x79a   : > { %5066 = vmatprep.subr.mxu0 %v11479_v46 }
 0x79d   : > { %5067 = vmatpush3.xpose.msk.msra.mxu0 %vm11952_vm13, %v7759_v16  ;;  %v2545_v16 = vld [vmem:[%s10756_s3 + $0x8] sm:$0xff]  ;;  %vm11963_vm13 = vmmov %vm11959_vm1 }
 0x79e   : > { %5068 = vmatprep.subr.mxu0 %v11479_v46  ;;  %v8618_v51 = vpack.c.bf16 %v2545_v16, %v2544_v11 }
 0x7a0   : > { %11956 = vst [vmem:[#allocation65_spill] sm:$0xff] %v8618_v51 }
 0x7a1   : > { %5069 = vmatpush3.xpose.msk.msra.mxu0 %vm11953_vm4, %v7741_v62  ;;  %v2548_v62 = vpack.c.bf16 %v7641_v56, %v7633_v23  ;;  %v2551_v23 = vpack.c.bf16 %v7597_v41, %v7585_v4  ;;  %v2552_v56 = vpack.c.bf16 %v7583_v7, %v7573_v58  ;;  %vm11964_vm4 = vmmov %vm11959_vm1  ;;  %v2555_v4 = vpack.c.bf16 %v7535_v50, %v7524_v32  ;;  %v12025_v41 = vld [vmem:[#allocation3_spill] sm:$0xff] }
 0x7a2   : > { %5070 = vmatprep.subr.mxu0 %v11479_v46 }
 0x7a5   : > { %5071 = vmatpush3.xpose.msk.msra.mxu0 %vm11955_vm9, %v7743_v29  ;;  %v2549_v29 = vpack.c.bf16 %v7629_v0, %v7618_v24  ;;  %v2553_v24 = vpack.c.bf16 %v7564_v53, %v7554_v60  ;;  %vm11965_vm9 = vmmov %vm11959_vm1  ;;  %v11976_v0 = vld [vmem:[#allocation57_spill] sm:$0xff] }
 0x7a6   : > { %5075 = vmatprep.subr.bf16.mxu0 %v8606_v22 }
 0x7a8   : > { %5073 = vmatmul.mubr.f32.vlgmr.msra.gmra.mxu0 %v11957_v28 }
 0x7a9   : > { %5076 = vmatpush3.bf16.msra.mxu0 %v8606_v22  ;;  %5079 = vmatprep.mubr.msk.bf16.mxu0 %vm11958_vm12, %v2548_v62  ;;  %vm11966_vm12 = vnez %v11717_v47 }
 0x7aa   : > { %5077 = vmatprep.subr.bf16.mxu0 %v8618_v51  ;;  %v2359_v58 = vsel %vm11966_vm12, 65537, %v11707_v36  ;;  %vm11989_vm12 = vnez %v11988_v6 }
 0x7ab   : > { %v2375_v45 = vunpack.c.l.b16 %v2359_v58  ;;  %v2366_v44 = vsel %vm11989_vm12, 65537, %v11707_v36 }
 0x7ac   : > { %v2382_v16 = vunpack.c.l.b16 %v2366_v44  ;;  %v2373_v44 = vsel %vm8511_vm0, 65537, %v11707_v36 }
 0x7ad   : > { %5078 = vmatpush3.bf16.msra.mxu0 %v8618_v51 }
 0x7ae   : > { %vm8724_vm12 = vcmp.ne.s32.totalorder %v2382_v16, 0 }
 0x7af   : > { %v4522_v58 = vsel %vm8724_vm12, 1.0, %v11479_v46 }
 0x7b0   : > { %5080 = vmatmul.mubr.msk.bf16.vlgmr.msra.gmra.mxu0 %vm11959_vm1, %v2549_v29  ;;  %vm11967_vm1 = vnez %v11702_v40  ;;  %v12022_v40 = vld [vmem:[#allocation4_spill] sm:$0xff] }
 0x7b1   : > { %5083 = vmatprep.mubr.msk.bf16.mxu0 %vm11960_vm2, %v2550_v34  ;;  %v2360_v60 = vsel %vm11967_vm1, 65537, %v11707_v36  ;;  %vm11968_vm2 = vnez %v11751_v1 }
 0x7b2   : > { %v2361_v2 = vsel %vm11968_vm2, 65537, %v11707_v36  ;;  %v2376_v53 = vunpack.c.l.b16 %v2360_v60  ;;  %v2369_v60 = vsel %vm8433_vm15, 65537, %v11707_v36 }
 0x7b3   : > { %v2377_v7 = vunpack.c.l.b16 %v2361_v2 }
 0x7b8   : > { %5084 = vmatmul.mubr.msk.bf16.gmra.mxu0 %vm11961_vm8, %v2551_v23  ;;  %vm8657_vm8 = vcmp.ne.s32.totalorder %v2375_v45, 0  ;;  %v12046_v23 = vld [vmem:[#allocation24_spill] sm:$0xff] }
 0x7b9   : > { %5087 = vmatprep.mubr.msk.bf16.mxu0 %vm11962_vm7, %v2552_v56  ;;  %vm11971_vm7 = vnez %v11734_v21  ;;  %v4515_v39 = vsel %vm8657_vm8, 1.0, %v11479_v46 }
 0x7ba   : > { %v2362_v32 = vsel %vm11971_vm7, 65537, %v11707_v36  ;;  %vm11985_vm7 = vnez %v11984_v26 }
 0x7bb   : > { %v2378_v54 = vunpack.c.l.b16 %v2362_v32  ;;  %v2365_v3 = vsel %vm11985_vm7, 65537, %v11707_v36  ;;  %vm11992_vm7 = vnez %v11876_v13 }
 0x7bc   : > { %v2381_v52 = vunpack.c.l.b16 %v2365_v3  ;;  %v2367_v11 = vsel %vm11992_vm7, 65537, %v11707_v36 }
 0x7bd   : > { %vm8684_vm10 = vcmp.ne.s32.totalorder %v2378_v54, 0  ;;  %v2383_v34 = vunpack.c.l.b16 %v2367_v11  ;;  %v2370_v54 = vsel %vm8397_vm11, 65537, %v11707_v36 }
 0x7be   : > { %v4518_v57 = vsel %vm8684_vm10, 1.0, %v11479_v46  ;;  %vm8711_vm1 = vcmp.ne.s32.totalorder %v2381_v52, 0 }
 0x7bf   : > { %v4521_v29 = vsel %vm8711_vm1, 1.0, %v11479_v46 }
 0x7c0   : > { %5088 = vmatmul.mubr.msk.bf16.gmra.mxu0 %vm11963_vm13, %v2553_v24  ;;  %vm8664_vm13 = vcmp.ne.s32.totalorder %v2377_v7, 0  ;;  %v11995_v24 = vld [vmem:[#allocation19_spill] sm:$0xff]  ;;  %v2385_v7 = vunpack.c.l.b16 %v2369_v60 }
 0x7c1   : > { %5091 = vmatprep.mubr.msk.bf16.mxu0 %vm11964_vm4, %v2554_v5  ;;  %vm8668_vm4 = vcmp.ne.s32.totalorder %v2376_v53, 0  ;;  %v4517_v17 = vsel %vm8664_vm13, 1.0, %v11479_v46  ;;  %vm11996_vm14 = vnez %v11995_v24 }
 0x7c2   : > { %v4516_v30 = vsel %vm8668_vm4, 1.0, %v11479_v46  ;;  %v2368_v5 = vsel %vm11996_vm14, 65537, %v11707_v36  ;;  %vm8751_vm14 = vcmp.ne.s32.totalorder %v2385_v7, 0 }
 0x7c3   : > { %v2439_v37 = vadd.f32 %v4516_v30, %v4515_v39  ;;  %v2384_v2 = vunpack.c.l.b16 %v2368_v5  ;;  %v12011_v5 = vmov 0 }
 0x7c5   : > { %v2440_v35 = vadd.f32 %v4517_v17, %v2439_v37  ;;  %vm8744_vm7 = vcmp.ne.s32.totalorder %v2384_v2, 0  ;;  %v2386_v37 = vunpack.c.l.b16 %v2370_v54 }
 0x7c6   : > { %v4524_v30 = vsel %vm8744_vm7, 1.0, %v11479_v46 }
 0x7c7   : > { %v2441_v59 = vadd.f32 %v4518_v57, %v2440_v35  ;;  %vm8764_vm15 = vcmp.ne.s32.totalorder %v2386_v37, 0 }
 0x7c8   : > { %5092 = vmatmul.mubr.msk.bf16.gmra.mxu0 %vm11965_vm9, %v2555_v4  ;;  %vm11977_vm9 = vnez %v11976_v0  ;;  %v12020_v0 = vld [vmem:[#allocation47_spill] sm:$0xff]  ;;  %v12048_v4 = vld [vmem:[#allocation20_spill] sm:$0xff] }
 0x7c9   : > { %v2363_v12 = vsel %vm11977_vm9, 65537, %v11707_v36  ;;  %vm11981_vm9 = vnez %v11980_v8 }
 0x7ca   : > { %v2379_v33 = vunpack.c.l.b16 %v2363_v12  ;;  %v2364_v10 = vsel %vm11981_vm9, 65537, %v11707_v36 }
 0x7cb   : > { %v2380_v19 = vunpack.c.l.b16 %v2364_v10  ;;  %v4525_v10 = vsel %vm8751_vm14, 1.0, %v11479_v46 }
 0x7cc   : > { %vm8691_vm2 = vcmp.ne.s32.totalorder %v2379_v33, 0  ;;  %v2371_v33 = vsel %vm8475_vm3, 65537, %v11707_v36 }
 0x7cd   : > { %v4519_v48 = vsel %vm8691_vm2, 1.0, %v11479_v46  ;;  %vm8704_vm9 = vcmp.ne.s32.totalorder %v2380_v19, 0  ;;  %v2387_v57 = vunpack.c.l.b16 %v2371_v33 }
 0x7ce   : > { %v11987_v55 = vsel %vm8704_vm9, 4294967295, %v11986_v55  ;;  %v2442_v49 = vadd.f32 %v4519_v48, %v2441_v59  ;;  %v4520_v25 = vsel %vm8704_vm9, 1.0, %v11479_v46  ;;  %vm8731_vm9 = vcmp.ne.s32.totalorder %v2383_v34, 0 }
 0x7cf   : > { %v4523_v53 = vsel %vm8731_vm9, 1.0, %v11479_v46  ;;  %v2372_v48 = vsel %vm8450_vm6, 65537, %v11707_v36  ;;  %vm8771_vm11 = vcmp.ne.s32.totalorder %v2387_v57, 0 }
 0x7d0   : > { %v2443_v62 = vadd.f32 %v4520_v25, %v2442_v49  ;;  %v4526_v49 = vsel %vm8764_vm15, 1.0, %v11479_v46  ;;  %v2388_v25 = vunpack.c.l.b16 %v2372_v48  ;;  %v4527_v16 = vsel %vm8771_vm11, 1.0, %v11479_v46  ;;  %v2171_v48 = vpop.xlane.xlu0 %2170 }
 0x7d2   : > { %v2444_v56 = vadd.f32 %v4521_v29, %v2443_v62  ;;  %v2389_v62 = vunpack.c.l.b16 %v2373_v44  ;;  %vm8784_vm3 = vcmp.ne.s32.totalorder %v2388_v25, 0  ;;  %v12009_v29 = vmov 0 }
 0x7d3   : > { %v12010_v29 = vsel %vm8784_vm3, 4294967295, %v12009_v29 }
 0x7d4   : > { %v2445_v45 = vadd.f32 %v4522_v58, %v2444_v56  ;;  %v2374_v56 = vsel %vm8360_vm5, 65537, %v11707_v36  ;;  %vm8791_vm6 = vcmp.ne.s32.totalorder %v2389_v62, 0  ;;  %v4528_v58 = vsel %vm8784_vm3, 1.0, %v11479_v46  ;;  %v2175_v25 = vpop.xlane.xlu0 %2174 }
 0x7d5   : > { %v12012_v5 = vsel %vm8791_vm6, 4294967295, %v12011_v5  ;;  %v2390_v60 = vunpack.c.l.b16 %v2374_v56 }
 0x7d6   : > { %v2446_v12 = vadd.f32 %v4523_v53, %v2445_v45  ;;  %v4529_v45 = vsel %vm8791_vm6, 1.0, %v11479_v46  ;;  %v12013_v53 = vmov 0 }
 0x7d7   : > { %vm8801_vm0 = vcmp.ne.s32.totalorder %v2390_v60, 0 }
 0x7d8   : > { %v2447_v35 = vadd.f32 %v4524_v30, %v2446_v12  ;;  %v12014_v53 = vsel %vm8801_vm0, 4294967295, %v12013_v53  ;;  %v4530_v12 = vsel %vm8801_vm0, 1.0, %v11479_v46  ;;  %v8810_v62 = vpop.xlane.xlu0 %2178  ;;  %vm2202_vm0 = vcmp.gt.f32.partialorder %v2171_v48, 0.0 }
 0x7d9   : > { %12015 = vst [vmem:[#allocation66_spill] sm:$0xff] %v12014_v53  ;;  %v12024_v53 = vld [vmem:[#allocation60_spill] sm:$0xff] }
 0x7da   : > { %v2448_v19 = vadd.f32 %v4525_v10, %v2447_v35 }
 0x7dc   : > { %v2449_v11 = vadd.f32 %v4526_v49, %v2448_v19  ;;  %v2173_v19 = vpop.xlane.xlu1 %2172 }
 0x7dd   : > { %5465 = vrsqrt.f32 %v2173_v19  ;;  %vm2203_vm5 = vcmp.gt.f32.partialorder %v2173_v19, 0.0  ;;  %v12017_v19 = vld [vmem:[#allocation39_spill] sm:$0xff] }
 0x7de   : > { %v2450_v34 = vadd.f32 %v4527_v16, %v2449_v11  ;;  %5467 = vrsqrt.f32 %v2171_v48 }
 0x7e0   : > { %v2451_v2 = vadd.f32 %v4528_v58, %v2450_v34  ;;  %v8808_v11 = vpop.xlane.xlu1 %2176 }
 0x7e2   : > { %v2452_v7 = vadd.f32 %v4529_v45, %v2451_v2 }
 0x7e4   : > { %v2453_v54 = vadd.f32 %v4530_v12, %v2452_v7  ;;  %v8812_v34 = vpop.xlane.xlu1 %2180 }
 0x7e5   : > { %vm2207_vm3 = vcmp.gt.f32.partialorder %v8812_v34, 0.0 }
 0x7e6   : > { %v2454_v30 = vrot.slane %v2453_v54, 4 }
 0x7e8   : > { %v2455_v33 = vadd.f32 %v2454_v30, %v2453_v54  ;;  %v8820_v30 = vpop.xlane.xlu0 %2182 }
 0x7ea   : > { %v2456_v37 = vrot.slane %v2455_v33, 2  ;;  %v5466_v58 = vpop.eup %5465 }
 0x7eb   : > { %v5468_v60 = vpop.eup %5467  ;;  %v2235_v12 = vsel %vm2203_vm5, %v5466_v58, 0.0  ;;  %vm2204_vm5 = vcmp.gt.f32.partialorder %v2175_v25, 0.0 }
 0x7ec   : > { %v2457_v35 = vadd.f32 %v2456_v37, %v2455_v33  ;;  %v2234_v54 = vsel %vm2202_vm0, %v5468_v60, 0.0  ;;  %v8822_v37 = vpop.xlane.xlu1 %2184  ;;  %vm2206_vm0 = vcmp.gt.f32.partialorder %v8810_v62, 0.0 }
 0x7ed   : > { %v2323_v48 = vmul.f32 %v2234_v54, %v12017_v19 }
 0x7ee   : > { %v2458_v10 = vrot.slane %v2457_v35, 1 }
 0x7f0   : > { %v2459_v57 = vadd.f32 %v2458_v10, %v2457_v35  ;;  %v8842_v54 = vpop.xlane.xlu1 %2188 }
 0x7f2   : > { %v2460_v49 = vadd.f32 1.0, %v2459_v57  ;;  %v12016_v57 = vld [vmem:[#allocation29_spill] sm:$0xff] }
 0x7f4   : > { %5469 = vrcp.f32 %v2460_v49  ;;  %v2324_v49 = vmul.f32 %v2235_v12, %v12016_v57  ;;  %v8840_v12 = vpop.xlane.xlu0 %2186 }
 0x801   : > { %v5470_v7 = vpop.eup %5469 }
 0x802   : > { %v2462_v60 = vmul.f32 1.442695, %v5470_v7 }
 0x868   : > { %v2316_v44 = vpop.f32.mrf.mxu0 }
 0x869   : > { %5471 = vrsqrt.f32 %v2316_v44  ;;  %vm2320_vm6 = vcmp.gt.f32.partialorder %v2316_v44, 0.0 }
 0x86a   : > { %v5074_v16 = vpop.f32.mrf.mxu0  ;;  %5473 = vrsqrt.f32 %v8808_v11 }
 0x86b   : > { %5475 = vrsqrt.f32 %v2175_v25  ;;  %v12018_v16 = vld [vmem:[#allocation64_spill] sm:$0xff] }
 0x86c   : > { %5477 = vrsqrt.f32 %v8810_v62 }
 0x86d   : > { %5479 = vrsqrt.f32 %v8812_v34 }
 0x86e   : > { %5481 = vpow2.f32 %v2462_v60 }
 0x870   : > { %v8814_v56 = vpop.f32.mrf.mxu0 }
 0x872   : > { %v8816_v2 = vpop.f32.mrf.mxu0 }
 0x874   : > { %v8818_v45 = vpop.f32.mrf.mxu0 }
 0x876   : > { %v5472_v33 = vpop.eup %5471  ;;  %v8824_v35 = vpop.f32.mrf.mxu0 }
 0x877   : > { %v2322_v10 = vsel %vm2320_vm6, %v5472_v33, 0.0  ;;  %vm2205_vm6 = vcmp.gt.f32.partialorder %v8808_v11, 0.0 }
 0x878   : > { %v8830_v51 = vrot.slane %v2322_v10, %v12018_v16  ;;  %v8832_v58 = vpop.f32.mrf.mxu0 }
 0x87a   : > { %v8835_v28 = vpop.f32.mrf.mxu0  ;;  %v2343_v44 = vmul.f32 %v8830_v51, %v2323_v48  ;;  %v2344_v22 = vmul.f32 %v8830_v51, %v2324_v49  ;;  %v8852_v49 = vpop.xlane.xlu0 %2190 }
 0x87b   : > { %v8855_v48 = vpop.xlane.xlu1 %2192 }
 0x87c   : > { %v8844_v33 = vpop.f32.mrf.mxu0  ;;  %v2464_v10 = vmul.f32 1.442695, %v2343_v44  ;;  %v2466_v57 = vmul.f32 1.442695, %v2344_v22  ;;  %v5474_v22 = vpop.eup %5473 }
 0x87d   : > { %v5476_v44 = vpop.eup %5475  ;;  %v2237_v13 = vsel %vm2205_vm6, %v5474_v22, 0.0  ;;  %v12021_v22 = vld [vmem:[#allocation63_spill] sm:$0xff]  ;;  %vm2210_vm6 = vcmp.gt.f32.partialorder %v8840_v12, 0.0 }
 0x87e   : > { %v8846_v19 = vpop.f32.mrf.mxu0  ;;  %5483 = vpow2.f32 %v2464_v10  ;;  %v5478_v10 = vpop.eup %5477  ;;  %v2236_v59 = vsel %vm2204_vm5, %v5476_v44, 0.0  ;;  %v12019_v44 = vld [vmem:[#allocation51_spill] sm:$0xff]  ;;  %v2326_v8 = vmul.f32 %v2237_v13, %v12020_v0  ;;  %vm12023_vm5 = vnez %v12022_v40 }
 0x87f   : > { %5485 = vpow2.f32 %v2466_v57  ;;  %v8864_v14 = vpop.xlane.xlu0 %2194  ;;  %v5480_v15 = vpop.eup %5479  ;;  %v2238_v43 = vsel %vm2206_vm0, %v5478_v10, 0.0  ;;  %v2325_v26 = vmul.f32 %v2236_v59, %v12019_v44  ;;  %vm2211_vm0 = vcmp.gt.f32.partialorder %v8842_v54, 0.0 }
 0x880   : > { %5487 = vrsqrt.f32 %v8820_v30  ;;  %v8849_v7 = vpop.f32.mrf.mxu0  ;;  %v8869_v61 = vpop.xlane.xlu1 %2196  ;;  %v2239_v62 = vsel %vm2207_vm3, %v5480_v15, 0.0  ;;  %v2327_v10 = vmul.f32 %v2238_v43, %v12021_v22  ;;  %vm12026_vm3 = vnez %v12025_v41 }
 0x881   : > { %5489 = vrsqrt.f32 %v8822_v37  ;;  %v8872_v24 = vpop.eup %5481  ;;  %v2345_v59 = vmul.f32 %v8830_v51, %v2325_v26  ;;  %v2328_v13 = vmul.f32 %v2239_v62, %v12024_v53  ;;  %v12255_v40 = vmov 0 }
 0x882   : > { %5491 = vrsqrt.f32 %v8840_v12  ;;  %v8857_v16 = vpop.f32.mrf.mxu0 }
 0x883   : > { %5493 = vrsqrt.f32 %v8842_v54  ;;  %v8889_v0 = vpop.xlane.xlu0 %2198  ;;  %v2348_v22 = vmul.f32 %v8830_v51, %v2328_v13 }
 0x884   : > { %v8860_v60 = vpop.f32.mrf.mxu0  ;;  %5495 = vrsqrt.f32 %v8852_v49 }
 0x885   : > { %5497 = vrsqrt.f32 %v8855_v48  ;;  %v2474_v13 = vmul.f32 1.442695, %v2348_v22 }
 0x886   : > { %v8862_v57 = vpop.f32.mrf.mxu0  ;;  %5499 = vrsqrt.f32 %v8864_v14 }
 0x887   : > { %5501 = vrsqrt.f32 %v8869_v61 }
 0x888   : > { %v5093_v39 = vpop.f32.mrf.mxu0  ;;  %5503 = vrsqrt.f32 %v8889_v0 }
 0x88a   : > { %v2664_v25 = vpop.f32.mrf.mxu0 }
 0x88b   : > { %v5484_v11 = vpop.eup %5483 }
 0x88c   : > { %v5486_v6 = vpop.eup %5485  ;;  %v5094_v1 = vpop.f32.mrf.mxu0  ;;  %v2496_v36 = vsel %vm8657_vm8, %v5484_v11, 0.0  ;;  %vm2208_vm8 = vcmp.gt.f32.partialorder %v8820_v30, 0.0 }
 0x88d   : > { %v5488_v21 = vpop.eup %5487  ;;  %v2694_v34 = vpack.c.bf16 %v5094_v1, %v5093_v39  ;;  %v2497_v47 = vsel %vm8668_vm4, %v5486_v6, 0.0  ;;  %v2512_v15 = vsel %vm12023_vm5, %v8872_v24, %v2496_v36  ;;  %v2346_v1 = vmul.f32 %v8830_v51, %v2326_v8  ;;  %v8896_v6 = vpop.xlane.xlu1 %2200 }
 0x88e   : > { %v5490_v44 = vpop.eup %5489  ;;  %v2667_v43 = vpop.f32.mrf.mxu0  ;;  %v2513_v11 = vsel %vm12026_vm3, %v8872_v24, %v2497_v47  ;;  %v2347_v39 = vmul.f32 %v8830_v51, %v2327_v10  ;;  %vm2209_vm4 = vcmp.gt.f32.partialorder %v8822_v37, 0.0  ;;  %v2240_v62 = vsel %vm2208_vm8, %v5488_v21, 0.0  ;;  %v12027_v10 = vld [vmem:[#allocation23_spill] sm:$0xff] }
 0x88f   : > { %v5492_v9 = vpop.eup %5491  ;;  %v2693_v36 = vpack.c.bf16 %v2667_v43, %v2664_v25  ;;  %5095 = vmatprep.subr.bf16.mxu1 %v2694_v34  ;;  %v2679_v26 = vpack.c.bf16 %v2513_v11, %v2512_v15  ;;  %v2241_v47 = vsel %vm2209_vm4, %v5490_v44, 0.0  ;;  %v2468_v8 = vmul.f32 1.442695, %v2345_v59  ;;  %v12028_v44 = vld [vmem:[#allocation15_spill] sm:$0xff]  ;;  %v12029_v11 = vld [vmem:[#allocation45_spill] sm:$0xff] }
 0x890   : > { %v5494_v53 = vpop.eup %5493  ;;  %5096 = vmatpush3.bf16.msra.mxu1 %v2694_v34  ;;  %v2242_v30 = vsel %vm2210_vm6, %v5492_v9, 0.0  ;;  %5505 = vrsqrt.f32 %v8896_v6  ;;  %v2470_v25 = vmul.f32 1.442695, %v2346_v1  ;;  %v2329_v37 = vmul.f32 %v2240_v62, %v12027_v10  ;;  %v12030_v1 = vld [vmem:[#allocation32_spill] sm:$0xff] }
 0x891   : > { %5111 = vmatprep.mubr.bf16.mxu1 %v2679_v26  ;;  %5097 = vmatprep.subr.bf16.mxu1 %v2693_v36  ;;  %v2243_v21 = vsel %vm2211_vm0, %v5494_v53, 0.0  ;;  %v2692_v34 = vpack.c.bf16 %v8860_v60, %v8849_v7  ;;  %v2472_v15 = vmul.f32 1.442695, %v2347_v39  ;;  %v2330_v12 = vmul.f32 %v2241_v47, %v12028_v44  ;;  %v5496_v43 = vpop.eup %5495 }
 0x892   : > { %v2331_v59 = vmul.f32 %v2242_v30, %v12029_v11  ;;  %5507 = vpow2.f32 %v2468_v8  ;;  %v2349_v54 = vmul.f32 %v8830_v51, %v2329_v37  ;;  %v5498_v9 = vpop.eup %5497  ;;  %v2332_v26 = vmul.f32 %v2243_v21, %v12030_v1  ;;  %v12032_v37 = vld [vmem:[#allocation53_spill] sm:$0xff] }
 0x893   : > { %5509 = vpow2.f32 %v2470_v25  ;;  %v2350_v53 = vmul.f32 %v8830_v51, %v2330_v12  ;;  %v5500_v62 = vpop.eup %5499  ;;  %vm2212_vm8 = vcmp.gt.f32.partialorder %v8852_v49, 0.0  ;;  %v2691_v7 = vpack.c.bf16 %v8862_v57, %v8857_v16  ;;  %v12031_v57 = vld [vmem:[#allocation56_spill] sm:$0xff] }
 0x894   : > { %5098 = vmatpush3.bf16.msra.mxu1 %v2693_v36  ;;  %5511 = vpow2.f32 %v2472_v15  ;;  %v2351_v60 = vmul.f32 %v8830_v51, %v2331_v59  ;;  %v5502_v36 = vpop.eup %5501  ;;  %vm2213_vm4 = vcmp.gt.f32.partialorder %v8855_v48, 0.0  ;;  %v2244_v39 = vsel %vm2212_vm8, %v5496_v43, 0.0 }
 0x895   : > { %5099 = vmatprep.subr.bf16.mxu1 %v2692_v34  ;;  %5513 = vpow2.f32 %v2474_v13  ;;  %v2352_v22 = vmul.f32 %v8830_v51, %v2332_v26  ;;  %v2245_v47 = vsel %vm2213_vm4, %v5498_v9, 0.0  ;;  %vm2214_vm6 = vcmp.gt.f32.partialorder %v8864_v14, 0.0 }
 0x896   : > { %v2476_v8 = vmul.f32 1.442695, %v2349_v54  ;;  %vm2215_vm0 = vcmp.gt.f32.partialorder %v8869_v61, 0.0  ;;  %v2246_v49 = vsel %vm2214_vm6, %v5500_v62, 0.0  ;;  %v2478_v16 = vmul.f32 1.442695, %v2350_v53  ;;  %v5504_v61 = vpop.eup %5503 }
 0x897   : > { %v2333_v30 = vmul.f32 %v2244_v39, %v12031_v57  ;;  %v2247_v25 = vsel %vm2215_vm0, %v5502_v36, 0.0  ;;  %v2690_v48 = vpack.c.bf16 %v8844_v33, %v8832_v58  ;;  %v2480_v10 = vmul.f32 1.442695, %v2351_v60 }
 0x898   : > { %5100 = vmatpush3.bf16.msra.mxu1 %v2692_v34  ;;  %v2334_v21 = vmul.f32 %v2245_v47, %v12032_v37  ;;  %v2482_v34 = vmul.f32 1.442695, %v2352_v22  ;;  %v2335_v15 = vmul.f32 %v2246_v49, %v8533_v38  ;;  %5515 = vpow2.f32 %v2476_v8  ;;  %v12038_v22 = vld [vmem:[#allocation10_spill] sm:$0xff] }
 0x899   : > { %5101 = vmatprep.subr.bf16.mxu1 %v2691_v7  ;;  %v2353_v14 = vmul.f32 %v8830_v51, %v2333_v30  ;;  %v2336_v44 = vmul.f32 %v2247_v25, %v8518_v42  ;;  %5517 = vpow2.f32 %v2478_v16  ;;  %v2689_v58 = vpack.c.bf16 %v8846_v19, %v8835_v28 }
 0x89a   : > { %v2354_v12 = vmul.f32 %v8830_v51, %v2334_v21  ;;  %5519 = vpow2.f32 %v2480_v10  ;;  %v2355_v33 = vmul.f32 %v8830_v51, %v2335_v15  ;;  %vm2216_vm8 = vcmp.gt.f32.partialorder %v8889_v0, 0.0 }
 0x89b   : > { %5521 = vpow2.f32 %v2482_v34  ;;  %v2356_v38 = vmul.f32 %v8830_v51, %v2336_v44  ;;  %vm2217_vm4 = vcmp.gt.f32.partialorder %v8896_v6, 0.0  ;;  %v2248_v43 = vsel %vm2216_vm8, %v5504_v61, 0.0  ;;  %v12042_v34 = vld [vmem:[#allocation16_spill] sm:$0xff] }
 0x89c   : > { %5102 = vmatpush3.bf16.msra.mxu1 %v2691_v7  ;;  %v2484_v42 = vmul.f32 1.442695, %v2353_v14  ;;  %v2486_v54 = vmul.f32 1.442695, %v2354_v12  ;;  %v2688_v28 = vpack.c.bf16 %v8818_v45, %v8814_v56  ;;  %v2488_v19 = vmul.f32 1.442695, %v2355_v33 }
 0x89d   : > { %5103 = vmatprep.subr.bf16.mxu1 %v2690_v48  ;;  %v5506_v13 = vpop.eup %5505  ;;  %v2337_v0 = vmul.f32 %v2248_v43, %v8543_v20  ;;  %v2490_v26 = vmul.f32 1.442695, %v2356_v38  ;;  %v2687_v6 = vpack.c.bf16 %v8824_v35, %v8816_v2  ;;  %vm12033_vm6 = vnez %v11987_v55  ;;  %v12034_v35 = vld [vmem:[#allocation6_spill] sm:$0xff]  ;;  %v12040_v55 = vld [vmem:[#allocation8_spill] sm:$0xff]  ;;  %v12044_v14 = vld [vmem:[#allocation13_spill] sm:$0xff] }
 0x89e   : > { %v2249_v59 = vsel %vm2217_vm4, %v5506_v13, 0.0  ;;  %5523 = vpow2.f32 %v2484_v42  ;;  %vm12035_vm0 = vnez %v12034_v35  ;;  %vm12043_vm8 = vnez %v12042_v34 }
 0x89f   : > { %v5508_v11 = vpop.eup %5507  ;;  %v2338_v62 = vmul.f32 %v2249_v59, %v8538_v18  ;;  %5525 = vpow2.f32 %v2486_v54  ;;  %v2357_v7 = vmul.f32 %v8830_v51, %v2337_v0  ;;  %vm12045_vm4 = vnez %v12044_v14  ;;  %v12051_v59 = vld [vmem:[#allocation30_spill] sm:$0xff] }
 0x8a0   : > { %5104 = vmatpush3.bf16.msra.mxu1 %v2690_v48  ;;  %v5510_v9 = vpop.eup %5509  ;;  %v2498_v56 = vsel %vm8664_vm13, %v5508_v11, 0.0  ;;  %5527 = vpow2.f32 %v2488_v19  ;;  %vm12039_vm13 = vnez %v12038_v22  ;;  %v12055_v19 = vld [vmem:[#allocation35_spill] sm:$0xff]  ;;  %v12236_v35 = vmov 0 }
 0x8a1   : > { %5105 = vmatprep.subr.bf16.mxu1 %v2689_v58  ;;  %v5512_v1 = vpop.eup %5511  ;;  %v2499_v45 = vsel %vm8684_vm10, %v5510_v9, 0.0  ;;  %v2358_v20 = vmul.f32 %v8830_v51, %v2338_v62  ;;  %5529 = vpow2.f32 %v2490_v26  ;;  %v2514_v50 = vsel %vm12035_vm0, %v8872_v24, %v2498_v56  ;;  %v12053_v9 = vld [vmem:[#allocation28_spill] sm:$0xff]  ;;  %v12060_v62 = vld [vmem:[#allocation66_spill] sm:$0xff] }
 0x8a2   : > { %v5514_v53 = vpop.eup %5513  ;;  %v2500_v18 = vsel %vm8691_vm2, %v5512_v1, 0.0  ;;  %vm12037_vm10 = vnez %v12036_v27  ;;  %v2492_v39 = vmul.f32 1.442695, %v2357_v7  ;;  %vm12041_vm2 = vnez %v12040_v55  ;;  %v12057_v1 = vld [vmem:[#allocation33_spill] sm:$0xff] }
 0x8a3   : > { %v2501_v60 = vsel %vm12033_vm6, %v5514_v53, 0.0  ;;  %v2515_v36 = vsel %vm12037_vm10, %v8872_v24, %v2499_v45  ;;  %v2516_v31 = vsel %vm12039_vm13, %v8872_v24, %v2500_v18  ;;  %v2494_v8 = vmul.f32 1.442695, %v2358_v20  ;;  %v12062_v7 = vld [vmem:[#allocation41_spill] sm:$0xff]  ;;  %v12064_v45 = vld [vmem:[#allocation38_spill] sm:$0xff] }
 0x8a4   : > { %5106 = vmatpush3.bf16.msra.mxu1 %v2689_v58  ;;  %v2517_v47 = vsel %vm12041_vm2, %v8872_v24, %v2501_v60  ;;  %v2680_v57 = vpack.c.bf16 %v2515_v36, %v2514_v50  ;;  %5531 = vpow2.f32 %v2492_v39  ;;  %vm12054_vm6 = vnez %v12053_v9 }
 0x8a5   : > { %5107 = vmatprep.subr.bf16.mxu1 %v2688_v28  ;;  %v5516_v2 = vpop.eup %5515  ;;  %v2681_v30 = vpack.c.bf16 %v2517_v47, %v2516_v31  ;;  %5533 = vpow2.f32 %v2494_v8 }
 0x8a6   : > { %v5518_v51 = vpop.eup %5517  ;;  %v2502_v25 = vsel %vm8711_vm1, %v5516_v2, 0.0  ;;  %vm12049_vm1 = vnez %v12048_v4 }
 0x8a7   : > { %v5520_v49 = vpop.eup %5519  ;;  %v2503_v48 = vsel %vm8724_vm12, %v5518_v51, 0.0  ;;  %v2518_v15 = vsel %vm12043_vm8, %v8872_v24, %v2502_v25  ;;  %vm12047_vm12 = vnez %v12046_v23 }
 0x8a8   : > { %5108 = vmatpush3.bf16.msra.mxu1 %v2688_v28  ;;  %v5522_v16 = vpop.eup %5521  ;;  %v2504_v10 = vsel %vm8731_vm9, %v5520_v49, 0.0  ;;  %v2519_v63 = vsel %vm12045_vm4, %v8872_v24, %v2503_v48  ;;  %vm12052_vm9 = vnez %v12051_v59  ;;  %v12067_v49 = vld [vmem:[#allocation2_spill] sm:$0xff] }
 0x8a9   : > { %5109 = vmatprep.subr.bf16.mxu1 %v2687_v6  ;;  %v2505_v37 = vsel %vm8744_vm7, %v5522_v16, 0.0  ;;  %v2520_v44 = vsel %vm12047_vm12, %v8872_v24, %v2504_v10  ;;  %v2682_v58 = vpack.c.bf16 %v2519_v63, %v2518_v15  ;;  %vm12050_vm7 = vnez %v12010_v29 }
 0x8aa   : > { %v2521_v12 = vsel %vm12049_vm1, %v8872_v24, %v2505_v37  ;;  %v2697_v16 = vsub.s32 3, %v12067_v49 }
 0x8ab   : > { %v5524_v21 = vpop.eup %5523  ;;  %v2683_v33 = vpack.c.bf16 %v2521_v12, %v2520_v44 }
 0x8ac   : > { %5110 = vmatpush3.bf16.msra.mxu1 %v2687_v6  ;;  %v5526_v61 = vpop.eup %5525  ;;  %v2506_v38 = vsel %vm8751_vm14, %v5524_v21, 0.0  ;;  %vm12056_vm14 = vnez %v12055_v19 }
 0x8ad   : > { %5183 = vmatprep.subr.mxu1 %v11479_v46  ;;  %v5528_v32 = vpop.eup %5527  ;;  %v2507_v43 = vsel %vm8764_vm15, %v5526_v61, 0.0  ;;  %v2522_v54 = vsel %vm12052_vm9, %v8872_v24, %v2506_v38  ;;  %vm12058_vm15 = vnez %v12057_v1  ;;  %vm12063_vm9 = vnez %v12062_v7 }
 0x8ae   : > { %v5530_v13 = vpop.eup %5529  ;;  %v2508_v42 = vsel %vm8771_vm11, %v5528_v32, 0.0  ;;  %v2523_v28 = vsel %vm12054_vm6, %v8872_v24, %v2507_v43  ;;  %vm12059_vm11 = vnez %v12012_v5 }
 0x8af   : > { %5112 = vmatmul.mubr.bf16.vlgmr.msra.gmra.mxu1 %v2680_v57  ;;  %v2509_v11 = vsel %vm12050_vm7, %v5530_v13, 0.0  ;;  %v2524_v3 = vsel %vm12056_vm14, %v8872_v24, %v2508_v42  ;;  %v2684_v29 = vpack.c.bf16 %v2523_v28, %v2522_v54  ;;  %vm12061_vm7 = vnez %v12060_v62 }
 0x8b0   : > { %5115 = vmatprep.mubr.bf16.mxu1 %v2681_v30  ;;  %v2525_v52 = vsel %vm12058_vm15, %v8872_v24, %v2509_v11  ;;  %vm12065_vm14 = vnez %v12064_v45  ;;  %vm12066_vm15 = vmmov 0  }
 0x8b1   : > { %v5532_v17 = vpop.eup %5531  ;;  %v2685_v26 = vpack.c.bf16 %v2525_v52, %v2524_v3 }
 0x8b2   : > { %v5534_v0 = vpop.eup %5533  ;;  %v2510_v53 = vsel %vm12059_vm11, %v5532_v17, 0.0 }
 0x8b3   : > { %v2511_v6 = vsel %vm12061_vm7, %v5534_v0, 0.0  ;;  %v2526_v56 = vsel %vm12063_vm9, %v8872_v24, %v2510_v53 }
 0x8b4   : > { %v2527_v20 = vsel %vm12065_vm14, %v8872_v24, %v2511_v6  ;;  %v9020_v24 = vld [vmem:[%s10757_s4] sm:$0xff] }
 0x8b5   : > { %v2686_v18 = vpack.c.bf16 %v2527_v20, %v2526_v56  ;;  %v9023_v25 = vrot.slane %v9020_v24, %v2697_v16 }
 0x8b7   : > { %5116 = vmatmul.mubr.bf16.gmra.mxu1 %v2682_v58  ;;  %12068 = vst [vmem:[#allocation29_spill] sm:$0xff] %v9023_v25 }
 0x8b8   : > { %5119 = vmatprep.mubr.bf16.mxu1 %v2683_v33 }
 0x8bf   : > { %5120 = vmatmul.mubr.bf16.gmra.mxu1 %v2684_v29 }
 0x8c0   : > { %5123 = vmatprep.mubr.bf16.mxu1 %v2685_v26 }
 0x8c7   : > { %5124 = vmatmul.mubr.bf16.gmra.mxu1 %v2686_v18 }
 0x8c8   : > { %5215 = vmatprep.mubr.msk.f32.mxu1 %vm12066_vm15, %v11479_v46  ;;  %vm12069_vm15 = vcmask 261120  }
 0x8c9   : > { %vm12070_vm11 = vmmov %vm12069_vm15 }
 0x8ca   : > { %vm12071_vm7 = vmmov %vm12070_vm11 }
 0x8cb   : > { %vm12073_vm9 = vmmov %vm12071_vm7 }
 0x8cc   : > { %vm12081_vm14 = vmmov %vm12071_vm7 }
 0x8cd   : > { %vm12126_vm6 = vmmov %vm12071_vm7 }
 0x8ce   : > { %vm12134_vm12 = vmmov %vm12126_vm6 }
 0x8cf   : > { %vm12135_vm1 = vmmov %vm12126_vm6 }
 0x8d0   : > { %vm12138_vm8 = vmmov %vm12135_vm1 }
 0x8d1   : > { %vm12139_vm4 = vmmov %vm12135_vm1 }
 0x8d2   : > { %vm12142_vm13 = vmmov %vm12135_vm1 }
 0x96f   : > { %v5113_v60 = vpop.f32.mrf.mxu1 }
 0x970   : > { %v9062_v26 = vadd.f32 %v5113_v60, %v9023_v25 }
 0x971   : > { %v2733_v5 = vpop.f32.mrf.mxu1 }
 0x972   : > { %v9072_v56 = vadd.f32 %v2733_v5, %v9023_v25 }
 0x973   : > { %v5114_v2 = vpop.f32.mrf.mxu1 }
 0x974   : > { %v9075_v20 = vadd.f32 %v5114_v2, %v9023_v25  ;;  %v2796_v5 = vsel %vm12071_vm7, %v9072_v56, 0.0 }
 0x975   : > { %v2736_v50 = vpop.f32.mrf.mxu1 }
 0x977   : > { %v5117_v36 = vpop.f32.mrf.mxu1 }
 0x978   : > { %v9042_v11 = vadd.f32 %v5117_v36, %v9023_v25  ;;  %v9082_v36 = vadd.f32 %v2736_v50, %v9023_v25 }
 0x979   : > { %v2749_v39 = vpop.f32.mrf.mxu1 }
 0x97a   : > { %v9052_v3 = vadd.f32 %v2749_v39, %v9023_v25  ;;  %v2799_v2 = vsel %vm12081_vm14, %v9082_v36, 0.0  ;;  %vm12083_vm14 = vmmov %vm12071_vm7 }
 0x97b   : > { %v5118_v51 = vpop.f32.mrf.mxu1 }
 0x97c   : > { %v9055_v52 = vadd.f32 %v5118_v51, %v9023_v25  ;;  %v2808_v6 = vsel %vm12071_vm7, %v9052_v3, 0.0 }
 0x97d   : > { %v2752_v31 = vpop.f32.mrf.mxu1 }
 0x97e   : > { %v9065_v53 = vadd.f32 %v2752_v31, %v9023_v25 }
 0x97f   : > { %v5121_v47 = vpop.f32.mrf.mxu1 }
 0x980   : > { %v2774_v12 = vadd.f32 %v5121_v47, %v9023_v25 }
 0x981   : > { %v2765_v8 = vpop.f32.mrf.mxu1 }
 0x982   : > { %v9034_v33 = vadd.f32 %v2765_v8, %v9023_v25  ;;  %v2826_v42 = vsel %vm12073_vm9, %v2774_v12, 0.0  ;;  %vm12075_vm9 = vmmov %vm12071_vm7 }
 0x983   : > { %v5122_v57 = vpop.f32.mrf.mxu1 }
 0x984   : > { %v9037_v38 = vadd.f32 %v5122_v57, %v9023_v25  ;;  %v2820_v17 = vsel %vm12071_vm7, %v9034_v33, 0.0 }
 0x985   : > { %v2768_v30 = vpop.f32.mrf.mxu1 }
 0x986   : > { %v9045_v54 = vadd.f32 %v2768_v30, %v9023_v25 }
 0x987   : > { %v5125_v48 = vpop.f32.mrf.mxu1 }
 0x988   : > { %v2790_v10 = vadd.f32 %v5125_v48, %v9023_v25  ;;  %v2823_v0 = vsel %vm12075_vm9, %v9045_v54, 0.0  ;;  %vm12078_vm9 = vmmov %vm12071_vm7 }
 0x989   : > { %v2781_v37 = vpop.f32.mrf.mxu1  ;;  %v2811_v18 = vsel %vm12078_vm9, %v9065_v53, 0.0  ;;  %vm12082_vm9 = vmmov %vm12071_vm7 }
 0x98a   : > { %v2782_v21 = vadd.f32 %v2781_v37, %v9023_v25  ;;  %v2838_v15 = vsel %vm12069_vm15, %v2790_v10, 0.0  ;;  %vm12072_vm15 = vmmov %vm12071_vm7 }
 0x98b   : > { %2839 = vadd.xlane.f32.xlu1 %v2838_v15  ;;  %v5126_v63 = vpop.f32.mrf.mxu1 }
 0x98c   : > { %v2793_v61 = vadd.f32 %v5126_v63, %v9023_v25  ;;  %v2832_v58 = vsel %vm12071_vm7, %v2782_v21, 0.0 }
 0x98d   : > { %v2784_v44 = vpop.f32.mrf.mxu1 }
 0x98e   : > { %v2785_v32 = vadd.f32 %v2784_v44, %v9023_v25  ;;  %v2841_v13 = vsel %vm12070_vm11, %v2793_v61, 0.0  ;;  %vm12074_vm11 = vmmov %vm12071_vm7 }
 0x98f   : > { %2842 = vadd.xlane.f32.xlu0 %v2841_v13  ;;  %2833 = vadd.xlane.f32.xlu1 %v2832_v58  ;;  %v2829_v28 = vsel %vm12074_vm11, %v9037_v38, 0.0  ;;  %vm12077_vm11 = vmmov %vm12071_vm7 }
 0x990   : > { %v2835_v43 = vsel %vm12072_vm15, %v2785_v32, 0.0  ;;  %vm12076_vm15 = vmmov %vm12071_vm7  ;;  %v2817_v62 = vsel %vm12077_vm11, %v9055_v52, 0.0 }
 0x991   : > { %v2814_v29 = vsel %vm12076_vm15, %v9042_v11, 0.0  ;;  %vm12079_vm15 = vmmov %vm12071_vm7 }
 0x992   : > { %v2802_v60 = vsel %vm12079_vm15, %v9062_v26, 0.0  ;;  %vm12080_vm11 = vmmov %vm12071_vm7 }
 0x993   : > { %2836 = vadd.xlane.f32.xlu0 %v2835_v43  ;;  %2827 = vadd.xlane.f32.xlu1 %v2826_v42  ;;  %v2805_v39 = vsel %vm12080_vm11, %v9075_v20, 0.0  ;;  %vm12084_vm15 = vmmov %vm12071_vm7 }
 0x994   : > { %vm12085_vm11 = vmmov %vm12071_vm7 }
 0x997   : > { %2830 = vadd.xlane.f32.xlu0 %v2829_v28  ;;  %2821 = vadd.xlane.f32.xlu1 %v2820_v17 }
 0x99b   : > { %2824 = vadd.xlane.f32.xlu0 %v2823_v0  ;;  %2815 = vadd.xlane.f32.xlu1 %v2814_v29 }
 0x99f   : > { %2818 = vadd.xlane.f32.xlu0 %v2817_v62  ;;  %2809 = vadd.xlane.f32.xlu1 %v2808_v6 }
 0x9a3   : > { %2812 = vadd.xlane.f32.xlu0 %v2811_v18  ;;  %2803 = vadd.xlane.f32.xlu1 %v2802_v60 }
 0x9a7   : > { %2806 = vadd.xlane.f32.xlu0 %v2805_v39  ;;  %2797 = vadd.xlane.f32.xlu1 %v2796_v5 }
 0x9ab   : > { %2800 = vadd.xlane.f32.xlu0 %v2799_v2 }
 0xa14   : > { %v2840_v51 = vpop.xlane.xlu1 %2839 }
 0xa15   : > { %v2858_v31 = vmul.f32 0.03125, %v2840_v51 }
 0xa17   : > { %v9090_v47 = vsub.f32 %v2790_v10, %v2858_v31 }
 0xa18   : > { %v2843_v8 = vpop.xlane.xlu0 %2842  ;;  %v2834_v16 = vpop.xlane.xlu1 %2833 }
 0xa19   : > { %v2859_v50 = vmul.f32 0.03125, %v2843_v8  ;;  %v2856_v57 = vmul.f32 0.03125, %v2834_v16  ;;  %v2890_v30 = vmul.f32 %v9090_v47, %v9090_v47 }
 0xa1b   : > { %v9094_v48 = vsub.f32 %v2793_v61, %v2859_v50  ;;  %v9096_v37 = vsub.f32 %v2782_v21, %v2856_v57  ;;  %v2934_v15 = vsel %vm12082_vm9, %v2890_v30, 0.0  ;;  %vm12086_vm9 = vmmov %vm12071_vm7 }
 0xa1c   : > { %v2837_v63 = vpop.xlane.xlu0 %2836  ;;  %2935 = vadd.xlane.f32.xlu1 %v2934_v15  ;;  %v2828_v44 = vpop.xlane.xlu1 %2827 }
 0xa1d   : > { %v2857_v13 = vmul.f32 0.03125, %v2837_v63  ;;  %v2854_v58 = vmul.f32 0.03125, %v2828_v44  ;;  %v2891_v10 = vmul.f32 %v9094_v48, %v9094_v48  ;;  %v2888_v43 = vmul.f32 %v9096_v37, %v9096_v37 }
 0xa1f   : > { %v9103_v42 = vsub.f32 %v2785_v32, %v2857_v13  ;;  %v9105_v28 = vsub.f32 %v2774_v12, %v2854_v58  ;;  %v2937_v21 = vsel %vm12083_vm14, %v2891_v10, 0.0  ;;  %v2928_v61 = vsel %vm12084_vm15, %v2888_v43, 0.0  ;;  %vm12087_vm14 = vmmov %vm12071_vm7 }
 0xa20   : > { %2938 = vadd.xlane.f32.xlu0 %v2937_v21  ;;  %v2831_v17 = vpop.xlane.xlu0 %2830  ;;  %2929 = vadd.xlane.f32.xlu1 %v2928_v61  ;;  %v2822_v0 = vpop.xlane.xlu1 %2821  ;;  %vm12088_vm15 = vmmov %vm12071_vm7 }
 0xa21   : > { %v2855_v29 = vmul.f32 0.03125, %v2831_v17  ;;  %v2852_v62 = vmul.f32 0.03125, %v2822_v0  ;;  %v2889_v6 = vmul.f32 %v9103_v42, %v9103_v42  ;;  %v2886_v18 = vmul.f32 %v9105_v28, %v9105_v28 }
 0xa23   : > { %v9114_v32 = vsub.f32 %v9037_v38, %v2855_v29  ;;  %v9117_v12 = vsub.f32 %v9034_v33, %v2852_v62  ;;  %v2931_v60 = vsel %vm12085_vm11, %v2889_v6, 0.0  ;;  %v2922_v39 = vsel %vm12071_vm7, %v2886_v18, 0.0  ;;  %vm12089_vm11 = vmmov %vm12071_vm7 }
 0xa24   : > { %2932 = vadd.xlane.f32.xlu0 %v2931_v60  ;;  %v2825_v5 = vpop.xlane.xlu0 %2824  ;;  %2923 = vadd.xlane.f32.xlu1 %v2922_v39  ;;  %v2816_v2 = vpop.xlane.xlu1 %2815 }
 0xa25   : > { %v2853_v51 = vmul.f32 0.03125, %v2825_v5  ;;  %v2850_v31 = vmul.f32 0.03125, %v2816_v2  ;;  %v2887_v8 = vmul.f32 %v9114_v32, %v9114_v32  ;;  %v2884_v38 = vmul.f32 %v9117_v12, %v9117_v12 }
 0xa27   : > { %v9126_v16 = vsub.f32 %v9045_v54, %v2853_v51  ;;  %v9129_v33 = vsub.f32 %v9042_v11, %v2850_v31  ;;  %v2925_v50 = vsel %vm12086_vm9, %v2887_v8, 0.0  ;;  %v2916_v57 = vsel %vm12087_vm14, %v2884_v38, 0.0  ;;  %vm12090_vm9 = vmmov %vm12071_vm7 }
 0xa28   : > { %2926 = vadd.xlane.f32.xlu0 %v2925_v50  ;;  %v2819_v30 = vpop.xlane.xlu0 %2818  ;;  %2917 = vadd.xlane.f32.xlu1 %v2916_v57  ;;  %v2810_v15 = vpop.xlane.xlu1 %2809  ;;  %vm12091_vm14 = vmmov %vm12071_vm7 }
 0xa29   : > { %v2851_v63 = vmul.f32 0.03125, %v2819_v30  ;;  %v2848_v44 = vmul.f32 0.03125, %v2810_v15  ;;  %v2885_v13 = vmul.f32 %v9126_v16, %v9126_v16  ;;  %v2882_v54 = vmul.f32 %v9129_v33, %v9129_v33 }
 0xa2b   : > { %v9138_v58 = vsub.f32 %v9055_v52, %v2851_v63  ;;  %v9141_v11 = vsub.f32 %v9052_v3, %v2848_v44  ;;  %v2919_v10 = vsel %vm12088_vm15, %v2885_v13, 0.0  ;;  %v2910_v43 = vsel %vm12089_vm11, %v2882_v54, 0.0  ;;  %vm12092_vm15 = vmmov %vm12071_vm7 }
 0xa2c   : > { %2920 = vadd.xlane.f32.xlu0 %v2919_v10  ;;  %v2813_v21 = vpop.xlane.xlu0 %2812  ;;  %2911 = vadd.xlane.f32.xlu1 %v2910_v43  ;;  %v2804_v61 = vpop.xlane.xlu1 %2803  ;;  %vm12093_vm11 = vmmov %vm12071_vm7 }
 0xa2d   : > { %v2849_v17 = vmul.f32 0.03125, %v2813_v21  ;;  %v2846_v0 = vmul.f32 0.03125, %v2804_v61  ;;  %v2883_v29 = vmul.f32 %v9138_v58, %v9138_v58  ;;  %v2880_v52 = vmul.f32 %v9141_v11, %v9141_v11 }
 0xa2f   : > { %v9150_v62 = vsub.f32 %v9065_v53, %v2849_v17  ;;  %v9153_v3 = vsub.f32 %v9062_v26, %v2846_v0  ;;  %v2913_v6 = vsel %vm12071_vm7, %v2883_v29, 0.0  ;;  %v2904_v18 = vsel %vm12090_vm9, %v2880_v52, 0.0  ;;  %vm12094_vm9 = vmmov %vm12071_vm7 }
 0xa30   : > { %2914 = vadd.xlane.f32.xlu0 %v2913_v6  ;;  %v2807_v60 = vpop.xlane.xlu0 %2806  ;;  %2905 = vadd.xlane.f32.xlu1 %v2904_v18  ;;  %v2798_v39 = vpop.xlane.xlu1 %2797 }
 0xa31   : > { %v2847_v5 = vmul.f32 0.03125, %v2807_v60  ;;  %v2844_v2 = vmul.f32 0.03125, %v2798_v39  ;;  %v2881_v51 = vmul.f32 %v9150_v62, %v9150_v62  ;;  %v2878_v53 = vmul.f32 %v9153_v3, %v9153_v3 }
 0xa33   : > { %v9162_v31 = vsub.f32 %v9075_v20, %v2847_v5  ;;  %v9165_v26 = vsub.f32 %v9072_v56, %v2844_v2  ;;  %v2907_v8 = vsel %vm12091_vm14, %v2881_v51, 0.0  ;;  %v2898_v38 = vsel %vm12092_vm15, %v2878_v53, 0.0  ;;  %vm12095_vm14 = vmmov %vm12071_vm7 }
 0xa34   : > { %2908 = vadd.xlane.f32.xlu0 %v2907_v8  ;;  %v2801_v50 = vpop.xlane.xlu0 %2800  ;;  %2899 = vadd.xlane.f32.xlu1 %v2898_v38  ;;  %v3006_v38 = vsub.s32 4, %v12067_v49  ;;  %vm12097_vm15 = vmmov %vm12071_vm7 }
 0xa35   : > { %v2845_v57 = vmul.f32 0.03125, %v2801_v50  ;;  %v2879_v30 = vmul.f32 %v9162_v31, %v9162_v31  ;;  %v2876_v15 = vmul.f32 %v9165_v26, %v9165_v26 }
 0xa37   : > { %v9174_v20 = vsub.f32 %v9082_v36, %v2845_v57  ;;  %v2901_v56 = vsel %vm12093_vm11, %v2879_v30, 0.0  ;;  %v2892_v63 = vsel %vm12071_vm7, %v2876_v15, 0.0  ;;  %v3026_v30 = vsub.s32 5, %v12067_v49  ;;  %vm12098_vm11 = vmmov %vm12071_vm7 }
 0xa38   : > { %2902 = vadd.xlane.f32.xlu0 %v2901_v56  ;;  %2893 = vadd.xlane.f32.xlu1 %v2892_v63 }
 0xa39   : > { %v2877_v44 = vmul.f32 %v9174_v20, %v9174_v20 }
 0xa3b   : > { %v2895_v13 = vsel %vm12094_vm9, %v2877_v44, 0.0  ;;  %vm12099_vm9 = vmmov %vm12071_vm7 }
 0xa3c   : > { %2896 = vadd.xlane.f32.xlu0 %v2895_v13  ;;  %v9184_v13 = vrot.slane %v9020_v24, %v3006_v38 }
 0xaa5   : > { %v2936_v54 = vpop.xlane.xlu1 %2935 }
 0xaa6   : > { %v2954_v10 = vmul.f32 0.03125, %v2936_v54 }
 0xaa8   : > { %v2970_v43 = vadd.f32 1e-05, %v2954_v10 }
 0xaa9   : > { %v2939_v21 = vpop.xlane.xlu0 %2938  ;;  %v2930_v61 = vpop.xlane.xlu1 %2929 }
 0xaaa   : > { %5535 = vrsqrt.f32 %v2970_v43  ;;  %v2955_v36 = vmul.f32 0.03125, %v2939_v21  ;;  %v2952_v17 = vmul.f32 0.03125, %v2930_v61  ;;  %v9188_v61 = vrot.slane %v9020_v24, %v3026_v30 }
 0xaac   : > { %v2971_v0 = vadd.f32 1e-05, %v2955_v36  ;;  %v2968_v29 = vadd.f32 1e-05, %v2952_v17 }
 0xaad   : > { %v2933_v52 = vpop.xlane.xlu0 %2932  ;;  %v2924_v6 = vpop.xlane.xlu1 %2923 }
 0xaae   : > { %5537 = vrsqrt.f32 %v2971_v0  ;;  %v2953_v18 = vmul.f32 0.03125, %v2933_v52  ;;  %v2950_v60 = vmul.f32 0.03125, %v2924_v6 }
 0xaaf   : > { %5539 = vrsqrt.f32 %v2968_v29 }
 0xab0   : > { %v2969_v39 = vadd.f32 1e-05, %v2953_v18  ;;  %v2966_v5 = vadd.f32 1e-05, %v2950_v60 }
 0xab1   : > { %v2927_v2 = vpop.xlane.xlu0 %2926  ;;  %v2918_v51 = vpop.xlane.xlu1 %2917 }
 0xab2   : > { %5541 = vrsqrt.f32 %v2969_v39  ;;  %v2951_v53 = vmul.f32 0.03125, %v2927_v2  ;;  %v2948_v8 = vmul.f32 0.03125, %v2918_v51 }
 0xab3   : > { %5543 = vrsqrt.f32 %v2966_v5 }
 0xab4   : > { %v2967_v50 = vadd.f32 1e-05, %v2951_v53  ;;  %v2964_v57 = vadd.f32 1e-05, %v2948_v8 }
 0xab5   : > { %v2921_v15 = vpop.xlane.xlu0 %2920  ;;  %v2912_v56 = vpop.xlane.xlu1 %2911 }
 0xab6   : > { %5545 = vrsqrt.f32 %v2967_v50  ;;  %v2949_v63 = vmul.f32 0.03125, %v2921_v15  ;;  %v2946_v44 = vmul.f32 0.03125, %v2912_v56 }
 0xab7   : > { %v5536_v54 = vpop.eup %5535  ;;  %5547 = vrsqrt.f32 %v2964_v57 }
 0xab8   : > { %v2965_v10 = vadd.f32 1e-05, %v2949_v63  ;;  %v2962_v43 = vadd.f32 1e-05, %v2946_v44  ;;  %v3002_v21 = vmul.f32 %v5536_v54, %v9090_v47 }
 0xab9   : > { %v2915_v36 = vpop.xlane.xlu0 %2914  ;;  %v2906_v17 = vpop.xlane.xlu1 %2905 }
 0xaba   : > { %5549 = vrsqrt.f32 %v2965_v10  ;;  %v2947_v49 = vmul.f32 0.03125, %v2915_v36  ;;  %v2944_v0 = vmul.f32 0.03125, %v2906_v17  ;;  %v3022_v29 = vmul.f32 %v9184_v13, %v3002_v21 }
 0xabb   : > { %v5538_v52 = vpop.eup %5537  ;;  %5551 = vrsqrt.f32 %v2962_v43 }
 0xabc   : > { %v5540_v6 = vpop.eup %5539  ;;  %v2963_v18 = vadd.f32 1e-05, %v2947_v49  ;;  %v2960_v60 = vadd.f32 1e-05, %v2944_v0  ;;  %v3042_v39 = vadd.f32 %v9188_v61, %v3022_v29  ;;  %v3003_v5 = vmul.f32 %v5538_v52, %v9094_v48 }
 0xabd   : > { %v2909_v47 = vpop.xlane.xlu0 %2908  ;;  %v2900_v2 = vpop.xlane.xlu1 %2899  ;;  %v3000_v24 = vmul.f32 %v5540_v6, %v9096_v37 }
 0xabe   : > { %5553 = vrsqrt.f32 %v2963_v18  ;;  %v2945_v51 = vmul.f32 0.03125, %v2909_v47  ;;  %v2942_v53 = vmul.f32 0.03125, %v2900_v2  ;;  %v9194_v8 = vmax.f32 %v3042_v39, 0.0 }
 0xabf   : > { %v5542_v38 = vpop.eup %5541  ;;  %5555 = vrsqrt.f32 %v2960_v60  ;;  %v3023_v50 = vmul.f32 %v9184_v13, %v3003_v5  ;;  %v3020_v57 = vmul.f32 %v9184_v13, %v3000_v24 }
 0xac0   : > { %v5544_v30 = vpop.eup %5543  ;;  %v2961_v15 = vadd.f32 1e-05, %v2945_v51  ;;  %v2958_v56 = vadd.f32 1e-05, %v2942_v53  ;;  %v3074_v48 = vmul.f32 %v9194_v8, %v9194_v8  ;;  %v3001_v63 = vmul.f32 %v5542_v38, %v9103_v42 }
 0xac1   : > { %v2903_v37 = vpop.xlane.xlu0 %2902  ;;  %v2894_v44 = vpop.xlane.xlu1 %2893  ;;  %v3043_v54 = vadd.f32 %v9188_v61, %v3023_v50  ;;  %v3040_v10 = vadd.f32 %v9188_v61, %v3020_v57  ;;  %v2998_v43 = vmul.f32 %v5544_v30, %v9105_v28 }
 0xac2   : > { %5557 = vrsqrt.f32 %v2961_v15  ;;  %v2943_v21 = vmul.f32 0.03125, %v2903_v37  ;;  %v2940_v36 = vmul.f32 0.03125, %v2894_v44  ;;  %v3118_v17 = vsel %vm12095_vm14, %v3074_v48, 0.0  ;;  %vm12100_vm14 = vmmov %vm12071_vm7 }
 0xac3   : > { %v5546_v49 = vpop.eup %5545  ;;  %5559 = vrsqrt.f32 %v2958_v56  ;;  %3119 = vadd.xlane.f32.xlu1 %v3118_v17  ;;  %v9205_v0 = vmax.f32 %v3043_v54, 0.0  ;;  %v9207_v29 = vmax.f32 %v3040_v10, 0.0  ;;  %v3021_v42 = vmul.f32 %v9184_v13, %v3001_v63 }
 0xac4   : > { %v5548_v52 = vpop.eup %5547  ;;  %v2959_v6 = vadd.f32 1e-05, %v2943_v21  ;;  %v2956_v18 = vadd.f32 1e-05, %v2940_v36  ;;  %v3018_v60 = vmul.f32 %v9184_v13, %v2998_v43  ;;  %v2999_v28 = vmul.f32 %v5546_v49, %v9114_v32 }
 0xac5   : > { %12096 = vst [vmem:[#allocation39_spill] sm:$0xff] %v9205_v0  ;;  %v2897_v39 = vpop.xlane.xlu0 %2896  ;;  %v3075_v5 = vmul.f32 %v9205_v0, %v9205_v0  ;;  %v3072_v47 = vmul.f32 %v9207_v29, %v9207_v29  ;;  %v3041_v2 = vadd.f32 %v9188_v61, %v3021_v42  ;;  %v2996_v24 = vmul.f32 %v5548_v52, %v9117_v12 }
 0xac6   : > { %5561 = vrsqrt.f32 %v2959_v6  ;;  %v2941_v51 = vmul.f32 0.03125, %v2897_v39  ;;  %v3038_v53 = vadd.f32 %v9188_v61, %v3018_v60  ;;  %v3019_v38 = vmul.f32 %v9184_v13, %v2999_v28 }
 0xac7   : > { %v5550_v50 = vpop.eup %5549  ;;  %5563 = vrsqrt.f32 %v2956_v18  ;;  %v3121_v32 = vsel %vm12097_vm15, %v3075_v5, 0.0  ;;  %v3112_v57 = vsel %vm12098_vm11, %v3072_v47, 0.0  ;;  %v9222_v30 = vmax.f32 %v3041_v2, 0.0  ;;  %vm12101_vm15 = vmmov %vm12071_vm7 }
 0xac8   : > { %v5552_v15 = vpop.eup %5551  ;;  %v2957_v56 = vadd.f32 1e-05, %v2941_v51  ;;  %3122 = vadd.xlane.f32.xlu0 %v3121_v32  ;;  %3113 = vadd.xlane.f32.xlu1 %v3112_v57  ;;  %v9224_v48 = vmax.f32 %v3038_v53, 0.0  ;;  %v3039_v12 = vadd.f32 %v9188_v61, %v3019_v38  ;;  %v3016_v63 = vmul.f32 %v9184_v13, %v2996_v24  ;;  %vm12102_vm11 = vmmov %vm12071_vm7 }
 0xac9   : > { %v3073_v37 = vmul.f32 %v9222_v30, %v9222_v30  ;;  %v2997_v44 = vmul.f32 %v5550_v50, %v9126_v16  ;;  %v2994_v54 = vmul.f32 %v5552_v15, %v9129_v33 }
 0xaca   : > { %5565 = vrsqrt.f32 %v2957_v56  ;;  %v3070_v10 = vmul.f32 %v9224_v48, %v9224_v48  ;;  %v9234_v43 = vmax.f32 %v3039_v12, 0.0  ;;  %v3036_v21 = vadd.f32 %v9188_v61, %v3016_v63 }
 0xacb   : > { %v5554_v36 = vpop.eup %5553  ;;  %v3115_v17 = vsel %vm12071_vm7, %v3073_v37, 0.0  ;;  %v3017_v49 = vmul.f32 %v9184_v13, %v2997_v44  ;;  %v3014_v42 = vmul.f32 %v9184_v13, %v2994_v54 }
 0xacc   : > { %v5556_v52 = vpop.eup %5555  ;;  %3116 = vadd.xlane.f32.xlu0 %v3115_v17  ;;  %v3106_v16 = vsel %vm12099_vm9, %v3070_v10, 0.0  ;;  %v3071_v33 = vmul.f32 %v9234_v43, %v9234_v43  ;;  %v9243_v6 = vmax.f32 %v3036_v21, 0.0  ;;  %v2995_v18 = vmul.f32 %v5554_v36, %v9138_v58  ;;  %vm12103_vm9 = vmmov %vm12071_vm7 }
 0xacd   : > { %3107 = vadd.xlane.f32.xlu1 %v3106_v16  ;;  %v3037_v60 = vadd.f32 %v9188_v61, %v3017_v49  ;;  %v3034_v28 = vadd.f32 %v9188_v61, %v3014_v42  ;;  %v2992_v39 = vmul.f32 %v5556_v52, %v9141_v11 }
 0xace   : > { %v3109_v5 = vsel %vm12100_vm14, %v3071_v33, 0.0  ;;  %v3068_v47 = vmul.f32 %v9243_v6, %v9243_v6  ;;  %v3015_v2 = vmul.f32 %v9184_v13, %v2995_v18  ;;  %vm12104_vm14 = vmmov %vm12071_vm7 }
 0xacf   : > { %v5558_v24 = vpop.eup %5557  ;;  %v9253_v51 = vmax.f32 %v3037_v60, 0.0  ;;  %v9255_v53 = vmax.f32 %v3034_v28, 0.0  ;;  %v3012_v58 = vmul.f32 %v9184_v13, %v2992_v39 }
 0xad0   : > { %v5560_v38 = vpop.eup %5559  ;;  %3110 = vadd.xlane.f32.xlu0 %v3109_v5  ;;  %v3100_v50 = vsel %vm12101_vm15, %v3068_v47, 0.0  ;;  %v3035_v11 = vadd.f32 %v9188_v61, %v3015_v2  ;;  %v2993_v32 = vmul.f32 %v5558_v24, %v9150_v62  ;;  %vm12105_vm15 = vmmov %vm12071_vm7 }
 0xad1   : > { %3101 = vadd.xlane.f32.xlu1 %v3100_v50  ;;  %v3069_v57 = vmul.f32 %v9253_v51, %v9253_v51  ;;  %v3066_v15 = vmul.f32 %v9255_v53, %v9255_v53  ;;  %v3032_v56 = vadd.f32 %v9188_v61, %v3012_v58  ;;  %v2990_v12 = vmul.f32 %v5560_v38, %v9153_v3 }
 0xad2   : > { %v9267_v63 = vmax.f32 %v3035_v11, 0.0  ;;  %v3013_v37 = vmul.f32 %v9184_v13, %v2993_v32 }
 0xad3   : > { %v5562_v44 = vpop.eup %5561  ;;  %v3103_v54 = vsel %vm12102_vm11, %v3069_v57, 0.0  ;;  %v3094_v62 = vsel %vm12071_vm7, %v3066_v15, 0.0  ;;  %v9272_v10 = vmax.f32 %v3032_v56, 0.0  ;;  %v3010_v21 = vmul.f32 %v9184_v13, %v2990_v12  ;;  %vm12106_vm11 = vmmov %vm12071_vm7 }
 0xad4   : > { %v5564_v36 = vpop.eup %5563  ;;  %3104 = vadd.xlane.f32.xlu0 %v3103_v54  ;;  %v3067_v17 = vmul.f32 %v9267_v63, %v9267_v63  ;;  %v3033_v3 = vadd.f32 %v9188_v61, %v3013_v37  ;;  %v2991_v49 = vmul.f32 %v5562_v44, %v9162_v31 }
 0xad5   : > { %3095 = vadd.xlane.f32.xlu1 %v3094_v62  ;;  %v3064_v42 = vmul.f32 %v9272_v10, %v9272_v10  ;;  %v3030_v52 = vadd.f32 %v9188_v61, %v3010_v21  ;;  %v2988_v16 = vmul.f32 %v5564_v36, %v9165_v26 }
 0xad6   : > { %v3097_v33 = vsel %vm12103_vm9, %v3067_v17, 0.0  ;;  %v9284_v18 = vmax.f32 %v3033_v3, 0.0  ;;  %v3011_v60 = vmul.f32 %v9184_v13, %v2991_v49  ;;  %vm12107_vm9 = vmmov %vm12071_vm7 }
 0xad7   : > { %v5566_v28 = vpop.eup %5565  ;;  %v3088_v39 = vsel %vm12104_vm14, %v3064_v42, 0.0  ;;  %v9288_v5 = vmax.f32 %v3030_v52, 0.0  ;;  %v3008_v31 = vmul.f32 %v9184_v13, %v2988_v16  ;;  %vm12108_vm14 = vmmov %vm12071_vm7 }
 0xad8   : > { %3098 = vadd.xlane.f32.xlu0 %v3097_v33  ;;  %v3065_v47 = vmul.f32 %v9284_v18, %v9284_v18  ;;  %v3031_v2 = vadd.f32 %v9188_v61, %v3011_v60  ;;  %v2989_v26 = vmul.f32 %v5566_v28, %v9174_v20 }
 0xad9   : > { %3089 = vadd.xlane.f32.xlu1 %v3088_v39  ;;  %v3062_v24 = vmul.f32 %v9288_v5, %v9288_v5  ;;  %v3028_v58 = vadd.f32 %v9188_v61, %v3008_v31 }
 0xada   : > { %v3091_v38 = vsel %vm12105_vm15, %v3065_v47, 0.0  ;;  %v9299_v50 = vmax.f32 %v3031_v2, 0.0  ;;  %v3009_v11 = vmul.f32 %v9184_v13, %v2989_v26  ;;  %vm12109_vm15 = vmmov %vm12071_vm7 }
 0xadb   : > { %v3082_v32 = vsel %vm12106_vm11, %v3062_v24, 0.0  ;;  %v9303_v57 = vmax.f32 %v3028_v58, 0.0  ;;  %vm12110_vm11 = vmmov %vm12071_vm7 }
 0xadc   : > { %3092 = vadd.xlane.f32.xlu0 %v3091_v38  ;;  %v3063_v20 = vmul.f32 %v9299_v50, %v9299_v50  ;;  %v3029_v15 = vadd.f32 %v9188_v61, %v3009_v11 }
 0xadd   : > { %3083 = vadd.xlane.f32.xlu1 %v3082_v32  ;;  %v3060_v56 = vmul.f32 %v9303_v57, %v9303_v57 }
 0xade   : > { %v3085_v12 = vsel %vm12071_vm7, %v3063_v20, 0.0  ;;  %v9311_v37 = vmax.f32 %v3029_v15, 0.0 }
 0xadf   : > { %v3076_v13 = vsel %vm12107_vm9, %v3060_v56, 0.0  ;;  %vm12111_vm9 = vmmov %vm12071_vm7 }
 0xae0   : > { %3086 = vadd.xlane.f32.xlu0 %v3085_v12  ;;  %v3061_v44 = vmul.f32 %v9311_v37, %v9311_v37 }
 0xae1   : > { %3077 = vadd.xlane.f32.xlu1 %v3076_v13 }
 0xae2   : > { %v3079_v54 = vsel %vm12108_vm14, %v3061_v44, 0.0  ;;  %vm12112_vm14 = vmmov %vm12071_vm7 }
 0xae4   : > { %3080 = vadd.xlane.f32.xlu0 %v3079_v54 }
 0xb4c   : > { %v3120_v62 = vpop.xlane.xlu1 %3119 }
 0xb4d   : > { %5567 = vrsqrt.f32 %v3120_v62 }
 0xb51   : > { %v3123_v61 = vpop.xlane.xlu0 %3122  ;;  %v3114_v21 = vpop.xlane.xlu1 %3113 }
 0xb52   : > { %5569 = vrsqrt.f32 %v3123_v61 }
 0xb55   : > { %v3117_v36 = vpop.xlane.xlu0 %3116 }
 0xb56   : > { %5571 = vrsqrt.f32 %v3117_v36  ;;  %v3108_v17 = vpop.xlane.xlu1 %3107 }
 0xb57   : > { %5573 = vrsqrt.f32 %v3114_v21 }
 0xb59   : > { %v3111_v3 = vpop.xlane.xlu0 %3110 }
 0xb5a   : > { %v3102_v49 = vpop.xlane.xlu1 %3101  ;;  %5575 = vrsqrt.f32 %v3111_v3  ;;  %v5568_v42 = vpop.eup %5567 }
 0xb5b   : > { %v3154_v33 = vmin.f32 %v5568_v42, 1e+08  ;;  %5577 = vrsqrt.f32 %v3108_v17 }
 0xb5d   : > { %v3105_v28 = vpop.xlane.xlu0 %3104  ;;  %v9321_v2 = vmul.f32 %v3154_v33, %v9194_v8 }
 0xb5e   : > { %v3096_v52 = vpop.xlane.xlu1 %3095  ;;  %5579 = vrsqrt.f32 %v3105_v28 }
 0xb5f   : > { %v5570_v16 = vpop.eup %5569  ;;  %5581 = vrsqrt.f32 %v3102_v49 }
 0xb60   : > { %v3155_v60 = vmin.f32 %v5570_v16, 1e+08 }
 0xb61   : > { %v3099_v20 = vpop.xlane.xlu0 %3098 }
 0xb62   : > { %v9318_v39 = vmul.f32 %v3155_v60, %v9205_v0  ;;  %v3090_v31 = vpop.xlane.xlu1 %3089 }
 0xb63   : > { %v5572_v47 = vpop.eup %5571 }
 0xb64   : > { %v3153_v26 = vmin.f32 %v5572_v47, 1e+08  ;;  %5127 = vmatprep.subr.msk.mxu0 %vm12109_vm15, %v9318_v39  ;;  %v5574_v24 = vpop.eup %5573  ;;  %vm12113_vm15 = vmmov %vm12071_vm7 }
 0xb65   : > { %5128 = vmatpush3.xpose.msk.msra.mxu0 %vm12110_vm11, %v9318_v39  ;;  %v3152_v38 = vmin.f32 %v5574_v24, 1e+08  ;;  %vm12114_vm11 = vmmov %vm12071_vm7  ;;  %v3093_v61 = vpop.xlane.xlu0 %3092 }
 0xb66   : > { %v3084_v58 = vpop.xlane.xlu1 %3083  ;;  %5129 = vmatprep.subr.msk.mxu0 %vm12071_vm7, %v9321_v2  ;;  %v9330_v11 = vmul.f32 %v3153_v26, %v9222_v30 }
 0xb67   : > { %v5576_v32 = vpop.eup %5575  ;;  %v9337_v56 = vmul.f32 %v3152_v38, %v9207_v29 }
 0xb68   : > { %v3151_v12 = vmin.f32 %v5576_v32, 1e+08  ;;  %v5578_v13 = vpop.eup %5577 }
 0xb69   : > { %5130 = vmatpush3.xpose.msk.msra.mxu0 %vm12111_vm9, %v9321_v2  ;;  %v3150_v44 = vmin.f32 %v5578_v13, 1e+08  ;;  %vm12115_vm9 = vmmov %vm12071_vm7  ;;  %v3087_v16 = vpop.xlane.xlu0 %3086 }
 0xb6a   : > { %v3078_v15 = vpop.xlane.xlu1 %3077  ;;  %5131 = vmatprep.subr.msk.mxu0 %vm12112_vm14, %v9330_v11  ;;  %v9344_v54 = vmul.f32 %v3151_v12, %v9234_v43  ;;  %vm12116_vm14 = vmmov %vm12071_vm7 }
 0xb6b   : > { %5583 = vrsqrt.f32 %v3078_v15  ;;  %v5580_v62 = vpop.eup %5579  ;;  %v9351_v21 = vmul.f32 %v3150_v44, %v9224_v48 }
 0xb6c   : > { %5585 = vrsqrt.f32 %v3099_v20  ;;  %v3149_v36 = vmin.f32 %v5580_v62, 1e+08  ;;  %v5582_v17 = vpop.eup %5581 }
 0xb6d   : > { %5132 = vmatpush3.xpose.msk.msra.mxu0 %vm12113_vm15, %v9330_v11  ;;  %5587 = vrsqrt.f32 %v3096_v52  ;;  %vm12117_vm15 = vmmov %vm12071_vm7  ;;  %v3148_v49 = vmin.f32 %v5582_v17, 1e+08  ;;  %v3081_v32 = vpop.xlane.xlu0 %3080 }
 0xb6e   : > { %5133 = vmatprep.subr.msk.mxu0 %vm12114_vm11, %v9337_v56  ;;  %5589 = vrsqrt.f32 %v3093_v61  ;;  %v3165_v42 = vmul.f32 %v3149_v36, %v9253_v51  ;;  %vm12118_vm11 = vmmov %vm12071_vm7 }
 0xb6f   : > { %5591 = vrsqrt.f32 %v3090_v31  ;;  %v3164_v28 = vmul.f32 %v3148_v49, %v9243_v6 }
 0xb70   : > { %5593 = vrsqrt.f32 %v3087_v16 }
 0xb71   : > { %5134 = vmatpush3.xpose.msk.msra.mxu0 %vm12071_vm7, %v9337_v56  ;;  %5595 = vrsqrt.f32 %v3084_v58 }
 0xb72   : > { %5135 = vmatprep.subr.msk.mxu0 %vm12115_vm9, %v9344_v54  ;;  %vm12119_vm9 = vmmov %vm12071_vm7  ;;  %5597 = vrsqrt.f32 %v3081_v32  ;;  %v12224_v32 = vmov 0 }
 0xb75   : > { %5136 = vmatpush3.xpose.msk.msra.mxu0 %vm12116_vm14, %v9344_v54  ;;  %vm12120_vm14 = vmmov %vm12071_vm7 }
 0xb76   : > { %5137 = vmatprep.subr.msk.mxu0 %vm12117_vm15, %v9351_v21  ;;  %vm12121_vm15 = vmmov %vm12071_vm7 }
 0xb78   : > { %v5584_v3 = vpop.eup %5583 }
 0xb79   : > { %v5586_v52 = vpop.eup %5585  ;;  %v3140_v33 = vmin.f32 %v5584_v3, 1e+08  ;;  %5138 = vmatpush3.xpose.msk.msra.mxu0 %vm12118_vm11, %v9351_v21  ;;  %vm12122_vm11 = vmmov %vm12071_vm7 }
 0xb7a   : > { %5139 = vmatprep.subr.msk.mxu0 %vm12071_vm7, %v3165_v42  ;;  %v3147_v47 = vmin.f32 %v5586_v52, 1e+08  ;;  %v5588_v26 = vpop.eup %5587 }
 0xb7b   : > { %v3156_v60 = vmul.f32 %v3140_v33, %v9303_v57  ;;  %v3146_v31 = vmin.f32 %v5588_v26, 1e+08  ;;  %v5590_v38 = vpop.eup %5589  ;;  %v12163_v26 = vld [vmem:[#allocation21_spill] sm:$0xff] }
 0xb7c   : > { %v3163_v24 = vmul.f32 %v3147_v47, %v9267_v63  ;;  %v3145_v15 = vmin.f32 %v5590_v38, 1e+08  ;;  %v5592_v12 = vpop.eup %5591 }
 0xb7d   : > { %5159 = vmatprep.mubr.msk.f32.mxu0 %vm12119_vm9, %v3156_v60  ;;  %5140 = vmatpush3.xpose.msk.msra.mxu0 %vm12120_vm14, %v3165_v42  ;;  %v3162_v20 = vmul.f32 %v3146_v31, %v9255_v53  ;;  %vm12123_vm9 = vmmov %vm12071_vm7  ;;  %v3144_v13 = vmin.f32 %v5592_v12, 1e+08  ;;  %v5594_v62 = vpop.eup %5593  ;;  %v12196_v31 = vld [vmem:[#allocation43_spill] sm:$0xff] }
 0xb7e   : > { %5141 = vmatprep.subr.msk.mxu0 %vm12121_vm15, %v3164_v28  ;;  %vm12124_vm14 = vmmov %vm12071_vm7  ;;  %v3161_v44 = vmul.f32 %v3145_v15, %v9284_v18  ;;  %v3143_v61 = vmin.f32 %v5594_v62, 1e+08  ;;  %v5596_v36 = vpop.eup %5595  ;;  %v12178_v62 = vmov 0  }
 0xb7f   : > { %vm12125_vm15 = vmmov %vm12071_vm7  ;;  %v3160_v58 = vmul.f32 %v3144_v13, %v9272_v10  ;;  %v3142_v17 = vmin.f32 %v5596_v36, 1e+08  ;;  %v5598_v49 = vpop.eup %5597 }
 0xb80   : > { %v3159_v3 = vmul.f32 %v3143_v61, %v9299_v50  ;;  %v3141_v16 = vmin.f32 %v5598_v49, 1e+08 }
 0xb81   : > { %5142 = vmatpush3.xpose.msk.msra.mxu0 %vm12122_vm11, %v3164_v28  ;;  %vm12127_vm11 = vmmov %vm12126_vm6  ;;  %v3158_v52 = vmul.f32 %v3142_v17, %v9288_v5  ;;  %v12182_v17 = vld [vmem:[#allocation34_spill] sm:$0xff] }
 0xb82   : > { %5143 = vmatprep.subr.msk.mxu0 %vm12071_vm7, %v3163_v24  ;;  %vm12128_vm7 = vmmov %vm12126_vm6  ;;  %v3157_v33 = vmul.f32 %v3141_v16, %v9311_v37  ;;  %v12189_v16 = vld [vmem:[#allocation9_spill] sm:$0xff] }
 0xb85   : > { %5144 = vmatpush3.xpose.msk.msra.mxu0 %vm12123_vm9, %v3163_v24  ;;  %vm12129_vm9 = vmmov %vm12126_vm6 }
 0xb86   : > { %5145 = vmatprep.subr.msk.mxu0 %vm12124_vm14, %v3162_v20  ;;  %vm12130_vm14 = vmmov %vm12126_vm6 }
 0xb89   : > { %5146 = vmatpush3.xpose.msk.msra.mxu0 %vm12125_vm15, %v3162_v20  ;;  %vm12131_vm15 = vmmov %vm12126_vm6 }
 0xb8a   : > { %5147 = vmatprep.subr.msk.mxu0 %vm12126_vm6, %v3161_v44 }
 0xb8d   : > { %5148 = vmatpush3.xpose.msk.msra.mxu0 %vm12127_vm11, %v3161_v44  ;;  %vm12132_vm11 = vmmov %vm12126_vm6 }
 0xb8e   : > { %5149 = vmatprep.subr.msk.mxu0 %vm12128_vm7, %v3160_v58  ;;  %vm12133_vm7 = vmmov %vm12126_vm6 }
 0xb91   : > { %5150 = vmatpush3.xpose.msk.msra.mxu0 %vm12129_vm9, %v3160_v58  ;;  %vm12136_vm9 = vmmov %vm12135_vm1 }
 0xb92   : > { %5151 = vmatprep.subr.msk.mxu0 %vm12130_vm14, %v3159_v3  ;;  %vm12137_vm14 = vmmov %vm12135_vm1 }
 0xb95   : > { %5152 = vmatpush3.xpose.msk.msra.mxu0 %vm12126_vm6, %v3159_v3  ;;  %vm12140_vm6 = vmmov %vm12135_vm1 }
 0xb96   : > { %5153 = vmatprep.subr.msk.mxu0 %vm12131_vm15, %v3158_v52  ;;  %vm12141_vm15 = vmmov %vm12135_vm1 }
 0xb99   : > { %5154 = vmatpush3.xpose.msk.msra.mxu0 %vm12132_vm11, %v3158_v52  ;;  %vm12143_vm11 = vmmov %vm12135_vm1 }
 0xb9a   : > { %5155 = vmatprep.subr.msk.mxu0 %vm12133_vm7, %v3157_v33  ;;  %vm12144_vm7 = vmmov %vm12135_vm1 }
 0xb9d   : > { %5156 = vmatpush3.xpose.msk.msra.mxu0 %vm12134_vm12, %v3157_v33  ;;  %vm12145_vm12 = vmmov %vm12135_vm1 }
 0xb9e   : > { %5157 = vmatprep.subr.msk.mxu0 %vm12135_vm1, %v3156_v60 }
 0xba1   : > { %5158 = vmatpush3.xpose.msk.msra.mxu0 %vm12136_vm9, %v3156_v60  ;;  %vm12146_vm9 = vmmov %vm12135_vm1 }
 0xba4   : > { %5160 = vmatmul.mubr.msk.f32.vlgmr.msra.gmra.mxu0 %vm12137_vm14, %v3157_v33  ;;  %vm12150_vm14 = vmmov %vm12135_vm1 }
 0xba5   : > { %5162 = vmatprep.mubr.msk.f32.mxu0 %vm12138_vm8, %v3158_v52  ;;  %vm12147_vm8 = vmmov %vm12135_vm1  ;;  %v12187_v52 = vmov 0 }
 0xba8   : > { %5163 = vmatmul.mubr.msk.f32.gmra.mxu0 %vm12139_vm4, %v3159_v3  ;;  %vm12148_vm4 = vmmov %vm12135_vm1 }
 0xba9   : > { %5165 = vmatprep.mubr.msk.f32.mxu0 %vm12140_vm6, %v3160_v58 }
 0xbac   : > { %5166 = vmatmul.mubr.msk.f32.gmra.mxu0 %vm12141_vm15, %v3161_v44  ;;  %v12176_v44 = vld [vmem:[#allocation7_spill] sm:$0xff] }
 0xbad   : > { %5168 = vmatprep.mubr.msk.f32.mxu0 %vm12142_vm13, %v3162_v20  ;;  %vm12149_vm13 = vmmov %vm12135_vm1  ;;  %v12170_v20 = vld [vmem:[#allocation25_spill] sm:$0xff] }
 0xbb0   : > { %5169 = vmatmul.mubr.msk.f32.gmra.mxu0 %vm12143_vm11, %v3163_v24 }
 0xbb1   : > { %5171 = vmatprep.mubr.msk.f32.mxu0 %vm12144_vm7, %v3164_v28  ;;  %vm12151_vm7 = vmpackc.low %vm12026_vm3, %vm12026_vm3 }
 0xbb4   : > { %5172 = vmatmul.mubr.msk.f32.gmra.mxu0 %vm12145_vm12, %v3165_v42 }
 0xbb5   : > { %5174 = vmatprep.mubr.msk.f32.mxu0 %vm12135_vm1, %v9351_v21 }
 0xbb8   : > { %5175 = vmatmul.mubr.msk.f32.gmra.mxu0 %vm12146_vm9, %v9344_v54 }
 0xbb9   : > { %5177 = vmatprep.mubr.msk.f32.mxu0 %vm12147_vm8, %v9337_v56 }
 0xbbc   : > { %5178 = vmatmul.mubr.msk.f32.gmra.mxu0 %vm12148_vm4, %v9330_v11 }
 0xbbd   : > { %5180 = vmatprep.mubr.msk.f32.mxu0 %vm12149_vm13, %v9321_v2  ;;  %vm12162_vm13 = vmpackc.low %vm12023_vm5, %vm12023_vm5 }
 0xbc0   : > { %5181 = vmatmul.mubr.msk.f32.gmra.mxu0 %vm12150_vm14, %v9318_v39  ;;  %v12152_v39 = vld [vmem:[#allocation17_spill] sm:$0xff]  ;;  %vm12164_vm14 = vnez %v12163_v26 }
 0xbc1   : > { %vm12153_vm12 = vnez %v12152_v39 }
 0xbc2   : > { %vm9429_vm1 = vmor %vm12153_vm12, %vm12151_vm7 }
 0xc64   : > { %v9411_v60 = vpop.f32.mrf.mxu0 }
 0xc65   : > { %vm3366_vm6 = vcmp.ge.f32.partialorder %v9411_v60, 0.1 }
 0xc66   : > { %v9413_v42 = vpop.f32.mrf.mxu0  ;;  %vm9435_vm9 = vmor %vm3366_vm6, %vm12026_vm3 }
 0xc67   : > { %vm3365_vm15 = vcmp.ge.f32.partialorder %v9413_v42, 0.1  ;;  %vm9460_vm6 = vmor %vm12164_vm14, %vm12162_vm13  ;;  %vm12171_vm14 = vnez %v12170_v20 }
 0xc68   : > { %v9416_v21 = vpop.f32.mrf.mxu0  ;;  %vm9441_vm8 = vmor %vm3365_vm15, %vm12023_vm5 }
 0xc69   : > { %vm3368_vm11 = vcmp.ge.f32.partialorder %v9416_v21, 0.1  ;;  %vm3398_vm15 = vmpackc.low %vm9435_vm9, %vm9435_vm9 }
 0xc6a   : > { %v9420_v56 = vpop.f32.mrf.mxu0  ;;  %vm9449_vm4 = vmor %vm3368_vm11, %vm12037_vm10 }
 0xc6b   : > { %vm3367_vm11 = vcmp.ge.f32.partialorder %v9420_v56, 0.1  ;;  %vm12169_vm9 = vmpackc.low %vm12037_vm10, %vm12037_vm10 }
 0xc6c   : > { %v9445_v28 = vpop.f32.mrf.mxu0  ;;  %vm9480_vm13 = vmor %vm3367_vm11, %vm12035_vm0  ;;  %vm12177_vm11 = vnez %v12176_v44 }
 0xc6d   : > { %vm9491_vm7 = vmor %vm12171_vm14, %vm12169_vm9  ;;  %vm3370_vm12 = vcmp.ge.f32.partialorder %v9445_v28, 0.1 }
 0xc6e   : > { %v9468_v24 = vpop.f32.mrf.mxu0  ;;  %vm9498_vm3 = vmand %vm9429_vm1, %vm3398_vm15  ;;  %vm12183_vm15 = vnez %v12182_v17  ;;  %v12205_v17 = vld [vmem:[#allocation11_spill] sm:$0xff] }
 0xc6f   : > { %vm3430_vm10 = vmand %vm9498_vm3, %vm12177_vm11  ;;  %v3699_v54 = vsel %vm9498_vm3, 65537, %v12178_v62 }
 0xc70   : > { %v9476_v38 = vpop.f32.mrf.mxu0  ;;  %v3446_v58 = vsel %vm3430_vm10, 65537, %v12178_v62  ;;  %vm9514_vm14 = vmor %vm3370_vm12, %vm12041_vm2  ;;  %vm3369_vm10 = vcmp.ge.f32.partialorder %v9468_v24, 0.1  ;;  %v3715_v47 = vunpack.c.l.b16 %v3699_v54  ;;  %v12212_v54 = vld [vmem:[#allocation57_spill] sm:$0xff] }
 0xc71   : > { %v3462_v36 = vunpack.c.l.b16 %v3446_v58  ;;  %vm12181_vm1 = vmpackc.low %vm12035_vm0, %vm12035_vm0 }
 0xc72   : > { %v9502_v13 = vpop.f32.mrf.mxu0  ;;  %vm9525_vm11 = vmor %vm12183_vm15, %vm12181_vm1  ;;  %vm12190_vm1 = vnez %v12189_v16 }
 0xc73   : > { %vm12186_vm12 = vmpackc.low %vm9441_vm8, %vm9441_vm8  ;;  %vm9539_vm5 = vcmp.ne.s32.totalorder %v3462_v36, 0  ;;  %vm12192_vm8 = vnez %v12038_v22  ;;  %v12203_v36 = vmov 0  ;;  %v12232_v22 = vld [vmem:[#allocation62_spill] sm:$0xff] }
 0xc74   : > { %vm3413_vm9 = vmand %vm9460_vm6, %vm12186_vm12  ;;  %v9537_v49 = vpop.f32.mrf.mxu0  ;;  %v12188_v52 = vsel %vm9539_vm5, 4294967295, %v12187_v52  ;;  %v9552_v39 = vsel %vm9539_vm5, %v9411_v60, 0.0  ;;  %vm12197_vm12 = vnez %v12196_v31  ;;  %v12216_v31 = vmov 0 }
 0xc75   : > { %vm3429_vm15 = vmand %vm3413_vm9, %vm12190_vm1  ;;  %v3698_v33 = vsel %vm3413_vm9, 65537, %v12178_v62  ;;  %12191 = vst [vmem:[#allocation51_spill] sm:$0xff] %v9552_v39  ;;  %3511 = vadd.xlane.f32.xlu1 %v9552_v39 }
 0xc76   : > { %v3445_v2 = vsel %vm3429_vm15, 65537, %v12178_v62  ;;  %vm9557_vm6 = vmor %vm3369_vm10, %vm12192_vm8  ;;  %vm3372_vm10 = vcmp.ge.f32.partialorder %v9476_v38, 0.1  ;;  %v3714_v44 = vunpack.c.l.b16 %v3698_v33  ;;  %v9588_v58 = vpop.f32.mrf.mxu0  ;;  %v12284_v33 = vmov 0 }
 0xc77   : > { %v3461_v26 = vunpack.c.l.b16 %v3445_v2  ;;  %vm12195_vm9 = vmpackc.low %vm12041_vm2, %vm12041_vm2 }
 0xc78   : > { %vm9572_vm1 = vmor %vm12197_vm12, %vm12195_vm9  ;;  %vm12206_vm12 = vnez %v12205_v17  ;;  %v9637_v17 = vpop.f32.mrf.mxu0 }
 0xc79   : > { %vm12200_vm3 = vmpackc.low %vm9449_vm4, %vm9449_vm4  ;;  %vm9590_vm9 = vcmp.ne.s32.totalorder %v3461_v26, 0  ;;  %vm12213_vm4 = vnez %v12212_v54  ;;  %v12214_v26 = vmov 0  ;;  %v12222_v54 = vld [vmem:[#allocation14_spill] sm:$0xff] }
 0xc7a   : > { %vm9584_vm15 = vmand %vm9491_vm7, %vm12200_vm3  ;;  %v12204_v36 = vsel %vm9590_vm9, 4294967295, %v12203_v36  ;;  %v9604_v15 = vsel %vm9590_vm9, %v9413_v42, 0.0  ;;  %vm12208_vm7 = vnez %v12044_v14  ;;  %v12244_v14 = vld [vmem:[#allocation18_spill] sm:$0xff] }
 0xc7b   : > { %vm3432_vm0 = vmand %vm9584_vm15, %vm12206_vm12  ;;  %12207 = vst [vmem:[#allocation47_spill] sm:$0xff] %v9604_v15  ;;  %3509 = vadd.xlane.f32.xlu0 %v9604_v15 }
 0xc7c   : > { %v3448_v16 = vsel %vm3432_vm0, 65537, %v12178_v62  ;;  %vm9609_vm3 = vmor %vm3372_vm10, %vm12208_vm7  ;;  %vm9625_vm0 = vcmp.ne.s32.totalorder %v3714_v44, 0  ;;  %vm3371_vm10 = vcmp.ge.f32.partialorder %v9502_v13, 0.1  ;;  %v3701_v44 = vsel %vm9584_vm15, 65537, %v12178_v62 }
 0xc7d   : > { %v3464_v2 = vunpack.c.l.b16 %v3448_v16  ;;  %vm12211_vm12 = vmpackc.low %vm12192_vm8, %vm12192_vm8  ;;  %v12217_v31 = vsel %vm9625_vm0, 4294967295, %v12216_v31  ;;  %v12220_v16 = vmov 0  ;;  %v3717_v27 = vunpack.c.l.b16 %v3701_v44 }
 0xc7e   : > { %vm9621_vm2 = vmor %vm12213_vm4, %vm12211_vm12  ;;  %12218 = vst [vmem:[#allocation63_spill] sm:$0xff] %v12217_v31  ;;  %vm12223_vm12 = vnez %v12222_v54  ;;  %v4587_v54 = vsel %vm9625_vm0, 1.0, %v11479_v46 }
 0xc7f   : > { %v12215_v26 = vsel %vm9621_vm2, 4294967295, %v12214_v26  ;;  %vm12219_vm9 = vmpackc.low %vm9480_vm13, %vm9480_vm13  ;;  %vm9639_vm4 = vcmp.ne.s32.totalorder %v3464_v2, 0  ;;  %vm9649_vm2 = vcmp.ne.s32.totalorder %v3715_v47, 0 }
 0xc80   : > { %vm3415_vm8 = vmand %vm9525_vm11, %vm12219_vm9  ;;  %v12221_v16 = vsel %vm9639_vm4, 4294967295, %v12220_v16  ;;  %v12225_v32 = vsel %vm9649_vm2, 4294967295, %v12224_v32  ;;  %v9659_v3 = vsel %vm9639_vm4, %v9416_v21, 0.0  ;;  %vm12228_vm11 = vnez %v12042_v34 }
 0xc81   : > { %vm3431_vm5 = vmand %vm3415_vm8, %vm12223_vm12  ;;  %v3700_v25 = vsel %vm3415_vm8, 65537, %v12178_v62  ;;  %12226 = vst [vmem:[#allocation60_spill] sm:$0xff] %v12225_v32  ;;  %3515 = vadd.xlane.f32.xlu1 %v9659_v3  ;;  %v4588_v44 = vsel %vm9649_vm2, 1.0, %v11479_v46 }
 0xc82   : > { %12227 = vst [vmem:[#allocation23_spill] sm:$0xff] %v9659_v3  ;;  %v3447_v12 = vsel %vm3431_vm5, 65537, %v12178_v62  ;;  %v3716_v2 = vunpack.c.l.b16 %v3700_v25  ;;  %vm9667_vm8 = vmor %vm3371_vm10, %vm12228_vm11  ;;  %vm12233_vm5 = vnez %v12232_v22  ;;  %vm3374_vm10 = vcmp.ge.f32.partialorder %v9537_v49, 0.1 }
 0xc83   : > { %v3463_v55 = vunpack.c.l.b16 %v3447_v12  ;;  %vm12231_vm15 = vmpackc.low %vm12208_vm7, %vm12208_vm7  ;;  %v9699_v12 = vpop.f32.mrf.mxu0  ;;  %v3778_v20 = vadd.f32 %v4588_v44, %v4587_v54  ;;  %v12251_v54 = vld [vmem:[#allocation12_spill] sm:$0xff]  ;;  %v12273_v3 = vmov 0  ;;  %v12305_v44 = vld [vmem:[#allocation27_spill] sm:$0xff] }
 0xc84   : > { %vm9679_vm9 = vmor %vm12233_vm5, %vm12231_vm15  ;;  %vm9684_vm12 = vcmp.ne.s32.totalorder %v3716_v2, 0  ;;  %v12242_v2 = vmov 0  ;;  %vm12247_vm5 = vnez %v12048_v4  ;;  %v12292_v4 = vld [vmem:[#allocation37_spill] sm:$0xff] }
 0xc85   : > { %v12237_v35 = vsel %vm9684_vm12, 4294967295, %v12236_v35  ;;  %vm12239_vm13 = vmpackc.low %vm9514_vm14, %vm9514_vm14  ;;  %vm9704_vm15 = vcmp.ne.s32.totalorder %v3463_v55, 0  ;;  %v4589_v61 = vsel %vm9684_vm12, 1.0, %v11479_v46  ;;  %vm12245_vm14 = vnez %v12244_v14 }
 0xc86   : > { %12238 = vst [vmem:[#allocation15_spill] sm:$0xff] %v12237_v35  ;;  %vm9695_vm7 = vmand %vm9572_vm1, %vm12239_vm13  ;;  %v12243_v2 = vsel %vm9704_vm15, 4294967295, %v12242_v2  ;;  %v9721_v55 = vsel %vm9704_vm15, %v9420_v56, 0.0  ;;  %vm12252_vm13 = vnez %v12251_v54  ;;  %v3779_v32 = vadd.f32 %v4589_v61, %v3778_v20  ;;  %v12262_v61 = vld [vmem:[#allocation22_spill] sm:$0xff] }
 0xc87   : > { %vm3434_vm1 = vmand %vm9695_vm7, %vm12245_vm14  ;;  %12246 = vst [vmem:[#allocation45_spill] sm:$0xff] %v9721_v55  ;;  %3513 = vadd.xlane.f32.xlu0 %v9721_v55  ;;  %v12260_v54 = vmov 0 }
 0xc88   : > { %v3450_v41 = vsel %vm3434_vm1, 65537, %v12178_v62  ;;  %vm9726_vm12 = vmor %vm3374_vm10, %vm12247_vm5  ;;  %vm9742_vm1 = vcmp.ne.s32.totalorder %v3717_v27, 0  ;;  %vm3373_vm10 = vcmp.ge.f32.partialorder %v9588_v58, 0.1  ;;  %v3703_v27 = vsel %vm9695_vm7, 65537, %v12178_v62 }
 0xc89   : > { %v3466_v14 = vunpack.c.l.b16 %v3450_v41  ;;  %vm12250_vm14 = vmpackc.low %vm12228_vm11, %vm12228_vm11  ;;  %v12256_v40 = vsel %vm9742_vm1, 4294967295, %v12255_v40  ;;  %vm12259_vm11 = vnez %v12215_v26  ;;  %v9754_v41 = vpop.f32.mrf.mxu0  ;;  %v4590_v22 = vsel %vm9742_vm1, 1.0, %v11479_v46 }
 0xc8a   : > { %vm9738_vm2 = vmor %vm12252_vm13, %vm12250_vm14  ;;  %12257 = vst [vmem:[#allocation32_spill] sm:$0xff] %v12256_v40  ;;  %vm12263_vm14 = vnez %v12262_v61  ;;  %vm12265_vm7 = vnez %v12046_v23  ;;  %v12266_v61 = vmov 0  ;;  %v12271_v40 = vmov 0 }
 0xc8b   : > { %vm12258_vm0 = vmpackc.low %vm9557_vm6, %vm9557_vm6  ;;  %vm9756_vm13 = vcmp.ne.s32.totalorder %v3466_v14, 0  ;;  %v3719_v31 = vunpack.c.l.b16 %v3703_v27  ;;  %vm3375_vm6 = vcmp.ge.f32.partialorder %v9699_v12, 0.1  ;;  %v12279_v27 = vmov 0 }
 0xc8c   : > { %vm3417_vm15 = vmand %vm12259_vm11, %vm12258_vm0  ;;  %v12261_v54 = vsel %vm9756_vm13, 4294967295, %v12260_v54  ;;  %v9772_v11 = vsel %vm9756_vm13, %v9445_v28, 0.0  ;;  %vm3376_vm11 = vcmp.ge.f32.partialorder %v9637_v17, 0.1 }
 0xc8d   : > { %vm3433_vm4 = vmand %vm3417_vm15, %vm12263_vm14  ;;  %v3702_v20 = vsel %vm3417_vm15, 65537, %v12178_v62  ;;  %12264 = vst [vmem:[#allocation56_spill] sm:$0xff] %v9772_v11  ;;  %3519 = vadd.xlane.f32.xlu1 %v9772_v11  ;;  %v3780_v11 = vadd.f32 %v4590_v22, %v3779_v32 }
 0xc8e   : > { %v3449_v26 = vsel %vm3433_vm4, 65537, %v12178_v62  ;;  %v3718_v14 = vunpack.c.l.b16 %v3702_v20  ;;  %vm9780_vm0 = vmor %vm3373_vm10, %vm12265_vm7  ;;  %v12269_v20 = vld [vmem:[#allocation19_spill] sm:$0xff] }
 0xc8f   : > { %v12267_v61 = vsel %vm9780_vm0, 4294967295, %v12266_v61  ;;  %v3465_v34 = vunpack.c.l.b16 %v3449_v26  ;;  %vm12268_vm4 = vmpackc.low %vm12247_vm5, %vm12247_vm5  ;;  %vm12270_vm15 = vnez %v12269_v20  ;;  %v9813_v20 = vpop.f32.mrf.mxu0 }
 0xc90   : > { %vm9793_vm14 = vmor %vm12270_vm15, %vm12268_vm4  ;;  %vm9797_vm10 = vcmp.ne.s32.totalorder %v3718_v14, 0  ;;  %v12281_v14 = vld [vmem:[#allocation26_spill] sm:$0xff] }
 0xc91   : > { %v12272_v40 = vsel %vm9793_vm14, 4294967295, %v12271_v40  ;;  %v12274_v3 = vsel %vm9797_vm10, 4294967295, %v12273_v3  ;;  %vm12276_vm1 = vmpackc.low %vm9609_vm3, %vm9609_vm3  ;;  %vm9815_vm4 = vcmp.ne.s32.totalorder %v3465_v34, 0  ;;  %v4591_v32 = vsel %vm9797_vm10, 1.0, %v11479_v46 }
 0xc92   : > { %12275 = vst [vmem:[#allocation53_spill] sm:$0xff] %v12274_v3  ;;  %vm9809_vm5 = vmand %vm9679_vm9, %vm12276_vm1  ;;  %v12280_v27 = vsel %vm9815_vm4, 4294967295, %v12279_v27  ;;  %vm12282_vm15 = vnez %v12281_v14  ;;  %vm12283_vm9 = vnez %v12053_v9  ;;  %v9835_v34 = vsel %vm9815_vm4, %v9468_v24, 0.0 }
 0xc93   : > { %vm3436_vm3 = vmand %vm9809_vm5, %vm12282_vm15  ;;  %12286 = vst [vmem:[#allocation66_spill] sm:$0xff] %v9835_v34  ;;  %3517 = vadd.xlane.f32.xlu0 %v9835_v34  ;;  %vm12287_vm15 = vnez %v12051_v59  ;;  %vm12290_vm4 = vnez %v12064_v45  ;;  %v12294_v3 = vmov 0  ;;  %vm9860_vm10 = vcmp.ne.s32.totalorder %v3719_v31, 0 }
 0xc94   : > { %vm9828_vm1 = vmor %vm3376_vm11, %vm12283_vm9  ;;  %v3452_v25 = vsel %vm3436_vm3, 65537, %v12178_v62  ;;  %vm3378_vm11 = vcmp.ge.f32.partialorder %v9754_v41, 0.1  ;;  %vm12293_vm9 = vnez %v12292_v4  ;;  %v12296_v34 = vmov 0  ;;  %v9872_v4 = vpop.f32.mrf.mxu0 }
 0xc95   : > { %v12285_v33 = vsel %vm9828_vm1, 4294967295, %v12284_v33  ;;  %vm9844_vm13 = vmor %vm3375_vm6, %vm12287_vm15  ;;  %v3468_v14 = vunpack.c.l.b16 %v3452_v25  ;;  %v12297_v34 = vsel %vm9860_vm10, 4294967295, %v12296_v34  ;;  %v3781_v55 = vadd.f32 %v4591_v32, %v3780_v11  ;;  %v12302_v11 = vld [vmem:[#allocation31_spill] sm:$0xff] }
 0xc96   : > { %vm12291_vm3 = vmpackc.low %vm12290_vm4, %vm12290_vm4  ;;  %12298 = vst [vmem:[#allocation2_spill] sm:$0xff] %v12297_v34  ;;  %vm3377_vm15 = vcmp.ge.f32.partialorder %v9813_v20, 0.1  ;;  %v12300_v25 = vmov 0  ;;  %v3705_v31 = vsel %vm9809_vm5, 65537, %v12178_v62  ;;  %v12307_v32 = vmov 0 }
 0xc97   : > { %vm9856_vm14 = vmor %vm12293_vm9, %vm12291_vm3  ;;  %vm9874_vm9 = vcmp.ne.s32.totalorder %v3468_v14, 0  ;;  %vm12303_vm3 = vnez %v12302_v11  ;;  %vm12310_vm5 = vnez %v12057_v1  ;;  %v12316_v34 = vmov 0 }
 0xc98   : > { %v12295_v3 = vsel %vm9856_vm14, 4294967295, %v12294_v3  ;;  %vm12299_vm6 = vmpackc.low %vm9667_vm8, %vm9667_vm8  ;;  %v12301_v25 = vsel %vm9874_vm9, 4294967295, %v12300_v25  ;;  %vm12306_vm8 = vnez %v12305_v44  ;;  %v9898_v26 = vsel %vm9874_vm9, %v9476_v38, 0.0 }
 0xc99   : > { %vm3419_vm0 = vmand %vm9738_vm2, %vm12299_vm6  ;;  %12309 = vst [vmem:[#allocation17_spill] sm:$0xff] %v9898_v26  ;;  %v4592_v44 = vsel %vm9860_vm10, 1.0, %v11479_v46  ;;  %3523 = vadd.xlane.f32.xlu1 %v9898_v26  ;;  %v12338_v45 = vmov 0 }
 0xc9a   : > { %vm3435_vm14 = vmand %vm3419_vm0, %vm12303_vm3  ;;  %v3704_v47 = vsel %vm3419_vm0, 65537, %v12178_v62  ;;  %v3782_v0 = vadd.f32 %v4592_v44, %v3781_v55  ;;  %v12323_v55 = vld [vmem:[#allocation36_spill] sm:$0xff]  ;;  %v9965_v44 = vpop.f32.mrf.mxu0 }
 0xc9b   : > { %vm12304_vm2 = vmpackc.low %vm12265_vm7, %vm12265_vm7  ;;  %v3451_v11 = vsel %vm3435_vm14, 65537, %v12178_v62  ;;  %v3720_v23 = vunpack.c.l.b16 %v3704_v47  ;;  %vm3380_vm14 = vcmp.ge.f32.partialorder %v9872_v4, 0.1  ;;  %v3721_v47 = vunpack.c.l.b16 %v3705_v31 }
 0xc9c   : > { %vm9891_vm6 = vmor %vm12306_vm8, %vm12304_vm2  ;;  %v3467_v15 = vunpack.c.l.b16 %v3451_v11  ;;  %vm12313_vm2 = vnez %v12055_v19  ;;  %vm12320_vm7 = vnez %v12272_v40  ;;  %v12321_v11 = vmov 0  ;;  %v12327_v40 = vld [vmem:[#allocation42_spill] sm:$0xff] }
 0xc9d   : > { %v12308_v32 = vsel %vm9891_vm6, 4294967295, %v12307_v32  ;;  %vm9902_vm3 = vmor %vm3378_vm11, %vm12310_vm5  ;;  %vm9923_vm8 = vcmp.ne.s32.totalorder %v3720_v23, 0  ;;  %vm12324_vm1 = vnez %v12323_v55 }
 0xc9e   : > { %vm9918_vm11 = vmor %vm3377_vm15, %vm12313_vm2  ;;  %v12317_v34 = vsel %vm9923_vm8, 4294967295, %v12316_v34  ;;  %vm9937_vm9 = vcmp.ne.s32.totalorder %v3467_v15, 0  ;;  %v4593_v23 = vsel %vm9923_vm8, 1.0, %v11479_v46  ;;  %vm9983_vm8 = vcmp.ne.s32.totalorder %v3721_v47, 0 }
 0xc9f   : > { %12318 = vst [vmem:[#allocation21_spill] sm:$0xff] %v12317_v34  ;;  %vm12319_vm0 = vmpackc.low %vm9726_vm12, %vm9726_vm12  ;;  %v12322_v11 = vsel %vm9937_vm9, 4294967295, %v12321_v11  ;;  %vm12325_vm12 = vnez %v12053_v9  ;;  %v9960_v15 = vsel %vm9937_vm9, %v9502_v13, 0.0  ;;  %v12334_v9 = vld [vmem:[#allocation49_spill] sm:$0xff]  ;;  %v12339_v45 = vsel %vm9983_vm8, 4294967295, %v12338_v45 }
 0xca0   : > { %vm3422_vm10 = vmand %vm12320_vm7, %vm12319_vm0  ;;  %vm12328_vm0 = vnez %v12327_v40  ;;  %12331 = vst [vmem:[#allocation25_spill] sm:$0xff] %v9960_v15  ;;  %3521 = vadd.xlane.f32.xlu0 %v9960_v15  ;;  %v3783_v26 = vadd.f32 %v4593_v23, %v3782_v0  ;;  %vm12341_vm15 = vnez %v12295_v3  ;;  %v12349_v0 = vld [vmem:[#allocation59_spill] sm:$0xff]  ;;  %v12400_v3 = vmov 0 }
 0xca1   : > { %vm3438_vm2 = vmand %vm3422_vm10, %vm12324_vm1  ;;  %v3707_v40 = vsel %vm3422_vm10, 65537, %v12178_v62  ;;  %12340 = vst [vmem:[#allocation7_spill] sm:$0xff] %v12339_v45 }
 0xca2   : > { %vm12326_vm7 = vmpackc.low %vm12325_vm12, %vm12325_vm12  ;;  %v3454_v31 = vsel %vm3438_vm2, 65537, %v12178_v62  ;;  %vm12335_vm12 = vnez %v12334_v9  ;;  %v12344_v9 = vmov 0  ;;  %v3723_v47 = vunpack.c.l.b16 %v3707_v40 }
 0xca3   : > { %vm9953_vm6 = vmor %vm12328_vm0, %vm12326_vm7  ;;  %v3470_v55 = vunpack.c.l.b16 %v3454_v31  ;;  %vm12332_vm0 = vnez %v12051_v59  ;;  %v12342_v31 = vmov 0  ;;  %v12346_v59 = vld [vmem:[#allocation52_spill] sm:$0xff] }
 0xca4   : > { %vm3396_vm1 = vmor %vm3380_vm14, %vm12290_vm4  ;;  %vm12356_vm4 = vnez %v12308_v32 }
 0xca5   : > { %vm3412_vm7 = vmpackc.low %vm3396_vm1, %vm3396_vm1 }
 0xca6   : > { %vm12333_vm2 = vmpackc.low %vm12332_vm0, %vm12332_vm0  ;;  %vm9996_vm0 = vcmp.ne.s32.totalorder %v3470_v55, 0  ;;  %v4594_v55 = vsel %vm9983_vm8, 1.0, %v11479_v46 }
 0xca7   : > { %vm9979_vm14 = vmor %vm12335_vm12, %vm12333_vm2  ;;  %v12345_v9 = vsel %vm9996_vm0, 4294967295, %v12344_v9  ;;  %vm12347_vm12 = vnez %v12346_v59  ;;  %v10019_v59 = vsel %vm9996_vm0, %v9537_v49, 0.0  ;;  %v3784_v1 = vadd.f32 %v4594_v55, %v3783_v26  ;;  %v12372_v26 = vld [vmem:[#allocation58_spill] sm:$0xff]  ;;  %v12386_v55 = vld [vmem:[#allocation44_spill] sm:$0xff] }
 0xca8   : > { %vm9989_vm10 = vmand %vm12341_vm15, %vm3412_vm7  ;;  %vm12350_vm7 = vnez %v12349_v0  ;;  %12353 = vst [vmem:[#allocation34_spill] sm:$0xff] %v10019_v59  ;;  %3527 = vadd.xlane.f32.xlu1 %v10019_v59  ;;  %v12357_v0 = vld [vmem:[#allocation40_spill] sm:$0xff]  ;;  %vm12373_vm8 = vnez %v12372_v26  ;;  %vm12382_vm0 = vnez %v12285_v33 }
 0xca9   : > { %v12343_v31 = vsel %vm9989_vm10, 4294967295, %v12342_v31  ;;  %vm3444_vm2 = vmand %vm9989_vm10, %vm12347_vm12  ;;  %vm12354_vm12 = vnez %v12267_v61  ;;  %vm12359_vm10 = vnez %v12055_v19  ;;  %v12361_v61 = vld [vmem:[#allocation55_spill] sm:$0xff] }
 0xcaa   : > { %vm12348_vm15 = vmpackc.low %vm12310_vm5, %vm12310_vm5  ;;  %v3460_v23 = vsel %vm3444_vm2, 65537, %v12178_v62  ;;  %vm12365_vm2 = vnez %v12062_v7  ;;  %v12389_v7 = vld [vmem:[#allocation46_spill] sm:$0xff] }
 0xcab   : > { %vm10012_vm9 = vmor %vm12350_vm7, %vm12348_vm15  ;;  %vm12358_vm15 = vnez %v12357_v0  ;;  %v3476_v45 = vunpack.c.l.b16 %v3460_v23  ;;  %v12367_v0 = vmov 0  ;;  %v12374_v23 = vmov 0 }
 0xcac   : > { %vm12355_vm1 = vmpackc.low %vm12354_vm12, %vm12354_vm12 }
 0xcad   : > { %vm3421_vm5 = vmand %vm12356_vm4, %vm12355_vm1  ;;  %vm12362_vm4 = vnez %v12361_v61 }
 0xcae   : > { %vm3437_vm7 = vmand %vm3421_vm5, %vm12358_vm15  ;;  %v3706_v40 = vsel %vm3421_vm5, 65537, %v12178_v62  ;;  %vm12366_vm5 = vcmp.ge.f32.partialorder %v9965_v44, 0.1 }
 0xcaf   : > { %vm12360_vm12 = vmpackc.low %vm12359_vm10, %vm12359_vm10  ;;  %v3453_v15 = vsel %vm3437_vm7, 65537, %v12178_v62  ;;  %v3722_v59 = vunpack.c.l.b16 %v3706_v40  ;;  %vm10074_vm10 = vcmp.ne.s32.totalorder %v3723_v47, 0 }
 0xcb0   : > { %vm10043_vm1 = vmor %vm12362_vm4, %vm12360_vm12  ;;  %v3469_v19 = vunpack.c.l.b16 %v3453_v15  ;;  %vm10059_vm4 = vcmp.ne.s32.totalorder %v3476_v45, 0  ;;  %v12376_v15 = vmov 0  ;;  %v12379_v45 = vmov 0 }
 0xcb1   : > { %vm10052_vm15 = vmor %vm12366_vm5, %vm12365_vm2  ;;  %v12377_v15 = vsel %vm10074_vm10, 4294967295, %v12376_v15  ;;  %vm10078_vm12 = vcmp.ne.s32.totalorder %v3722_v59, 0  ;;  %5184 = vmatpush3.xpose.msk.msra.mxu1 %vm10059_vm4, %v9872_v4 }
 0xcb2   : > { %v12368_v0 = vsel %vm10052_vm15, 4294967295, %v12367_v0  ;;  %vm12371_vm7 = vmpackc.low %vm12365_vm2, %vm12365_vm2  ;;  %12378 = vst [vmem:[#allocation9_spill] sm:$0xff] %v12377_v15  ;;  %v12380_v45 = vsel %vm10078_vm12, 4294967295, %v12379_v45  ;;  %v4595_v59 = vsel %vm10078_vm12, 1.0, %v11479_v46  ;;  %5185 = vmatprep.subr.mxu1 %v11479_v46  ;;  %v12397_v15 = vld [vmem:[#allocation48_spill] sm:$0xff] }
 0xcb3   : > { %vm10070_vm5 = vmor %vm12373_vm8, %vm12371_vm7  ;;  %12381 = vst [vmem:[#allocation43_spill] sm:$0xff] %v12380_v45  ;;  %vm10092_vm8 = vcmp.ne.s32.totalorder %v3469_v19, 0  ;;  %vm12387_vm7 = vnez %v12386_v55  ;;  %v3785_v19 = vadd.f32 %v4595_v59, %v3784_v1  ;;  %v4596_v55 = vsel %vm10074_vm10, 1.0, %v11479_v46 }
 0xcb4   : > { %v12375_v23 = vsel %vm10070_vm5, 4294967295, %v12374_v23  ;;  %vm12383_vm15 = vmpackc.low %vm12382_vm0, %vm12382_vm0  ;;  %v10106_v35 = vsel %vm10092_vm8, %v9588_v58, 0.0 }
 0xcb5   : > { %vm3424_vm2 = vmand %vm9953_vm6, %vm12383_vm15  ;;  %3525 = vadd.xlane.f32.xlu0 %v10106_v35  ;;  %v3786_v22 = vadd.f32 %v4596_v55, %v3785_v19 }
 0xcb6   : > { %vm3440_vm5 = vmand %vm3424_vm2, %vm12387_vm7  ;;  %v3709_v33 = vsel %vm3424_vm2, 65537, %v12178_v62  ;;  %vm12390_vm2 = vnez %v12389_v7  ;;  %v12394_v7 = vmov 0 }
 0xcb7   : > { %v3456_v40 = vsel %vm3440_vm5, 65537, %v12178_v62  ;;  %v3725_v26 = vunpack.c.l.b16 %v3709_v33  ;;  %vm12388_vm6 = vmpackc.low %vm9844_vm13, %vm9844_vm13 }
 0xcb8   : > { %vm3423_vm0 = vmand %vm9979_vm14, %vm12388_vm6  ;;  %v3472_v45 = vunpack.c.l.b16 %v3456_v40  ;;  %vm12398_vm6 = vnez %v12397_v15 }
 0xcb9   : > { %vm3439_vm15 = vmand %vm3423_vm0, %vm12390_vm2  ;;  %v3708_v1 = vsel %vm3423_vm0, 65537, %v12178_v62  ;;  %vm10135_vm7 = vcmp.ne.s32.totalorder %v3725_v26, 0 }
 0xcba   : > { %v3455_v59 = vsel %vm3439_vm15, 65537, %v12178_v62  ;;  %v3724_v33 = vunpack.c.l.b16 %v3708_v1  ;;  %vm12391_vm13 = vmpackc.low %vm9902_vm3, %vm9902_vm3  ;;  %vm10131_vm5 = vcmp.ne.s32.totalorder %v3472_v45, 0  ;;  %v12395_v7 = vsel %vm10135_vm7, 4294967295, %v12394_v7 }
 0xcbb   : > { %vm3426_vm14 = vmand %vm10012_vm9, %vm12391_vm13  ;;  %12396 = vst [vmem:[#allocation11_spill] sm:$0xff] %v12395_v7  ;;  %v3471_v40 = vunpack.c.l.b16 %v3455_v59  ;;  %v10145_v14 = vsel %vm10131_vm5, %v9637_v17, 0.0  ;;  %v12406_v59 = vld [vmem:[#allocation50_spill] sm:$0xff] }
 0xcbc   : > { %vm3442_vm0 = vmand %vm3426_vm14, %vm12398_vm6  ;;  %v3711_v19 = vsel %vm3426_vm14, 65537, %v12178_v62  ;;  %12399 = vst [vmem:[#allocation57_spill] sm:$0xff] %v10145_v14  ;;  %vm10147_vm9 = vcmp.ne.s32.totalorder %v3724_v33, 0  ;;  %3531 = vadd.xlane.f32.xlu1 %v10145_v14  ;;  %vm12407_vm13 = vnez %v12406_v59  ;;  %vm12410_vm6 = vnez %v12375_v23 }
 0xcbd   : > { %v12401_v3 = vsel %vm10147_vm9, 4294967295, %v12400_v3  ;;  %v3458_v45 = vsel %vm3442_vm0, 65537, %v12178_v62  ;;  %v3727_v26 = vunpack.c.l.b16 %v3711_v19  ;;  %vm12403_vm3 = vmpackc.low %vm9918_vm11, %vm9918_vm11  ;;  %vm10160_vm15 = vcmp.ne.s32.totalorder %v3471_v40, 0 }
 0xcbe   : > { %12402 = vst [vmem:[#allocation14_spill] sm:$0xff] %v12401_v3  ;;  %vm3425_vm2 = vmand %vm10043_vm1, %vm12403_vm3  ;;  %v4597_v55 = vsel %vm10147_vm9, 1.0, %v11479_v46  ;;  %v3474_v1 = vunpack.c.l.b16 %v3458_v45  ;;  %v10173_v32 = vsel %vm10160_vm15, %v9699_v12, 0.0  ;;  %vm12408_vm11 = vnez %v12368_v0  ;;  %v12415_v0 = vld [vmem:[#allocation54_spill] sm:$0xff] }
 0xcbf   : > { %vm3441_vm14 = vmand %vm3425_vm2, %vm12407_vm13  ;;  %v3710_v39 = vsel %vm3425_vm2, 65537, %v12178_v62  ;;  %v3787_v33 = vadd.f32 %v4597_v55, %v3786_v22  ;;  %v4598_v45 = vsel %vm10135_vm7, 1.0, %v11479_v46  ;;  %3529 = vadd.xlane.f32.xlu0 %v10173_v32  ;;  %vm12416_vm2 = vnez %v12415_v0 }
 0xcc0   : > { %v3457_v40 = vsel %vm3441_vm14, 65537, %v12178_v62  ;;  %vm12409_vm1 = vmpackc.low %vm12408_vm11, %vm12408_vm11  ;;  %vm10191_vm3 = vcmp.ne.s32.totalorder %v3474_v1, 0  ;;  %v3726_v59 = vunpack.c.l.b16 %v3710_v39  ;;  %vm10205_vm14 = vcmp.ne.s32.totalorder %v3727_v26, 0 }
 0xcc1   : > { %vm10183_vm0 = vmand %vm12410_vm6, %vm12409_vm1  ;;  %v3473_v55 = vunpack.c.l.b16 %v3457_v40  ;;  %v10202_v23 = vsel %vm10191_vm3, %v9754_v41, 0.0  ;;  %v3788_v7 = vadd.f32 %v4598_v45, %v3787_v33  ;;  %v10229_v45 = vsel %vm10059_vm4, %v9872_v4, 0.0  ;;  %v12466_v40 = vld [vmem:[#allocation33_spill] sm:$0xff] }
 0xcc2   : > { %vm3443_vm13 = vmand %vm10183_vm0, %vm12416_vm2  ;;  %3535 = vadd.xlane.f32.xlu1 %v10202_v23  ;;  %vm10214_vm1 = vcmp.ne.s32.totalorder %v3726_v59, 0  ;;  %vm12423_vm4 = vnez %v12345_v9  ;;  %vm12428_vm2 = vnez %v12221_v16 }
 0xcc3   : > { %v3459_v3 = vsel %vm3443_vm13, 65537, %v12178_v62  ;;  %vm10210_vm11 = vcmp.ne.s32.totalorder %v3473_v55, 0  ;;  %v4599_v26 = vsel %vm10214_vm1, 1.0, %v11479_v46  ;;  %vm12429_vm13 = vnez %v12243_v2 }
 0xcc4   : > { %v3475_v0 = vunpack.c.l.b16 %v3459_v3  ;;  %v10221_v33 = vsel %vm10210_vm11, %v9813_v20, 0.0  ;;  %v3789_v55 = vadd.f32 %v4599_v26, %v3788_v7  ;;  %v4600_v3 = vsel %vm10205_vm14, 1.0, %v11479_v46 }
 0xcc5   : > { %3533 = vadd.xlane.f32.xlu0 %v10221_v33 }
 0xcc6   : > { %vm3491_vm6 = vcmp.ne.s32.totalorder %v3475_v0, 0  ;;  %3539 = vadd.xlane.f32.xlu1 %v10229_v45  ;;  %v3790_v14 = vadd.f32 %v4600_v3, %v3789_v55 }
 0xcc7   : > { %v10236_v59 = vsel %vm3491_vm6, %v9965_v44, 0.0  ;;  %5186 = vmatpush3.xpose.msk.msra.mxu1 %vm3491_vm6, %v9965_v44  ;;  %vm12431_vm6 = vnez %v12204_v36 }
 0xcc8   : > { %5187 = vmatprep.subr.mxu1 %v11479_v46 }
 0xcc9   : > { %3537 = vadd.xlane.f32.xlu0 %v10236_v59 }
 0xccb   : > { %5188 = vmatpush3.xpose.msk.msra.mxu1 %vm10191_vm3, %v9754_v41  ;;  %vm12426_vm3 = vnez %v12261_v54 }
 0xccc   : > { %5189 = vmatprep.subr.mxu1 %v11479_v46 }
 0xccf   : > { %5190 = vmatpush3.xpose.msk.msra.mxu1 %vm10210_vm11, %v9813_v20  ;;  %vm12430_vm11 = vnez %v12188_v52 }
 0xcd0   : > { %5191 = vmatprep.subr.mxu1 %v11479_v46 }
 0xcd3   : > { %5192 = vmatpush3.xpose.msk.msra.mxu1 %vm10131_vm5, %v9637_v17  ;;  %vm12424_vm5 = vnez %v12301_v25 }
 0xcd4   : > { %5193 = vmatprep.subr.mxu1 %v11479_v46 }
 0xcd7   : > { %5194 = vmatpush3.xpose.msk.msra.mxu1 %vm10160_vm15, %v9699_v12  ;;  %vm12425_vm15 = vnez %v12322_v11 }
 0xcd8   : > { %5195 = vmatprep.subr.mxu1 %v11479_v46 }
 0xcdb   : > { %5196 = vmatpush3.xpose.msk.msra.mxu1 %vm12423_vm4, %v9537_v49  ;;  %vm12434_vm4 = vcmask 261120  }
 0xcdc   : > { %5197 = vmatprep.subr.mxu1 %v11479_v46 }
 0xcdf   : > { %5198 = vmatpush3.xpose.msk.msra.mxu1 %vm10092_vm8, %v9588_v58  ;;  %vm12427_vm8 = vnez %v12280_v27 }
 0xce0   : > { %5199 = vmatprep.subr.mxu1 %v11479_v46 }
 0xce3   : > { %5200 = vmatpush3.xpose.msk.msra.mxu1 %vm12424_vm5, %v9476_v38  ;;  %vm12436_vm5 = vmmov %vm12434_vm4 }
 0xce4   : > { %5201 = vmatprep.subr.mxu1 %v11479_v46 }
 0xce7   : > { %5202 = vmatpush3.xpose.msk.msra.mxu1 %vm12425_vm15, %v9502_v13  ;;  %vm12437_vm15 = vmmov %vm12434_vm4 }
 0xce8   : > { %5203 = vmatprep.subr.mxu1 %v11479_v46 }
 0xceb   : > { %5204 = vmatpush3.xpose.msk.msra.mxu1 %vm12426_vm3, %v9445_v28  ;;  %v12432_v28 = vld [vmem:[#allocation61_spill] sm:$0xff]  ;;  %vm12438_vm3 = vmmov %vm12434_vm4 }
 0xcec   : > { %5205 = vmatprep.subr.mxu1 %v11479_v46 }
 0xcef   : > { %5206 = vmatpush3.xpose.msk.msra.mxu1 %vm12427_vm8, %v9468_v24  ;;  %v12433_v24 = vmov 1.0   ;;  %vm12439_vm8 = vmmov %vm12438_vm3 }
 0xcf0   : > { %5207 = vmatprep.subr.mxu1 %v11479_v46 }
 0xcf3   : > { %5208 = vmatpush3.xpose.msk.msra.mxu1 %vm12428_vm2, %v9416_v21  ;;  %v3867_v21 = vpack.c.bf16 %v9311_v37, %v9303_v57  ;;  %v3870_v57 = vpack.c.bf16 %v9267_v63, %v9255_v53  ;;  %v3871_v37 = vpack.c.bf16 %v9253_v51, %v9243_v6  ;;  %vm12440_vm2 = vmmov %vm12438_vm3  ;;  %v3712_v6 = vsel %vm10183_vm0, 65537, %v12178_v62 }
 0xcf4   : > { %5209 = vmatprep.subr.mxu1 %v11479_v46  ;;  %v3728_v51 = vunpack.c.l.b16 %v3712_v6 }
 0xcf7   : > { %5210 = vmatpush3.xpose.msk.msra.mxu1 %vm12429_vm13, %v9420_v56  ;;  %v12435_v56 = vld [vmem:[#allocation65_spill] sm:$0xff]  ;;  %vm12441_vm13 = vmmov %vm12440_vm2 }
 0xcf8   : > { %5211 = vmatprep.subr.mxu1 %v11479_v46 }
 0xcfb   : > { %5212 = vmatpush3.xpose.msk.msra.mxu1 %vm12430_vm11, %v9411_v60  ;;  %v3868_v60 = vpack.c.bf16 %v9299_v50, %v9288_v5  ;;  %v3872_v5 = vpack.c.bf16 %v9234_v43, %v9224_v48  ;;  %vm12443_vm11 = vmmov %vm12440_vm2 }
 0xcfc   : > { %5213 = vmatprep.subr.mxu1 %v11479_v46 }
 0xcff   : > { %5214 = vmatpush3.xpose.msk.msra.mxu1 %vm12431_vm6, %v9413_v42  ;;  %v3869_v42 = vpack.c.bf16 %v9284_v18, %v9272_v10  ;;  %v3873_v10 = vpack.c.bf16 %v9222_v30, %v9207_v29  ;;  %v12442_v18 = vld [vmem:[#allocation39_spill] sm:$0xff]  ;;  %vm12444_vm6 = vnez %v12343_v31  ;;  %v3512_v30 = vpop.xlane.xlu1 %3511  ;;  %v12482_v29 = vld [vmem:[#allocation5_spill] sm:$0xff] }
 0xd00   : > { %5218 = vmatprep.subr.bf16.mxu1 %v12432_v28  ;;  %v3874_v53 = vpack.c.bf16 %v12442_v18, %v9194_v8  ;;  %v3713_v48 = vsel %vm12444_vm6, 65537, %v12178_v62  ;;  %5599 = vrsqrt.f32 %v3512_v30  ;;  %vm3542_vm0 = vcmp.gt.f32.partialorder %v3512_v30, 0.0 }
 0xd01   : > { %v3729_v43 = vunpack.c.l.b16 %v3713_v48 }
 0xd02   : > { %5216 = vmatmul.mubr.f32.vlgmr.msra.gmra.mxu1 %v12433_v24 }
 0xd03   : > { %5219 = vmatpush3.bf16.msra.mxu1 %v12432_v28  ;;  %5222 = vmatprep.mubr.msk.bf16.mxu1 %vm12434_vm4, %v3867_v21  ;;  %vm10332_vm4 = vcmp.ne.s32.totalorder %v3728_v51, 0  ;;  %v12451_v51 = vld [vmem:[#allocation64_spill] sm:$0xff] }
 0xd04   : > { %5220 = vmatprep.subr.bf16.mxu1 %v12435_v56  ;;  %v3510_v63 = vpop.xlane.xlu0 %3509  ;;  %v4601_v8 = vsel %vm10332_vm4, 1.0, %v11479_v46 }
 0xd05   : > { %v3791_v38 = vadd.f32 %v4601_v8, %v3790_v14  ;;  %5601 = vrsqrt.f32 %v3510_v63 }
 0xd07   : > { %5221 = vmatpush3.bf16.msra.mxu1 %v12435_v56 }
 0xd0a   : > { %5223 = vmatmul.mubr.msk.bf16.vlgmr.msra.gmra.mxu1 %vm12436_vm5, %v3868_v60  ;;  %vm10339_vm5 = vcmp.ne.s32.totalorder %v3729_v43, 0  ;;  %v10343_v13 = vpop.xlane.xlu1 %3515 }
 0xd0b   : > { %5226 = vmatprep.mubr.msk.bf16.mxu1 %vm12437_vm15, %v3869_v42  ;;  %v4602_v62 = vsel %vm10339_vm5, 1.0, %v11479_v46  ;;  %vm3541_vm15 = vcmp.gt.f32.partialorder %v3510_v63, 0.0 }
 0xd0c   : > { %v3792_v52 = vadd.f32 %v4602_v62, %v3791_v38 }
 0xd0d   : > { %v5600_v34 = vpop.eup %5599 }
 0xd0e   : > { %v3793_v36 = vrot.slane %v3792_v52, 4  ;;  %v3574_v0 = vsel %vm3542_vm0, %v5600_v34, 0.0 }
 0xd10   : > { %v10345_v49 = vpop.xlane.xlu0 %3513  ;;  %v3794_v16 = vadd.f32 %v3793_v36, %v3792_v52 }
 0xd12   : > { %5227 = vmatmul.mubr.msk.bf16.gmra.mxu1 %vm12438_vm3, %v3870_v57  ;;  %v3795_v41 = vrot.slane %v3794_v16, 2  ;;  %v5602_v7 = vpop.eup %5601  ;;  %v12449_v57 = vld [vmem:[#allocation51_spill] sm:$0xff] }
 0xd13   : > { %5230 = vmatprep.mubr.msk.bf16.mxu1 %vm12439_vm8, %v3871_v37  ;;  %v3573_v26 = vsel %vm3541_vm15, %v5602_v7, 0.0  ;;  %v3663_v37 = vmul.f32 %v3574_v0, %v12449_v57 }
 0xd14   : > { %v3796_v20 = vadd.f32 %v3795_v41, %v3794_v16 }
 0xd16   : > { %v10350_v58 = vpop.xlane.xlu1 %3519  ;;  %v3797_v4 = vrot.slane %v3796_v20, 1 }
 0xd17   : > { %vm3546_vm6 = vcmp.gt.f32.partialorder %v10350_v58, 0.0 }
 0xd18   : > { %v3798_v11 = vadd.f32 %v3797_v4, %v3796_v20 }
 0xd1a   : > { %5231 = vmatmul.mubr.msk.bf16.gmra.mxu1 %vm12440_vm2, %v3872_v5  ;;  %v3799_v31 = vadd.f32 1.0, %v3798_v11  ;;  %v12450_v5 = vld [vmem:[#allocation47_spill] sm:$0xff] }
 0xd1b   : > { %5234 = vmatprep.mubr.msk.bf16.mxu1 %vm12441_vm13, %v3873_v10  ;;  %v3662_v10 = vmul.f32 %v3573_v26, %v12450_v5  ;;  %vm3543_vm13 = vcmp.gt.f32.partialorder %v10345_v49, 0.0 }
 0xd1c   : > { %v10352_v17 = vpop.xlane.xlu0 %3517 }
 0xd1d   : > { %vm3545_vm0 = vcmp.gt.f32.partialorder %v10352_v17, 0.0 }
 0xd22   : > { %5235 = vmatmul.mubr.msk.bf16.gmra.mxu1 %vm12443_vm11, %v3874_v53  ;;  %v10354_v12 = vpop.xlane.xlu1 %3523  ;;  %vm3544_vm11 = vcmp.gt.f32.partialorder %v10343_v13, 0.0 }
 0xd29   : > { %v10356_v2 = vpop.xlane.xlu0 %3521 }
 0xd31   : > { %v10358_v54 = vpop.xlane.xlu1 %3527 }
 0xd3e   : > { %v10360_v27 = vpop.xlane.xlu0 %3525 }
 0xd45   : > { %v10362_v25 = vpop.xlane.xlu1 %3531 }
 0xd48   : > { %v10364_v46 = vpop.xlane.xlu0 %3529 }
 0xd4b   : > { %v3536_v44 = vpop.xlane.xlu1 %3535 }
 0xd4c   : > { %5603 = vrsqrt.f32 %v3536_v44  ;;  %vm3554_vm3 = vcmp.gt.f32.partialorder %v3536_v44, 0.0 }
 0xd4e   : > { %v3534_v9 = vpop.xlane.xlu0 %3533 }
 0xd4f   : > { %5605 = vrsqrt.f32 %v3534_v9  ;;  %vm3553_vm8 = vcmp.gt.f32.partialorder %v3534_v9, 0.0  ;;  %v3540_v24 = vpop.xlane.xlu1 %3539 }
 0xd50   : > { %5607 = vrcp.f32 %v3799_v31 }
 0xd52   : > { %v3538_v55 = vpop.xlane.xlu0 %3537 }
 0xd53   : > { %vm3555_vm15 = vcmp.gt.f32.partialorder %v3538_v55, 0.0 }
 0xd59   : > { %v5604_v15 = vpop.eup %5603 }
 0xd5a   : > { %v3586_v28 = vsel %vm3554_vm3, %v5604_v15, 0.0  ;;  %vm3556_vm3 = vcmp.gt.f32.partialorder %v3540_v24, 0.0 }
 0xd5b   : > { %v3675_v53 = vmul.f32 %v3586_v28, %v10202_v23 }
 0xd5c   : > { %v5606_v19 = vpop.eup %5605 }
 0xd5d   : > { %v5608_v39 = vpop.eup %5607  ;;  %v3585_v21 = vsel %vm3553_vm8, %v5606_v19, 0.0  ;;  %vm3547_vm8 = vcmp.gt.f32.partialorder %v10356_v2, 0.0 }
 0xd5e   : > { %v3801_v60 = vmul.f32 1.442695, %v5608_v39  ;;  %v3674_v6 = vmul.f32 %v3585_v21, %v10221_v33  ;;  %v12452_v39 = vld [vmem:[#allocation45_spill] sm:$0xff] }
 0xdc2   : > { %v3655_v61 = vpop.f32.mrf.mxu1 }
 0xdc3   : > { %5609 = vrsqrt.f32 %v3655_v61  ;;  %vm3659_vm2 = vcmp.gt.f32.partialorder %v3655_v61, 0.0 }
 0xdc4   : > { %v5217_v47 = vpop.f32.mrf.mxu1  ;;  %5611 = vrsqrt.f32 %v10343_v13 }
 0xdc5   : > { %5613 = vrsqrt.f32 %v10345_v49 }
 0xdc6   : > { %5615 = vrsqrt.f32 %v10350_v58 }
 0xdc7   : > { %5617 = vrsqrt.f32 %v10352_v17  ;;  %v12453_v17 = vld [vmem:[#allocation23_spill] sm:$0xff] }
 0xdc8   : > { %5619 = vrsqrt.f32 %v3538_v55 }
 0xdc9   : > { %5621 = vrsqrt.f32 %v3540_v24 }
 0xdca   : > { %v10366_v14 = vpop.f32.mrf.mxu1  ;;  %5623 = vpow2.f32 %v3801_v60 }
 0xdcb   : > { %5625 = vrsqrt.f32 %v10356_v2 }
 0xdcc   : > { %v10369_v22 = vpop.f32.mrf.mxu1  ;;  %5627 = vrsqrt.f32 %v10354_v12 }
 0xdce   : > { %v10372_v3 = vpop.f32.mrf.mxu1 }
 0xdd0   : > { %v5610_v56 = vpop.eup %5609  ;;  %v10376_v42 = vpop.f32.mrf.mxu1 }
 0xdd1   : > { %v3661_v18 = vsel %vm3659_vm2, %v5610_v56, 0.0  ;;  %v5612_v20 = vpop.eup %5611 }
 0xdd2   : > { %v10383_v48 = vrot.slane %v3661_v18, %v12451_v51  ;;  %v10385_v30 = vpop.f32.mrf.mxu1  ;;  %v5614_v4 = vpop.eup %5613  ;;  %v3576_v19 = vsel %vm3544_vm11, %v5612_v20, 0.0  ;;  %v12458_v20 = vld [vmem:[#allocation60_spill] sm:$0xff] }
 0xdd3   : > { %v5616_v44 = vpop.eup %5615  ;;  %v3575_v47 = vsel %vm3543_vm13, %v5614_v4, 0.0  ;;  %v3665_v55 = vmul.f32 %v3576_v19, %v12453_v17  ;;  %vm12459_vm13 = vnez %v12458_v20 }
 0xdd4   : > { %v10387_v43 = vpop.f32.mrf.mxu1  ;;  %v3682_v63 = vmul.f32 %v10383_v48, %v3662_v10  ;;  %v3683_v8 = vmul.f32 %v10383_v48, %v3663_v37  ;;  %v3694_v38 = vmul.f32 %v10383_v48, %v3674_v6  ;;  %v3695_v62 = vmul.f32 %v10383_v48, %v3675_v53  ;;  %v5618_v9 = vpop.eup %5617  ;;  %v12454_v10 = vld [vmem:[#allocation56_spill] sm:$0xff]  ;;  %v12455_v53 = vld [vmem:[#allocation66_spill] sm:$0xff] }
 0xdd5   : > { %v5620_v61 = vpop.eup %5619  ;;  %v3664_v0 = vmul.f32 %v3575_v47, %v12452_v39  ;;  %v3578_v28 = vsel %vm3546_vm6, %v5616_v44, 0.0  ;;  %v3577_v21 = vsel %vm3545_vm0, %v5618_v9, 0.0  ;;  %v12460_v44 = vld [vmem:[#allocation4_spill] sm:$0xff]  ;;  %v12462_v47 = vld [vmem:[#allocation3_spill] sm:$0xff] }
 0xdd6   : > { %v10394_v23 = vpop.f32.mrf.mxu1  ;;  %v3803_v33 = vmul.f32 1.442695, %v3682_v63  ;;  %v3805_v52 = vmul.f32 1.442695, %v3683_v8  ;;  %v3827_v36 = vmul.f32 1.442695, %v3694_v38  ;;  %v5622_v7 = vpop.eup %5621  ;;  %v3667_v18 = vmul.f32 %v3578_v28, %v12454_v10 }
 0xdd7   : > { %v3829_v16 = vmul.f32 1.442695, %v3695_v62  ;;  %v3587_v49 = vsel %vm3555_vm15, %v5620_v61, 0.0  ;;  %v10414_v26 = vpop.eup %5623  ;;  %v3588_v56 = vsel %vm3556_vm3, %v5622_v7, 0.0  ;;  %v3684_v24 = vmul.f32 %v10383_v48, %v3664_v0  ;;  %v12456_v62 = vld [vmem:[#allocation63_spill] sm:$0xff]  ;;  %v12468_v10 = vld [vmem:[#allocation25_spill] sm:$0xff] }
 0xdd8   : > { %v10397_v41 = vpop.f32.mrf.mxu1  ;;  %5629 = vpow2.f32 %v3803_v33  ;;  %v5626_v60 = vpop.eup %5625  ;;  %v3676_v57 = vmul.f32 %v3587_v49, %v10236_v59  ;;  %v3666_v6 = vmul.f32 %v3577_v21, %v12455_v53  ;;  %v3677_v51 = vmul.f32 %v3588_v56, %v10229_v45 }
 0xdd9   : > { %5631 = vpow2.f32 %v3805_v52  ;;  %v5628_v58 = vpop.eup %5627  ;;  %v3579_v8 = vsel %vm3547_vm8, %v5626_v60, 0.0  ;;  %vm12457_vm2 = vnez %v12456_v62  ;;  %v3685_v59 = vmul.f32 %v10383_v48, %v3665_v55 }
 0xdda   : > { %v10399_v11 = vpop.f32.mrf.mxu1  ;;  %5633 = vpow2.f32 %v3827_v36  ;;  %v3696_v52 = vmul.f32 %v10383_v48, %v3676_v57  ;;  %vm12461_vm11 = vnez %v12460_v44  ;;  %v3697_v45 = vmul.f32 %v10383_v48, %v3677_v51 }
 0xddb   : > { %5635 = vpow2.f32 %v3829_v16  ;;  %vm12463_vm6 = vnez %v12462_v47  ;;  %v3807_v39 = vmul.f32 1.442695, %v3684_v24  ;;  %v3686_v0 = vmul.f32 %v10383_v48, %v3666_v6 }
 0xddc   : > { %5637 = vrsqrt.f32 %v10360_v27  ;;  %v10402_v31 = vpop.f32.mrf.mxu1  ;;  %vm3548_vm15 = vcmp.gt.f32.partialorder %v10354_v12, 0.0  ;;  %v3809_v57 = vmul.f32 1.442695, %v3685_v59  ;;  %vm3549_vm3 = vcmp.gt.f32.partialorder %v10360_v27, 0.0  ;;  %v12470_v59 = vld [vmem:[#allocation34_spill] sm:$0xff] }
 0xddd   : > { %5639 = vrsqrt.f32 %v10358_v54  ;;  %v3580_v24 = vsel %vm3548_vm15, %v5628_v58, 0.0  ;;  %v3668_v53 = vmul.f32 %v3579_v8, %v12468_v10  ;;  %v3833_v6 = vmul.f32 1.442695, %v3697_v45  ;;  %v12488_v10 = vld [vmem:[#allocation10_spill] sm:$0xff] }
 0xdde   : > { %v10406_v34 = vpop.f32.mrf.mxu1  ;;  %5641 = vrsqrt.f32 %v10364_v46  ;;  %v3811_v58 = vmul.f32 1.442695, %v3686_v0  ;;  %vm3551_vm8 = vcmp.gt.f32.partialorder %v10364_v46, 0.0  ;;  %v4005_v0 = vpack.c.bf16 %v10372_v3, %v10366_v14 }
 0xddf   : > { %5643 = vrsqrt.f32 %v10362_v25 }
 0xde0   : > { %v10411_v15 = vpop.f32.mrf.mxu1  ;;  %5645 = vpow2.f32 %v3807_v39 }
 0xde1   : > { %5647 = vpow2.f32 %v3809_v57  ;;  %v12484_v57 = vld [vmem:[#allocation41_spill] sm:$0xff] }
 0xde2   : > { %v5236_v13 = vpop.f32.mrf.mxu1 }
 0xde4   : > { %v3981_v37 = vpop.f32.mrf.mxu1 }
 0xde5   : > { %v5630_v5 = vpop.eup %5629 }
 0xde6   : > { %v5632_v63 = vpop.eup %5631  ;;  %v5237_v38 = vpop.f32.mrf.mxu1  ;;  %v3835_v33 = vsel %vm12457_vm2, %v5630_v5, 0.0  ;;  %v3831_v5 = vmul.f32 1.442695, %v3696_v52  ;;  %v4008_v52 = vpack.c.bf16 %v10411_v15, %v10402_v31  ;;  %vm3552_vm2 = vcmp.gt.f32.partialorder %v10362_v25, 0.0 }
 0xde7   : > { %v5634_v36 = vpop.eup %5633  ;;  %v4011_v16 = vpack.c.bf16 %v5237_v38, %v5236_v13  ;;  %v3836_v4 = vsel %vm12459_vm13, %v5632_v63, 0.0  ;;  %v3851_v2 = vsel %vm12461_vm11, %v10414_v26, %v3835_v33  ;;  %v12464_v13 = vld [vmem:[#allocation35_spill] sm:$0xff]  ;;  %v4009_v63 = vpack.c.bf16 %v10406_v34, %v10399_v11 }
 0xde8   : > { %v5636_v9 = vpop.eup %5635  ;;  %v3984_v61 = vpop.f32.mrf.mxu1  ;;  %v3852_v7 = vsel %vm12463_vm6, %v10414_v26, %v3836_v4  ;;  %v3847_v19 = vsel %vm10214_vm1, %v5634_v36, 0.0  ;;  %vm12465_vm0 = vnez %v12464_v13  ;;  %vm12467_vm1 = vnez %v12466_v40  ;;  %v12476_v13 = vld [vmem:[#allocation53_spill] sm:$0xff]  ;;  %v12480_v40 = vld [vmem:[#allocation6_spill] sm:$0xff] }
 0xde9   : > { %v5638_v49 = vpop.eup %5637  ;;  %v4010_v28 = vpack.c.bf16 %v3984_v61, %v3981_v37  ;;  %5238 = vmatprep.subr.bf16.mxu0 %v4011_v16  ;;  %5270 = vmatprep.subr.bf16.mxu1 %v4011_v16  ;;  %v3996_v21 = vpack.c.bf16 %v3852_v7, %v3851_v2  ;;  %v3848_v56 = vsel %vm10205_vm14, %v5636_v9, 0.0  ;;  %v3863_v60 = vsel %vm12465_vm0, %v10414_v26, %v3847_v19  ;;  %v12471_v2 = vld [vmem:[#allocation57_spill] sm:$0xff] }
 0xdea   : > { %v5640_v17 = vpop.eup %5639  ;;  %5239 = vmatpush3.bf16.msra.mxu0 %v4011_v16  ;;  %5278 = vmatpush3.bf16.msra.mxu1 %v4011_v16  ;;  %v3864_v55 = vsel %vm12467_vm1, %v10414_v26, %v3848_v56  ;;  %v3687_v37 = vmul.f32 %v10383_v48, %v3667_v18  ;;  %vm3550_vm14 = vcmp.gt.f32.partialorder %v10358_v54, 0.0  ;;  %v3581_v12 = vsel %vm3549_vm3, %v5638_v49, 0.0  ;;  %v12469_v18 = vld [vmem:[#allocation17_spill] sm:$0xff] }
 0xdeb   : > { %5254 = vmatprep.mubr.bf16.mxu0 %v3996_v21  ;;  %v4002_v1 = vpack.c.bf16 %v3864_v55, %v3863_v60  ;;  %5240 = vmatprep.subr.bf16.mxu0 %v4010_v28  ;;  %v3582_v51 = vsel %vm3550_vm14, %v5640_v17, 0.0  ;;  %v3669_v27 = vmul.f32 %v3580_v24, %v12469_v18  ;;  %v5642_v62 = vpop.eup %5641  ;;  %v3670_v8 = vmul.f32 %v3581_v12, %v10106_v35  ;;  %v12474_v21 = vld [vmem:[#allocation32_spill] sm:$0xff]  ;;  %v12478_v17 = vld [vmem:[#allocation2_spill] sm:$0xff] }
 0xdec   : > { %5271 = vmatprep.subr.bf16.mxu1 %v4010_v28  ;;  %v3813_v38 = vmul.f32 1.442695, %v3687_v37  ;;  %5649 = vpow2.f32 %v3831_v5  ;;  %v3688_v54 = vmul.f32 %v10383_v48, %v3668_v53  ;;  %v5644_v33 = vpop.eup %5643  ;;  %v3671_v11 = vmul.f32 %v3582_v51, %v12470_v59  ;;  %v12486_v24 = vld [vmem:[#allocation38_spill] sm:$0xff]  ;;  %v12490_v12 = vld [vmem:[#allocation8_spill] sm:$0xff] }
 0xded   : > { %5266 = vmatprep.mubr.bf16.mxu1 %v4002_v1  ;;  %5651 = vpow2.f32 %v3833_v6  ;;  %v3689_v34 = vmul.f32 %v10383_v48, %v3669_v27  ;;  %v3690_v36 = vmul.f32 %v10383_v48, %v3670_v8  ;;  %v3583_v35 = vsel %vm3551_vm8, %v5642_v62, 0.0  ;;  %v5646_v47 = vpop.eup %5645  ;;  %v12494_v8 = vld [vmem:[#allocation7_spill] sm:$0xff] }
 0xdee   : > { %5241 = vmatpush3.bf16.msra.mxu0 %v4010_v28  ;;  %5279 = vmatpush3.bf16.msra.mxu1 %v4010_v28  ;;  %5653 = vpow2.f32 %v3811_v58  ;;  %v3691_v16 = vmul.f32 %v10383_v48, %v3671_v11  ;;  %v3584_v20 = vsel %vm3552_vm2, %v5644_v33, 0.0  ;;  %v3815_v4 = vmul.f32 1.442695, %v3688_v54 }
 0xdef   : > { %5242 = vmatprep.subr.bf16.mxu0 %v4009_v63  ;;  %5272 = vmatprep.subr.bf16.mxu1 %v4009_v63  ;;  %5655 = vpow2.f32 %v3813_v38  ;;  %v3817_v44 = vmul.f32 1.442695, %v3689_v34  ;;  %v3672_v46 = vmul.f32 %v3583_v35, %v10173_v32  ;;  %v4007_v31 = vpack.c.bf16 %v10394_v23, %v10385_v30  ;;  %v5648_v30 = vpop.eup %5647  ;;  %v12492_v38 = vld [vmem:[#allocation21_spill] sm:$0xff] }
 0xdf0   : > { %v3819_v15 = vmul.f32 1.442695, %v3690_v36  ;;  %v3673_v45 = vmul.f32 %v3584_v20, %v12471_v2  ;;  %v3821_v25 = vmul.f32 1.442695, %v3691_v16  ;;  %5657 = vpow2.f32 %v3815_v4  ;;  %v12498_v36 = vld [vmem:[#allocation16_spill] sm:$0xff]  ;;  %v12500_v16 = vld [vmem:[#allocation13_spill] sm:$0xff] }
 0xdf1   : > { %v3692_v9 = vmul.f32 %v10383_v48, %v3672_v46  ;;  %5659 = vpow2.f32 %v3817_v44  ;;  %v4006_v32 = vpack.c.bf16 %v10397_v41, %v10387_v43  ;;  %v4004_v43 = vpack.c.bf16 %v10376_v42, %v10369_v22  ;;  %v12472_v41 = vld [vmem:[#allocation15_spill] sm:$0xff]  ;;  %v12502_v44 = vld [vmem:[#allocation24_spill] sm:$0xff] }
 0xdf2   : > { %5243 = vmatpush3.bf16.msra.mxu0 %v4009_v63  ;;  %5280 = vmatpush3.bf16.msra.mxu1 %v4009_v63  ;;  %v3693_v61 = vmul.f32 %v10383_v48, %v3673_v45  ;;  %5661 = vpow2.f32 %v3819_v15  ;;  %vm12473_vm13 = vnez %v12472_v41  ;;  %vm12475_vm11 = vnez %v12474_v21 }
 0xdf3   : > { %5244 = vmatprep.subr.bf16.mxu0 %v4008_v52  ;;  %5273 = vmatprep.subr.bf16.mxu1 %v4008_v52  ;;  %5663 = vpow2.f32 %v3821_v25  ;;  %v3823_v23 = vmul.f32 1.442695, %v3692_v9  ;;  %v3837_v28 = vsel %vm12473_vm13, %v5646_v47, 0.0  ;;  %v3838_v56 = vsel %vm12475_vm11, %v5648_v30, 0.0  ;;  %v12508_v47 = vld [vmem:[#allocation30_spill] sm:$0xff] }
 0xdf4   : > { %v3825_v19 = vmul.f32 1.442695, %v3693_v61  ;;  %vm12477_vm6 = vnez %v12476_v13  ;;  %vm12479_vm0 = vnez %v12478_v17  ;;  %vm12481_vm15 = vnez %v12480_v40 }
 0xdf5   : > { %5665 = vpow2.f32 %v3823_v23  ;;  %v3853_v55 = vsel %vm12481_vm15, %v10414_v26, %v3837_v28  ;;  %vm12487_vm1 = vnez %v12486_v24  ;;  %vm12489_vm3 = vnez %v12488_v10  ;;  %v12510_v23 = vld [vmem:[#allocation28_spill] sm:$0xff] }
 0xdf6   : > { %5245 = vmatpush3.bf16.msra.mxu0 %v4008_v52  ;;  %5281 = vmatpush3.bf16.msra.mxu1 %v4008_v52  ;;  %5667 = vpow2.f32 %v3825_v19  ;;  %vm12491_vm14 = vnez %v12490_v12  ;;  %vm12493_vm8 = vnez %v12492_v38  ;;  %vm12495_vm2 = vnez %v12494_v8 }
 0xdf7   : > { %5246 = vmatprep.subr.bf16.mxu0 %v4007_v31  ;;  %5274 = vmatprep.subr.bf16.mxu1 %v4007_v31  ;;  %vm12499_vm13 = vnez %v12498_v36  ;;  %vm12501_vm11 = vnez %v12500_v16 }
 0xdf9   : > { %v5650_v7 = vpop.eup %5649 }
 0xdfa   : > { %5247 = vmatpush3.bf16.msra.mxu0 %v4007_v31  ;;  %5282 = vmatpush3.bf16.msra.mxu1 %v4007_v31  ;;  %v5652_v39 = vpop.eup %5651  ;;  %v3849_v14 = vsel %vm10332_vm4, %v5650_v7, 0.0  ;;  %vm12483_vm4 = vnez %v12482_v29  ;;  %v12504_v31 = vld [vmem:[#allocation20_spill] sm:$0xff] }
 0xdfb   : > { %5248 = vmatprep.subr.bf16.mxu0 %v4006_v32  ;;  %5275 = vmatprep.subr.bf16.mxu1 %v4006_v32  ;;  %v5654_v49 = vpop.eup %5653  ;;  %v3850_v3 = vsel %vm10339_vm5, %v5652_v39, 0.0  ;;  %v3854_v50 = vsel %vm12483_vm4, %v10414_v26, %v3838_v56  ;;  %vm12485_vm5 = vnez %v12484_v57 }
 0xdfc   : > { %v5656_v48 = vpop.eup %5655  ;;  %v3839_v60 = vsel %vm12477_vm6, %v5654_v49, 0.0  ;;  %v3865_v37 = vsel %vm12485_vm5, %v10414_v26, %v3849_v14  ;;  %v3866_v1 = vsel %vm12487_vm1, %v10414_v26, %v3850_v3  ;;  %v3997_v58 = vpack.c.bf16 %v3854_v50, %v3853_v55  ;;  %v12512_v49 = vld [vmem:[#allocation29_spill] sm:$0xff] }
 0xdfd   : > { %v3840_v22 = vsel %vm12479_vm0, %v5656_v48, 0.0  ;;  %v5658_v42 = vpop.eup %5657  ;;  %v3855_v53 = vsel %vm12489_vm3, %v10414_v26, %v3839_v60  ;;  %v4003_v18 = vpack.c.bf16 %v3866_v1, %v3865_v37  ;;  %vm12503_vm6 = vnez %v12502_v44 }
 0xdfe   : > { %5249 = vmatpush3.bf16.msra.mxu0 %v4006_v32  ;;  %5283 = vmatpush3.bf16.msra.mxu1 %v4006_v32  ;;  %v5660_v5 = vpop.eup %5659  ;;  %v3856_v6 = vsel %vm12491_vm14, %v10414_v26, %v3840_v22  ;;  %v3841_v62 = vsel %vm12493_vm8, %v5658_v42, 0.0  ;;  %vm12511_vm0 = vnez %v12510_v23 }
 0xdff   : > { %5250 = vmatprep.subr.bf16.mxu0 %v4005_v0  ;;  %5276 = vmatprep.subr.bf16.mxu1 %v4005_v0  ;;  %v5662_v51 = vpop.eup %5661  ;;  %v3998_v27 = vpack.c.bf16 %v3856_v6, %v3855_v53  ;;  %v3842_v54 = vsel %vm12495_vm2, %v5660_v5, 0.0  ;;  %v3857_v35 = vsel %vm12499_vm13, %v10414_v26, %v3841_v62 }
 0xe00   : > { %v5664_v63 = vpop.eup %5663  ;;  %v3843_v59 = vsel %vm10078_vm12, %v5662_v51, 0.0  ;;  %v3858_v20 = vsel %vm12501_vm11, %v10414_v26, %v3842_v54  ;;  %vm12505_vm12 = vnez %v12504_v31 }
 0xe01   : > { %v3844_v34 = vsel %vm10074_vm10, %v5664_v63, 0.0  ;;  %v3859_v46 = vsel %vm12503_vm6, %v10414_v26, %v3843_v59  ;;  %v3999_v2 = vpack.c.bf16 %v3858_v20, %v3857_v35  ;;  %vm12509_vm10 = vnez %v12508_v47 }
 0xe02   : > { %5251 = vmatpush3.bf16.msra.mxu0 %v4005_v0  ;;  %5284 = vmatpush3.bf16.msra.mxu1 %v4005_v0  ;;  %v5666_v52 = vpop.eup %5665  ;;  %v3860_v15 = vsel %vm12505_vm12, %v10414_v26, %v3844_v34 }
 0xe03   : > { %5252 = vmatprep.subr.bf16.mxu0 %v4004_v43  ;;  %5277 = vmatprep.subr.bf16.mxu1 %v4004_v43  ;;  %v5668_v4 = vpop.eup %5667  ;;  %v4000_v45 = vpack.c.bf16 %v3860_v15, %v3859_v46  ;;  %v3845_v9 = vsel %vm10147_vm9, %v5666_v52, 0.0 }
 0xe04   : > { %v3846_v32 = vsel %vm10135_vm7, %v5668_v4, 0.0  ;;  %v3861_v30 = vsel %vm12509_vm10, %v10414_v26, %v3845_v9  ;;  %vm12513_vm7 = vcmask 261120  }
 0xe05   : > { %v3862_v7 = vsel %vm12511_vm0, %v10414_v26, %v3846_v32  ;;  %vm12514_vm9 = vmmov %vm12513_vm7 }
 0xe06   : > { %5253 = vmatpush3.bf16.msra.mxu0 %v4004_v43  ;;  %5285 = vmatpush3.bf16.msra.mxu1 %v4004_v43  ;;  %v4001_v19 = vpack.c.bf16 %v3862_v7, %v3861_v30  ;;  %vm12515_vm15 = vmmov %vm12513_vm7 }
 0xe07   : > { %vm12516_vm4 = vmmov %vm12513_vm7 }
 0xe08   : > { %vm12517_vm5 = vmmov %vm12516_vm4 }
 0xe09   : > { %5255 = vmatmul.mubr.bf16.vlgmr.msra.gmra.mxu0 %v3997_v58  ;;  %5267 = vmatmul.mubr.bf16.vlgmr.msra.gmra.mxu1 %v4003_v18  ;;  %vm12518_vm1 = vmmov %vm12516_vm4 }
 0xe0a   : > { %5258 = vmatprep.mubr.bf16.mxu0 %v3998_v27  ;;  %vm12519_vm3 = vmmov %vm12518_vm1 }
 0xe0b   : > { %vm12520_vm14 = vmmov %vm12518_vm1 }
 0xe0c   : > { %vm12521_vm8 = vmmov %vm12518_vm1 }
 0xe0d   : > { %vm12522_vm2 = vmmov %vm12518_vm1 }
 0xe0e   : > { %vm12523_vm13 = vmmov %vm12518_vm1 }
 0xe0f   : > { %vm12524_vm11 = vmmov %vm12518_vm1 }
 0xe10   : > { %vm12525_vm6 = vmmov %vm12518_vm1 }
 0xe11   : > { %5259 = vmatmul.mubr.bf16.gmra.mxu0 %v3999_v2  ;;  %vm12526_vm12 = vmmov %vm12518_vm1 }
 0xe12   : > { %5262 = vmatprep.mubr.bf16.mxu0 %v4000_v45  ;;  %vm12527_vm10 = vmmov %vm12518_vm1 }
 0xe13   : > { %vm12528_vm0 = vmmov %vm12518_vm1 }
 0xe19   : > { %5263 = vmatmul.mubr.bf16.gmra.mxu0 %v4001_v19 }
 0xec9   : > { %v5256_v39 = vpop.f32.mrf.mxu0  ;;  %v5268_v0 = vpop.f32.mrf.mxu1 }
 0xeca   : > { %v10540_v48 = vadd.f32 %v5256_v39, %v12512_v49  ;;  %v10598_v11 = vadd.f32 %v5268_v0, %v12512_v49 }
 0xecb   : > { %v4046_v43 = vpop.f32.mrf.mxu0  ;;  %v4094_v41 = vpop.f32.mrf.mxu1 }
 0xecc   : > { %v10543_v28 = vadd.f32 %v4046_v43, %v12512_v49  ;;  %v4115_v21 = vsel %vm12513_vm7, %v10540_v48, -inf  ;;  %v10549_v13 = vadd.f32 %v4094_v41, %v12512_v49  ;;  %v4151_v20 = vsel %vm12527_vm10, %v10598_v11, -inf  ;;  %vm12529_vm7 = vmmov %vm12528_vm0 }
 0xecd   : > { %v5257_v56 = vpop.f32.mrf.mxu0  ;;  %4116 = vmax.xlane.f32.xlu0 %v4115_v21  ;;  %v5269_v14 = vpop.f32.mrf.mxu1  ;;  %vm12543_vm10 = vmmov %vm12528_vm0 }
 0xece   : > { %v4058_v26 = vadd.f32 %v5257_v56, %v12512_v49  ;;  %v4109_v22 = vsel %vm12515_vm15, %v10543_v28, -inf  ;;  %v4145_v37 = vsel %vm12517_vm5, %v10549_v13, -inf  ;;  %v10608_v35 = vadd.f32 %v5269_v14, %v12512_v49  ;;  %vm12531_vm15 = vmmov %vm12528_vm0 }
 0xecf   : > { %v4049_v3 = vpop.f32.mrf.mxu0  ;;  %v4097_v42 = vpop.f32.mrf.mxu1  ;;  %vm12533_vm5 = vmmov %vm12528_vm0 }
 0xed0   : > { %v10552_v60 = vadd.f32 %v4049_v3, %v12512_v49  ;;  %v4118_v17 = vsel %vm12514_vm9, %v4058_v26, -inf  ;;  %v10558_v29 = vadd.f32 %v4097_v42, %v12512_v49  ;;  %v4154_v4 = vsel %vm12528_vm0, %v10608_v35, -inf  ;;  %vm12530_vm9 = vmmov %vm12528_vm0 }
 0xed1   : > { %4119 = vmax.xlane.f32.xlu1 %v4118_v17  ;;  %v5260_v40 = vpop.f32.mrf.mxu0  ;;  %4110 = vmax.xlane.f32.xlu0 %v4109_v22 }
 0xed2   : > { %v10561_v50 = vadd.f32 %v5260_v40, %v12512_v49  ;;  %v4112_v57 = vsel %vm12516_vm4, %v10552_v60, -inf  ;;  %v4148_v53 = vsel %vm12518_vm1, %v10558_v29, -inf  ;;  %vm12532_vm4 = vmmov %vm12528_vm0 }
 0xed3   : > { %v4062_v55 = vpop.f32.mrf.mxu0  ;;  %vm12534_vm1 = vmmov %vm12528_vm0 }
 0xed4   : > { %v10568_v5 = vadd.f32 %v4062_v55, %v12512_v49  ;;  %v4127_v12 = vsel %vm12519_vm3, %v10561_v50, -inf  ;;  %vm12535_vm3 = vmmov %vm12528_vm0 }
 0xed5   : > { %v5261_v24 = vpop.f32.mrf.mxu0  ;;  %4113 = vmax.xlane.f32.xlu1 %v4112_v57  ;;  %4146 = vmax.xlane.f32.xlu0 %v4145_v37 }
 0xed6   : > { %v10571_v10 = vadd.f32 %v5261_v24, %v12512_v49  ;;  %v4121_v27 = vsel %vm12521_vm8, %v10568_v5, -inf  ;;  %vm12537_vm8 = vmmov %vm12528_vm0 }
 0xed7   : > { %v4065_v1 = vpop.f32.mrf.mxu0 }
 0xed8   : > { %v10578_v63 = vadd.f32 %v4065_v1, %v12512_v49  ;;  %v4130_v18 = vsel %vm12520_vm14, %v10571_v10, -inf  ;;  %vm12536_vm14 = vmmov %vm12528_vm0 }
 0xed9   : > { %v5264_v6 = vpop.f32.mrf.mxu0  ;;  %4149 = vmax.xlane.f32.xlu1 %v4148_v53  ;;  %4128 = vmax.xlane.f32.xlu0 %v4127_v12 }
 0xeda   : > { %v10581_v58 = vadd.f32 %v5264_v6, %v12512_v49  ;;  %v4124_v54 = vsel %vm12522_vm2, %v10578_v63, -inf  ;;  %vm12538_vm2 = vmmov %vm12528_vm0 }
 0xedb   : > { %v4078_v51 = vpop.f32.mrf.mxu0 }
 0xedc   : > { %v10588_v62 = vadd.f32 %v4078_v51, %v12512_v49  ;;  %v4139_v33 = vsel %vm12523_vm13, %v10581_v58, -inf  ;;  %vm12539_vm13 = vmmov %vm12528_vm0 }
 0xedd   : > { %v5265_v38 = vpop.f32.mrf.mxu0  ;;  %4131 = vmax.xlane.f32.xlu1 %v4130_v18  ;;  %4122 = vmax.xlane.f32.xlu0 %v4121_v27 }
 0xede   : > { %v10591_v8 = vadd.f32 %v5265_v38, %v12512_v49  ;;  %v4133_v36 = vsel %vm12525_vm6, %v10588_v62, -inf  ;;  %vm12541_vm6 = vmmov %vm12528_vm0 }
 0xedf   : > { %v4081_v59 = vpop.f32.mrf.mxu0 }
 0xee0   : > { %v10601_v34 = vadd.f32 %v4081_v59, %v12512_v49  ;;  %v4142_v52 = vsel %vm12524_vm11, %v10591_v8, -inf  ;;  %vm12540_vm11 = vmmov %vm12528_vm0 }
 0xee1   : > { %4125 = vmax.xlane.f32.xlu1 %v4124_v54  ;;  %4140 = vmax.xlane.f32.xlu0 %v4139_v33 }
 0xee2   : > { %v4136_v16 = vsel %vm12526_vm12, %v10601_v34, -inf  ;;  %vm12542_vm12 = vmmov %vm12528_vm0 }
 0xee5   : > { %4143 = vmax.xlane.f32.xlu1 %v4142_v52  ;;  %4134 = vmax.xlane.f32.xlu0 %v4133_v36 }
 0xee9   : > { %4137 = vmax.xlane.f32.xlu1 %v4136_v16  ;;  %4152 = vmax.xlane.f32.xlu0 %v4151_v20 }
 0xeed   : > { %4155 = vmax.xlane.f32.xlu1 %v4154_v4 }
 0xf56   : > { %v4117_v44 = vpop.xlane.xlu0 %4116 }
 0xf57   : > { %v10617_v46 = vsub.f32 %v10540_v48, %v4117_v44 }
 0xf59   : > { %v4177_v31 = vmul.f32 1.442695, %v10617_v46 }
 0xf5a   : > { %v4120_v15 = vpop.xlane.xlu1 %4119  ;;  %v4111_v2 = vpop.xlane.xlu0 %4110 }
 0xf5b   : > { %5669 = vpow2.f32 %v4177_v31  ;;  %v10620_v45 = vsub.f32 %v4058_v26, %v4120_v15  ;;  %v10623_v25 = vsub.f32 %v10543_v28, %v4111_v2 }
 0xf5d   : > { %v4179_v9 = vmul.f32 1.442695, %v10620_v45  ;;  %v4173_v61 = vmul.f32 1.442695, %v10623_v25 }
 0xf5e   : > { %v4114_v32 = vpop.xlane.xlu1 %4113  ;;  %v4147_v47 = vpop.xlane.xlu0 %4146 }
 0xf5f   : > { %5671 = vpow2.f32 %v4179_v9  ;;  %v10628_v30 = vsub.f32 %v10552_v60, %v4114_v32  ;;  %v10631_v23 = vsub.f32 %v10549_v13, %v4147_v47 }
 0xf60   : > { %5673 = vpow2.f32 %v4173_v61 }
 0xf61   : > { %v4175_v7 = vmul.f32 1.442695, %v10628_v30  ;;  %v4197_v19 = vmul.f32 1.442695, %v10631_v23 }
 0xf62   : > { %v4150_v39 = vpop.xlane.xlu1 %4149  ;;  %v4129_v0 = vpop.xlane.xlu0 %4128 }
 0xf63   : > { %5675 = vpow2.f32 %v4175_v7  ;;  %v10636_v49 = vsub.f32 %v10558_v29, %v4150_v39  ;;  %v10639_v48 = vsub.f32 %v10561_v50, %v4129_v0 }
 0xf64   : > { %5677 = vpow2.f32 %v4197_v19 }
 0xf65   : > { %v4199_v43 = vmul.f32 1.442695, %v10636_v49  ;;  %v4185_v41 = vmul.f32 1.442695, %v10639_v48 }
 0xf66   : > { %v4132_v28 = vpop.xlane.xlu1 %4131  ;;  %v4123_v21 = vpop.xlane.xlu0 %4122 }
 0xf67   : > { %5679 = vpow2.f32 %v4199_v43  ;;  %v10644_v56 = vsub.f32 %v10571_v10, %v4132_v28  ;;  %v10647_v14 = vsub.f32 %v10568_v5, %v4123_v21 }
 0xf68   : > { %v5670_v26 = vpop.eup %5669  ;;  %5681 = vpow2.f32 %v4185_v41 }
 0xf69   : > { %v4187_v3 = vmul.f32 1.442695, %v10644_v56  ;;  %v4181_v13 = vmul.f32 1.442695, %v10647_v14  ;;  %v4211_v60 = vsel %vm12529_vm7, %v5670_v26, 0.0  ;;  %vm12544_vm7 = vmmov %vm12528_vm0 }
 0xf6a   : > { %v4126_v17 = vpop.xlane.xlu1 %4125  ;;  %4212 = vadd.xlane.f32.xlu0 %v4211_v60  ;;  %v4141_v22 = vpop.xlane.xlu0 %4140 }
 0xf6b   : > { %5683 = vpow2.f32 %v4187_v3  ;;  %v10653_v42 = vsub.f32 %v10578_v63, %v4126_v17  ;;  %v10656_v40 = vsub.f32 %v10581_v58, %v4141_v22 }
 0xf6c   : > { %v5672_v55 = vpop.eup %5671  ;;  %5685 = vpow2.f32 %v4181_v13 }
 0xf6d   : > { %v5674_v29 = vpop.eup %5673  ;;  %v4183_v50 = vmul.f32 1.442695, %v10653_v42  ;;  %v4193_v57 = vmul.f32 1.442695, %v10656_v40  ;;  %v4214_v37 = vsel %vm12530_vm9, %v5672_v55, 0.0  ;;  %vm12545_vm9 = vmmov %vm12528_vm0 }
 0xf6e   : > { %4215 = vadd.xlane.f32.xlu1 %v4214_v37  ;;  %v4144_v24 = vpop.xlane.xlu1 %4143  ;;  %v4205_v1 = vsel %vm12531_vm15, %v5674_v29, 0.0  ;;  %v4135_v5 = vpop.xlane.xlu0 %4134  ;;  %vm12546_vm15 = vmmov %vm12528_vm0 }
 0xf6f   : > { %5687 = vpow2.f32 %v4183_v50  ;;  %v10663_v10 = vsub.f32 %v10591_v8, %v4144_v24  ;;  %4206 = vadd.xlane.f32.xlu0 %v4205_v1  ;;  %v10666_v53 = vsub.f32 %v10588_v62, %v4135_v5 }
 0xf70   : > { %v5676_v12 = vpop.eup %5675  ;;  %5689 = vpow2.f32 %v4193_v57 }
 0xf71   : > { %v5678_v6 = vpop.eup %5677  ;;  %v4195_v51 = vmul.f32 1.442695, %v10663_v10  ;;  %v4189_v63 = vmul.f32 1.442695, %v10666_v53  ;;  %v4208_v58 = vsel %vm12532_vm4, %v5676_v12, 0.0  ;;  %vm12547_vm4 = vmmov %vm12528_vm0 }
 0xf72   : > { %4209 = vadd.xlane.f32.xlu1 %v4208_v58  ;;  %v4138_v18 = vpop.xlane.xlu1 %4137  ;;  %v4241_v27 = vsel %vm12533_vm5, %v5678_v6, 0.0  ;;  %v4153_v38 = vpop.xlane.xlu0 %4152  ;;  %vm12548_vm5 = vmmov %vm12528_vm0 }
 0xf73   : > { %5691 = vpow2.f32 %v4195_v51  ;;  %v10673_v8 = vsub.f32 %v10601_v34, %v4138_v18  ;;  %4242 = vadd.xlane.f32.xlu0 %v4241_v27  ;;  %v10676_v62 = vsub.f32 %v10598_v11, %v4153_v38 }
 0xf74   : > { %v5680_v54 = vpop.eup %5679  ;;  %5693 = vpow2.f32 %v4189_v63 }
 0xf75   : > { %v5682_v33 = vpop.eup %5681  ;;  %v4191_v59 = vmul.f32 1.442695, %v10673_v8  ;;  %v4201_v52 = vmul.f32 1.442695, %v10676_v62  ;;  %v4244_v36 = vsel %vm12534_vm1, %v5680_v54, 0.0  ;;  %vm12549_vm1 = vmmov %vm12528_vm0 }
 0xf76   : > { %4245 = vadd.xlane.f32.xlu1 %v4244_v36  ;;  %v4156_v16 = vpop.xlane.xlu1 %4155  ;;  %v4223_v20 = vsel %vm12535_vm3, %v5682_v33, 0.0  ;;  %vm12550_vm3 = vmmov %vm12528_vm0 }
 0xf77   : > { %5695 = vpow2.f32 %v4191_v59  ;;  %v10683_v34 = vsub.f32 %v10608_v35, %v4156_v16  ;;  %4224 = vadd.xlane.f32.xlu0 %v4223_v20 }
 0xf78   : > { %v5684_v11 = vpop.eup %5683  ;;  %5697 = vpow2.f32 %v4201_v52 }
 0xf79   : > { %v5686_v4 = vpop.eup %5685  ;;  %v4203_v44 = vmul.f32 1.442695, %v10683_v34  ;;  %v4226_v31 = vsel %vm12536_vm14, %v5684_v11, 0.0  ;;  %vm12551_vm14 = vmmov %vm12528_vm0 }
 0xf7a   : > { %4227 = vadd.xlane.f32.xlu1 %v4226_v31  ;;  %v4217_v15 = vsel %vm12537_vm8, %v5686_v4, 0.0  ;;  %vm12552_vm8 = vmmov %vm12528_vm0 }
 0xf7b   : > { %5699 = vpow2.f32 %v4203_v44  ;;  %4218 = vadd.xlane.f32.xlu0 %v4217_v15 }
 0xf7c   : > { %v5688_v2 = vpop.eup %5687 }
 0xf7d   : > { %v5690_v9 = vpop.eup %5689  ;;  %v4220_v61 = vsel %vm12538_vm2, %v5688_v2, 0.0  ;;  %vm12553_vm2 = vmmov %vm12528_vm0 }
 0xf7e   : > { %4221 = vadd.xlane.f32.xlu1 %v4220_v61  ;;  %v4235_v35 = vsel %vm12539_vm13, %v5690_v9, 0.0  ;;  %vm12554_vm13 = vmmov %vm12528_vm0 }
 0xf7f   : > { %4236 = vadd.xlane.f32.xlu0 %v4235_v35 }
 0xf80   : > { %v5692_v32 = vpop.eup %5691 }
 0xf81   : > { %v5694_v47 = vpop.eup %5693  ;;  %v4238_v7 = vsel %vm12540_vm11, %v5692_v32, 0.0  ;;  %vm12555_vm11 = vmmov %vm12528_vm0 }
 0xf82   : > { %4239 = vadd.xlane.f32.xlu1 %v4238_v7  ;;  %v4229_v19 = vsel %vm12541_vm6, %v5694_v47, 0.0  ;;  %vm12556_vm6 = vmmov %vm12528_vm0 }
 0xf83   : > { %4230 = vadd.xlane.f32.xlu0 %v4229_v19 }
 0xf84   : > { %v5696_v39 = vpop.eup %5695 }
 0xf85   : > { %v5698_v0 = vpop.eup %5697  ;;  %v4232_v43 = vsel %vm12542_vm12, %v5696_v39, 0.0  ;;  %vm12557_vm12 = vmmov %vm12528_vm0 }
 0xf86   : > { %4233 = vadd.xlane.f32.xlu1 %v4232_v43  ;;  %v4247_v41 = vsel %vm12543_vm10, %v5698_v0, 0.0  ;;  %vm12558_vm10 = vmmov %vm12528_vm0 }
 0xf87   : > { %4248 = vadd.xlane.f32.xlu0 %v4247_v41 }
 0xf88   : > { %v5700_v28 = vpop.eup %5699 }
 0xf89   : > { %v4250_v21 = vsel %vm12528_vm0, %v5700_v28, 0.0 }
 0xf8a   : > { %4251 = vadd.xlane.f32.xlu1 %v4250_v21 }
 0xff3   : > { %v4213_v26 = vpop.xlane.xlu0 %4212 }
 0xff4   : > { %5701 = vlog2.f32 %v4213_v26 }
 0xff7   : > { %v4216_v3 = vpop.xlane.xlu1 %4215 }
 0xff8   : > { %5703 = vlog2.f32 %v4216_v3  ;;  %v4207_v13 = vpop.xlane.xlu0 %4206 }
 0xff9   : > { %5705 = vlog2.f32 %v4207_v13 }
 0xffb   : > { %v4210_v60 = vpop.xlane.xlu1 %4209 }
 0xffc   : > { %5707 = vlog2.f32 %v4210_v60  ;;  %v4243_v17 = vpop.xlane.xlu0 %4242 }
 0xffd   : > { %5709 = vlog2.f32 %v4243_v17 }
 0xfff   : > { %v4246_v22 = vpop.xlane.xlu1 %4245 }
0x1000   : > { %5711 = vlog2.f32 %v4246_v22  ;;  %v4225_v55 = vpop.xlane.xlu0 %4224 }
0x1001   : > { %v5702_v29 = vpop.eup %5701  ;;  %5713 = vlog2.f32 %v4225_v55 }
0x1002   : > { %v4258_v50 = vmul.f32 0.6931472, %v5702_v29 }
0x1003   : > { %v4228_v57 = vpop.xlane.xlu1 %4227 }
0x1004   : > { %v4287_v37 = vsub.f32 %v10617_v46, %v4258_v50  ;;  %5715 = vlog2.f32 %v4228_v57  ;;  %v4219_v24 = vpop.xlane.xlu0 %4218 }
0x1005   : > { %v5704_v1 = vpop.eup %5703  ;;  %5717 = vlog2.f32 %v4219_v24 }
0x1006   : > { %v5706_v5 = vpop.eup %5705  ;;  %4303 = vst.msk [vmem:[%s10700_s28 + $0x10] sm:$0xff] %vm12544_vm7, %v4287_v37  ;;  %v4260_v12 = vmul.f32 0.6931472, %v5704_v1 }
0x1007   : > { %v4254_v6 = vmul.f32 0.6931472, %v5706_v5  ;;  %v4222_v51 = vpop.xlane.xlu1 %4221 }
0x1008   : > { %v4288_v63 = vsub.f32 %v10620_v45, %v4260_v12  ;;  %5719 = vlog2.f32 %v4222_v51  ;;  %v4237_v58 = vpop.xlane.xlu0 %4236 }
0x1009   : > { %v5708_v18 = vpop.eup %5707  ;;  %v4285_v46 = vsub.f32 %v10623_v25, %v4254_v6  ;;  %5721 = vlog2.f32 %v4237_v58 }
0x100a   : > { %v5710_v27 = vpop.eup %5709  ;;  %4304 = vst.msk [vmem:[%s10700_s28 + $0x18] sm:$0xff] %vm12545_vm9, %v4288_v63  ;;  %v4256_v38 = vmul.f32 0.6931472, %v5708_v18 }
0x100b   : > { %4301 = vst.msk [vmem:[%s10700_s28] sm:$0xff] %vm12546_vm15, %v4285_v46  ;;  %v4278_v54 = vmul.f32 0.6931472, %v5710_v27  ;;  %v4240_v33 = vpop.xlane.xlu1 %4239 }
0x100c   : > { %v4286_v59 = vsub.f32 %v10628_v30, %v4256_v38  ;;  %5723 = vlog2.f32 %v4240_v33  ;;  %v4231_v45 = vpop.xlane.xlu0 %4230 }
0x100d   : > { %v5712_v52 = vpop.eup %5711  ;;  %v4297_v36 = vsub.f32 %v10631_v23, %v4278_v54  ;;  %5725 = vlog2.f32 %v4231_v45 }
0x100e   : > { %v5714_v25 = vpop.eup %5713  ;;  %4302 = vst.msk [vmem:[%s10700_s28 + $0x8] sm:$0xff] %vm12547_vm4, %v4286_v59  ;;  %v4280_v16 = vmul.f32 0.6931472, %v5712_v52 }
0x100f   : > { %4313 = vst.msk [vmem:[%s10700_s28 + $0x60] sm:$0xff] %vm12548_vm5, %v4297_v36  ;;  %v4266_v20 = vmul.f32 0.6931472, %v5714_v25  ;;  %v4234_v11 = vpop.xlane.xlu1 %4233 }
0x1010   : > { %v4298_v4 = vsub.f32 %v10636_v49, %v4280_v16  ;;  %5727 = vlog2.f32 %v4234_v11  ;;  %v4249_v30 = vpop.xlane.xlu0 %4248 }
0x1011   : > { %v5716_v44 = vpop.eup %5715  ;;  %v4291_v31 = vsub.f32 %v10639_v48, %v4266_v20  ;;  %5729 = vlog2.f32 %v4249_v30 }
0x1012   : > { %v5718_v23 = vpop.eup %5717  ;;  %4314 = vst.msk [vmem:[%s10700_s28 + $0x68] sm:$0xff] %vm12549_vm1, %v4298_v4  ;;  %v4268_v15 = vmul.f32 0.6931472, %v5716_v44 }
0x1013   : > { %4307 = vst.msk [vmem:[%s10700_s28 + $0x30] sm:$0xff] %vm12550_vm3, %v4291_v31  ;;  %v4262_v2 = vmul.f32 0.6931472, %v5718_v23  ;;  %v4252_v9 = vpop.xlane.xlu1 %4251 }
0x1014   : > { %v4292_v49 = vsub.f32 %v10644_v56, %v4268_v15  ;;  %5731 = vlog2.f32 %v4252_v9 }
0x1015   : > { %v5720_v61 = vpop.eup %5719  ;;  %v4289_v35 = vsub.f32 %v10647_v14, %v4262_v2 }
0x1016   : > { %v5722_v32 = vpop.eup %5721  ;;  %4308 = vst.msk [vmem:[%s10700_s28 + $0x38] sm:$0xff] %vm12551_vm14, %v4292_v49  ;;  %v4264_v48 = vmul.f32 0.6931472, %v5720_v61 }
0x1017   : > { %4305 = vst.msk [vmem:[%s10700_s28 + $0x20] sm:$0xff] %vm12552_vm8, %v4289_v35  ;;  %v4274_v47 = vmul.f32 0.6931472, %v5722_v32 }
0x1018   : > { %v4290_v7 = vsub.f32 %v10653_v42, %v4264_v48 }
0x1019   : > { %v5724_v19 = vpop.eup %5723  ;;  %v4295_v39 = vsub.f32 %v10656_v40, %v4274_v47 }
0x101a   : > { %v5726_v0 = vpop.eup %5725  ;;  %4306 = vst.msk [vmem:[%s10700_s28 + $0x28] sm:$0xff] %vm12553_vm2, %v4290_v7  ;;  %v4276_v56 = vmul.f32 0.6931472, %v5724_v19 }
0x101b   : > { %4311 = vst.msk [vmem:[%s10700_s28 + $0x50] sm:$0xff] %vm12554_vm13, %v4295_v39  ;;  %v4270_v14 = vmul.f32 0.6931472, %v5726_v0 }
0x101c   : > { %v4296_v43 = vsub.f32 %v10663_v10, %v4276_v56 }
0x101d   : > { %v5728_v41 = vpop.eup %5727  ;;  %v4293_v28 = vsub.f32 %v10666_v53, %v4270_v14 }
0x101e   : > { %v5730_v21 = vpop.eup %5729  ;;  %4312 = vst.msk [vmem:[%s10700_s28 + $0x58] sm:$0xff] %vm12555_vm11, %v4296_v43  ;;  %v4272_v42 = vmul.f32 0.6931472, %v5728_v41 }
0x101f   : > { %4309 = vst.msk [vmem:[%s10700_s28 + $0x40] sm:$0xff] %vm12556_vm6, %v4293_v28  ;;  %v4282_v40 = vmul.f32 0.6931472, %v5730_v21 }
0x1020   : > { %v4294_v26 = vsub.f32 %v10673_v8, %v4272_v42 }
0x1021   : > { %v5732_v3 = vpop.eup %5731  ;;  %v4299_v13 = vsub.f32 %v10676_v62, %v4282_v40 }
0x1022   : > { %4310 = vst.msk [vmem:[%s10700_s28 + $0x48] sm:$0xff] %vm12557_vm12, %v4294_v26  ;;  %v4284_v60 = vmul.f32 0.6931472, %v5732_v3 }
0x1023   : > { %4315 = vst.msk [vmem:[%s10700_s28 + $0x70] sm:$0xff] %vm12558_vm10, %v4299_v13 }
0x1024   : > { %v4300_v10 = vsub.f32 %v10683_v34, %v4284_v60 }
0x1026   : > { %4316 = vst.msk [vmem:[%s10700_s28 + $0x78] sm:$0xff] %vm12528_vm0, %v4300_v10 }
0x1027 PF: > { %s15_s18 = sadd.s32 1, %s5746_s18  }
0x1028   : > { %p12_p4 = scmp.ge.s32.totalorder %s15_s18, 4  }
0x102a   :  { %14 = sbr.rel (!%p12_p4) target bundleno = 1 (0x1), region = 73 }

</bundles_post_ra>
